<compile_context>
chip_gen: v6e
topology: v6e:2x2x1
jax: 0.10.0
libtpu: 0.0.40
codegen_flags: <defaults>
</compile_context>

<pallas_src>
import numpy as np
import jax
import jax.numpy as jnp
from jax import lax
from jax.experimental import pallas as pl
from jax.experimental.pallas import tpu as pltpu

N, C, H, W = 2, 256, 14, 14     # module hard-codes 256 channels & 14x14 spatial
HW = H * W                      # 196 (flattened spatial, on lanes)
CO = 128                        # Conv2d(256 -> 128)
PH = PW = 5                     # MaxPool2d(3, stride=3, padding=1): 14x14 -> 5x5
S = PH * PW                     # 25 pooled positions
EPS = 1e-5


def _shift_lanes(a, k):
    """y[..., l] = a[..., l + k]  (wraps; wrapped tail lanes are never consumed)."""
    return jnp.concatenate([a[:, :, k:], a[:, :, :k]], axis=2)


def _projection_kernel(x_ref, gamma_ref, beta_ref, w_ref, b_ref, sel_ref,
                       mw_ref, mh_ref, dense_ref, glob_ref):
    x = x_ref[...]                                    # (N, C, HW) f32

    # ---- BatchNorm2d(256), training mode: fused one-pass batch statistics ----
    cnt = float(N * HW)
    s1n = jnp.sum(x, axis=2, keepdims=True)           # (N, C, 1) per-sample sums
    s2n = jnp.sum(x * x, axis=2, keepdims=True)       # (N, C, 1)
    mean = jnp.sum(s1n, axis=0, keepdims=True) / cnt  # (1, C, 1)
    ex2 = jnp.sum(s2n, axis=0, keepdims=True) / cnt
    var = jnp.maximum(ex2 - mean * mean, 0.0)         # biased var, clamped >= 0
    inv = lax.rsqrt(var + EPS)
    scale = gamma_ref[...] * inv                      # (1, C, 1)
    shift = beta_ref[...] - mean * scale              # (1, C, 1)

    # ---- AvgPool2d(14): algebraic, reuses the per-sample sums (free) ----
    glob_ref[...] = (s1n * (1.0 / HW)) * scale + shift          # (N, C, 1)

    # ---- normalize (single fused pass) ----
    norm = x * scale + shift                          # (N, C, HW)

    # ---- MaxPool2d(3, stride=3, pad=1) on the lane-flattened 14x14 grid ----
    # window(i,j) covers rows {max(0,3i-1)..3i+1}, cols {max(0,3j-1)..3j+1};
    # its anchor lane is 14*rs_i + cs_j with rs = cs = [0,2,5,8,11].
    # Column (W) direction: running 2- / 3-wide max via +1 / +2 lane shifts.
    c2 = jnp.maximum(norm, _shift_lanes(norm, 1))
    c3 = jnp.maximum(c2, _shift_lanes(norm, 2))
    cmix = jnp.where(mw_ref[...] != 0, c2, c3)        # left-edge windows are 2 wide
    # Row (H) direction: shift by one / two full rows (+14 / +28 lanes).
    r2 = jnp.maximum(cmix, _shift_lanes(cmix, W))
    r3 = jnp.maximum(r2, _shift_lanes(cmix, 2 * W))
    mfull = jnp.where(mh_ref[...] != 0, r2, r3)       # top-edge windows are 2 tall
    # At anchor lanes, mfull now holds the exact pooled value for window (i,j).

    # ---- anchor gather (MXU 0/1 select) + Conv2d(256->128, 1x1) (MXU) ----
    w2 = w_ref[...]                                   # (CO, C)
    bias = b_ref[...]                                 # (CO, 1)
    sel = sel_ref[...]                                # (HW, S) 0/1 anchor selector
    for n in range(N):                                # N = 2, static
        pooled = jnp.dot(mfull[n], sel, preferred_element_type=jnp.float32)   # (C, S)
        dense = jnp.dot(w2, pooled, preferred_element_type=jnp.float32) + bias
        dense_ref[n] = dense                          # (CO, S)


@jax.jit
def projection_forward(x_nchw, gamma, beta, conv_w, conv_b):
    """x_nchw: (N,256,14,14).  Returns (dense (N,128,5,5), glob (N,256,1,1))."""
    # Host-side constants (anchor selector + edge-window masks), built once.
    rs = np.array([0, 2, 5, 8, 11])
    sel_np = np.zeros((HW, S), np.float32)
    for i in range(PH):
        for j in range(PW):
            sel_np[W * rs[i] + rs[j], PH * i + j] = 1.0
    lanes = np.arange(HW)
    mw0 = (lanes % W == 0).astype(np.float32).reshape(1, 1, HW)   # j == 0 windows
    mh0 = (lanes < W).astype(np.float32).reshape(1, 1, HW)        # i == 0 windows

    x3 = x_nchw.reshape(N, C, HW)                     # free view, no transpose
    vmem = pl.BlockSpec(memory_space=pltpu.MemorySpace.VMEM)
    dense3, glob3 = pl.pallas_call(
        _projection_kernel,
        out_shape=(jax.ShapeDtypeStruct((N, CO, S), jnp.float32),
                   jax.ShapeDtypeStruct((N, C, 1), jnp.float32)),
        in_specs=[vmem] * 8,
        out_specs=(vmem, vmem),
    )(x3, gamma.reshape(1, C, 1), beta.reshape(1, C, 1),
      conv_w.reshape(CO, C), conv_b.reshape(CO, 1),
      jnp.asarray(sel_np), jnp.asarray(mw0), jnp.asarray(mh0))
    # Both reshapes below are layout-preserving (no transpose, no copy).
    return dense3.reshape(N, CO, PH, PW), glob3.reshape(N, C, 1, 1)


def reference_forward(x, gamma, beta, conv_w, conv_b):
    """Pure-JAX reference (NCHW) of the PyTorch forward, for validation."""
    mean = x.mean(axis=(0, 2, 3), keepdims=True)
    var = ((x - mean) ** 2).mean(axis=(0, 2, 3), keepdims=True)
    norm = ((x - mean) / jnp.sqrt(var + EPS)) * gamma.reshape(1, C, 1, 1) \
           + beta.reshape(1, C, 1, 1)
    xp = jnp.pad(norm, ((0, 0), (0, 0), (1, 0), (1, 0)),
                 constant_values=-jnp.inf)            # left/top pad only is enough
    pooled = jnp.stack([
        jnp.stack([jnp.max(xp[:, :, 3 * i:3 * i + 3, 3 * j:3 * j + 3], axis=(2, 3))
                   for j in range(PW)], axis=-1)
        for i in range(PH)], axis=-2)                  # (N,C,5,5)
    dense = jnp.einsum('nchw,oc->nohw', pooled, conv_w.reshape(CO, C)) \
            + conv_b.reshape(1, CO, 1, 1)
    glob = norm.mean(axis=(2, 3), keepdims=True)
    return dense, glob


if __name__ == "__main__":
    key = jax.random.PRNGKey(0)
    k1, k2, k3, k4, k5 = jax.random.split(key, 5)
    x = jax.random.normal(k1, (N, C, H, W), dtype=jnp.float32)
    gamma = 1.0 + 0.1 * jax.random.normal(k2, (C,), dtype=jnp.float32)
    beta = 0.1 * jax.random.normal(k3, (C,), dtype=jnp.float32)
    conv_w = jax.random.normal(k4, (CO, C, 1, 1), dtype=jnp.float32) / jnp.sqrt(C)
    conv_b = 0.01 * jax.random.normal(k5, (CO,), dtype=jnp.float32)

    dense, glob = projection_forward(x, gamma, beta, conv_w, conv_b)
    jax.block_until_ready((dense, glob))

    dense_exp, glob_exp = reference_forward(x, gamma, beta, conv_w, conv_b)
    assert dense.shape == (N, CO, PH, PW) and glob.shape == (N, C, 1, 1)
    assert jnp.allclose(dense, dense_exp, rtol=2e-3, atol=2e-3)
    assert jnp.allclose(glob, glob_exp, rtol=2e-3, atol=2e-3)
    print("KERNEL_OK")
</pallas_src>

<mosaic_0001>
module attributes {stable_mosaic.version = 11 : i64} {
  func.func @_projection_kernel(%arg0: memref<2x256x196xf32, #tpu.memory_space<vmem>>, %arg1: memref<1x256x1xf32, #tpu.memory_space<vmem>>, %arg2: memref<1x256x1xf32, #tpu.memory_space<vmem>>, %arg3: memref<128x256xf32, #tpu.memory_space<vmem>>, %arg4: memref<128x1xf32, #tpu.memory_space<vmem>>, %arg5: memref<196x25xf32, #tpu.memory_space<vmem>>, %arg6: memref<1x1x196xf32, #tpu.memory_space<vmem>>, %arg7: memref<1x1x196xf32, #tpu.memory_space<vmem>>, %arg8: memref<2x128x25xf32, #tpu.memory_space<vmem>>, %arg9: memref<2x256x1xf32, #tpu.memory_space<vmem>>) attributes {dimension_semantics = [], scalar_prefetch = 0 : i64, scratch_operands = 0 : i64, tpu.core_type = #tpu.core_type<tc>} {
    %c0 = arith.constant 0 : index
    %c0_0 = arith.constant 0 : index
    %c0_1 = arith.constant 0 : index
    %0 = vector.load %arg0[%c0, %c0_0, %c0_1] : memref<2x256x196xf32, #tpu.memory_space<vmem>>, vector<2x256x196xf32>
    %cst = arith.constant dense<0.000000e+00> : vector<2x256xf32>
    %1 = vector.multi_reduction <add>, %0, %cst [2] : vector<2x256x196xf32> to vector<2x256xf32>
    %2 = vector.shape_cast %1 : vector<2x256xf32> to vector<2x256x1xf32>
    %3 = arith.mulf %0, %0 : vector<2x256x196xf32>
    %cst_2 = arith.constant dense<0.000000e+00> : vector<2x256xf32>
    %4 = vector.multi_reduction <add>, %3, %cst_2 [2] : vector<2x256x196xf32> to vector<2x256xf32>
    %5 = vector.shape_cast %4 : vector<2x256xf32> to vector<2x256x1xf32>
    %cst_3 = arith.constant dense<0.000000e+00> : vector<256x1xf32>
    %6 = vector.multi_reduction <add>, %2, %cst_3 [0] : vector<2x256x1xf32> to vector<256x1xf32>
    %7 = vector.shape_cast %6 : vector<256x1xf32> to vector<1x256x1xf32>
    %cst_4 = arith.constant 3.920000e+02 : f32
    %8 = vector.broadcast %cst_4 : f32 to vector<1x256x1xf32>
    %9 = arith.divf %7, %8 : vector<1x256x1xf32>
    %cst_5 = arith.constant dense<0.000000e+00> : vector<256x1xf32>
    %10 = vector.multi_reduction <add>, %5, %cst_5 [0] : vector<2x256x1xf32> to vector<256x1xf32>
    %11 = vector.shape_cast %10 : vector<256x1xf32> to vector<1x256x1xf32>
    %cst_6 = arith.constant 3.920000e+02 : f32
    %12 = vector.broadcast %cst_6 : f32 to vector<1x256x1xf32>
    %13 = arith.divf %11, %12 : vector<1x256x1xf32>
    %14 = arith.mulf %9, %9 : vector<1x256x1xf32>
    %15 = arith.subf %13, %14 : vector<1x256x1xf32>
    %cst_7 = arith.constant 0.000000e+00 : f32
    %16 = vector.broadcast %cst_7 : f32 to vector<1x256x1xf32>
    %17 = arith.maximumf %15, %16 : vector<1x256x1xf32>
    %cst_8 = arith.constant 9.99999974E-6 : f32
    %18 = vector.broadcast %cst_8 : f32 to vector<1x256x1xf32>
    %19 = arith.addf %17, %18 : vector<1x256x1xf32>
    %20 = math.rsqrt %19 : vector<1x256x1xf32>
    %c0_9 = arith.constant 0 : index
    %c0_10 = arith.constant 0 : index
    %c0_11 = arith.constant 0 : index
    %21 = vector.load %arg1[%c0_9, %c0_10, %c0_11] : memref<1x256x1xf32, #tpu.memory_space<vmem>>, vector<1x256x1xf32>
    %22 = arith.mulf %21, %20 : vector<1x256x1xf32>
    %c0_12 = arith.constant 0 : index
    %c0_13 = arith.constant 0 : index
    %c0_14 = arith.constant 0 : index
    %23 = vector.load %arg2[%c0_12, %c0_13, %c0_14] : memref<1x256x1xf32, #tpu.memory_space<vmem>>, vector<1x256x1xf32>
    %24 = arith.mulf %9, %22 : vector<1x256x1xf32>
    %25 = arith.subf %23, %24 : vector<1x256x1xf32>
    %cst_15 = arith.constant 0.00510204071 : f32
    %26 = vector.broadcast %cst_15 : f32 to vector<2x256x1xf32>
    %27 = arith.mulf %2, %26 : vector<2x256x1xf32>
    %28 = vector.broadcast %22 : vector<1x256x1xf32> to vector<2x256x1xf32>
    %29 = arith.mulf %27, %28 : vector<2x256x1xf32>
    %30 = vector.broadcast %25 : vector<1x256x1xf32> to vector<2x256x1xf32>
    %31 = arith.addf %29, %30 : vector<2x256x1xf32>
    %c0_16 = arith.constant 0 : index
    %c0_17 = arith.constant 0 : index
    %c0_18 = arith.constant 0 : index
    %32 = vector.load %arg9[%c0_16, %c0_17, %c0_18] : memref<2x256x1xf32, #tpu.memory_space<vmem>>, vector<2x256x1xf32>
    tpu.vector_store %arg9[%c0_16, %c0_17, %c0_18], %31 {strides = array<i32>} : memref<2x256x1xf32, #tpu.memory_space<vmem>>, vector<2x256x1xf32>,
    %33 = vector.broadcast %22 : vector<1x256x1xf32> to vector<2x256x196xf32>
    %34 = arith.mulf %0, %33 : vector<2x256x196xf32>
    %35 = vector.broadcast %25 : vector<1x256x1xf32> to vector<2x256x196xf32>
    %36 = arith.addf %34, %35 : vector<2x256x196xf32>
    %37 = vector.extract_strided_slice %36 {offsets = [0, 0, 1], sizes = [2, 256, 195], strides = [1, 1, 1]} : vector<2x256x196xf32> to vector<2x256x195xf32>
    %38 = vector.extract_strided_slice %36 {offsets = [0, 0, 0], sizes = [2, 256, 1], strides = [1, 1, 1]} : vector<2x256x196xf32> to vector<2x256x1xf32>
    %39 = tpu.concatenate %37, %38 in 2 : vector<2x256x195xf32>, vector<2x256x1xf32> -> vector<2x256x196xf32>
    %40 = arith.maximumf %36, %39 : vector<2x256x196xf32>
    %41 = vector.extract_strided_slice %36 {offsets = [0, 0, 2], sizes = [2, 256, 194], strides = [1, 1, 1]} : vector<2x256x196xf32> to vector<2x256x194xf32>
    %42 = vector.extract_strided_slice %36 {offsets = [0, 0, 0], sizes = [2, 256, 2], strides = [1, 1, 1]} : vector<2x256x196xf32> to vector<2x256x2xf32>
    %43 = tpu.concatenate %41, %42 in 2 : vector<2x256x194xf32>, vector<2x256x2xf32> -> vector<2x256x196xf32>
    %44 = arith.maximumf %40, %43 : vector<2x256x196xf32>
    %c0_19 = arith.constant 0 : index
    %c0_20 = arith.constant 0 : index
    %c0_21 = arith.constant 0 : index
    %45 = vector.load %arg6[%c0_19, %c0_20, %c0_21] : memref<1x1x196xf32, #tpu.memory_space<vmem>>, vector<1x1x196xf32>
    %cst_22 = arith.constant 0.000000e+00 : f32
    %46 = vector.broadcast %cst_22 : f32 to vector<1x1x196xf32>
    %47 = arith.cmpf one, %45, %46 : vector<1x1x196xf32>
    %48 = vector.shape_cast %47 : vector<1x1x196xi1> to vector<1x1x196xi1>
    %49 = vector.broadcast %48 : vector<1x1x196xi1> to vector<2x256x196xi1>
    %50 = arith.select %49, %40, %44 : vector<2x256x196xi1>, vector<2x256x196xf32>
    %51 = vector.extract_strided_slice %50 {offsets = [0, 0, 14], sizes = [2, 256, 182], strides = [1, 1, 1]} : vector<2x256x196xf32> to vector<2x256x182xf32>
    %52 = vector.extract_strided_slice %50 {offsets = [0, 0, 0], sizes = [2, 256, 14], strides = [1, 1, 1]} : vector<2x256x196xf32> to vector<2x256x14xf32>
    %53 = tpu.concatenate %51, %52 in 2 : vector<2x256x182xf32>, vector<2x256x14xf32> -> vector<2x256x196xf32>
    %54 = arith.maximumf %50, %53 : vector<2x256x196xf32>
    %55 = vector.extract_strided_slice %50 {offsets = [0, 0, 28], sizes = [2, 256, 168], strides = [1, 1, 1]} : vector<2x256x196xf32> to vector<2x256x168xf32>
    %56 = vector.extract_strided_slice %50 {offsets = [0, 0, 0], sizes = [2, 256, 28], strides = [1, 1, 1]} : vector<2x256x196xf32> to vector<2x256x28xf32>
    %57 = tpu.concatenate %55, %56 in 2 : vector<2x256x168xf32>, vector<2x256x28xf32> -> vector<2x256x196xf32>
    %58 = arith.maximumf %54, %57 : vector<2x256x196xf32>
    %c0_23 = arith.constant 0 : index
    %c0_24 = arith.constant 0 : index
    %c0_25 = arith.constant 0 : index
    %59 = vector.load %arg7[%c0_23, %c0_24, %c0_25] : memref<1x1x196xf32, #tpu.memory_space<vmem>>, vector<1x1x196xf32>
    %cst_26 = arith.constant 0.000000e+00 : f32
    %60 = vector.broadcast %cst_26 : f32 to vector<1x1x196xf32>
    %61 = arith.cmpf one, %59, %60 : vector<1x1x196xf32>
    %62 = vector.shape_cast %61 : vector<1x1x196xi1> to vector<1x1x196xi1>
    %63 = vector.broadcast %62 : vector<1x1x196xi1> to vector<2x256x196xi1>
    %64 = arith.select %63, %54, %58 : vector<2x256x196xi1>, vector<2x256x196xf32>
    %c0_27 = arith.constant 0 : index
    %c0_28 = arith.constant 0 : index
    %65 = vector.load %arg3[%c0_27, %c0_28] : memref<128x256xf32, #tpu.memory_space<vmem>>, vector<128x256xf32>
    %c0_29 = arith.constant 0 : index
    %c0_30 = arith.constant 0 : index
    %66 = vector.load %arg4[%c0_29, %c0_30] : memref<128x1xf32, #tpu.memory_space<vmem>>, vector<128x1xf32>
    %c0_31 = arith.constant 0 : index
    %c0_32 = arith.constant 0 : index
    %67 = vector.load %arg5[%c0_31, %c0_32] : memref<196x25xf32, #tpu.memory_space<vmem>>, vector<196x25xf32>
    %68 = vector.extract_strided_slice %64 {offsets = [0, 0, 0], sizes = [1, 256, 196], strides = [1, 1, 1]} : vector<2x256x196xf32> to vector<1x256x196xf32>
    %69 = vector.shape_cast %68 : vector<1x256x196xf32> to vector<256x196xf32>
    %cst_33 = arith.constant dense<0.000000e+00> : vector<256x25xf32>
    %70 = tpu.matmul %69, %67, %cst_33 {dimension_numbers = #tpu.dot_dimension_numbers<[1], [0], [0], [1], [0, 0, 1, 1], [], []>} : vector<256x196xf32>, vector<196x25xf32>, vector<256x25xf32> -> vector<256x25xf32>
    %cst_34 = arith.constant dense<0.000000e+00> : vector<128x25xf32>
    %71 = tpu.matmul %65, %70, %cst_34 {dimension_numbers = #tpu.dot_dimension_numbers<[1], [0], [0], [1], [0, 0, 1, 1], [], []>} : vector<128x256xf32>, vector<256x25xf32>, vector<128x25xf32> -> vector<128x25xf32>
    %72 = vector.broadcast %66 : vector<128x1xf32> to vector<128x25xf32>
    %73 = arith.addf %71, %72 : vector<128x25xf32>
    %c0_35 = arith.constant 0 : index
    %c0_36 = arith.constant 0 : index
    %c0_37 = arith.constant 0 : index
    %74 = vector.load %arg8[%c0_35, %c0_36, %c0_37] : memref<2x128x25xf32, #tpu.memory_space<vmem>>, vector<1x128x25xf32>
    %75 = vector.shape_cast %74 : vector<1x128x25xf32> to vector<128x25xf32>
    %76 = vector.shape_cast %73 : vector<128x25xf32> to vector<1x128x25xf32>
    tpu.vector_store %arg8[%c0_35, %c0_36, %c0_37], %76 {strides = array<i32>} : memref<2x128x25xf32, #tpu.memory_space<vmem>>, vector<1x128x25xf32>,
    %77 = vector.extract_strided_slice %64 {offsets = [1, 0, 0], sizes = [1, 256, 196], strides = [1, 1, 1]} : vector<2x256x196xf32> to vector<1x256x196xf32>
    %78 = vector.shape_cast %77 : vector<1x256x196xf32> to vector<256x196xf32>
    %cst_38 = arith.constant dense<0.000000e+00> : vector<256x25xf32>
    %79 = tpu.matmul %78, %67, %cst_38 {dimension_numbers = #tpu.dot_dimension_numbers<[1], [0], [0], [1], [0, 0, 1, 1], [], []>} : vector<256x196xf32>, vector<196x25xf32>, vector<256x25xf32> -> vector<256x25xf32>
    %cst_39 = arith.constant dense<0.000000e+00> : vector<128x25xf32>
    %80 = tpu.matmul %65, %79, %cst_39 {dimension_numbers = #tpu.dot_dimension_numbers<[1], [0], [0], [1], [0, 0, 1, 1], [], []>} : vector<128x256xf32>, vector<256x25xf32>, vector<128x25xf32> -> vector<128x25xf32>
    %81 = vector.broadcast %66 : vector<128x1xf32> to vector<128x25xf32>
    %82 = arith.addf %80, %81 : vector<128x25xf32>
    %c1 = arith.constant 1 : index
    %c0_40 = arith.constant 0 : index
    %c0_41 = arith.constant 0 : index
    %83 = vector.load %arg8[%c1, %c0_40, %c0_41] : memref<2x128x25xf32, #tpu.memory_space<vmem>>, vector<1x128x25xf32>
    %84 = vector.shape_cast %83 : vector<1x128x25xf32> to vector<128x25xf32>
    %85 = vector.shape_cast %82 : vector<128x25xf32> to vector<1x128x25xf32>
    tpu.vector_store %arg8[%c1, %c0_40, %c0_41], %85 {strides = array<i32>} : memref<2x128x25xf32, #tpu.memory_space<vmem>>, vector<1x128x25xf32>,
    return
  }
}

</mosaic_0001>

<bundles_post_ra>
// kernel: projection_forward.1
= control target key start
LH: loop header
LB: loop body
LE: loop exit
PB: predicated region body
PF: predicated region fallthrough
CT: control target
= control target key end

     0   :  { %vm159_vm0 = vcmask 556032   ;;  %vm1441_vm2 = vcmask 7168   ;;  %s7937_s28 = smov 127   ;;  %vm2466_vm4 = vcmask 1039360   ;;  %vm3300_vm5 = vcmask 1031168   ;;  %s7942_s17 = smov 40   ;;  %s17135_s0 = inlined_call_operand.vmem [shape: f32[2,256,196], index: 0, kind: input, shape index: {}]   ;;  %s17136_s7 = inlined_call_operand.vmem [shape: f32[1,1,196], index: 7, kind: input, shape index: {}]   ;;  %s17137_s1 = inlined_call_operand.vmem [shape: f32[1,256,1], index: 1, kind: input, shape index: {}]   ;;  %s17138_s2 = inlined_call_operand.vmem [shape: f32[1,256,1], index: 2, kind: input, shape index: {}]   ;;  %s17139_s9 = inlined_call_operand.vmem [shape: f32[2,256,1], index: 9, kind: output, shape index: {1}]   ;;  %s17140_s6 = inlined_call_operand.vmem [shape: f32[1,1,196], index: 6, kind: input, shape index: {}]   ;;  %s17141_s5 = inlined_call_operand.vmem [shape: f32[196,25], index: 5, kind: input, shape index: {}]   ;;  %s17142_s3 = inlined_call_operand.vmem [shape: f32[128,256], index: 3, kind: input, shape index: {}]   ;;  %s17143_s4 = inlined_call_operand.vmem [shape: f32[128,1], index: 4, kind: input, shape index: {}]   ;;  %s17144_s8 = inlined_call_operand.vmem [shape: f32[2,128,25], index: 8, kind: output, shape index: {0}]  }
   0x1   :  { %v7999_v0 = vld [vmem:[%s17135_s0 + $0x20] sm:$0xff]  ;;  %v8004_v1 = vld [vmem:[%s17135_s0 + $0x28] sm:$0xff]  ;;  %v8021_v5 = vld [vmem:[%s17135_s0 + $0x30] sm:$0xff]  ;;  %vm6125_vm7 = vcmask 1043456   ;;  %vm2851_vm8 = vcmask 547840   ;;  %vm3685_vm9 = vcmask 539648  }
   0x2   :  { %v8009_v2 = vld [vmem:[%s17135_s0] sm:$0xff]  ;;  %v168_v3 = vsel %vm159_vm0, %v8004_v1, 0.0  ;;  %v8016_v4 = vld [vmem:[%s17135_s0 + $0x8] sm:$0xff]  ;;  %v8026_v6 = vld [vmem:[%s17135_s0 + $0x38] sm:$0xff]  ;;  %s7944_s18 = smov 114   ;;  %s7945_s21 = smov 100  }
   0x3   :  { %v169_v7 = vadd.f32 %v168_v3, %v7999_v0  ;;  %v160_v8 = vsel %vm159_vm0, %v8016_v4, 0.0  ;;  %v172_v9 = vsel %vm159_vm0, %v8026_v6, 0.0  ;;  %v8036_v10 = vld [vmem:[%s17135_s0 + $0x10] sm:$0xff]  ;;  %v8041_v11 = vld [vmem:[%s17135_s0 + $0x18] sm:$0xff]  ;;  %v8054_v15 = vld [vmem:[%s17135_s0 + $0x48] sm:$0xff]  ;;  %vm4788_vm11 = vcmask 441344  }
   0x4   :  { %v161_v12 = vadd.f32 %v160_v8, %v8009_v2  ;;  %v164_v13 = vsel %vm159_vm0, %v8041_v11, 0.0  ;;  %v8049_v14 = vld [vmem:[%s17135_s0 + $0x58] sm:$0xff]  ;;  %v173_v16 = vadd.f32 %v172_v9, %v8021_v5  ;;  %v8061_v18 = vld [vmem:[%s17135_s0 + $0x50] sm:$0xff]  ;;  %v8068_v20 = vld [vmem:[%s17135_s0 + $0x40] sm:$0xff]  ;;  %v176_v21 = vsel %vm159_vm0, %v8054_v15, 0.0 }
   0x5   :  { %170 = vadd.xlane.f32.xlu1 %v169_v7  ;;  %v165_v17 = vadd.f32 %v164_v13, %v8036_v10  ;;  %v180_v19 = vsel %vm159_vm0, %v8049_v14, 0.0  ;;  %v8075_v22 = vld [vmem:[%s17135_s0 + $0x78] sm:$0xff]  ;;  %v8080_v23 = vld [vmem:[%s17135_s0 + $0x68] sm:$0xff]  ;;  %v177_v25 = vadd.f32 %v176_v21, %v8068_v20  ;;  %v8087_v26 = vld [vmem:[%s17135_s0 + $0x70] sm:$0xff]  ;;  %vm5622_vm12 = vcmask 326656  }
   0x6   :  { %162 = vadd.xlane.f32.xlu0 %v161_v12  ;;  %v181_v24 = vadd.f32 %v180_v19, %v8061_v18  ;;  %v188_v27 = vsel %vm159_vm0, %v8075_v22, 0.0  ;;  %v8094_v28 = vld [vmem:[%s17135_s0 + $0x60] sm:$0xff]  ;;  %v184_v29 = vsel %vm159_vm0, %v8080_v23, 0.0  ;;  %v8101_v30 = vld [vmem:[%s17135_s0 + $0x98] sm:$0xff]  ;;  %v8106_v31 = vld [vmem:[%s17135_s0 + $0x88] sm:$0xff]  ;;  %vm4403_vm13 = vcmask 932864  }
   0x7   :  { %v189_v32 = vadd.f32 %v188_v27, %v8087_v26  ;;  %v185_v33 = vadd.f32 %v184_v29, %v8094_v28  ;;  %v8113_v34 = vld [vmem:[%s17135_s0 + $0x90] sm:$0xff]  ;;  %v196_v35 = vsel %vm159_vm0, %v8101_v30, 0.0  ;;  %v8120_v36 = vld [vmem:[%s17135_s0 + $0x80] sm:$0xff]  ;;  %v192_v37 = vsel %vm159_vm0, %v8106_v31, 0.0  ;;  %v8127_v38 = vld [vmem:[%s17135_s0 + $0xb8] sm:$0xff] }
   0x8   :  { %v8132_v39 = vld [vmem:[%s17135_s0 + $0xa8] sm:$0xff]  ;;  %v197_v40 = vadd.f32 %v196_v35, %v8113_v34  ;;  %v193_v41 = vadd.f32 %v192_v37, %v8120_v36  ;;  %v8139_v42 = vld [vmem:[%s17135_s0 + $0xb0] sm:$0xff]  ;;  %v204_v43 = vsel %vm159_vm0, %v8127_v38, 0.0  ;;  %v8146_v44 = vld [vmem:[%s17135_s0 + $0xa0] sm:$0xff]  ;;  %vm5237_vm15 = vcmask 818176  }
   0x9   :  { %174 = vadd.xlane.f32.xlu1 %v173_v16  ;;  %v200_v45 = vsel %vm159_vm0, %v8132_v39, 0.0  ;;  %v8153_v46 = vld [vmem:[%s17135_s0 + $0xd8] sm:$0xff]  ;;  %v8158_v47 = vld [vmem:[%s17135_s0 + $0xc8] sm:$0xff]  ;;  %v205_v48 = vadd.f32 %v204_v43, %v8139_v42  ;;  %v8165_v50 = vld [vmem:[%s17135_s0 + $0xd0] sm:$0xff] }
   0xa   :  { %166 = vadd.xlane.f32.xlu0 %v165_v17  ;;  %v201_v49 = vadd.f32 %v200_v45, %v8146_v44  ;;  %v212_v51 = vsel %vm159_vm0, %v8153_v46, 0.0  ;;  %v8172_v52 = vld [vmem:[%s17135_s0 + $0xc0] sm:$0xff]  ;;  %v208_v53 = vsel %vm159_vm0, %v8158_v47, 0.0  ;;  %v8179_v54 = vld [vmem:[%s17135_s0 + $0xf8] sm:$0xff]  ;;  %v8184_v55 = vld [vmem:[%s17135_s0 + $0xe8] sm:$0xff] }
   0xb   :  { %v213_v56 = vadd.f32 %v212_v51, %v8165_v50  ;;  %v209_v57 = vadd.f32 %v208_v53, %v8172_v52  ;;  %v8191_v58 = vld [vmem:[%s17135_s0 + $0xf0] sm:$0xff]  ;;  %v220_v59 = vsel %vm159_vm0, %v8179_v54, 0.0  ;;  %v8198_v60 = vld [vmem:[%s17135_s0 + $0xe0] sm:$0xff]  ;;  %v216_v61 = vsel %vm159_vm0, %v8184_v55, 0.0  ;;  %v8205_v62 = vld [vmem:[%s17135_s0 + $0x118] sm:$0xff] }
   0xc   :  { %v8210_v63 = vld [vmem:[%s17135_s0 + $0x108] sm:$0xff]  ;;  %v221_v3 = vadd.f32 %v220_v59, %v8191_v58  ;;  %v217_v7 = vadd.f32 %v216_v61, %v8198_v60  ;;  %v8217_v8 = vld [vmem:[%s17135_s0 + $0x110] sm:$0xff]  ;;  %v228_v9 = vsel %vm159_vm0, %v8205_v62, 0.0  ;;  %v8224_v12 = vld [vmem:[%s17135_s0 + $0x100] sm:$0xff] }
   0xd   :  { %182 = vadd.xlane.f32.xlu1 %v181_v24  ;;  %v224_v13 = vsel %vm159_vm0, %v8210_v63, 0.0  ;;  %v8231_v16 = vld [vmem:[%s17135_s0 + $0x138] sm:$0xff]  ;;  %v8236_v17 = vld [vmem:[%s17135_s0 + $0x128] sm:$0xff]  ;;  %v229_v19 = vadd.f32 %v228_v9, %v8217_v8  ;;  %v8243_v24 = vld [vmem:[%s17135_s0 + $0x130] sm:$0xff] }
   0xe   :  { %178 = vadd.xlane.f32.xlu0 %v177_v25  ;;  %v225_v21 = vadd.f32 %v224_v13, %v8224_v12  ;;  %v236_v25 = vsel %vm159_vm0, %v8231_v16, 0.0  ;;  %v8250_v27 = vld [vmem:[%s17135_s0 + $0x120] sm:$0xff]  ;;  %v232_v29 = vsel %vm159_vm0, %v8236_v17, 0.0 }
   0xf   :  { %v237_v35 = vadd.f32 %v236_v25, %v8243_v24  ;;  %v233_v37 = vadd.f32 %v232_v29, %v8250_v27  ;;  %v8276_v43 = vld [vmem:[%s17135_s0 + $0x140] sm:$0xff] }
  0x10   :  { %v8302_v59 = vld [vmem:[%s17135_s0 + $0x160] sm:$0xff] }
  0x11   :  { %190 = vadd.xlane.f32.xlu1 %v189_v32  ;;  %v8257_v32 = vld [vmem:[%s17135_s0 + $0x158] sm:$0xff]  ;;  %v8328_v25 = vld [vmem:[%s17135_s0 + $0x180] sm:$0xff] }
  0x12   :  { %186 = vadd.xlane.f32.xlu0 %v185_v33  ;;  %v8262_v33 = vld [vmem:[%s17135_s0 + $0x148] sm:$0xff]  ;;  %17735 = vst [vmem:[#allocation3_spill] sm:$0xff] %v8328_v25 }
  0x13   :  { %v240_v45 = vsel %vm159_vm0, %v8262_v33, 0.0 }
  0x14   :  { %v241_v53 = vadd.f32 %v240_v45, %v8276_v43 }
  0x15   :  { %198 = vadd.xlane.f32.xlu1 %v197_v40  ;;  %v8269_v40 = vld [vmem:[%s17135_s0 + $0x150] sm:$0xff] }
  0x16   :  { %194 = vadd.xlane.f32.xlu0 %v193_v41  ;;  %v244_v41 = vsel %vm159_vm0, %v8257_v32, 0.0 }
  0x17   :  { %v245_v51 = vadd.f32 %v244_v41, %v8269_v40 }
  0x19   :  { %206 = vadd.xlane.f32.xlu1 %v205_v48  ;;  %v8283_v48 = vld [vmem:[%s17135_s0 + $0x178] sm:$0xff] }
  0x1a   :  { %202 = vadd.xlane.f32.xlu0 %v201_v49  ;;  %v8288_v49 = vld [vmem:[%s17135_s0 + $0x168] sm:$0xff] }
  0x1b   :  { %v248_v61 = vsel %vm159_vm0, %v8288_v49, 0.0 }
  0x1c   :  { %v249_v13 = vadd.f32 %v248_v61, %v8302_v59 }
  0x1d   :  { %214 = vadd.xlane.f32.xlu1 %v213_v56  ;;  %v8295_v56 = vld [vmem:[%s17135_s0 + $0x170] sm:$0xff] }
  0x1e   :  { %210 = vadd.xlane.f32.xlu0 %v209_v57  ;;  %v252_v57 = vsel %vm159_vm0, %v8283_v48, 0.0 }
  0x1f   :  { %v253_v9 = vadd.f32 %v252_v57, %v8295_v56  ;;  %v8354_v57 = vld [vmem:[%s17135_s0 + $0x1a0] sm:$0xff] }
  0x20   :  { %17739 = vst [vmem:[#allocation7_spill] sm:$0xff] %v8354_v57 }
  0x21   :  { %222 = vadd.xlane.f32.xlu1 %v221_v3  ;;  %v8309_v3 = vld [vmem:[%s17135_s0 + $0x198] sm:$0xff] }
  0x22   :  { %218 = vadd.xlane.f32.xlu0 %v217_v7  ;;  %v8314_v7 = vld [vmem:[%s17135_s0 + $0x188] sm:$0xff] }
  0x23   :  { %v256_v29 = vsel %vm159_vm0, %v8314_v7, 0.0 }
  0x24   :  { %v257_v45 = vadd.f32 %v256_v29, %v8328_v25  ;;  %v8380_v25 = vld [vmem:[%s17135_s0 + $0x1c0] sm:$0xff] }
  0x25   :  { %230 = vadd.xlane.f32.xlu1 %v229_v19  ;;  %v8321_v19 = vld [vmem:[%s17135_s0 + $0x190] sm:$0xff]  ;;  %17743 = vst [vmem:[#allocation11_spill] sm:$0xff] %v8380_v25 }
  0x26   :  { %226 = vadd.xlane.f32.xlu0 %v225_v21  ;;  %17734 = vst [vmem:[#allocation2_spill] sm:$0xff] %v8321_v19  ;;  %v260_v21 = vsel %vm159_vm0, %v8309_v3, 0.0 }
  0x27   :  { %v261_v41 = vadd.f32 %v260_v21, %v8321_v19 }
  0x29   :  { %238 = vadd.xlane.f32.xlu1 %v237_v35  ;;  %v8335_v35 = vld [vmem:[%s17135_s0 + $0x1b8] sm:$0xff] }
  0x2a   :  { %234 = vadd.xlane.f32.xlu0 %v233_v37  ;;  %17736 = vst [vmem:[#allocation4_spill] sm:$0xff] %v8335_v35  ;;  %v8340_v37 = vld [vmem:[%s17135_s0 + $0x1a8] sm:$0xff] }
  0x2b   :  { %17737 = vst [vmem:[#allocation5_spill] sm:$0xff] %v8340_v37  ;;  %v264_v61 = vsel %vm159_vm0, %v8340_v37, 0.0  ;;  %v8373_v37 = vld [vmem:[%s17135_s0 + $0x1d0] sm:$0xff] }
  0x2c   :  { %v265_v29 = vadd.f32 %v264_v61, %v8354_v57  ;;  %17742 = vst [vmem:[#allocation10_spill] sm:$0xff] %v8373_v37 }
  0x2d   :  { %246 = vadd.xlane.f32.xlu1 %v245_v51  ;;  %v8347_v51 = vld [vmem:[%s17135_s0 + $0x1b0] sm:$0xff] }
  0x2e   :  { %242 = vadd.xlane.f32.xlu0 %v241_v53  ;;  %17738 = vst [vmem:[#allocation6_spill] sm:$0xff] %v8347_v51  ;;  %v268_v53 = vsel %vm159_vm0, %v8335_v35, 0.0 }
  0x2f   :  { %v269_v21 = vadd.f32 %v268_v53, %v8347_v51  ;;  %v8392_v53 = vld [vmem:[%s17135_s0 + $0x1e8] sm:$0xff]  ;;  %v8406_v51 = vld [vmem:[%s17135_s0 + $0x1e0] sm:$0xff] }
  0x30   :  { %17745 = vst [vmem:[#allocation13_spill] sm:$0xff] %v8392_v53  ;;  %17747 = vst [vmem:[#allocation15_spill] sm:$0xff] %v8406_v51 }
  0x31   :  { %254 = vadd.xlane.f32.xlu1 %v253_v9  ;;  %v8361_v9 = vld [vmem:[%s17135_s0 + $0x1d8] sm:$0xff] }
  0x32   :  { %250 = vadd.xlane.f32.xlu0 %v249_v13  ;;  %17740 = vst [vmem:[#allocation8_spill] sm:$0xff] %v8361_v9  ;;  %v8366_v13 = vld [vmem:[%s17135_s0 + $0x1c8] sm:$0xff]  ;;  %v276_v35 = vsel %vm159_vm0, %v8361_v9, 0.0 }
  0x33   :  { %17741 = vst [vmem:[#allocation9_spill] sm:$0xff] %v8366_v13  ;;  %v277_v61 = vadd.f32 %v276_v35, %v8373_v37  ;;  %v8413_v35 = vld [vmem:[%s17135_s0 + $0x218] sm:$0xff]  ;;  %v8432_v37 = vld [vmem:[%s17135_s0 + $0x200] sm:$0xff] }
  0x34   :  { %17748 = vst [vmem:[#allocation16_spill] sm:$0xff] %v8413_v35  ;;  %17751 = vst [vmem:[#allocation19_spill] sm:$0xff] %v8432_v37 }
  0x35   :  { %262 = vadd.xlane.f32.xlu1 %v261_v41  ;;  %v272_v41 = vsel %vm159_vm0, %v8366_v13, 0.0  ;;  %v8399_v13 = vld [vmem:[%s17135_s0 + $0x1f0] sm:$0xff] }
  0x36   :  { %258 = vadd.xlane.f32.xlu0 %v257_v45  ;;  %v8387_v45 = vld [vmem:[%s17135_s0 + $0x1f8] sm:$0xff]  ;;  %v273_v9 = vadd.f32 %v272_v41, %v8380_v25  ;;  %17746 = vst [vmem:[#allocation14_spill] sm:$0xff] %v8399_v13  ;;  %v292_v25 = vsel %vm159_vm0, %v8413_v35, 0.0 }
  0x37   :  { %17744 = vst [vmem:[#allocation12_spill] sm:$0xff] %v8387_v45  ;;  %v284_v57 = vsel %vm159_vm0, %v8387_v45, 0.0 }
  0x38   :  { %v285_v41 = vadd.f32 %v284_v57, %v8399_v13  ;;  %v8439_v57 = vld [vmem:[%s17135_s0 + $0x238] sm:$0xff]  ;;  %v8458_v13 = vld [vmem:[%s17135_s0 + $0x220] sm:$0xff] }
  0x39   :  { %270 = vadd.xlane.f32.xlu1 %v269_v21  ;;  %v280_v21 = vsel %vm159_vm0, %v8392_v53, 0.0  ;;  %v8425_v53 = vld [vmem:[%s17135_s0 + $0x210] sm:$0xff]  ;;  %17752 = vst [vmem:[#allocation20_spill] sm:$0xff] %v8439_v57  ;;  %17755 = vst [vmem:[#allocation23_spill] sm:$0xff] %v8458_v13 }
  0x3a   :  { %266 = vadd.xlane.f32.xlu0 %v265_v29  ;;  %v8418_v29 = vld [vmem:[%s17135_s0 + $0x208] sm:$0xff]  ;;  %v281_v45 = vadd.f32 %v280_v21, %v8406_v51  ;;  %17750 = vst [vmem:[#allocation18_spill] sm:$0xff] %v8425_v53  ;;  %v293_v21 = vadd.f32 %v292_v25, %v8425_v53  ;;  %v300_v51 = vsel %vm159_vm0, %v8439_v57, 0.0  ;;  %v8465_v25 = vld [vmem:[%s17135_s0 + $0x258] sm:$0xff]  ;;  %v8484_v53 = vld [vmem:[%s17135_s0 + $0x240] sm:$0xff] }
  0x3b   :  { %17749 = vst [vmem:[#allocation17_spill] sm:$0xff] %v8418_v29  ;;  %17756 = vst [vmem:[#allocation24_spill] sm:$0xff] %v8465_v25 }
  0x3c   :  { %17759 = vst [vmem:[#allocation27_spill] sm:$0xff] %v8484_v53 }
  0x3d   :  { %278 = vadd.xlane.f32.xlu1 %v277_v61  ;;  %v288_v61 = vsel %vm159_vm0, %v8418_v29, 0.0  ;;  %v8451_v29 = vld [vmem:[%s17135_s0 + $0x230] sm:$0xff] }
  0x3e   :  { %274 = vadd.xlane.f32.xlu0 %v273_v9  ;;  %v8444_v9 = vld [vmem:[%s17135_s0 + $0x228] sm:$0xff]  ;;  %v289_v35 = vadd.f32 %v288_v61, %v8432_v37  ;;  %17754 = vst [vmem:[#allocation22_spill] sm:$0xff] %v8451_v29  ;;  %v301_v61 = vadd.f32 %v300_v51, %v8451_v29  ;;  %v308_v37 = vsel %vm159_vm0, %v8465_v25, 0.0  ;;  %v8491_v51 = vld [vmem:[%s17135_s0 + $0x278] sm:$0xff]  ;;  %v8510_v29 = vld [vmem:[%s17135_s0 + $0x260] sm:$0xff] }
  0x3f   :  { %17753 = vst [vmem:[#allocation21_spill] sm:$0xff] %v8444_v9  ;;  %17760 = vst [vmem:[#allocation28_spill] sm:$0xff] %v8491_v51 }
  0x40   :  { %17763 = vst [vmem:[#allocation31_spill] sm:$0xff] %v8510_v29 }
  0x41   :  { %286 = vadd.xlane.f32.xlu1 %v285_v41  ;;  %v296_v41 = vsel %vm159_vm0, %v8444_v9, 0.0  ;;  %v8477_v9 = vld [vmem:[%s17135_s0 + $0x250] sm:$0xff] }
  0x42   :  { %282 = vadd.xlane.f32.xlu0 %v281_v45  ;;  %v8470_v45 = vld [vmem:[%s17135_s0 + $0x248] sm:$0xff]  ;;  %v297_v57 = vadd.f32 %v296_v41, %v8458_v13  ;;  %17758 = vst [vmem:[#allocation26_spill] sm:$0xff] %v8477_v9  ;;  %v309_v41 = vadd.f32 %v308_v37, %v8477_v9  ;;  %v316_v13 = vsel %vm159_vm0, %v8491_v51, 0.0  ;;  %v8517_v37 = vld [vmem:[%s17135_s0 + $0x298] sm:$0xff]  ;;  %v8536_v9 = vld [vmem:[%s17135_s0 + $0x280] sm:$0xff] }
  0x43   :  { %17757 = vst [vmem:[#allocation25_spill] sm:$0xff] %v8470_v45  ;;  %17764 = vst [vmem:[#allocation32_spill] sm:$0xff] %v8517_v37 }
  0x44   :  { %17767 = vst [vmem:[#allocation35_spill] sm:$0xff] %v8536_v9 }
  0x45   :  { %294 = vadd.xlane.f32.xlu1 %v293_v21  ;;  %v304_v21 = vsel %vm159_vm0, %v8470_v45, 0.0  ;;  %v8503_v45 = vld [vmem:[%s17135_s0 + $0x270] sm:$0xff] }
  0x46   :  { %290 = vadd.xlane.f32.xlu0 %v289_v35  ;;  %v8496_v35 = vld [vmem:[%s17135_s0 + $0x268] sm:$0xff]  ;;  %v305_v25 = vadd.f32 %v304_v21, %v8484_v53  ;;  %17762 = vst [vmem:[#allocation30_spill] sm:$0xff] %v8503_v45  ;;  %v317_v21 = vadd.f32 %v316_v13, %v8503_v45  ;;  %v324_v53 = vsel %vm159_vm0, %v8517_v37, 0.0  ;;  %v8543_v13 = vld [vmem:[%s17135_s0 + $0x2b8] sm:$0xff]  ;;  %v8562_v45 = vld [vmem:[%s17135_s0 + $0x2a0] sm:$0xff] }
  0x47   :  { %17761 = vst [vmem:[#allocation29_spill] sm:$0xff] %v8496_v35  ;;  %17768 = vst [vmem:[#allocation36_spill] sm:$0xff] %v8543_v13 }
  0x48   :  { %17771 = vst [vmem:[#allocation39_spill] sm:$0xff] %v8562_v45 }
  0x49   :  { %302 = vadd.xlane.f32.xlu1 %v301_v61  ;;  %v312_v61 = vsel %vm159_vm0, %v8496_v35, 0.0  ;;  %v8529_v35 = vld [vmem:[%s17135_s0 + $0x290] sm:$0xff] }
  0x4a   :  { %298 = vadd.xlane.f32.xlu0 %v297_v57  ;;  %v8522_v57 = vld [vmem:[%s17135_s0 + $0x288] sm:$0xff]  ;;  %v313_v51 = vadd.f32 %v312_v61, %v8510_v29  ;;  %17766 = vst [vmem:[#allocation34_spill] sm:$0xff] %v8529_v35  ;;  %v325_v61 = vadd.f32 %v324_v53, %v8529_v35  ;;  %v332_v29 = vsel %vm159_vm0, %v8543_v13, 0.0  ;;  %v8569_v53 = vld [vmem:[%s17135_s0 + $0x2d8] sm:$0xff]  ;;  %v8588_v35 = vld [vmem:[%s17135_s0 + $0x2c0] sm:$0xff] }
  0x4b   :  { %17765 = vst [vmem:[#allocation33_spill] sm:$0xff] %v8522_v57  ;;  %17772 = vst [vmem:[#allocation40_spill] sm:$0xff] %v8569_v53 }
  0x4c   :  { %17775 = vst [vmem:[#allocation43_spill] sm:$0xff] %v8588_v35 }
  0x4d   :  { %310 = vadd.xlane.f32.xlu1 %v309_v41  ;;  %v320_v41 = vsel %vm159_vm0, %v8522_v57, 0.0  ;;  %v8555_v57 = vld [vmem:[%s17135_s0 + $0x2b0] sm:$0xff] }
  0x4e   :  { %306 = vadd.xlane.f32.xlu0 %v305_v25  ;;  %v8548_v25 = vld [vmem:[%s17135_s0 + $0x2a8] sm:$0xff]  ;;  %v321_v37 = vadd.f32 %v320_v41, %v8536_v9  ;;  %17770 = vst [vmem:[#allocation38_spill] sm:$0xff] %v8555_v57  ;;  %v333_v41 = vadd.f32 %v332_v29, %v8555_v57  ;;  %v340_v9 = vsel %vm159_vm0, %v8569_v53, 0.0  ;;  %v8595_v29 = vld [vmem:[%s17135_s0 + $0x2f8] sm:$0xff]  ;;  %v8614_v57 = vld [vmem:[%s17135_s0 + $0x2e0] sm:$0xff] }
  0x4f   :  { %17769 = vst [vmem:[#allocation37_spill] sm:$0xff] %v8548_v25  ;;  %17776 = vst [vmem:[#allocation44_spill] sm:$0xff] %v8595_v29 }
  0x50   :  { %17779 = vst [vmem:[#allocation47_spill] sm:$0xff] %v8614_v57 }
  0x51   :  { %318 = vadd.xlane.f32.xlu1 %v317_v21  ;;  %v328_v21 = vsel %vm159_vm0, %v8548_v25, 0.0  ;;  %v8581_v25 = vld [vmem:[%s17135_s0 + $0x2d0] sm:$0xff] }
  0x52   :  { %314 = vadd.xlane.f32.xlu0 %v313_v51  ;;  %v8574_v51 = vld [vmem:[%s17135_s0 + $0x2c8] sm:$0xff]  ;;  %v329_v13 = vadd.f32 %v328_v21, %v8562_v45  ;;  %17774 = vst [vmem:[#allocation42_spill] sm:$0xff] %v8581_v25  ;;  %v341_v21 = vadd.f32 %v340_v9, %v8581_v25  ;;  %v348_v45 = vsel %vm159_vm0, %v8595_v29, 0.0  ;;  %v8621_v9 = vld [vmem:[%s17135_s0 + $0x318] sm:$0xff]  ;;  %v8640_v25 = vld [vmem:[%s17135_s0 + $0x300] sm:$0xff] }
  0x53   :  { %17773 = vst [vmem:[#allocation41_spill] sm:$0xff] %v8574_v51  ;;  %17780 = vst [vmem:[#allocation48_spill] sm:$0xff] %v8621_v9 }
  0x54   :  { %17783 = vst [vmem:[#allocation51_spill] sm:$0xff] %v8640_v25 }
  0x55   :  { %326 = vadd.xlane.f32.xlu1 %v325_v61  ;;  %v336_v61 = vsel %vm159_vm0, %v8574_v51, 0.0  ;;  %v8607_v51 = vld [vmem:[%s17135_s0 + $0x2f0] sm:$0xff] }
  0x56   :  { %322 = vadd.xlane.f32.xlu0 %v321_v37  ;;  %v8600_v37 = vld [vmem:[%s17135_s0 + $0x2e8] sm:$0xff]  ;;  %v337_v53 = vadd.f32 %v336_v61, %v8588_v35  ;;  %17778 = vst [vmem:[#allocation46_spill] sm:$0xff] %v8607_v51  ;;  %v349_v61 = vadd.f32 %v348_v45, %v8607_v51  ;;  %v356_v35 = vsel %vm159_vm0, %v8621_v9, 0.0  ;;  %v8647_v45 = vld [vmem:[%s17135_s0 + $0x338] sm:$0xff]  ;;  %v8666_v51 = vld [vmem:[%s17135_s0 + $0x320] sm:$0xff] }
  0x57   :  { %17777 = vst [vmem:[#allocation45_spill] sm:$0xff] %v8600_v37  ;;  %17784 = vst [vmem:[#allocation52_spill] sm:$0xff] %v8647_v45 }
  0x58   :  { %17787 = vst [vmem:[#allocation55_spill] sm:$0xff] %v8666_v51 }
  0x59   :  { %334 = vadd.xlane.f32.xlu1 %v333_v41  ;;  %v344_v41 = vsel %vm159_vm0, %v8600_v37, 0.0  ;;  %v8633_v37 = vld [vmem:[%s17135_s0 + $0x310] sm:$0xff] }
  0x5a   :  { %330 = vadd.xlane.f32.xlu0 %v329_v13  ;;  %v8626_v13 = vld [vmem:[%s17135_s0 + $0x308] sm:$0xff]  ;;  %v345_v29 = vadd.f32 %v344_v41, %v8614_v57  ;;  %17782 = vst [vmem:[#allocation50_spill] sm:$0xff] %v8633_v37  ;;  %v357_v41 = vadd.f32 %v356_v35, %v8633_v37  ;;  %v364_v57 = vsel %vm159_vm0, %v8647_v45, 0.0  ;;  %v8673_v35 = vld [vmem:[%s17135_s0 + $0x358] sm:$0xff]  ;;  %v8692_v37 = vld [vmem:[%s17135_s0 + $0x340] sm:$0xff] }
  0x5b   :  { %17781 = vst [vmem:[#allocation49_spill] sm:$0xff] %v8626_v13  ;;  %17788 = vst [vmem:[#allocation56_spill] sm:$0xff] %v8673_v35 }
  0x5c   :  { %17791 = vst [vmem:[#allocation59_spill] sm:$0xff] %v8692_v37 }
  0x5d   :  { %342 = vadd.xlane.f32.xlu1 %v341_v21  ;;  %v352_v21 = vsel %vm159_vm0, %v8626_v13, 0.0  ;;  %v8659_v13 = vld [vmem:[%s17135_s0 + $0x330] sm:$0xff] }
  0x5e   :  { %338 = vadd.xlane.f32.xlu0 %v337_v53  ;;  %v8652_v53 = vld [vmem:[%s17135_s0 + $0x328] sm:$0xff]  ;;  %v353_v9 = vadd.f32 %v352_v21, %v8640_v25  ;;  %17786 = vst [vmem:[#allocation54_spill] sm:$0xff] %v8659_v13  ;;  %v365_v21 = vadd.f32 %v364_v57, %v8659_v13  ;;  %v372_v25 = vsel %vm159_vm0, %v8673_v35, 0.0  ;;  %v8699_v57 = vld [vmem:[%s17135_s0 + $0x378] sm:$0xff]  ;;  %v8718_v13 = vld [vmem:[%s17135_s0 + $0x360] sm:$0xff] }
  0x5f   :  { %17785 = vst [vmem:[#allocation53_spill] sm:$0xff] %v8652_v53  ;;  %17792 = vst [vmem:[#allocation60_spill] sm:$0xff] %v8699_v57 }
  0x60   :  { %17795 = vst [vmem:[#allocation63_spill] sm:$0xff] %v8718_v13 }
  0x61   :  { %350 = vadd.xlane.f32.xlu1 %v349_v61  ;;  %v360_v61 = vsel %vm159_vm0, %v8652_v53, 0.0  ;;  %v8685_v53 = vld [vmem:[%s17135_s0 + $0x350] sm:$0xff] }
  0x62   :  { %346 = vadd.xlane.f32.xlu0 %v345_v29  ;;  %v8678_v29 = vld [vmem:[%s17135_s0 + $0x348] sm:$0xff]  ;;  %v361_v45 = vadd.f32 %v360_v61, %v8666_v51  ;;  %17790 = vst [vmem:[#allocation58_spill] sm:$0xff] %v8685_v53  ;;  %v373_v61 = vadd.f32 %v372_v25, %v8685_v53  ;;  %v380_v51 = vsel %vm159_vm0, %v8699_v57, 0.0  ;;  %v8725_v25 = vld [vmem:[%s17135_s0 + $0x398] sm:$0xff]  ;;  %v8744_v53 = vld [vmem:[%s17135_s0 + $0x380] sm:$0xff] }
  0x63   :  { %17789 = vst [vmem:[#allocation57_spill] sm:$0xff] %v8678_v29  ;;  %17796 = vst [vmem:[#allocation64_spill] sm:$0xff] %v8725_v25 }
  0x64   :  { %17799 = vst [vmem:[#allocation67_spill] sm:$0xff] %v8744_v53 }
  0x65   :  { %358 = vadd.xlane.f32.xlu1 %v357_v41  ;;  %v368_v41 = vsel %vm159_vm0, %v8678_v29, 0.0  ;;  %v8711_v29 = vld [vmem:[%s17135_s0 + $0x370] sm:$0xff] }
  0x66   :  { %354 = vadd.xlane.f32.xlu0 %v353_v9  ;;  %v8704_v9 = vld [vmem:[%s17135_s0 + $0x368] sm:$0xff]  ;;  %v369_v35 = vadd.f32 %v368_v41, %v8692_v37  ;;  %17794 = vst [vmem:[#allocation62_spill] sm:$0xff] %v8711_v29  ;;  %v381_v41 = vadd.f32 %v380_v51, %v8711_v29  ;;  %v388_v37 = vsel %vm159_vm0, %v8725_v25, 0.0  ;;  %v8751_v51 = vld [vmem:[%s17135_s0 + $0x3b8] sm:$0xff]  ;;  %v8770_v29 = vld [vmem:[%s17135_s0 + $0x3a0] sm:$0xff] }
  0x67   :  { %17793 = vst [vmem:[#allocation61_spill] sm:$0xff] %v8704_v9  ;;  %17800 = vst [vmem:[#allocation68_spill] sm:$0xff] %v8751_v51  ;;  %v396_v25 = vsel %vm159_vm0, %v8751_v51, 0.0 }
  0x68   :  { %17803 = vst [vmem:[#allocation71_spill] sm:$0xff] %v8770_v29 }
  0x69   :  { %366 = vadd.xlane.f32.xlu1 %v365_v21  ;;  %v376_v21 = vsel %vm159_vm0, %v8704_v9, 0.0  ;;  %v8737_v9 = vld [vmem:[%s17135_s0 + $0x390] sm:$0xff] }
  0x6a   :  { %362 = vadd.xlane.f32.xlu0 %v361_v45  ;;  %v8730_v45 = vld [vmem:[%s17135_s0 + $0x388] sm:$0xff]  ;;  %v377_v57 = vadd.f32 %v376_v21, %v8718_v13  ;;  %17798 = vst [vmem:[#allocation66_spill] sm:$0xff] %v8737_v9  ;;  %v389_v21 = vadd.f32 %v388_v37, %v8737_v9  ;;  %v8777_v37 = vld [vmem:[%s17135_s0 + $0x3d8] sm:$0xff]  ;;  %v8796_v9 = vld [vmem:[%s17135_s0 + $0x3c0] sm:$0xff] }
  0x6b   :  { %17797 = vst [vmem:[#allocation65_spill] sm:$0xff] %v8730_v45  ;;  %17804 = vst [vmem:[#allocation72_spill] sm:$0xff] %v8777_v37 }
  0x6c   :  { %17807 = vst [vmem:[#allocation75_spill] sm:$0xff] %v8796_v9 }
  0x6d   :  { %374 = vadd.xlane.f32.xlu1 %v373_v61  ;;  %v384_v61 = vsel %vm159_vm0, %v8730_v45, 0.0  ;;  %v8763_v45 = vld [vmem:[%s17135_s0 + $0x3b0] sm:$0xff] }
  0x6e   :  { %370 = vadd.xlane.f32.xlu0 %v369_v35  ;;  %v8756_v35 = vld [vmem:[%s17135_s0 + $0x3a8] sm:$0xff]  ;;  %v385_v13 = vadd.f32 %v384_v61, %v8744_v53  ;;  %17802 = vst [vmem:[#allocation70_spill] sm:$0xff] %v8763_v45  ;;  %v397_v61 = vadd.f32 %v396_v25, %v8763_v45  ;;  %v404_v53 = vsel %vm159_vm0, %v8777_v37, 0.0  ;;  %v419_v45 = vmul.f32 %v8041_v11, %v8041_v11 }
  0x6f   :  { %17801 = vst [vmem:[#allocation69_spill] sm:$0xff] %v8756_v35  ;;  %v8808_v25 = vld [vmem:[%s17135_s0 + $0x3e8] sm:$0xff] }
  0x70   :  { %17809 = vst [vmem:[#allocation77_spill] sm:$0xff] %v8808_v25 }
  0x71   :  { %382 = vadd.xlane.f32.xlu1 %v381_v41  ;;  %v392_v41 = vsel %vm159_vm0, %v8756_v35, 0.0  ;;  %v8789_v35 = vld [vmem:[%s17135_s0 + $0x3d0] sm:$0xff] }
  0x72   :  { %378 = vadd.xlane.f32.xlu0 %v377_v57  ;;  %v8782_v57 = vld [vmem:[%s17135_s0 + $0x3c8] sm:$0xff]  ;;  %v393_v51 = vadd.f32 %v392_v41, %v8770_v29  ;;  %17806 = vst [vmem:[#allocation74_spill] sm:$0xff] %v8789_v35  ;;  %v405_v41 = vadd.f32 %v404_v53, %v8789_v35  ;;  %v408_v53 = vsel %vm159_vm0, %v8808_v25, 0.0  ;;  %v416_v35 = vmul.f32 %v8009_v2, %v8009_v2 }
  0x73   :  { %17805 = vst [vmem:[#allocation73_spill] sm:$0xff] %v8782_v57  ;;  %v423_v25 = vmul.f32 %v8026_v6, %v8026_v6  ;;  %v420_v2 = vmul.f32 %v7999_v0, %v7999_v0  ;;  %v427_v6 = vmul.f32 %v8049_v14, %v8049_v14  ;;  %v424_v0 = vmul.f32 %v8068_v20, %v8068_v20 }
  0x74   :  { %v431_v14 = vmul.f32 %v8075_v22, %v8075_v22  ;;  %v428_v20 = vmul.f32 %v8094_v28, %v8094_v28  ;;  %v435_v22 = vmul.f32 %v8101_v30, %v8101_v30  ;;  %v432_v28 = vmul.f32 %v8120_v36, %v8120_v36 }
  0x75   :  { %390 = vadd.xlane.f32.xlu1 %v389_v21  ;;  %v400_v21 = vsel %vm159_vm0, %v8782_v57, 0.0  ;;  %v8815_v57 = vld [vmem:[%s17135_s0 + $0x3f0] sm:$0xff]  ;;  %v439_v30 = vmul.f32 %v8127_v38, %v8127_v38  ;;  %v436_v38 = vmul.f32 %v8146_v44, %v8146_v44 }
  0x76   :  { %386 = vadd.xlane.f32.xlu0 %v385_v13  ;;  %v8803_v13 = vld [vmem:[%s17135_s0 + $0x3f8] sm:$0xff]  ;;  %v401_v37 = vadd.f32 %v400_v21, %v8796_v9  ;;  %v548_v9 = vsel %vm159_vm0, %v419_v45, 0.0  ;;  %v556_v45 = vsel %vm159_vm0, %v423_v25, 0.0 }
  0x77   :  { %17808 = vst [vmem:[#allocation76_spill] sm:$0xff] %v8803_v13  ;;  %v412_v29 = vsel %vm159_vm0, %v8803_v13, 0.0  ;;  %v418_v13 = vmul.f32 %v8036_v10, %v8036_v10  ;;  %v422_v10 = vmul.f32 %v8021_v5, %v8021_v5  ;;  %v426_v5 = vmul.f32 %v8061_v18, %v8061_v18 }
  0x78   :  { %v413_v21 = vadd.f32 %v412_v29, %v8815_v57  ;;  %v430_v18 = vmul.f32 %v8087_v26, %v8087_v26  ;;  %v434_v26 = vmul.f32 %v8113_v34, %v8113_v34  ;;  %v588_v36 = vsel %vm159_vm0, %v439_v30, 0.0 }
  0x79   :  { %398 = vadd.xlane.f32.xlu1 %v397_v61  ;;  %v8824_v61 = vld [vmem:[%s17135_s0 + $0x3e0] sm:$0xff]  ;;  %v549_v29 = vadd.f32 %v548_v9, %v418_v13  ;;  %v557_v9 = vadd.f32 %v556_v45, %v422_v10  ;;  %v580_v10 = vsel %vm159_vm0, %v435_v22, 0.0  ;;  %v437_v45 = vmul.f32 %v8132_v39, %v8132_v39 }
  0x7a   :  { %394 = vadd.xlane.f32.xlu0 %v393_v51  ;;  %v417_v51 = vmul.f32 %v8016_v4, %v8016_v4  ;;  %v409_v11 = vadd.f32 %v408_v53, %v8824_v61  ;;  %v421_v4 = vmul.f32 %v8004_v1, %v8004_v1  ;;  %v425_v1 = vmul.f32 %v8054_v15, %v8054_v15 }
  0x7b   :  { %v429_v15 = vmul.f32 %v8080_v23, %v8080_v23  ;;  %v433_v23 = vmul.f32 %v8106_v31, %v8106_v31  ;;  %v581_v34 = vadd.f32 %v580_v10, %v434_v26  ;;  %v584_v39 = vsel %vm159_vm0, %v437_v45, 0.0 }
  0x7c   :  { %v544_v19 = vsel %vm159_vm0, %v417_v51, 0.0  ;;  %v560_v13 = vsel %vm159_vm0, %v425_v1, 0.0  ;;  %v572_v51 = vsel %vm159_vm0, %v431_v14, 0.0  ;;  %v443_v1 = vmul.f32 %v8153_v46, %v8153_v46 }
  0x7d   :  { %406 = vadd.xlane.f32.xlu1 %v405_v41  ;;  %v552_v41 = vsel %vm159_vm0, %v421_v4, 0.0  ;;  %v561_v53 = vadd.f32 %v560_v13, %v424_v0  ;;  %v576_v31 = vsel %vm159_vm0, %v433_v23, 0.0  ;;  %v585_v0 = vadd.f32 %v584_v39, %v436_v38 }
  0x7e   :  { %402 = vadd.xlane.f32.xlu0 %v401_v37  ;;  %v545_v37 = vadd.f32 %v544_v19, %v416_v35  ;;  %v553_v19 = vadd.f32 %v552_v41, %v420_v2  ;;  %v564_v35 = vsel %vm159_vm0, %v427_v6, 0.0  ;;  %v438_v2 = vmul.f32 %v8139_v42, %v8139_v42 }
  0x7f   :  { %v565_v25 = vadd.f32 %v564_v35, %v426_v5  ;;  %v577_v41 = vadd.f32 %v576_v31, %v432_v28  ;;  %v441_v5 = vmul.f32 %v8158_v47, %v8158_v47  ;;  %v596_v44 = vsel %vm159_vm0, %v443_v1, 0.0 }
  0x80   :  { %v589_v42 = vadd.f32 %v588_v36, %v438_v2  ;;  %v440_v46 = vmul.f32 %v8172_v52, %v8172_v52  ;;  %v447_v14 = vmul.f32 %v8179_v54, %v8179_v54  ;;  %v444_v54 = vmul.f32 %v8198_v60, %v8198_v60 }
  0x81   :  { %414 = vadd.xlane.f32.xlu1 %v413_v21  ;;  %v568_v21 = vsel %vm159_vm0, %v429_v15, 0.0  ;;  %v592_v47 = vsel %vm159_vm0, %v441_v5, 0.0  ;;  %v445_v15 = vmul.f32 %v8184_v55, %v8184_v55  ;;  %v449_v22 = vmul.f32 %v8210_v63, %v8210_v63 }
  0x82   :  { %410 = vadd.xlane.f32.xlu0 %v409_v11  ;;  %v573_v11 = vadd.f32 %v572_v51, %v430_v18  ;;  %v604_v52 = vsel %vm159_vm0, %v447_v14, 0.0  ;;  %v451_v51 = vmul.f32 %v8205_v62, %v8205_v62  ;;  %v448_v62 = vmul.f32 %v8224_v12, %v8224_v12 }
  0x83   :  { %v600_v55 = vsel %vm159_vm0, %v445_v15, 0.0  ;;  %v455_v26 = vmul.f32 %v8231_v16, %v8231_v16  ;;  %v608_v63 = vsel %vm159_vm0, %v449_v22, 0.0  ;;  %v453_v10 = vmul.f32 %v8236_v17, %v8236_v17 }
  0x84   :  { %v612_v60 = vsel %vm159_vm0, %v451_v51, 0.0  ;;  %v454_v28 = vmul.f32 %v8243_v24, %v8243_v24  ;;  %v609_v31 = vadd.f32 %v608_v63, %v448_v62  ;;  %v452_v16 = vmul.f32 %v8250_v27, %v8250_v27  ;;  %v17815_v63 = vld [vmem:[#allocation7_spill] sm:$0xff] }
  0x85   :  { %550 = vadd.xlane.f32.xlu1 %v549_v29  ;;  %v569_v29 = vadd.f32 %v568_v21, %v428_v20  ;;  %v450_v21 = vmul.f32 %v8217_v8, %v8217_v8  ;;  %v620_v12 = vsel %vm159_vm0, %v455_v26, 0.0  ;;  %v459_v45 = vmul.f32 %v8257_v32, %v8257_v32 }
  0x86   :  { %546 = vadd.xlane.f32.xlu0 %v545_v37  ;;  %v616_v17 = vsel %vm159_vm0, %v453_v10, 0.0  ;;  %v457_v2 = vmul.f32 %v8262_v33, %v8262_v33  ;;  %v621_v24 = vadd.f32 %v620_v12, %v454_v28  ;;  %v456_v32 = vmul.f32 %v8276_v43, %v8276_v43 }
  0x87   :  { %v613_v8 = vadd.f32 %v612_v60, %v450_v21  ;;  %v617_v38 = vadd.f32 %v616_v17, %v452_v16  ;;  %v628_v27 = vsel %vm159_vm0, %v459_v45, 0.0  ;;  %v463_v1 = vmul.f32 %v8283_v48, %v8283_v48  ;;  %v17814_v21 = vld [vmem:[#allocation6_spill] sm:$0xff]  ;;  %v17817_v16 = vld [vmem:[#allocation9_spill] sm:$0xff] }
  0x88   :  { %v624_v33 = vsel %vm159_vm0, %v457_v2, 0.0  ;;  %v461_v5 = vmul.f32 %v8288_v49, %v8288_v49  ;;  %v460_v48 = vmul.f32 %v8302_v59, %v8302_v59  ;;  %v465_v14 = vmul.f32 %v8314_v7, %v8314_v7  ;;  %v17818_v2 = vld [vmem:[#allocation10_spill] sm:$0xff] }
  0x89   :  { %558 = vadd.xlane.f32.xlu1 %v557_v9  ;;  %v636_v43 = vsel %vm159_vm0, %v463_v1, 0.0  ;;  %v468_v10 = vmul.f32 %v17815_v63, %v17815_v63  ;;  %v473_v45 = vmul.f32 %v17817_v16, %v17817_v16  ;;  %v17829_v16 = vld [vmem:[#allocation21_spill] sm:$0xff] }
  0x8a   :  { %554 = vadd.xlane.f32.xlu0 %v553_v19  ;;  %v442_v19 = vmul.f32 %v8165_v50, %v8165_v50  ;;  %v632_v49 = vsel %vm159_vm0, %v461_v5, 0.0  ;;  %v640_v7 = vsel %vm159_vm0, %v465_v14, 0.0 }
  0x8c   :  { %v597_v50 = vadd.f32 %v596_v44, %v442_v19  ;;  %v467_v44 = vmul.f32 %v8309_v3, %v8309_v3 }
  0x8d   :  { %566 = vadd.xlane.f32.xlu1 %v565_v25  ;;  %v446_v25 = vmul.f32 %v8191_v58, %v8191_v58 }
  0x8e   :  { %562 = vadd.xlane.f32.xlu0 %v561_v53  ;;  %v8874_v4 = vpop.xlane.xlu1 %170  ;;  %v593_v53 = vadd.f32 %v592_v47, %v440_v46  ;;  %v17810_v47 = vld [vmem:[#allocation2_spill] sm:$0xff]  ;;  %v644_v59 = vsel %vm159_vm0, %v467_v44, 0.0 }
  0x8f   :  { %v8881_v37 = vpop.xlane.xlu0 %162  ;;  %v605_v58 = vadd.f32 %v604_v52, %v446_v25  ;;  %v466_v15 = vmul.f32 %v17810_v47, %v17810_v47  ;;  %v633_v25 = vadd.f32 %v632_v49, %v460_v48  ;;  %v17812_v52 = vld [vmem:[#allocation4_spill] sm:$0xff]  ;;  %v17822_v44 = vld [vmem:[#allocation14_spill] sm:$0xff] }
  0x90   :  { %v478_v49 = vmul.f32 %v17822_v44, %v17822_v44 }
  0x91   :  { %574 = vadd.xlane.f32.xlu1 %v573_v11  ;;  %v601_v11 = vadd.f32 %v600_v55, %v444_v54  ;;  %v471_v54 = vmul.f32 %v17812_v52, %v17812_v52  ;;  %v17813_v55 = vld [vmem:[#allocation5_spill] sm:$0xff] }
  0x92   :  { %570 = vadd.xlane.f32.xlu0 %v569_v29  ;;  %v8888_v6 = vpop.xlane.xlu1 %174  ;;  %v469_v22 = vmul.f32 %v17813_v55, %v17813_v55 }
  0x93   :  { %v8895_v9 = vpop.xlane.xlu0 %166  ;;  %v652_v26 = vsel %vm159_vm0, %v471_v54, 0.0  ;;  %v17825_v54 = vld [vmem:[#allocation17_spill] sm:$0xff] }
  0x94   :  { %v648_v12 = vsel %vm159_vm0, %v469_v22, 0.0  ;;  %v17826_v22 = vld [vmem:[#allocation18_spill] sm:$0xff] }
  0x95   :  { %582 = vadd.xlane.f32.xlu1 %v581_v34 }
  0x96   :  { %578 = vadd.xlane.f32.xlu0 %v577_v41  ;;  %v8902_v35 = vpop.xlane.xlu1 %182  ;;  %v458_v41 = vmul.f32 %v8269_v40, %v8269_v40 }
  0x97   :  { %v8909_v13 = vpop.xlane.xlu0 %178 }
  0x98   :  { %v629_v40 = vadd.f32 %v628_v27, %v458_v41 }
  0x99   :  { %590 = vadd.xlane.f32.xlu1 %v589_v42  ;;  %v462_v42 = vmul.f32 %v8295_v56, %v8295_v56 }
  0x9a   :  { %586 = vadd.xlane.f32.xlu0 %v585_v0  ;;  %v8916_v18 = vpop.xlane.xlu1 %190  ;;  %v625_v0 = vadd.f32 %v624_v33, %v456_v32  ;;  %v17819_v32 = vld [vmem:[#allocation11_spill] sm:$0xff]  ;;  %v17820_v33 = vld [vmem:[#allocation12_spill] sm:$0xff] }
  0x9b   :  { %v8923_v20 = vpop.xlane.xlu0 %186  ;;  %v637_v56 = vadd.f32 %v636_v43, %v462_v42  ;;  %v472_v1 = vmul.f32 %v17819_v32, %v17819_v32  ;;  %v479_v5 = vmul.f32 %v17820_v33, %v17820_v33  ;;  %v656_v42 = vsel %vm159_vm0, %v473_v45, 0.0 }
  0x9c   :  { %v485_v45 = vmul.f32 %v17829_v16, %v17829_v16  ;;  %v17839_v16 = vld [vmem:[#allocation31_spill] sm:$0xff] }
  0x9d   :  { %598 = vadd.xlane.f32.xlu1 %v597_v50  ;;  %v668_v47 = vsel %vm159_vm0, %v479_v5, 0.0  ;;  %v17832_v5 = vld [vmem:[#allocation24_spill] sm:$0xff] }
  0x9e   :  { %594 = vadd.xlane.f32.xlu0 %v593_v53  ;;  %v8930_v23 = vpop.xlane.xlu1 %198  ;;  %v17811_v53 = vld [vmem:[#allocation3_spill] sm:$0xff]  ;;  %v669_v55 = vadd.f32 %v668_v47, %v478_v49 }
  0x9f   :  { %v8937_v29 = vpop.xlane.xlu0 %194  ;;  %v464_v3 = vmul.f32 %v17811_v53, %v17811_v53 }
  0xa1   :  { %606 = vadd.xlane.f32.xlu1 %v605_v58  ;;  %v645_v58 = vadd.f32 %v644_v59, %v466_v15  ;;  %v641_v62 = vadd.f32 %v640_v7, %v464_v3  ;;  %v17823_v15 = vld [vmem:[#allocation15_spill] sm:$0xff]  ;;  %v17824_v59 = vld [vmem:[#allocation16_spill] sm:$0xff]  ;;  %v481_v7 = vmul.f32 %v17825_v54, %v17825_v54 }
  0xa2   :  { %602 = vadd.xlane.f32.xlu0 %v601_v11  ;;  %v8944_v30 = vpop.xlane.xlu1 %206  ;;  %v470_v11 = vmul.f32 %v17814_v21, %v17814_v21  ;;  %v483_v53 = vmul.f32 %v17824_v59, %v17824_v59  ;;  %v17836_v54 = vld [vmem:[#allocation28_spill] sm:$0xff] }
  0xa3   :  { %v8951_v34 = vpop.xlane.xlu0 %202 }
  0xa4   :  { %v653_v17 = vadd.f32 %v652_v26, %v470_v11  ;;  %v17827_v26 = vld [vmem:[#allocation19_spill] sm:$0xff] }
  0xa5   :  { %614 = vadd.xlane.f32.xlu1 %v613_v8  ;;  %v17816_v8 = vld [vmem:[#allocation8_spill] sm:$0xff]  ;;  %v480_v63 = vmul.f32 %v17827_v26, %v17827_v26  ;;  %v17838_v26 = vld [vmem:[#allocation30_spill] sm:$0xff] }
  0xa6   :  { %610 = vadd.xlane.f32.xlu0 %v609_v31  ;;  %v8958_v36 = vpop.xlane.xlu1 %214  ;;  %v475_v28 = vmul.f32 %v17816_v8, %v17816_v8 }
  0xa7   :  { %v8965_v39 = vpop.xlane.xlu0 %210 }
  0xa8   :  { %v660_v27 = vsel %vm159_vm0, %v475_v28, 0.0 }
  0xa9   :  { %622 = vadd.xlane.f32.xlu1 %v621_v24  ;;  %v474_v24 = vmul.f32 %v17818_v2, %v17818_v2  ;;  %v17830_v2 = vld [vmem:[#allocation22_spill] sm:$0xff] }
  0xaa   :  { %618 = vadd.xlane.f32.xlu0 %v617_v38  ;;  %v8972_v19 = vpop.xlane.xlu1 %222  ;;  %v649_v38 = vadd.f32 %v648_v12, %v468_v10  ;;  %v17828_v10 = vld [vmem:[#allocation20_spill] sm:$0xff]  ;;  %v672_v12 = vsel %vm159_vm0, %v481_v7, 0.0  ;;  %v495_v7 = vmul.f32 %v17836_v54, %v17836_v54 }
  0xab   :  { %v8979_v46 = vpop.xlane.xlu0 %218  ;;  %v661_v48 = vadd.f32 %v660_v27, %v474_v24  ;;  %v487_v8 = vmul.f32 %v17828_v10, %v17828_v10  ;;  %v486_v24 = vmul.f32 %v17830_v2, %v17830_v2  ;;  %v673_v27 = vadd.f32 %v672_v12, %v480_v63 }
  0xac   :  { %v494_v63 = vmul.f32 %v17838_v26, %v17838_v26  ;;  %v700_v12 = vsel %vm159_vm0, %v495_v7, 0.0 }
  0xad   :  { %630 = vadd.xlane.f32.xlu1 %v629_v40  ;;  %v684_v32 = vsel %vm159_vm0, %v487_v8, 0.0 }
  0xae   :  { %626 = vadd.xlane.f32.xlu0 %v625_v0  ;;  %v8986_v50 = vpop.xlane.xlu1 %230  ;;  %v17821_v0 = vld [vmem:[#allocation13_spill] sm:$0xff]  ;;  %v685_v49 = vadd.f32 %v684_v32, %v486_v24 }
  0xaf   :  { %v8993_v51 = vpop.xlane.xlu0 %226  ;;  %v477_v43 = vmul.f32 %v17821_v0, %v17821_v0  ;;  %v17842_v32 = vld [vmem:[#allocation33_spill] sm:$0xff] }
  0xb1   :  { %638 = vadd.xlane.f32.xlu1 %v637_v56  ;;  %v657_v56 = vadd.f32 %v656_v42, %v472_v1  ;;  %v664_v52 = vsel %vm159_vm0, %v477_v43, 0.0  ;;  %v17831_v1 = vld [vmem:[#allocation23_spill] sm:$0xff]  ;;  %v491_v42 = vmul.f32 %v17832_v5, %v17832_v5  ;;  %v680_v43 = vsel %vm159_vm0, %v485_v45, 0.0  ;;  %v17843_v5 = vld [vmem:[#allocation34_spill] sm:$0xff] }
  0xb2   :  { %634 = vadd.xlane.f32.xlu0 %v633_v25  ;;  %v9000_v60 = vpop.xlane.xlu1 %238  ;;  %v476_v25 = vmul.f32 %v17823_v15, %v17823_v15  ;;  %v484_v33 = vmul.f32 %v17831_v1, %v17831_v1  ;;  %v492_v45 = vmul.f32 %v17839_v16, %v17839_v16  ;;  %v497_v1 = vmul.f32 %v17842_v32, %v17842_v32 }
  0xb3   :  { %v9007_v31 = vpop.xlane.xlu0 %234  ;;  %v692_v59 = vsel %vm159_vm0, %v491_v42, 0.0  ;;  %v498_v42 = vmul.f32 %v17843_v5, %v17843_v5 }
  0xb4   :  { %v665_v11 = vadd.f32 %v664_v52, %v476_v25  ;;  %v681_v25 = vadd.f32 %v680_v43, %v484_v33  ;;  %v701_v33 = vadd.f32 %v700_v12, %v494_v63  ;;  %v17848_v63 = vld [vmem:[#allocation39_spill] sm:$0xff]  ;;  %v17849_v12 = vld [vmem:[#allocation40_spill] sm:$0xff] }
  0xb5   :  { %646 = vadd.xlane.f32.xlu1 %v645_v58  ;;  %v482_v58 = vmul.f32 %v17826_v22, %v17826_v22  ;;  %v507_v16 = vmul.f32 %v17849_v12, %v17849_v12 }
  0xb6   :  { %642 = vadd.xlane.f32.xlu0 %v641_v62  ;;  %v9014_v41 = vpop.xlane.xlu1 %246  ;;  %v676_v62 = vsel %vm159_vm0, %v483_v53, 0.0  ;;  %v17835_v53 = vld [vmem:[#allocation27_spill] sm:$0xff] }
  0xb7   :  { %v9021_v40 = vpop.xlane.xlu0 %242  ;;  %v488_v52 = vmul.f32 %v17835_v53, %v17835_v53  ;;  %v704_v53 = vsel %vm159_vm0, %v497_v1, 0.0  ;;  %v17851_v1 = vld [vmem:[#allocation42_spill] sm:$0xff] }
  0xb9   :  { %654 = vadd.xlane.f32.xlu1 %v653_v17  ;;  %v677_v17 = vadd.f32 %v676_v62, %v482_v58  ;;  %v17837_v58 = vld [vmem:[#allocation29_spill] sm:$0xff] }
  0xba   :  { %650 = vadd.xlane.f32.xlu0 %v649_v38  ;;  %v9028_v14 = vpop.xlane.xlu1 %254 }
  0xbb   :  { %v9035_v3 = vpop.xlane.xlu0 %250 }
  0xbd   :  { %662 = vadd.xlane.f32.xlu1 %v661_v48  ;;  %v17833_v48 = vld [vmem:[#allocation25_spill] sm:$0xff] }
  0xbe   :  { %658 = vadd.xlane.f32.xlu0 %v657_v56  ;;  %v9042_v21 = vpop.xlane.xlu1 %262  ;;  %v489_v44 = vmul.f32 %v17833_v48, %v17833_v48  ;;  %v17834_v56 = vld [vmem:[#allocation26_spill] sm:$0xff] }
  0xbf   :  { %v9049_v28 = vpop.xlane.xlu0 %258  ;;  %v490_v47 = vmul.f32 %v17834_v56, %v17834_v56 }
  0xc0   :  { %v688_v22 = vsel %vm159_vm0, %v489_v44, 0.0 }
  0xc1   :  { %670 = vadd.xlane.f32.xlu1 %v669_v55  ;;  %v693_v62 = vadd.f32 %v692_v59, %v490_v47  ;;  %v689_v8 = vadd.f32 %v688_v22, %v488_v52  ;;  %v17845_v47 = vld [vmem:[#allocation36_spill] sm:$0xff]  ;;  %v17846_v52 = vld [vmem:[#allocation37_spill] sm:$0xff]  ;;  %v17847_v22 = vld [vmem:[#allocation38_spill] sm:$0xff] }
  0xc2   :  { %666 = vadd.xlane.f32.xlu0 %v665_v11  ;;  %v9056_v38 = vpop.xlane.xlu1 %270  ;;  %v493_v11 = vmul.f32 %v17837_v58, %v17837_v58  ;;  %v501_v54 = vmul.f32 %v17846_v52, %v17846_v52  ;;  %v502_v58 = vmul.f32 %v17847_v22, %v17847_v22  ;;  %v17854_v52 = vld [vmem:[#allocation45_spill] sm:$0xff]  ;;  %v17855_v22 = vld [vmem:[#allocation46_spill] sm:$0xff] }
  0xc3   :  { %v9063_v0 = vpop.xlane.xlu0 %266 }
  0xc5   :  { %678 = vadd.xlane.f32.xlu1 %v677_v17  ;;  %v17840_v17 = vld [vmem:[#allocation32_spill] sm:$0xff] }
  0xc6   :  { %674 = vadd.xlane.f32.xlu0 %v673_v27  ;;  %v9070_v15 = vpop.xlane.xlu1 %278  ;;  %v499_v2 = vmul.f32 %v17840_v17, %v17840_v17  ;;  %v696_v27 = vsel %vm159_vm0, %v493_v11, 0.0  ;;  %v712_v17 = vsel %vm159_vm0, %v501_v54, 0.0  ;;  %v509_v54 = vmul.f32 %v17854_v52, %v17854_v52  ;;  %v17861_v52 = vld [vmem:[#allocation52_spill] sm:$0xff] }
  0xc7   :  { %v9077_v55 = vpop.xlane.xlu0 %274  ;;  %v697_v48 = vadd.f32 %v696_v27, %v492_v45 }
  0xc8   :  { %v708_v44 = vsel %vm159_vm0, %v499_v2, 0.0  ;;  %v17850_v2 = vld [vmem:[#allocation41_spill] sm:$0xff] }
  0xc9   :  { %686 = vadd.xlane.f32.xlu1 %v685_v49  ;;  %v17844_v49 = vld [vmem:[#allocation35_spill] sm:$0xff]  ;;  %v709_v7 = vadd.f32 %v708_v44, %v498_v42  ;;  %v505_v27 = vmul.f32 %v17850_v2, %v17850_v2 }
  0xca   :  { %682 = vadd.xlane.f32.xlu0 %v681_v25  ;;  %v9084_v10 = vpop.xlane.xlu1 %286  ;;  %v496_v56 = vmul.f32 %v17844_v49, %v17844_v49  ;;  %v503_v25 = vmul.f32 %v17845_v47, %v17845_v47  ;;  %v17852_v44 = vld [vmem:[#allocation43_spill] sm:$0xff] }
  0xcb   :  { %v9091_v24 = vpop.xlane.xlu0 %282  ;;  %v504_v49 = vmul.f32 %v17852_v44, %v17852_v44 }
  0xcc   :  { %17841 = vst [vmem:[#allocation2_spill] sm:$0xff] %v9091_v24  ;;  %v716_v26 = vsel %vm159_vm0, %v503_v25, 0.0  ;;  %v17872_v24 = vld [vmem:[#allocation60_spill] sm:$0xff] }
  0xcd   :  { %694 = vadd.xlane.f32.xlu1 %v693_v62  ;;  %v705_v62 = vadd.f32 %v704_v53, %v496_v56  ;;  %v717_v32 = vadd.f32 %v716_v26, %v502_v58  ;;  %v17853_v56 = vld [vmem:[#allocation44_spill] sm:$0xff]  ;;  %v720_v53 = vsel %vm159_vm0, %v505_v27, 0.0  ;;  %v510_v58 = vmul.f32 %v17855_v22, %v17855_v22 }
  0xce   :  { %690 = vadd.xlane.f32.xlu0 %v689_v8  ;;  %v9098_v43 = vpop.xlane.xlu1 %294  ;;  %v500_v8 = vmul.f32 %v17848_v63, %v17848_v63  ;;  %v511_v47 = vmul.f32 %v17853_v56, %v17853_v56  ;;  %v721_v26 = vadd.f32 %v720_v53, %v504_v49  ;;  %v728_v27 = vsel %vm159_vm0, %v509_v54, 0.0 }
  0xcf   :  { %v9105_v59 = vpop.xlane.xlu0 %290  ;;  %v519_v54 = vmul.f32 %v17861_v52, %v17861_v52 }
  0xd0   :  { %v713_v42 = vadd.f32 %v712_v17, %v500_v8  ;;  %v732_v63 = vsel %vm159_vm0, %v511_v47, 0.0  ;;  %v17856_v8 = vld [vmem:[#allocation47_spill] sm:$0xff] }
  0xd1   :  { %702 = vadd.xlane.f32.xlu1 %v701_v33  ;;  %v506_v33 = vmul.f32 %v17851_v1, %v17851_v1  ;;  %v508_v12 = vmul.f32 %v17856_v8, %v17856_v8  ;;  %v17860_v47 = vld [vmem:[#allocation51_spill] sm:$0xff]  ;;  %v17863_v8 = vld [vmem:[#allocation54_spill] sm:$0xff] }
  0xd2   :  { %698 = vadd.xlane.f32.xlu0 %v697_v48  ;;  %v9112_v11 = vpop.xlane.xlu1 %302  ;;  %v724_v48 = vsel %vm159_vm0, %v507_v16, 0.0  ;;  %v17857_v16 = vld [vmem:[#allocation48_spill] sm:$0xff]  ;;  %v512_v53 = vmul.f32 %v17860_v47, %v17860_v47 }
  0xd3   :  { %v9119_v45 = vpop.xlane.xlu0 %298  ;;  %v515_v17 = vmul.f32 %v17857_v16, %v17857_v16  ;;  %v729_v49 = vadd.f32 %v728_v27, %v508_v12  ;;  %v518_v12 = vmul.f32 %v17863_v8, %v17863_v8  ;;  %v748_v27 = vsel %vm159_vm0, %v519_v54, 0.0  ;;  %v17866_v47 = vld [vmem:[#allocation56_spill] sm:$0xff] }
  0xd5   :  { %710 = vadd.xlane.f32.xlu1 %v709_v7  ;;  %v725_v7 = vadd.f32 %v724_v48, %v506_v33  ;;  %v733_v33 = vadd.f32 %v732_v63, %v510_v58  ;;  %v740_v56 = vsel %vm159_vm0, %v515_v17, 0.0  ;;  %v17862_v58 = vld [vmem:[#allocation53_spill] sm:$0xff] }
  0xd6   :  { %706 = vadd.xlane.f32.xlu0 %v705_v62  ;;  %v9126_v5 = vpop.xlane.xlu1 %310  ;;  %v517_v63 = vmul.f32 %v17862_v58, %v17862_v58  ;;  %v17869_v58 = vld [vmem:[#allocation58_spill] sm:$0xff] }
  0xd7   :  { %v9133_v25 = vpop.xlane.xlu0 %306 }
  0xd9   :  { %718 = vadd.xlane.f32.xlu1 %v717_v32  ;;  %v17858_v32 = vld [vmem:[#allocation49_spill] sm:$0xff] }
  0xda   :  { %714 = vadd.xlane.f32.xlu0 %v713_v42  ;;  %v9140_v62 = vpop.xlane.xlu1 %318  ;;  %v513_v1 = vmul.f32 %v17858_v32, %v17858_v32  ;;  %v17859_v42 = vld [vmem:[#allocation50_spill] sm:$0xff]  ;;  %v17865_v32 = vld [vmem:[#allocation55_spill] sm:$0xff] }
  0xdb   :  { %v9147_v2 = vpop.xlane.xlu0 %314  ;;  %v514_v48 = vmul.f32 %v17859_v42, %v17859_v42  ;;  %v516_v42 = vmul.f32 %v17865_v32, %v17865_v32  ;;  %v17871_v32 = vld [vmem:[#allocation59_spill] sm:$0xff] }
  0xdd   :  { %726 = vadd.xlane.f32.xlu1 %v725_v7  ;;  %v736_v7 = vsel %vm159_vm0, %v513_v1, 0.0  ;;  %v523_v1 = vmul.f32 %v17866_v47, %v17866_v47  ;;  %v520_v47 = vmul.f32 %v17871_v32, %v17871_v32 }
  0xde   :  { %722 = vadd.xlane.f32.xlu0 %v721_v26  ;;  %v9154_v44 = vpop.xlane.xlu1 %326  ;;  %v741_v26 = vadd.f32 %v740_v56, %v514_v48  ;;  %v737_v17 = vadd.f32 %v736_v7, %v512_v53  ;;  %v17868_v48 = vld [vmem:[#allocation57_spill] sm:$0xff]  ;;  %v522_v53 = vmul.f32 %v17869_v58, %v17869_v58  ;;  %v17226_v58 = vmov 0  }
  0xdf   :  { %v9161_v22 = vpop.xlane.xlu0 %322  ;;  %v521_v56 = vmul.f32 %v17868_v48, %v17868_v48  ;;  %v756_v8 = vsel %vm159_vm0, %v523_v1, 0.0  ;;  %v17875_v48 = vld [vmem:[#allocation62_spill] sm:$0xff]  ;;  %7371 = vset.pattern.permute.xlu0 %v17226_v58  ;;  %7372 = vset.pattern.permute.xlu1 %v17226_v58 }
  0xe1   :  { %734 = vadd.xlane.f32.xlu1 %v733_v33  ;;  %v744_v33 = vsel %vm159_vm0, %v517_v63, 0.0  ;;  %v527_v63 = vmul.f32 %v17872_v24, %v17872_v24 }
  0xe2   :  { %730 = vadd.xlane.f32.xlu0 %v729_v49  ;;  %v9168_v16 = vpop.xlane.xlu1 %334  ;;  %v749_v49 = vadd.f32 %v748_v27, %v518_v12  ;;  %v745_v7 = vadd.f32 %v744_v33, %v516_v42  ;;  %v17874_v12 = vld [vmem:[#allocation61_spill] sm:$0xff]  ;;  %v526_v42 = vmul.f32 %v17875_v48, %v17875_v48  ;;  %v17876_v33 = vld [vmem:[#allocation64_spill] sm:$0xff] }
  0xe3   :  { %17864 = vst [vmem:[#allocation3_spill] sm:$0xff] %v9168_v16  ;;  %v9175_v52 = vpop.xlane.xlu0 %330  ;;  %v525_v27 = vmul.f32 %v17874_v12, %v17874_v12  ;;  %v531_v1 = vmul.f32 %v17876_v33, %v17876_v33  ;;  %v17881_v33 = vld [vmem:[#allocation66_spill] sm:$0xff] }
  0xe4   :  { %17867 = vst [vmem:[#allocation4_spill] sm:$0xff] %v9175_v52 }
  0xe5   :  { %742 = vadd.xlane.f32.xlu1 %v741_v26  ;;  %v752_v26 = vsel %vm159_vm0, %v521_v56, 0.0  ;;  %v764_v56 = vsel %vm159_vm0, %v527_v63, 0.0  ;;  %v760_v48 = vsel %vm159_vm0, %v525_v27, 0.0  ;;  %v17882_v63 = vld [vmem:[#allocation67_spill] sm:$0xff]  ;;  %v17885_v27 = vld [vmem:[#allocation69_spill] sm:$0xff] }
  0xe6   :  { %738 = vadd.xlane.f32.xlu0 %v737_v17  ;;  %v9182_v54 = vpop.xlane.xlu1 %342  ;;  %v757_v17 = vadd.f32 %v756_v8, %v522_v53  ;;  %v753_v32 = vadd.f32 %v752_v26, %v520_v47  ;;  %v772_v47 = vsel %vm159_vm0, %v531_v1, 0.0  ;;  %v528_v26 = vmul.f32 %v17882_v63, %v17882_v63  ;;  %v17887_v1 = vld [vmem:[#allocation70_spill] sm:$0xff] }
  0xe7   :  { %17870 = vst [vmem:[#allocation5_spill] sm:$0xff] %v9182_v54  ;;  %v9189_v52 = vpop.xlane.xlu0 %338  ;;  %v533_v16 = vmul.f32 %v17885_v27, %v17885_v27 }
  0xe8   :  { %17873 = vst [vmem:[#allocation6_spill] sm:$0xff] %v9189_v52  ;;  %v17878_v52 = vld [vmem:[#allocation63_spill] sm:$0xff] }
  0xe9   :  { %750 = vadd.xlane.f32.xlu1 %v749_v49  ;;  %v524_v12 = vmul.f32 %v17878_v52, %v17878_v52  ;;  %v17879_v49 = vld [vmem:[#allocation65_spill] sm:$0xff]  ;;  %v17883_v52 = vld [vmem:[#allocation68_spill] sm:$0xff] }
  0xea   :  { %746 = vadd.xlane.f32.xlu0 %v745_v7  ;;  %v9199_v24 = vpop.xlane.xlu1 %350  ;;  %v529_v53 = vmul.f32 %v17879_v49, %v17879_v49  ;;  %v530_v7 = vmul.f32 %v17881_v33, %v17881_v33  ;;  %v535_v54 = vmul.f32 %v17883_v52, %v17883_v52  ;;  %v17888_v52 = vld [vmem:[#allocation71_spill] sm:$0xff] }
  0xeb   :  { %17877 = vst [vmem:[#allocation7_spill] sm:$0xff] %v9199_v24  ;;  %v9207_v8 = vpop.xlane.xlu0 %346  ;;  %v765_v24 = vadd.f32 %v764_v56, %v526_v42  ;;  %v761_v58 = vadd.f32 %v760_v48, %v524_v12  ;;  %v534_v56 = vmul.f32 %v17887_v1, %v17887_v1  ;;  %v17890_v48 = vld [vmem:[#allocation72_spill] sm:$0xff]  ;;  %v17894_v1 = vld [vmem:[#allocation74_spill] sm:$0xff] }
  0xec   :  { %17880 = vst [vmem:[#allocation8_spill] sm:$0xff] %v9207_v8  ;;  %v768_v8 = vsel %vm159_vm0, %v529_v53, 0.0  ;;  %v780_v63 = vsel %vm159_vm0, %v535_v54, 0.0  ;;  %v776_v53 = vsel %vm159_vm0, %v533_v16, 0.0  ;;  %v539_v27 = vmul.f32 %v17890_v48, %v17890_v48  ;;  %v5815_v54 = vld [vmem:[%s17136_s7] sm:$0x3] }
  0xed   :  { %758 = vadd.xlane.f32.xlu1 %v757_v17  ;;  %v773_v17 = vadd.f32 %v772_v47, %v530_v7  ;;  %v769_v42 = vadd.f32 %v768_v8, %v528_v26  ;;  %v3881_v8 = vlaneseq  ;;  %v538_v16 = vmul.f32 %v17894_v1, %v17894_v1  ;;  %v17895_v48 = vld [vmem:[#allocation75_spill] sm:$0xff]  ;;  %s7940_s7 = smov 66  }
  0xee   :  { %754 = vadd.xlane.f32.xlu0 %v753_v32  ;;  %v9217_v49 = vpop.xlane.xlu1 %358  ;;  %v532_v32 = vmul.f32 %v17888_v52, %v17888_v52  ;;  %vm5816_vm1 = vcmp.ne.f32.partialorder %v5815_v54, 0.0  ;;  %v542_v1 = vmul.f32 %v8815_v57, %v8815_v57 }
  0xef   :  { %17884 = vst [vmem:[#allocation9_spill] sm:$0xff] %v9217_v49  ;;  %v9222_v33 = vpop.xlane.xlu0 %354  ;;  %v9241_v47 = vshrl.u32 %v3881_v8, 7  ;;  %v17896_v49 = vld [vmem:[#allocation76_spill] sm:$0xff] }
  0xf0   :  { %17886 = vst [vmem:[#allocation10_spill] sm:$0xff] %v9222_v33  ;;  %v17891_v33 = vld [vmem:[#allocation73_spill] sm:$0xff]  ;;  %v777_v26 = vadd.f32 %v776_v53, %v532_v32  ;;  %v543_v8 = vmul.f32 %v17896_v49, %v17896_v49  ;;  %v17899_v53 = vmov 0  }
  0xf1   :  { %766 = vadd.xlane.f32.xlu1 %v765_v24  ;;  %v537_v24 = vmul.f32 %v17891_v33, %v17891_v33  ;;  %17893 = vst [vmem:[#allocation13_spill] sm:$0xff] %v9241_v47  ;;  %v788_v33 = vsel %vm159_vm0, %v539_v27, 0.0  ;;  %v17235_v32 = vsub.s32 0, %v9241_v47  ;;  %v5817_v54 = vsel %vm5816_vm1, 1, %v17899_v53 }
  0xf2   :  { %762 = vadd.xlane.f32.xlu0 %v761_v58  ;;  %v9229_v12 = vpop.xlane.xlu1 %366  ;;  %v781_v58 = vadd.f32 %v780_v63, %v534_v56  ;;  %v17898_v56 = vld [vmem:[#allocation77_spill] sm:$0xff]  ;;  %v789_v27 = vadd.f32 %v788_v33, %v538_v16 }
  0xf3   :  { %17889 = vst [vmem:[#allocation11_spill] sm:$0xff] %v9229_v12  ;;  %v9236_v7 = vpop.xlane.xlu0 %362  ;;  %v784_v12 = vsel %vm159_vm0, %v537_v24, 0.0  ;;  %v541_v63 = vmul.f32 %v17898_v56, %v17898_v56  ;;  %v9264_v24 = vrot.slane %v5817_v54, %v17235_v32 }
  0xf4   :  { %17892 = vst [vmem:[#allocation12_spill] sm:$0xff] %v9236_v7  ;;  %v536_v7 = vmul.f32 %v17895_v48, %v17895_v48 }
  0xf5   :  { %774 = vadd.xlane.f32.xlu1 %v773_v17  ;;  %17900 = vst [vmem:[#allocation15_spill] sm:$0xff] %v9264_v24  ;;  %v792_v57 = vsel %vm159_vm0, %v541_v63, 0.0 }
  0xf6   :  { %770 = vadd.xlane.f32.xlu0 %v769_v42  ;;  %v9245_v52 = vpop.xlane.xlu1 %374  ;;  %v17236_v42 = vsub.s32 1, %v9241_v47  ;;  %v785_v56 = vadd.f32 %v784_v12, %v536_v7 }
  0xf7   :  { %v9253_v17 = vpop.xlane.xlu0 %370 }
  0xf8   :  { %17897 = vst [vmem:[#allocation14_spill] sm:$0xff] %v9253_v17  ;;  %v9268_v49 = vrot.slane %v5817_v54, %v17236_v42  ;;  %v796_v17 = vsel %vm159_vm0, %v543_v8, 0.0 }
  0xf9   :  { %782 = vadd.xlane.f32.xlu1 %v781_v58  ;;  %v540_v58 = vmul.f32 %v8824_v61, %v8824_v61  ;;  %v797_v33 = vadd.f32 %v796_v17, %v542_v1 }
  0xfa   :  { %17901 = vst [vmem:[#allocation16_spill] sm:$0xff] %v9268_v49  ;;  %778 = vadd.xlane.f32.xlu0 %v777_v26  ;;  %v9270_v48 = vpop.xlane.xlu1 %382 }
  0xfb   :  { %v9275_v16 = vpop.xlane.xlu0 %378  ;;  %v793_v54 = vadd.f32 %v792_v57, %v540_v58 }
  0xfd   :  { %790 = vadd.xlane.f32.xlu1 %v789_v27 }
  0xfe   :  { %786 = vadd.xlane.f32.xlu0 %v785_v56  ;;  %v9278_v32 = vpop.xlane.xlu1 %390 }
  0xff   :  { %v9280_v42 = vpop.xlane.xlu0 %386 }
 0x101   :  { %798 = vadd.xlane.f32.xlu1 %v797_v33 }
 0x102   :  { %794 = vadd.xlane.f32.xlu0 %v793_v54  ;;  %v9282_v12 = vpop.xlane.xlu1 %398 }
 0x103   :  { %v9284_v7 = vpop.xlane.xlu0 %394 }
 0x106   :  { %v9286_v26 = vpop.xlane.xlu1 %406 }
 0x107   :  { %17902 = vst [vmem:[#allocation17_spill] sm:$0xff] %v9286_v26  ;;  %v9288_v61 = vpop.xlane.xlu0 %402 }
 0x108   :  { %17903 = vst [vmem:[#allocation18_spill] sm:$0xff] %v9288_v61 }
 0x10a   :  { %v9290_v8 = vpop.xlane.xlu1 %414 }
 0x10b   :  { %17904 = vst [vmem:[#allocation19_spill] sm:$0xff] %v9290_v8  ;;  %v9292_v63 = vpop.xlane.xlu0 %410 }
 0x10c   :  { %17905 = vst [vmem:[#allocation20_spill] sm:$0xff] %v9292_v63 }
 0x10e   :  { %v9294_v17 = vpop.xlane.xlu1 %550 }
 0x10f   :  { %v9296_v27 = vpop.xlane.xlu0 %546 }
 0x112   :  { %v9298_v1 = vpop.xlane.xlu1 %558 }
 0x113   :  { %v9300_v56 = vpop.xlane.xlu0 %554 }
 0x116   :  { %v9302_v58 = vpop.xlane.xlu1 %566 }
 0x117   :  { %v9304_v57 = vpop.xlane.xlu0 %562 }
 0x118   :  { %17906 = vst [vmem:[#allocation21_spill] sm:$0xff] %v9304_v57 }
 0x11a   :  { %v9306_v33 = vpop.xlane.xlu1 %574 }
 0x11b   :  { %v9308_v54 = vpop.xlane.xlu0 %570 }
 0x11c   :  { %17907 = vst [vmem:[#allocation22_spill] sm:$0xff] %v9308_v54  ;;  %v9329_v54 = vmul.f32 0.0051020407, %v8874_v4 }
 0x11e   :  { %v9310_v24 = vpop.xlane.xlu1 %582  ;;  %17916 = vst [vmem:[#allocation31_spill] sm:$0xff] %v9329_v54  ;;  %v9352_v54 = vmul.f32 0.0051020407, %v8923_v20 }
 0x11f   :  { %17908 = vst [vmem:[#allocation23_spill] sm:$0xff] %v9310_v24  ;;  %v9312_v49 = vpop.xlane.xlu0 %578 }
 0x120   :  { %17909 = vst [vmem:[#allocation24_spill] sm:$0xff] %v9312_v49  ;;  %v9334_v49 = vmul.f32 0.0051020407, %v8881_v37  ;;  %17924 = vst [vmem:[#allocation39_spill] sm:$0xff] %v9352_v54  ;;  %v9374_v54 = vmul.f32 0.0051020407, %v8965_v39 }
 0x122   :  { %v9314_v47 = vpop.xlane.xlu1 %590  ;;  %17918 = vst [vmem:[#allocation33_spill] sm:$0xff] %v9334_v49  ;;  %v9355_v49 = vmul.f32 0.0051020407, %v8930_v23  ;;  %17932 = vst [vmem:[#allocation47_spill] sm:$0xff] %v9374_v54  ;;  %v800_v54 = vadd.f32 %v9105_v59, %v8881_v37  ;;  %v9415_v37 = vmul.f32 0.0051020407, %v9042_v21 }
 0x123   :  { %v9316_v53 = vpop.xlane.xlu0 %586 }
 0x124   :  { %17910 = vst [vmem:[#allocation25_spill] sm:$0xff] %v9316_v53  ;;  %v9337_v53 = vmul.f32 0.0051020407, %v8888_v6  ;;  %17925 = vst [vmem:[#allocation40_spill] sm:$0xff] %v9355_v49  ;;  %v9377_v49 = vmul.f32 0.0051020407, %v8972_v19 }
 0x125   :  { %17944 = vst [vmem:[#allocation59_spill] sm:$0xff] %v9415_v37  ;;  %v9435_v37 = vmul.f32 0.0051020407, %v9070_v15 }
 0x126   :  { %v9318_v63 = vpop.xlane.xlu1 %598  ;;  %17919 = vst [vmem:[#allocation34_spill] sm:$0xff] %v9337_v53  ;;  %v9358_v53 = vmul.f32 0.0051020407, %v8937_v29  ;;  %17933 = vst [vmem:[#allocation48_spill] sm:$0xff] %v9377_v49  ;;  %v9396_v49 = vmul.f32 0.0051020407, %v9007_v31 }
 0x127   :  { %17911 = vst [vmem:[#allocation26_spill] sm:$0xff] %v9318_v63  ;;  %v9320_v8 = vpop.xlane.xlu0 %594  ;;  %v9340_v63 = vmul.f32 0.0051020407, %v8895_v9  ;;  %17949 = vst [vmem:[#allocation63_spill] sm:$0xff] %v9435_v37  ;;  %v9454_v37 = vmul.f32 0.0051020407, %v9098_v43 }
 0x128   :  { %17912 = vst [vmem:[#allocation27_spill] sm:$0xff] %v9320_v8  ;;  %17926 = vst [vmem:[#allocation41_spill] sm:$0xff] %v9358_v53  ;;  %v9380_v53 = vmul.f32 0.0051020407, %v8979_v46 }
 0x129   :  { %17920 = vst [vmem:[#allocation35_spill] sm:$0xff] %v9340_v63  ;;  %v9363_v63 = vmul.f32 0.0051020407, %v8944_v30  ;;  %17938 = vst [vmem:[#allocation53_spill] sm:$0xff] %v9396_v49  ;;  %v802_v49 = vadd.f32 %v9119_v45, %v8874_v4  ;;  %v9437_v4 = vmul.f32 0.0025510204, %v800_v54 }
 0x12a   :  { %v9322_v61 = vpop.xlane.xlu1 %606  ;;  %17934 = vst [vmem:[#allocation49_spill] sm:$0xff] %v9380_v53  ;;  %v9399_v53 = vmul.f32 0.0051020407, %v9014_v41  ;;  %v9457_v54 = vmul.f32 0.0051020407, %v9105_v59 }
 0x12b   :  { %17913 = vst [vmem:[#allocation28_spill] sm:$0xff] %v9322_v61  ;;  %v9324_v26 = vpop.xlane.xlu0 %602  ;;  %v9343_v61 = vmul.f32 0.0051020407, %v8902_v35  ;;  %17928 = vst [vmem:[#allocation43_spill] sm:$0xff] %v9363_v63  ;;  %v801_v63 = vadd.f32 %v9098_v43, %v8895_v9  ;;  %v9402_v9 = vmul.f32 0.0051020407, %v9021_v40  ;;  %v809_v43 = vadd.f32 %v9154_v44, %v8930_v23 }
 0x12c   :  { %17914 = vst [vmem:[#allocation29_spill] sm:$0xff] %v9324_v26  ;;  %v9346_v26 = vmul.f32 0.0051020407, %v8909_v13  ;;  %17939 = vst [vmem:[#allocation54_spill] sm:$0xff] %v9399_v53  ;;  %v9478_v59 = vmul.f32 %v9437_v4, %v9437_v4 }
 0x12d   :  { %17921 = vst [vmem:[#allocation36_spill] sm:$0xff] %v9343_v61  ;;  %v9366_v61 = vmul.f32 0.0051020407, %v8951_v34  ;;  %17940 = vst [vmem:[#allocation55_spill] sm:$0xff] %v9402_v9  ;;  %v9422_v9 = vmul.f32 0.0051020407, %v9049_v28 }
 0x12e   :  { %v9326_v57 = vpop.xlane.xlu1 %614  ;;  %17922 = vst [vmem:[#allocation37_spill] sm:$0xff] %v9346_v26  ;;  %v9369_v26 = vmul.f32 0.0051020407, %v8958_v36  ;;  %17950 = vst [vmem:[#allocation65_spill] sm:$0xff] %v9437_v4  ;;  %v17964_v4 = vld [vmem:[#allocation3_spill] sm:$0xff] }
 0x12f   :  { %17915 = vst [vmem:[#allocation30_spill] sm:$0xff] %v9326_v57  ;;  %v9331_v24 = vpop.xlane.xlu0 %610  ;;  %v9349_v57 = vmul.f32 0.0051020407, %v8916_v18  ;;  %17929 = vst [vmem:[#allocation44_spill] sm:$0xff] %v9366_v61  ;;  %v9388_v61 = vmul.f32 0.0051020407, %v8993_v51 }
 0x130   :  { %17917 = vst [vmem:[#allocation32_spill] sm:$0xff] %v9331_v24  ;;  %17930 = vst [vmem:[#allocation45_spill] sm:$0xff] %v9369_v26  ;;  %v9391_v26 = vmul.f32 0.0051020407, %v9000_v60 }
 0x131   :  { %17923 = vst [vmem:[#allocation38_spill] sm:$0xff] %v9349_v57  ;;  %17936 = vst [vmem:[#allocation51_spill] sm:$0xff] %v9388_v61  ;;  %v9409_v61 = vmul.f32 0.0051020407, %v9028_v14 }
 0x132   :  { %v9360_v24 = vpop.xlane.xlu1 %622  ;;  %17937 = vst [vmem:[#allocation52_spill] sm:$0xff] %v9391_v26  ;;  %v9412_v26 = vmul.f32 0.0051020407, %v9035_v3  ;;  %17946 = vst [vmem:[#allocation61_spill] sm:$0xff] %v9422_v9  ;;  %v9442_v9 = vmul.f32 0.0051020407, %v9077_v55 }
 0x133   :  { %17927 = vst [vmem:[#allocation42_spill] sm:$0xff] %v9360_v24  ;;  %v9371_v57 = vpop.xlane.xlu0 %618  ;;  %v9385_v24 = vmul.f32 0.0051020407, %v8986_v50  ;;  %17942 = vst [vmem:[#allocation57_spill] sm:$0xff] %v9409_v61  ;;  %v805_v61 = vadd.f32 %v9126_v5, %v8902_v35  ;;  %v807_v35 = vadd.f32 %v9140_v62, %v8916_v18  ;;  %v9470_v18 = vmul.f32 0.0051020407, %v9112_v11 }
 0x134   :  { %17931 = vst [vmem:[#allocation46_spill] sm:$0xff] %v9371_v57  ;;  %17943 = vst [vmem:[#allocation58_spill] sm:$0xff] %v9412_v26  ;;  %v9432_v26 = vmul.f32 0.0051020407, %v9063_v0 }
 0x135   :  { %17935 = vst [vmem:[#allocation50_spill] sm:$0xff] %v9385_v24  ;;  %v803_v24 = vadd.f32 %v9112_v11, %v8888_v6  ;;  %v9425_v6 = vmul.f32 0.0051020407, %v9056_v38  ;;  %17951 = vst [vmem:[#allocation66_spill] sm:$0xff] %v9442_v9  ;;  %v806_v9 = vadd.f32 %v9147_v2, %v8923_v20  ;;  %v9481_v20 = vmul.f32 0.0051020407, %v9119_v45 }
 0x136   :  { %v9406_v57 = vpop.xlane.xlu1 %630  ;;  %17948 = vst [vmem:[#allocation64_spill] sm:$0xff] %v9432_v26  ;;  %17955 = vst [vmem:[#allocation70_spill] sm:$0xff] %v9457_v54  ;;  %v808_v54 = vadd.f32 %v9161_v22, %v8937_v29  ;;  %v9494_v23 = vmul.f32 0.0025510204, %v807_v35  ;;  %v9505_v29 = vmul.f32 0.0051020407, %v9133_v25 }
 0x137   :  { %17941 = vst [vmem:[#allocation56_spill] sm:$0xff] %v9406_v57  ;;  %v9419_v53 = vpop.xlane.xlu0 %626  ;;  %17947 = vst [vmem:[#allocation62_spill] sm:$0xff] %v9425_v6  ;;  %v9427_v57 = vmul.f32 0.0025510204, %v801_v63  ;;  %v9445_v63 = vmul.f32 0.0051020407, %v9084_v10 }
 0x138   :  { %17945 = vst [vmem:[#allocation60_spill] sm:$0xff] %v9419_v53  ;;  %v804_v53 = vadd.f32 %v9133_v25, %v8909_v13  ;;  %v9447_v6 = vmul.f32 0.0025510204, %v803_v24  ;;  %v9459_v13 = vmul.f32 0.0025510204, %v802_v49  ;;  %17958 = vst [vmem:[#allocation73_spill] sm:$0xff] %v9470_v18  ;;  %v811_v18 = vadd.f32 %v17964_v4, %v8944_v30 }
 0x139   :  { %17952 = vst [vmem:[#allocation67_spill] sm:$0xff] %v9445_v63  ;;  %v9467_v24 = vmul.f32 %v9427_v57, %v9427_v57  ;;  %v9472_v63 = vmul.f32 0.0025510204, %v805_v61  ;;  %17960 = vst [vmem:[#allocation75_spill] sm:$0xff] %v9481_v20  ;;  %v9492_v61 = vmul.f32 0.0051020407, %v9126_v5 }
 0x13a   :  { %17953 = vst [vmem:[#allocation68_spill] sm:$0xff] %v9447_v6  ;;  %v9451_v26 = vpop.xlane.xlu1 %638  ;;  %17956 = vst [vmem:[#allocation71_spill] sm:$0xff] %v9459_v13  ;;  %v9483_v49 = vmul.f32 0.0025510204, %v804_v53  ;;  %v9489_v11 = vmul.f32 %v9447_v6, %v9447_v6  ;;  %v9502_v45 = vmul.f32 %v9459_v13, %v9459_v13  ;;  %v9507_v53 = vmul.f32 0.0025510204, %v806_v9 }
 0x13b   :  { %17954 = vst [vmem:[#allocation69_spill] sm:$0xff] %v9451_v26  ;;  %v9463_v8 = vpop.xlane.xlu0 %634  ;;  %17959 = vst [vmem:[#allocation74_spill] sm:$0xff] %v9472_v63  ;;  %v17968_v20 = vld [vmem:[#allocation4_spill] sm:$0xff]  ;;  %v9515_v35 = vmul.f32 %v9472_v63, %v9472_v63  ;;  %v9518_v30 = vmul.f32 0.0051020407, %v9140_v62  ;;  %v17972_v13 = vld [vmem:[#allocation5_spill] sm:$0xff]  ;;  %v9537_v62 = vmul.f32 %v9494_v23, %v9494_v23 }
 0x13c   :  { %17957 = vst [vmem:[#allocation72_spill] sm:$0xff] %v9463_v8  ;;  %17961 = vst [vmem:[#allocation76_spill] sm:$0xff] %v9483_v49  ;;  %v810_v5 = vadd.f32 %v17968_v20, %v8951_v34  ;;  %v813_v25 = vadd.f32 %v17972_v13, %v8958_v36  ;;  %v9526_v9 = vmul.f32 %v9483_v49, %v9483_v49  ;;  %v9529_v34 = vmul.f32 0.0051020407, %v9147_v2  ;;  %v17975_v63 = vld [vmem:[#allocation6_spill] sm:$0xff]  ;;  %v17978_v49 = vld [vmem:[#allocation7_spill] sm:$0xff] }
 0x13d   :  { %17962 = vst [vmem:[#allocation77_spill] sm:$0xff] %v9492_v61  ;;  %17963 = vst [vmem:[#allocation78_spill] sm:$0xff] %v9494_v23  ;;  %v9542_v36 = vmul.f32 0.0025510204, %v811_v18  ;;  %v9550_v2 = vmul.f32 %v9507_v53, %v9507_v53 }
 0x13e   :  { %v9498_v8 = vpop.xlane.xlu1 %646  ;;  %17966 = vst [vmem:[#allocation79_spill] sm:$0xff] %v9505_v29  ;;  %17967 = vst [vmem:[#allocation80_spill] sm:$0xff] %v9507_v53  ;;  %v9531_v29 = vmul.f32 0.0025510204, %v808_v54  ;;  %v9555_v54 = vmul.f32 0.0025510204, %v810_v5 }
 0x13f   :  { %17965 = vst [vmem:[#allocation3_spill] sm:$0xff] %v9498_v8  ;;  %v9511_v61 = vpop.xlane.xlu0 %642  ;;  %17970 = vst [vmem:[#allocation81_spill] sm:$0xff] %v9518_v30  ;;  %v9520_v8 = vmul.f32 0.0025510204, %v809_v43  ;;  %v9540_v43 = vmul.f32 0.0051020407, %v9154_v44  ;;  %v815_v30 = vadd.f32 %v17978_v49, %v8972_v19 }
 0x140   :  { %17969 = vst [vmem:[#allocation4_spill] sm:$0xff] %v9511_v61  ;;  %17973 = vst [vmem:[#allocation5_spill] sm:$0xff] %v9529_v34  ;;  %v812_v61 = vadd.f32 %v17975_v63, %v8965_v39  ;;  %v9553_v39 = vmul.f32 0.0051020407, %v9161_v22  ;;  %v17982_v34 = vld [vmem:[#allocation8_spill] sm:$0xff]  ;;  %v17986_v53 = vld [vmem:[#allocation9_spill] sm:$0xff]  ;;  %v9574_v5 = vmul.f32 %v9531_v29, %v9531_v29 }
 0x141   :  { %17971 = vst [vmem:[#allocation82_spill] sm:$0xff] %v9520_v8  ;;  %17974 = vst [vmem:[#allocation83_spill] sm:$0xff] %v9531_v29  ;;  %v814_v44 = vadd.f32 %v17982_v34, %v8979_v46  ;;  %v9563_v18 = vmul.f32 %v9520_v8, %v9520_v8  ;;  %v9566_v19 = vmul.f32 0.0051020407, %v17964_v4  ;;  %v9568_v23 = vmul.f32 0.0025510204, %v813_v25 }
 0x142   :  { %17976 = vst [vmem:[#allocation6_spill] sm:$0xff] %v9540_v43  ;;  %17977 = vst [vmem:[#allocation84_spill] sm:$0xff] %v9542_v36  ;;  %v9546_v26 = vpop.xlane.xlu1 %654  ;;  %v817_v22 = vadd.f32 %v17986_v53, %v8986_v50  ;;  %v9577_v46 = vmul.f32 0.0051020407, %v17968_v20  ;;  %v17989_v8 = vld [vmem:[#allocation10_spill] sm:$0xff]  ;;  %v9585_v4 = vmul.f32 %v9542_v36, %v9542_v36  ;;  %v17990_v50 = vld [vmem:[#allocation11_spill] sm:$0xff]  ;;  %v9597_v20 = vmul.f32 %v9555_v54, %v9555_v54 }
 0x143   :  { %17979 = vst [vmem:[#allocation7_spill] sm:$0xff] %v9546_v26  ;;  %17980 = vst [vmem:[#allocation85_spill] sm:$0xff] %v9553_v39  ;;  %v9559_v43 = vpop.xlane.xlu0 %650  ;;  %v9579_v39 = vmul.f32 0.0025510204, %v812_v61  ;;  %v9587_v25 = vmul.f32 0.0025510204, %v815_v30 }
 0x144   :  { %17981 = vst [vmem:[#allocation86_spill] sm:$0xff] %v9555_v54  ;;  %17983 = vst [vmem:[#allocation8_spill] sm:$0xff] %v9559_v43  ;;  %v816_v43 = vadd.f32 %v17989_v8, %v8993_v51  ;;  %v17991_v29 = vld [vmem:[#allocation12_spill] sm:$0xff]  ;;  %v9600_v51 = vmul.f32 0.0051020407, %v17972_v13  ;;  %v821_v54 = vadd.f32 %v9245_v52, %v9014_v41  ;;  %v17995_v36 = vld [vmem:[#allocation14_spill] sm:$0xff] }
 0x145   :  { %17984 = vst [vmem:[#allocation87_spill] sm:$0xff] %v9566_v19  ;;  %17985 = vst [vmem:[#allocation88_spill] sm:$0xff] %v9568_v23  ;;  %v819_v19 = vadd.f32 %v17990_v50, %v9000_v60  ;;  %v818_v26 = vadd.f32 %v17991_v29, %v9007_v31  ;;  %v9603_v61 = vmul.f32 0.0051020407, %v17975_v63  ;;  %v9605_v30 = vmul.f32 0.0025510204, %v814_v44 }
 0x146   :  { %17987 = vst [vmem:[#allocation9_spill] sm:$0xff] %v9577_v46  ;;  %17988 = vst [vmem:[#allocation89_spill] sm:$0xff] %v9579_v39  ;;  %v9593_v6 = vpop.xlane.xlu1 %662  ;;  %v9611_v60 = vmul.f32 %v9568_v23, %v9568_v23  ;;  %v9613_v31 = vmul.f32 0.0025510204, %v817_v22  ;;  %v820_v13 = vadd.f32 %v17995_v36, %v9021_v40  ;;  %v9621_v63 = vmul.f32 %v9579_v39, %v9579_v39 }
 0x147   :  { %17992 = vst [vmem:[#allocation10_spill] sm:$0xff] %v9600_v51  ;;  %17993 = vst [vmem:[#allocation11_spill] sm:$0xff] %v9603_v61  ;;  %v9607_v46 = vpop.xlane.xlu0 %658  ;;  %v9624_v44 = vmul.f32 0.0051020407, %v17978_v49  ;;  %v9626_v61 = vmul.f32 0.0025510204, %v816_v43  ;;  %v823_v51 = vadd.f32 %v9270_v48, %v9028_v14  ;;  %v9632_v22 = vmul.f32 %v9587_v25, %v9587_v25 }
 0x148   :  { %17994 = vst [vmem:[#allocation12_spill] sm:$0xff] %v9605_v30  ;;  %v9635_v41 = vmul.f32 0.0051020407, %v17982_v34  ;;  %v9637_v40 = vmul.f32 0.0025510204, %v819_v19  ;;  %v9645_v49 = vmul.f32 %v9605_v30, %v9605_v30  ;;  %v822_v34 = vadd.f32 %v9275_v16, %v9035_v3 }
 0x149   :  { %17996 = vst [vmem:[#allocation14_spill] sm:$0xff] %v9624_v44  ;;  %17997 = vst [vmem:[#allocation90_spill] sm:$0xff] %v9626_v61  ;;  %v9639_v23 = vmul.f32 0.0025510204, %v818_v26  ;;  %v9648_v43 = vmul.f32 0.0051020407, %v17986_v53  ;;  %v9659_v26 = vmul.f32 %v9613_v31, %v9613_v31 }
 0x14a   :  { %17998 = vst [vmem:[#allocation91_spill] sm:$0xff] %v9635_v41  ;;  %17999 = vst [vmem:[#allocation92_spill] sm:$0xff] %v9637_v40  ;;  %v9641_v39 = vpop.xlane.xlu1 %670  ;;  %v9651_v14 = vmul.f32 0.0051020407, %v17989_v8  ;;  %v9662_v19 = vmul.f32 0.0051020407, %v17990_v50  ;;  %v9670_v8 = vmul.f32 %v9626_v61, %v9626_v61  ;;  %v9681_v50 = vmul.f32 %v9637_v40, %v9637_v40 }
 0x14b   :  { %18000 = vst [vmem:[#allocation93_spill] sm:$0xff] %v9639_v23  ;;  %v9655_v41 = vpop.xlane.xlu0 %666  ;;  %v9664_v30 = vmul.f32 0.0025510204, %v821_v54  ;;  %v9666_v44 = vmul.f32 0.0025510204, %v820_v13  ;;  %v9685_v54 = vmul.f32 %v9639_v23, %v9639_v23 }
 0x14c   :  { %18001 = vst [vmem:[#allocation94_spill] sm:$0xff] %v9651_v14  ;;  %18002 = vst [vmem:[#allocation95_spill] sm:$0xff] %v9662_v19  ;;  %v9673_v53 = vmul.f32 0.0051020407, %v17991_v29  ;;  %v9675_v3 = vmul.f32 0.0025510204, %v823_v51  ;;  %v825_v14 = vadd.f32 %v9278_v32, %v9042_v21  ;;  %v824_v29 = vadd.f32 %v9280_v42, %v9049_v28 }
 0x14d   :  { %18003 = vst [vmem:[#allocation96_spill] sm:$0xff] %v9666_v44  ;;  %v9688_v13 = vmul.f32 0.0051020407, %v9245_v52  ;;  %v9693_v51 = vmul.f32 0.0051020407, %v17995_v36  ;;  %v827_v21 = vadd.f32 %v9282_v12, %v9056_v38  ;;  %v9702_v23 = vmul.f32 %v9664_v30, %v9664_v30 }
 0x14e   :  { %18004 = vst [vmem:[#allocation97_spill] sm:$0xff] %v9673_v53  ;;  %18005 = vst [vmem:[#allocation98_spill] sm:$0xff] %v9675_v3  ;;  %v679_v53 = vpop.xlane.xlu1 %678  ;;  %v9695_v61 = vmul.f32 0.0025510204, %v822_v34  ;;  %v9706_v52 = vmul.f32 %v9666_v44, %v9666_v44  ;;  %v9709_v28 = vmul.f32 0.0051020407, %v9270_v48  ;;  %v9714_v34 = vmul.f32 %v9675_v3, %v9675_v3 }
 0x14f   :  { %18006 = vst [vmem:[#allocation99_spill] sm:$0xff] %v9693_v51  ;;  %v866_v19 = vadd.f32 %v679_v53, %v9294_v17  ;;  %v675_v40 = vpop.xlane.xlu0 %674  ;;  %v9717_v38 = vmul.f32 0.0051020407, %v9275_v16  ;;  %v9719_v17 = vmul.f32 0.0025510204, %v825_v14  ;;  %v826_v48 = vadd.f32 %v9284_v7, %v9063_v0 }
 0x150   :  { %18007 = vst [vmem:[#allocation100_spill] sm:$0xff] %v9695_v61  ;;  %18008 = vst [vmem:[#allocation101_spill] sm:$0xff] %v9709_v28  ;;  %v865_v36 = vadd.f32 %v675_v40, %v9296_v27  ;;  %v9722_v51 = vmul.f32 0.0051020407, %v9278_v32  ;;  %v9724_v44 = vmul.f32 0.0025510204, %v824_v29  ;;  %v9730_v40 = vmul.f32 %v9695_v61, %v9695_v61 }
 0x151   :  { %18009 = vst [vmem:[#allocation102_spill] sm:$0xff] %v9717_v38  ;;  %v898_v53 = vmul.f32 0.0025510204, %v866_v19  ;;  %v9732_v3 = vmul.f32 0.0025510204, %v827_v21  ;;  %v9746_v38 = vmul.f32 %v9719_v17, %v9719_v17 }
 0x152   :  { %18010 = vst [vmem:[#allocation103_spill] sm:$0xff] %v9724_v44  ;;  %v897_v28 = vmul.f32 0.0025510204, %v865_v36  ;;  %v687_v27 = vpop.xlane.xlu1 %686  ;;  %v9737_v32 = vmul.f32 0.0051020407, %v9280_v42  ;;  %v9753_v42 = vmul.f32 %v9724_v44, %v9724_v44  ;;  %v18015_v44 = vld [vmem:[#allocation21_spill] sm:$0xff] }
 0x153   :  { %v962_v16 = vsub.f32 %v898_v53, %v9467_v24  ;;  %v868_v14 = vadd.f32 %v687_v27, %v9298_v1  ;;  %v683_v19 = vpop.xlane.xlu0 %682  ;;  %v9740_v29 = vmul.f32 0.0051020407, %v9282_v12  ;;  %v9749_v21 = vmul.f32 0.0051020407, %v9284_v7 }
 0x154   :  { %18011 = vst [vmem:[#allocation104_spill] sm:$0xff] %v9737_v32  ;;  %v961_v0 = vsub.f32 %v897_v28, %v9478_v59  ;;  %v867_v36 = vadd.f32 %v683_v19, %v9300_v56  ;;  %v9755_v53 = vmul.f32 0.0025510204, %v826_v48  ;;  %v9759_v56 = vmul.f32 %v9732_v3, %v9732_v3 }
 0x155   :  { %18012 = vst [vmem:[#allocation105_spill] sm:$0xff] %v9740_v29  ;;  %18013 = vst [vmem:[#allocation106_spill] sm:$0xff] %v9749_v21  ;;  %v994_v24 = vmax.f32 %v962_v16, 0.0  ;;  %v900_v1 = vmul.f32 0.0025510204, %v868_v14  ;;  %v18014_v14 = vld [vmem:[#allocation17_spill] sm:$0xff] }
 0x156   :  { %v993_v12 = vmax.f32 %v961_v0, 0.0  ;;  %v899_v27 = vmul.f32 0.0025510204, %v867_v36  ;;  %v695_v59 = vpop.xlane.xlu1 %694  ;;  %v829_v21 = vadd.f32 %v18014_v14, %v9070_v15  ;;  %v9768_v36 = vmul.f32 0.0051020407, %v18014_v14  ;;  %v18016_v15 = vld [vmem:[#allocation18_spill] sm:$0xff] }
 0x157   :  { %v1026_v28 = vadd.f32 1e-05, %v994_v24  ;;  %v964_v19 = vsub.f32 %v900_v1, %v9489_v11  ;;  %v870_v7 = vadd.f32 %v695_v59, %v9302_v58  ;;  %v691_v16 = vpop.xlane.xlu0 %690  ;;  %v9772_v11 = vmul.f32 %v9755_v53, %v9755_v53 }
 0x158   :  { %v1025_v32 = vadd.f32 1e-05, %v993_v12  ;;  %v963_v48 = vsub.f32 %v899_v27, %v9502_v45  ;;  %v869_v0 = vadd.f32 %v691_v16, %v18015_v44  ;;  %v828_v12 = vadd.f32 %v18016_v15, %v9077_v55  ;;  %v18018_v16 = vld [vmem:[#allocation22_spill] sm:$0xff]  ;;  %v18019_v55 = vld [vmem:[#allocation19_spill] sm:$0xff] }
 0x159   :  { %7688 = vrsqrt.f32 %v1026_v28  ;;  %v996_v61 = vmax.f32 %v964_v19, 0.0  ;;  %v902_v29 = vmul.f32 0.0025510204, %v870_v7  ;;  %v9779_v28 = vmul.f32 0.0051020407, %v18016_v15 }
 0x15a   :  { %7690 = vrsqrt.f32 %v1025_v32  ;;  %v995_v58 = vmax.f32 %v963_v48, 0.0  ;;  %v901_v24 = vmul.f32 0.0025510204, %v869_v0  ;;  %v703_v1 = vpop.xlane.xlu1 %702  ;;  %v9783_v14 = vmul.f32 0.0025510204, %v829_v21 }
 0x15b   :  { %v1028_v45 = vadd.f32 1e-05, %v996_v61  ;;  %v966_v44 = vsub.f32 %v902_v29, %v9515_v35  ;;  %v872_v27 = vadd.f32 %v703_v1, %v9306_v33  ;;  %v699_v59 = vpop.xlane.xlu0 %698  ;;  %18017 = vst [vmem:[#allocation17_spill] sm:$0xff] %v9779_v28  ;;  %v831_v61 = vadd.f32 %v18019_v55, %v9084_v10 }
 0x15c   :  { %v1027_v19 = vadd.f32 1e-05, %v995_v58  ;;  %v965_v7 = vsub.f32 %v901_v24, %v9526_v9  ;;  %v871_v32 = vadd.f32 %v699_v59, %v18018_v16  ;;  %v9787_v1 = vmul.f32 0.0025510204, %v828_v12  ;;  %v18021_v9 = vld [vmem:[#allocation23_spill] sm:$0xff] }
 0x15d   :  { %7692 = vrsqrt.f32 %v1028_v45  ;;  %v998_v48 = vmax.f32 %v966_v44, 0.0  ;;  %v904_v0 = vmul.f32 0.0025510204, %v872_v27  ;;  %v9792_v21 = vmul.f32 0.0051020407, %v18019_v55  ;;  %v18022_v27 = vld [vmem:[#allocation24_spill] sm:$0xff] }
 0x15e   :  { %7694 = vrsqrt.f32 %v1027_v19  ;;  %v997_v35 = vmax.f32 %v965_v7, 0.0  ;;  %v903_v33 = vmul.f32 0.0025510204, %v871_v32  ;;  %v711_v29 = vpop.xlane.xlu1 %710  ;;  %18020 = vst [vmem:[#allocation21_spill] sm:$0xff] %v9787_v1  ;;  %v18023_v19 = vld [vmem:[#allocation2_spill] sm:$0xff]  ;;  %v18024_v7 = vld [vmem:[#allocation20_spill] sm:$0xff] }
 0x15f   :  { %v1030_v15 = vadd.f32 1e-05, %v998_v48  ;;  %v968_v58 = vsub.f32 %v904_v0, %v9537_v62  ;;  %v874_v24 = vadd.f32 %v711_v29, %v18021_v9  ;;  %v707_v59 = vpop.xlane.xlu0 %706  ;;  %v830_v16 = vadd.f32 %v18024_v7, %v18023_v19  ;;  %v18028_v19 = vld [vmem:[#allocation27_spill] sm:$0xff] }
 0x160   :  { %v1029_v45 = vadd.f32 1e-05, %v997_v35  ;;  %v967_v44 = vsub.f32 %v903_v33, %v9550_v2  ;;  %v873_v10 = vadd.f32 %v707_v59, %v18022_v27  ;;  %v9800_v62 = vmul.f32 %v9783_v14, %v9783_v14  ;;  %v18025_v59 = vld [vmem:[#allocation25_spill] sm:$0xff] }
 0x161   :  { %7696 = vrsqrt.f32 %v1030_v15  ;;  %v1000_v12 = vmax.f32 %v968_v58, 0.0  ;;  %v906_v32 = vmul.f32 0.0025510204, %v874_v24  ;;  %v9802_v48 = vmul.f32 0.0025510204, %v831_v61 }
 0x162   :  { %v999_v0 = vmax.f32 %v967_v44, 0.0  ;;  %v905_v55 = vmul.f32 0.0025510204, %v873_v10  ;;  %v719_v29 = vpop.xlane.xlu1 %718  ;;  %7698 = vrsqrt.f32 %v1029_v45  ;;  %v9808_v15 = vmul.f32 %v9787_v1, %v9787_v1  ;;  %v1090_v44 = vld [vmem:[%s17137_s1 + $0x8] sm:$0xff] }
 0x163   :  { %v1032_v35 = vadd.f32 1e-05, %v1000_v12  ;;  %v970_v2 = vsub.f32 %v906_v32, %v9563_v18  ;;  %v876_v33 = vadd.f32 %v719_v29, %v9314_v47  ;;  %v715_v9 = vpop.xlane.xlu0 %714  ;;  %v9815_v45 = vmul.f32 0.0025510204, %v830_v16  ;;  %v1089_v47 = vld [vmem:[%s17137_s1] sm:$0xff] }
 0x164   :  { %v1031_v58 = vadd.f32 1e-05, %v999_v0  ;;  %v969_v24 = vsub.f32 %v905_v55, %v9574_v5  ;;  %v875_v61 = vadd.f32 %v715_v9, %v18025_v59  ;;  %v9822_v12 = vmul.f32 %v9802_v48, %v9802_v48 }
 0x165   :  { %18026 = vst [vmem:[#allocation18_spill] sm:$0xff] %v9815_v45  ;;  %7700 = vrsqrt.f32 %v1032_v35  ;;  %v1002_v18 = vmax.f32 %v970_v2, 0.0  ;;  %v908_v27 = vmul.f32 0.0025510204, %v876_v33  ;;  %v18027_v35 = vld [vmem:[#allocation26_spill] sm:$0xff] }
 0x166   :  { %v7689_v10 = vpop.eup %7688  ;;  %7702 = vrsqrt.f32 %v1031_v58  ;;  %v1001_v5 = vmax.f32 %v969_v24, 0.0  ;;  %v907_v32 = vmul.f32 0.0025510204, %v875_v61  ;;  %v727_v0 = vpop.xlane.xlu1 %726 }
 0x167   :  { %v7691_v55 = vpop.eup %7690  ;;  %v1034_v29 = vadd.f32 1e-05, %v1002_v18  ;;  %v972_v16 = vsub.f32 %v908_v27, %v9585_v4  ;;  %v878_v2 = vadd.f32 %v727_v0, %v18027_v35  ;;  %v723_v33 = vpop.xlane.xlu0 %722  ;;  %v1122_v9 = vmul.f32 %v7689_v10, %v1090_v44  ;;  %v1091_v4 = vld [vmem:[%s17137_s1 + $0x10] sm:$0xff] }
 0x168   :  { %v1033_v59 = vadd.f32 1e-05, %v1001_v5  ;;  %v971_v7 = vsub.f32 %v907_v32, %v9597_v20  ;;  %v877_v28 = vadd.f32 %v723_v33, %v18028_v19  ;;  %v9828_v1 = vmul.f32 %v7691_v55, %v1089_v47  ;;  %v1154_v47 = vld [vmem:[%s17138_s2 + $0x8] sm:$0xff] }
 0x169   :  { %7704 = vrsqrt.f32 %v1034_v29  ;;  %v1004_v58 = vmax.f32 %v972_v16, 0.0  ;;  %v910_v24 = vmul.f32 0.0025510204, %v878_v2  ;;  %1513 = vperm.xlu1 %7372, %v1122_v9   ;;  %v1186_v61 = vmul.f32 %v1122_v9, %v9427_v57  ;;  %v18029_v57 = vld [vmem:[#allocation28_spill] sm:$0xff]  ;;  %v1092_v29 = vld [vmem:[%s17137_s1 + $0x18] sm:$0xff] }
 0x16a   :  { %v7693_v18 = vpop.eup %7692  ;;  %v9836_v44 = vmul.f32 %v9815_v45, %v9815_v45  ;;  %7706 = vrsqrt.f32 %v1033_v59  ;;  %v1003_v20 = vmax.f32 %v971_v7, 0.0  ;;  %v909_v19 = vmul.f32 0.0025510204, %v877_v28  ;;  %1508 = vperm.xlu0 %7371, %v9828_v1   ;;  %v735_v27 = vpop.xlane.xlu1 %734  ;;  %v18030_v7 = vld [vmem:[#allocation35_spill] sm:$0xff]  ;;  %v18031_v2 = vld [vmem:[#allocation29_spill] sm:$0xff] }
 0x16b   :  { %v7695_v10 = vpop.eup %7694  ;;  %v1036_v5 = vadd.f32 1e-05, %v1004_v58  ;;  %v974_v32 = vsub.f32 %v910_v24, %v9611_v60  ;;  %v880_v0 = vadd.f32 %v735_v27, %v18029_v57  ;;  %v731_v55 = vpop.xlane.xlu0 %730  ;;  %v1314_v28 = vmul.f32 %v18030_v7, %v1122_v9  ;;  %v1094_v60 = vld [vmem:[%s17137_s1 + $0x28] sm:$0xff] }
 0x16c   :  { %v1035_v16 = vadd.f32 1e-05, %v1003_v20  ;;  %v973_v35 = vsub.f32 %v909_v19, %v9621_v63  ;;  %v879_v33 = vadd.f32 %v731_v55, %v18031_v2  ;;  %v9850_v59 = vmul.f32 %v7695_v10, %v1091_v4  ;;  %v18032_v10 = vld [vmem:[#allocation30_spill] sm:$0xff] }
 0x16d   :  { %7708 = vrsqrt.f32 %v1036_v5  ;;  %v1006_v58 = vmax.f32 %v974_v32, 0.0  ;;  %v912_v45 = vmul.f32 0.0025510204, %v880_v0  ;;  %v9855_v24 = vsub.f32 %v1154_v47, %v1186_v61  ;;  %v1093_v2 = vld [vmem:[%s17137_s1 + $0x20] sm:$0xff] }
 0x16e   :  { %v7697_v27 = vpop.eup %7696  ;;  %7710 = vrsqrt.f32 %v1035_v16  ;;  %v1005_v57 = vmax.f32 %v973_v35, 0.0  ;;  %v911_v7 = vmul.f32 0.0025510204, %v879_v33  ;;  %1518 = vperm.xlu1 %7372, %v9850_v59   ;;  %v743_v63 = vpop.xlane.xlu1 %742  ;;  %v9858_v20 = vmul.f32 %v7693_v18, %v1092_v29  ;;  %v18033_v16 = vld [vmem:[#allocation32_spill] sm:$0xff] }
 0x16f   :  { %v1038_v4 = vadd.f32 1e-05, %v1006_v58  ;;  %v976_v19 = vsub.f32 %v912_v45, %v9632_v22  ;;  %v882_v5 = vadd.f32 %v743_v63, %v18032_v10  ;;  %v739_v32 = vpop.xlane.xlu0 %738  ;;  %v1346_v0 = vmul.f32 %v9454_v37, %v1122_v9  ;;  %v7699_v55 = vpop.eup %7698  ;;  %v1096_v45 = vld [vmem:[%s17137_s1 + $0x38] sm:$0xff]  ;;  %v18034_v63 = vld [vmem:[#allocation42_spill] sm:$0xff] }
 0x170   :  { %v1037_v61 = vadd.f32 1e-05, %v1005_v57  ;;  %v975_v47 = vsub.f32 %v911_v7, %v9645_v49  ;;  %v881_v35 = vadd.f32 %v739_v32, %v18033_v16  ;;  %v9868_v18 = vmul.f32 %v7697_v27, %v1094_v60 }
 0x171   :  { %7712 = vrsqrt.f32 %v1038_v4  ;;  %v1008_v29 = vmax.f32 %v976_v19, 0.0  ;;  %v914_v22 = vmul.f32 0.0025510204, %v882_v5  ;;  %v1378_v37 = vadd.f32 %v1314_v28, %v9855_v24  ;;  %v1095_v28 = vld [vmem:[%s17137_s1 + $0x30] sm:$0xff] }
 0x172   :  { %v7701_v9 = vpop.eup %7700  ;;  %7714 = vrsqrt.f32 %v1037_v61  ;;  %v1007_v49 = vmax.f32 %v975_v47, 0.0  ;;  %v913_v33 = vmul.f32 0.0025510204, %v881_v35  ;;  %1523 = vperm.xlu1 %7372, %v9858_v20   ;;  %v751_v58 = vpop.xlane.xlu1 %750  ;;  %v1410_v57 = vadd.f32 %v1346_v0, %v9855_v24  ;;  %v18035_v0 = vld [vmem:[#allocation46_spill] sm:$0xff]  ;;  %v18036_v35 = vld [vmem:[#allocation68_spill] sm:$0xff] }
 0x173   :  { %v7703_v60 = vpop.eup %7702  ;;  %v1040_v27 = vadd.f32 1e-05, %v1008_v29  ;;  %v978_v7 = vsub.f32 %v914_v22, %v9659_v26  ;;  %v884_v4 = vadd.f32 %v751_v58, %v18034_v63  ;;  %v747_v19 = vpop.xlane.xlu0 %746  ;;  %v9878_v10 = vmul.f32 %v7699_v55, %v1093_v2  ;;  %1443 = vst.msk [vmem:[%s17139_s9 + $0x8] sm:$0xff] %vm1441_vm2, %v1378_v37  ;;  %v1098_v26 = vld [vmem:[%s17137_s1 + $0x48] sm:$0xff] }
 0x174   :  { %v1039_v5 = vadd.f32 1e-05, %v1007_v49  ;;  %v977_v32 = vsub.f32 %v913_v33, %v9670_v8  ;;  %v883_v61 = vadd.f32 %v747_v19, %v18035_v0  ;;  %v9892_v55 = vmul.f32 %v7701_v9, %v1096_v45  ;;  %1475 = vst.msk [vmem:[%s17139_s9 + $0x108] sm:$0xff] %vm1441_vm2, %v1410_v57  ;;  %v1156_v9 = vld [vmem:[%s17138_s2 + $0x18] sm:$0xff]  ;;  %v18037_v57 = vld [vmem:[#allocation56_spill] sm:$0xff] }
 0x175   :  { %7716 = vrsqrt.f32 %v1040_v27  ;;  %v1010_v47 = vmax.f32 %v978_v7, 0.0  ;;  %v916_v16 = vmul.f32 0.0025510204, %v884_v4  ;;  %v1188_v2 = vmul.f32 %v9858_v20, %v18036_v35  ;;  %v1097_v4 = vld [vmem:[%s17137_s1 + $0x40] sm:$0xff] }
 0x176   :  { %v7705_v8 = vpop.eup %7704  ;;  %7718 = vrsqrt.f32 %v1039_v5  ;;  %v1009_v29 = vmax.f32 %v977_v32, 0.0  ;;  %v915_v22 = vmul.f32 0.0025510204, %v883_v61  ;;  %1528 = vperm.xlu1 %7372, %v9878_v10   ;;  %v759_v37 = vpop.xlane.xlu1 %758  ;;  %v9901_v45 = vmul.f32 %v7703_v60, %v1095_v28  ;;  %v18038_v28 = vld [vmem:[#allocation60_spill] sm:$0xff]  ;;  %v1100_v32 = vld [vmem:[%s17137_s1 + $0x58] sm:$0xff] }
 0x177   :  { %v7707_v49 = vpop.eup %7706  ;;  %v1042_v33 = vadd.f32 1e-05, %v1010_v47  ;;  %v980_v58 = vsub.f32 %v916_v16, %v9681_v50  ;;  %v886_v27 = vadd.f32 %v759_v37, %v18037_v57  ;;  %v755_v7 = vpop.xlane.xlu0 %754  ;;  %v9908_v63 = vmul.f32 %v7705_v8, %v1098_v26  ;;  %v18039_v50 = vld [vmem:[#allocation34_spill] sm:$0xff] }
 0x178   :  { %v1041_v19 = vadd.f32 1e-05, %v1009_v29  ;;  %v979_v60 = vsub.f32 %v915_v22, %v9685_v54  ;;  %v885_v5 = vadd.f32 %v755_v7, %v18038_v28  ;;  %v1316_v0 = vmul.f32 %v18039_v50, %v9858_v20 }
 0x179   :  { %7720 = vrsqrt.f32 %v1042_v33  ;;  %v1012_v61 = vmax.f32 %v980_v58, 0.0  ;;  %v918_v26 = vmul.f32 0.0025510204, %v886_v27  ;;  %1553 = vperm.xlu0 %7371, %v9908_v63   ;;  %v9921_v47 = vsub.f32 %v1156_v9, %v1188_v2  ;;  %v18040_v33 = vld [vmem:[#allocation69_spill] sm:$0xff]  ;;  %v1099_v2 = vld [vmem:[%s17137_s1 + $0x50] sm:$0xff] }
 0x17a   :  { %v7709_v16 = vpop.eup %7708  ;;  %7722 = vrsqrt.f32 %v1041_v19  ;;  %v1011_v35 = vmax.f32 %v979_v60, 0.0  ;;  %v917_v54 = vmul.f32 0.0025510204, %v885_v5  ;;  %1533 = vperm.xlu1 %7372, %v9868_v18   ;;  %v767_v8 = vpop.xlane.xlu1 %766  ;;  %v9924_v29 = vmul.f32 %v7707_v49, %v1097_v4  ;;  %v18041_v60 = vld [vmem:[#allocation72_spill] sm:$0xff]  ;;  %v1102_v49 = vld [vmem:[%s17137_s1 + $0x68] sm:$0xff] }
 0x17b   :  { %v7711_v22 = vpop.eup %7710  ;;  %v1044_v37 = vadd.f32 1e-05, %v1012_v61  ;;  %v982_v57 = vsub.f32 %v918_v26, %v9702_v23  ;;  %v888_v58 = vadd.f32 %v767_v8, %v18040_v33  ;;  %v763_v27 = vpop.xlane.xlu0 %762  ;;  %v9928_v7 = vmul.f32 %v7709_v16, %v1100_v32  ;;  %v18042_v23 = vld [vmem:[#allocation73_spill] sm:$0xff] }
 0x17c   :  { %v1043_v9 = vadd.f32 1e-05, %v1011_v35  ;;  %v981_v19 = vsub.f32 %v917_v54, %v9706_v52  ;;  %v887_v28 = vadd.f32 %v763_v27, %v18041_v60  ;;  %v1348_v4 = vmul.f32 %v18042_v23, %v9858_v20  ;;  %v1104_v60 = vld [vmem:[%s17137_s1 + $0x78] sm:$0xff] }
 0x17d   :  { %7724 = vrsqrt.f32 %v1044_v37  ;;  %v1014_v5 = vmax.f32 %v982_v57, 0.0  ;;  %v920_v32 = vmul.f32 0.0025510204, %v888_v58  ;;  %1563 = vperm.xlu0 %7371, %v9928_v7   ;;  %v1380_v50 = vadd.f32 %v1316_v0, %v9921_v47  ;;  %v18043_v37 = vld [vmem:[#allocation3_spill] sm:$0xff]  ;;  %v1101_v0 = vld [vmem:[%s17137_s1 + $0x60] sm:$0xff] }
 0x17e   :  { %v7713_v61 = vpop.eup %7712  ;;  %v1013_v26 = vmax.f32 %v981_v19, 0.0  ;;  %v919_v16 = vmul.f32 0.0025510204, %v887_v28  ;;  %1538 = vperm.xlu1 %7372, %v9901_v45   ;;  %v775_v52 = vpop.xlane.xlu1 %774  ;;  %v9943_v35 = vmul.f32 %v7711_v22, %v1099_v2  ;;  %v1412_v54 = vadd.f32 %v1348_v4, %v9921_v47  ;;  %v18044_v19 = vld [vmem:[#allocation4_spill] sm:$0xff] }
 0x17f   :  { %v7715_v8 = vpop.eup %7714  ;;  %v1046_v33 = vadd.f32 1e-05, %v1014_v5  ;;  %v984_v20 = vsub.f32 %v920_v32, %v9714_v34  ;;  %v890_v57 = vadd.f32 %v775_v52, %v18043_v37  ;;  %v771_v58 = vpop.xlane.xlu0 %770  ;;  %v9948_v27 = vmul.f32 %v7713_v61, %v1102_v49  ;;  %1445 = vst.msk [vmem:[%s17139_s9 + $0x18] sm:$0xff] %vm1441_vm2, %v1380_v50  ;;  %v1158_v61 = vld [vmem:[%s17138_s2 + $0x28] sm:$0xff] }
 0x180   :  { %7726 = vrsqrt.f32 %v1043_v9  ;;  %v1045_v22 = vadd.f32 1e-05, %v1013_v26  ;;  %v983_v2 = vsub.f32 %v919_v16, %v9730_v40  ;;  %v889_v34 = vadd.f32 %v771_v58, %v18044_v19  ;;  %1477 = vst.msk [vmem:[%s17139_s9 + $0x118] sm:$0xff] %vm1441_vm2, %v1412_v54  ;;  %v18045_v9 = vld [vmem:[#allocation74_spill] sm:$0xff]  ;;  %v18046_v54 = vld [vmem:[#allocation7_spill] sm:$0xff] }
 0x181   :  { %7728 = vrsqrt.f32 %v1046_v33  ;;  %v1016_v28 = vmax.f32 %v984_v20, 0.0  ;;  %v922_v49 = vmul.f32 0.0025510204, %v890_v57  ;;  %1573 = vperm.xlu0 %7371, %v9948_v27   ;;  %v1190_v23 = vmul.f32 %v9868_v18, %v18045_v9  ;;  %v1103_v57 = vld [vmem:[%s17137_s1 + $0x70] sm:$0xff] }
 0x182   :  { %v7717_v40 = vpop.eup %7716  ;;  %7730 = vrsqrt.f32 %v1045_v22  ;;  %v1015_v4 = vmax.f32 %v983_v2, 0.0  ;;  %v921_v5 = vmul.f32 0.0025510204, %v889_v34  ;;  %1543 = vperm.xlu1 %7372, %v9892_v55   ;;  %v783_v32 = vpop.xlane.xlu1 %782  ;;  %v9970_v50 = vmul.f32 %v7715_v8, %v1101_v0  ;;  %v18047_v0 = vld [vmem:[#allocation8_spill] sm:$0xff]  ;;  %v1106_v2 = vld [vmem:[%s17137_s1 + $0x88] sm:$0xff] }
 0x183   :  { %v7719_v26 = vpop.eup %7718  ;;  %v1048_v16 = vadd.f32 1e-05, %v1016_v28  ;;  %v986_v52 = vsub.f32 %v922_v49, %v9746_v38  ;;  %v892_v33 = vadd.f32 %v783_v32, %v18046_v54  ;;  %v779_v20 = vpop.xlane.xlu0 %778  ;;  %v9977_v37 = vmul.f32 %v7717_v40, %v1104_v60  ;;  %v18048_v38 = vld [vmem:[#allocation36_spill] sm:$0xff] }
 0x184   :  { %v1047_v58 = vadd.f32 1e-05, %v1015_v4  ;;  %v985_v8 = vsub.f32 %v921_v5, %v9753_v42  ;;  %v891_v22 = vadd.f32 %v779_v20, %v18047_v0  ;;  %v1318_v19 = vmul.f32 %v18048_v38, %v9868_v18 }
 0x185   :  { %7732 = vrsqrt.f32 %v1048_v16  ;;  %v1018_v34 = vmax.f32 %v986_v52, 0.0  ;;  %v924_v60 = vmul.f32 0.0025510204, %v892_v33  ;;  %1583 = vperm.xlu0 %7371, %v9977_v37   ;;  %v9990_v28 = vsub.f32 %v1158_v61, %v1190_v23  ;;  %v1105_v23 = vld [vmem:[%s17137_s1 + $0x80] sm:$0xff] }
 0x186   :  { %v7721_v49 = vpop.eup %7720  ;;  %7734 = vrsqrt.f32 %v1047_v58  ;;  %v1017_v9 = vmax.f32 %v985_v8, 0.0  ;;  %v923_v42 = vmul.f32 0.0025510204, %v891_v22  ;;  %1548 = vperm.xlu1 %7372, %v9924_v29   ;;  %v791_v40 = vpop.xlane.xlu1 %790  ;;  %v9993_v4 = vmul.f32 %v7719_v26, %v1103_v57  ;;  %v1108_v26 = vld [vmem:[%s17137_s1 + $0x98] sm:$0xff] }
 0x187   :  { %v7723_v5 = vpop.eup %7722  ;;  %v1050_v32 = vadd.f32 1e-05, %v1018_v34  ;;  %v988_v54 = vsub.f32 %v924_v60, %v9759_v56  ;;  %v894_v16 = vadd.f32 %v791_v40, %v9593_v6  ;;  %v787_v52 = vpop.xlane.xlu0 %786  ;;  %v9997_v33 = vmul.f32 %v7721_v49, %v1106_v2  ;;  %v18049_v56 = vld [vmem:[#allocation77_spill] sm:$0xff] }
 0x188   :  { %v1049_v61 = vadd.f32 1e-05, %v1017_v9  ;;  %v987_v20 = vsub.f32 %v923_v42, %v9772_v11  ;;  %v893_v58 = vadd.f32 %v787_v52, %v9607_v46  ;;  %v1350_v57 = vmul.f32 %v18049_v56, %v9868_v18 }
 0x189   :  { %7736 = vrsqrt.f32 %v1050_v32  ;;  %v1020_v6 = vmax.f32 %v988_v54, 0.0  ;;  %v926_v8 = vmul.f32 0.0025510204, %v894_v16  ;;  %1593 = vperm.xlu0 %7371, %v9997_v33   ;;  %v1382_v0 = vadd.f32 %v1318_v19, %v9990_v28 }
 0x18a   :  { %v7725_v22 = vpop.eup %7724  ;;  %v1019_v2 = vmax.f32 %v987_v20, 0.0  ;;  %v925_v38 = vmul.f32 0.0025510204, %v893_v58  ;;  %1558 = vperm.xlu1 %7372, %v9943_v35   ;;  %v799_v46 = vpop.xlane.xlu1 %798  ;;  %v10012_v11 = vmul.f32 %v7723_v5, %v1105_v23  ;;  %v1414_v34 = vadd.f32 %v1350_v57, %v9990_v28  ;;  %v18051_v58 = vld [vmem:[#allocation38_spill] sm:$0xff] }
 0x18b   :  { %v1052_v60 = vadd.f32 1e-05, %v1020_v6  ;;  %v990_v18 = vsub.f32 %v926_v8, %v9800_v62  ;;  %v896_v49 = vadd.f32 %v799_v46, %v9641_v39  ;;  %v795_v9 = vpop.xlane.xlu0 %794  ;;  %v10017_v42 = vmul.f32 %v7725_v22, %v1108_v26  ;;  %1447 = vst.msk [vmem:[%s17139_s9 + $0x28] sm:$0xff] %vm1441_vm2, %v1382_v0  ;;  %v1110_v62 = vld [vmem:[%s17137_s1 + $0xa8] sm:$0xff]  ;;  %v1160_v39 = vld [vmem:[%s17138_s2 + $0x38] sm:$0xff]  ;;  %v1109_v0 = vld [vmem:[%s17137_s1 + $0xa0] sm:$0xff] }
 0x18c   :  { %7738 = vrsqrt.f32 %v1049_v61  ;;  %v1051_v19 = vadd.f32 1e-05, %v1019_v2  ;;  %v989_v40 = vsub.f32 %v925_v38, %v9808_v15  ;;  %v895_v5 = vadd.f32 %v795_v9, %v9655_v41  ;;  %1479 = vst.msk [vmem:[%s17139_s9 + $0x128] sm:$0xff] %vm1441_vm2, %v1414_v34  ;;  %v1107_v41 = vld [vmem:[%s17137_s1 + $0x90] sm:$0xff]  ;;  %v18050_v15 = vld [vmem:[#allocation78_spill] sm:$0xff]  ;;  %v1112_v46 = vld [vmem:[%s17137_s1 + $0xb8] sm:$0xff] }
 0x18d   :  { %v7727_v32 = vpop.eup %7726  ;;  %7740 = vrsqrt.f32 %v1052_v60  ;;  %v1022_v54 = vmax.f32 %v990_v18, 0.0  ;;  %v928_v16 = vmul.f32 0.0025510204, %v896_v49  ;;  %1603 = vperm.xlu0 %7371, %v10017_v42   ;;  %v1192_v52 = vmul.f32 %v9892_v55, %v18050_v15  ;;  %v18052_v60 = vld [vmem:[#allocation81_spill] sm:$0xff]  ;;  %v1153_v18 = vld [vmem:[%s17138_s2] sm:$0xff] }
 0x18e   :  { %v7729_v23 = vpop.eup %7728  ;;  %7742 = vrsqrt.f32 %v1051_v19  ;;  %v1021_v61 = vmax.f32 %v989_v40, 0.0  ;;  %v927_v20 = vmul.f32 0.0025510204, %v895_v5  ;;  %1568 = vperm.xlu1 %7372, %v9970_v50   ;;  %v1320_v26 = vmul.f32 %v18051_v58, %v9892_v55  ;;  %v18053_v19 = vld [vmem:[#allocation65_spill] sm:$0xff] }
 0x18f   :  { %v7731_v56 = vpop.eup %7730  ;;  %v1054_v57 = vadd.f32 1e-05, %v1022_v54  ;;  %v992_v6 = vsub.f32 %v928_v16, %v9822_v12  ;;  %v10045_v8 = vmul.f32 %v7729_v23, %v1110_v62  ;;  %v10050_v22 = vsub.f32 %v1160_v39, %v1192_v52  ;;  %v18055_v23 = vld [vmem:[#allocation70_spill] sm:$0xff] }
 0x190   :  { %v1053_v2 = vadd.f32 1e-05, %v1021_v61  ;;  %v991_v38 = vsub.f32 %v927_v20, %v9836_v44  ;;  %v10056_v34 = vmul.f32 %v7727_v32, %v1107_v41  ;;  %v1352_v12 = vmul.f32 %v18052_v60, %v9892_v55  ;;  %v1111_v44 = vld [vmem:[%s17137_s1 + $0xb0] sm:$0xff]  ;;  %v18054_v32 = vld [vmem:[#allocation33_spill] sm:$0xff]  ;;  %v1162_v20 = vld [vmem:[%s17138_s2 + $0x48] sm:$0xff] }
 0x191   :  { %7744 = vrsqrt.f32 %v1054_v57  ;;  %v1024_v49 = vmax.f32 %v992_v6, 0.0  ;;  %1613 = vperm.xlu0 %7371, %v10045_v8   ;;  %v1384_v9 = vadd.f32 %v1320_v26, %v10050_v22  ;;  %v1185_v40 = vmul.f32 %v9828_v1, %v18053_v19  ;;  %v1114_v26 = vld [vmem:[%s17137_s1 + $0xc8] sm:$0xff]  ;;  %v18056_v57 = vld [vmem:[#allocation82_spill] sm:$0xff]  ;;  %v1164_v19 = vld [vmem:[%s17138_s2 + $0x58] sm:$0xff] }
 0x192   :  { %v7733_v5 = vpop.eup %7732  ;;  %v1023_v62 = vmax.f32 %v991_v38, 0.0  ;;  %1578 = vperm.xlu1 %7372, %v9993_v4   ;;  %v10071_v55 = vmul.f32 %v7731_v56, %v1109_v0  ;;  %v1416_v39 = vadd.f32 %v1352_v12, %v10050_v22  ;;  %v1313_v54 = vmul.f32 %v18054_v32, %v9828_v1  ;;  %v18062_v32 = vld [vmem:[#allocation84_spill] sm:$0xff] }
 0x193   :  { %v7735_v16 = vpop.eup %7734  ;;  %v1056_v41 = vadd.f32 1e-05, %v1024_v49  ;;  %v10076_v15 = vmul.f32 %v7733_v5, %v1112_v46  ;;  %1449 = vst.msk [vmem:[%s17139_s9 + $0x38] sm:$0xff] %vm1441_vm2, %v1384_v9  ;;  %v10082_v52 = vsub.f32 %v1153_v18, %v1185_v40  ;;  %v1345_v61 = vmul.f32 %v18055_v23, %v9828_v1  ;;  %v1155_v46 = vld [vmem:[%s17138_s2 + $0x10] sm:$0xff]  ;;  %v18058_v18 = vld [vmem:[#allocation6_spill] sm:$0xff] }
 0x194   :  { %7746 = vrsqrt.f32 %v1053_v2  ;;  %v1055_v58 = vadd.f32 1e-05, %v1023_v62  ;;  %v10092_v56 = vmul.f32 %v7735_v16, %v1111_v44  ;;  %1481 = vst.msk [vmem:[%s17139_s9 + $0x138] sm:$0xff] %vm1441_vm2, %v1416_v39  ;;  %v1194_v1 = vmul.f32 %v9908_v63, %v18056_v57  ;;  %v18057_v2 = vld [vmem:[#allocation40_spill] sm:$0xff]  ;;  %v18059_v44 = vld [vmem:[#allocation71_spill] sm:$0xff]  ;;  %v1116_v16 = vld [vmem:[%s17137_s1 + $0xd8] sm:$0xff] }
 0x195   :  { %7748 = vrsqrt.f32 %v1056_v41  ;;  %1623 = vperm.xlu0 %7371, %v10076_v15   ;;  %v1377_v6 = vadd.f32 %v1313_v54, %v10082_v52  ;;  %v1409_v0 = vadd.f32 %v1345_v61, %v10082_v52  ;;  %v1322_v38 = vmul.f32 %v18057_v2, %v9908_v63  ;;  %v18061_v62 = vld [vmem:[#allocation75_spill] sm:$0xff]  ;;  %v1113_v57 = vld [vmem:[%s17137_s1 + $0xc0] sm:$0xff]  ;;  %v18065_v2 = vld [vmem:[#allocation76_spill] sm:$0xff] }
 0x196   :  { %v7737_v60 = vpop.eup %7736  ;;  %7750 = vrsqrt.f32 %v1055_v58  ;;  %1588 = vperm.xlu1 %7372, %v10012_v11   ;;  %v10109_v12 = vsub.f32 %v1162_v20, %v1194_v1  ;;  %v1354_v49 = vmul.f32 %v18058_v18, %v9908_v63  ;;  %v1187_v9 = vmul.f32 %v9850_v59, %v18059_v44  ;;  %v18060_v63 = vld [vmem:[#allocation31_spill] sm:$0xff]  ;;  %v1115_v44 = vld [vmem:[%s17137_s1 + $0xd0] sm:$0xff] }
 0x197   :  { %v10118_v40 = vmul.f32 %v7737_v60, %v1114_v26  ;;  %1442 = vst.msk [vmem:[%s17139_s9] sm:$0xff] %vm1441_vm2, %v1377_v6  ;;  %1474 = vst.msk [vmem:[%s17139_s9 + $0x100] sm:$0xff] %vm1441_vm2, %v1409_v0  ;;  %v1315_v5 = vmul.f32 %v18060_v63, %v9850_v59  ;;  %v1347_v39 = vmul.f32 %v18061_v62, %v9850_v59  ;;  %v18063_v20 = vld [vmem:[#allocation43_spill] sm:$0xff]  ;;  %v1157_v59 = vld [vmem:[%s17138_s2 + $0x20] sm:$0xff] }
 0x198   :  { %v1196_v54 = vmul.f32 %v9928_v7, %v18062_v32  ;;  %v1386_v41 = vadd.f32 %v1322_v38, %v10109_v12  ;;  %v1418_v23 = vadd.f32 %v1354_v49, %v10109_v12  ;;  %v10139_v61 = vsub.f32 %v1155_v46, %v1187_v9  ;;  %v18064_v6 = vld [vmem:[#allocation87_spill] sm:$0xff]  ;;  %v18066_v46 = vld [vmem:[#allocation37_spill] sm:$0xff]  ;;  %v18068_v62 = vld [vmem:[#allocation88_spill] sm:$0xff] }
 0x199   :  { %v1324_v58 = vmul.f32 %v18063_v20, %v9928_v7  ;;  %v7739_v26 = vpop.eup %7738  ;;  %1633 = vperm.xlu0 %7371, %v10118_v40   ;;  %v1356_v0 = vmul.f32 %v18064_v6, %v9928_v7  ;;  %v1189_v38 = vmul.f32 %v9878_v10, %v18065_v2  ;;  %v1317_v60 = vmul.f32 %v18066_v46, %v9878_v10  ;;  %v1166_v18 = vld [vmem:[%s17138_s2 + $0x68] sm:$0xff] }
 0x19a   :  { %v10150_v1 = vsub.f32 %v1164_v19, %v1196_v54  ;;  %v7741_v49 = vpop.eup %7740  ;;  %1598 = vperm.xlu1 %7372, %v10056_v34   ;;  %1451 = vst.msk [vmem:[%s17139_s9 + $0x48] sm:$0xff] %vm1441_vm2, %v1386_v41  ;;  %1483 = vst.msk [vmem:[%s17139_s9 + $0x148] sm:$0xff] %vm1441_vm2, %v1418_v23  ;;  %v1379_v7 = vadd.f32 %v1315_v5, %v10139_v61  ;;  %v1411_v9 = vadd.f32 %v1347_v39, %v10139_v61  ;;  %v18067_v19 = vld [vmem:[#allocation79_spill] sm:$0xff] }
 0x19b   :  { %v1349_v63 = vmul.f32 %v18067_v19, %v9878_v10  ;;  %v1198_v32 = vmul.f32 %v9948_v27, %v18068_v62  ;;  %v7743_v54 = vpop.eup %7742  ;;  %v10179_v20 = vmul.f32 %v7741_v49, %v1116_v16  ;;  %v10183_v2 = vsub.f32 %v1157_v59, %v1189_v38  ;;  %v1118_v5 = vld [vmem:[%s17137_s1 + $0xe8] sm:$0xff]  ;;  %v18069_v16 = vld [vmem:[#allocation45_spill] sm:$0xff]  ;;  %v18071_v38 = vld [vmem:[#allocation80_spill] sm:$0xff] }
 0x19c   :  { %v1388_v41 = vadd.f32 %v1324_v58, %v10150_v1  ;;  %v1420_v6 = vadd.f32 %v1356_v0, %v10150_v1  ;;  %v10188_v39 = vmul.f32 %v7739_v26, %v1113_v57  ;;  %1444 = vst.msk [vmem:[%s17139_s9 + $0x10] sm:$0xff] %vm1441_vm2, %v1379_v7  ;;  %1476 = vst.msk [vmem:[%s17139_s9 + $0x110] sm:$0xff] %vm1441_vm2, %v1411_v9  ;;  %v18070_v58 = vld [vmem:[#allocation10_spill] sm:$0xff]  ;;  %v1159_v26 = vld [vmem:[%s17138_s2 + $0x30] sm:$0xff] }
 0x19d   :  { %v10198_v10 = vsub.f32 %v1166_v18, %v1198_v32  ;;  %v1326_v23 = vmul.f32 %v18069_v16, %v9948_v27  ;;  %v1358_v59 = vmul.f32 %v18070_v58, %v9948_v27  ;;  %1643 = vperm.xlu0 %7371, %v10179_v20   ;;  %v10208_v57 = vmul.f32 %v7743_v54, %v1115_v44  ;;  %v1168_v18 = vld [vmem:[%s17138_s2 + $0x78] sm:$0xff]  ;;  %v18072_v9 = vld [vmem:[#allocation39_spill] sm:$0xff]  ;;  %v18075_v16 = vld [vmem:[#allocation14_spill] sm:$0xff] }
 0x19e   :  { %1453 = vst.msk [vmem:[%s17139_s9 + $0x58] sm:$0xff] %vm1441_vm2, %v1388_v41  ;;  %1485 = vst.msk [vmem:[%s17139_s9 + $0x158] sm:$0xff] %vm1441_vm2, %v1420_v6  ;;  %v1381_v27 = vadd.f32 %v1317_v60, %v10183_v2  ;;  %v1413_v0 = vadd.f32 %v1349_v63, %v10183_v2  ;;  %v1191_v46 = vmul.f32 %v9901_v45, %v18071_v38  ;;  %v7745_v49 = vpop.eup %7744  ;;  %1608 = vperm.xlu1 %7372, %v10071_v55   ;;  %v18073_v32 = vld [vmem:[#allocation5_spill] sm:$0xff]  ;;  %v18074_v41 = vld [vmem:[#allocation48_spill] sm:$0xff] }
 0x19f   :  { %v1390_v44 = vadd.f32 %v1326_v23, %v10198_v10  ;;  %v1422_v7 = vadd.f32 %v1358_v59, %v10198_v10  ;;  %v1319_v19 = vmul.f32 %v18072_v9, %v9901_v45  ;;  %v1200_v60 = vmul.f32 %v9977_v37, %v9587_v25  ;;  %v1161_v6 = vld [vmem:[%s17138_s2 + $0x40] sm:$0xff]  ;;  %v18076_v58 = vld [vmem:[#allocation83_spill] sm:$0xff] }
 0x1a0   :  { %v10232_v63 = vmul.f32 %v7745_v49, %v1118_v5  ;;  %1446 = vst.msk [vmem:[%s17139_s9 + $0x20] sm:$0xff] %vm1441_vm2, %v1381_v27  ;;  %1478 = vst.msk [vmem:[%s17139_s9 + $0x120] sm:$0xff] %vm1441_vm2, %v1413_v0  ;;  %v10242_v62 = vsub.f32 %v1159_v26, %v1191_v46  ;;  %v1351_v54 = vmul.f32 %v18073_v32, %v9901_v45  ;;  %v1120_v5 = vld [vmem:[%s17137_s1 + $0xf8] sm:$0xff]  ;;  %v1170_v0 = vld [vmem:[%s17138_s2 + $0x88] sm:$0xff] }
 0x1a1   :  { %v1328_v25 = vmul.f32 %v18074_v41, %v9977_v37  ;;  %1455 = vst.msk [vmem:[%s17139_s9 + $0x68] sm:$0xff] %vm1441_vm2, %v1390_v44  ;;  %1487 = vst.msk [vmem:[%s17139_s9 + $0x168] sm:$0xff] %vm1441_vm2, %v1422_v7  ;;  %v10262_v45 = vsub.f32 %v1168_v18, %v1200_v60  ;;  %v1360_v23 = vmul.f32 %v18075_v16, %v9977_v37  ;;  %v18077_v26 = vld [vmem:[#allocation41_spill] sm:$0xff]  ;;  %v7747_v38 = vpop.eup %7746  ;;  %v1117_v46 = vld [vmem:[%s17137_s1 + $0xe0] sm:$0xff] }
 0x1a2   :  { %v1193_v59 = vmul.f32 %v9924_v29, %v18076_v58  ;;  %v1321_v27 = vmul.f32 %v18077_v26, %v9924_v29  ;;  %1653 = vperm.xlu0 %7371, %v10232_v63   ;;  %v1383_v18 = vadd.f32 %v1319_v19, %v10242_v62  ;;  %v1415_v37 = vadd.f32 %v1351_v54, %v10242_v62  ;;  %v18078_v49 = vld [vmem:[#allocation85_spill] sm:$0xff]  ;;  %v7749_v9 = vpop.eup %7748  ;;  %v18079_v16 = vld [vmem:[#allocation50_spill] sm:$0xff]  ;;  %v1163_v54 = vld [vmem:[%s17138_s2 + $0x50] sm:$0xff] }
 0x1a3   :  { %v1353_v44 = vmul.f32 %v18078_v49, %v9924_v29  ;;  %v1202_v7 = vmul.f32 %v9997_v33, %v9613_v31  ;;  %1618 = vperm.xlu1 %7372, %v10092_v56   ;;  %v1392_v60 = vadd.f32 %v1328_v25, %v10262_v45  ;;  %v1424_v32 = vadd.f32 %v1360_v23, %v10262_v45  ;;  %v7751_v29 = vpop.eup %7750  ;;  %v1119_v31 = vld [vmem:[%s17137_s1 + $0xf0] sm:$0xff] }
 0x1a4   :  { %v10286_v41 = vsub.f32 %v1161_v6, %v1193_v59  ;;  %v1330_v19 = vmul.f32 %v18079_v16, %v9997_v33  ;;  %v10293_v58 = vmul.f32 %v7749_v9, %v1120_v5  ;;  %1448 = vst.msk [vmem:[%s17139_s9 + $0x30] sm:$0xff] %vm1441_vm2, %v1383_v18  ;;  %1480 = vst.msk [vmem:[%s17139_s9 + $0x130] sm:$0xff] %vm1441_vm2, %v1415_v37  ;;  %v18080_v5 = vld [vmem:[#allocation86_spill] sm:$0xff]  ;;  %v18082_v37 = vld [vmem:[#allocation9_spill] sm:$0xff] }
 0x1a5   :  { %v10306_v25 = vsub.f32 %v1170_v0, %v1202_v7  ;;  %v1362_v6 = vmul.f32 %v9648_v43, %v9997_v33  ;;  %v1195_v23 = vmul.f32 %v9943_v35, %v18080_v5  ;;  %v10312_v59 = vmul.f32 %v7747_v38, %v1117_v46  ;;  %1457 = vst.msk [vmem:[%s17139_s9 + $0x78] sm:$0xff] %vm1441_vm2, %v1392_v60  ;;  %v18081_v43 = vld [vmem:[#allocation44_spill] sm:$0xff]  ;;  %v18085_v16 = vld [vmem:[#allocation89_spill] sm:$0xff]  ;;  %v18087_v5 = vld [vmem:[#allocation47_spill] sm:$0xff] }
 0x1a6   :  { %1489 = vst.msk [vmem:[%s17139_s9 + $0x178] sm:$0xff] %vm1441_vm2, %v1424_v32  ;;  %v1385_v26 = vadd.f32 %v1321_v27, %v10286_v41  ;;  %v1417_v0 = vadd.f32 %v1353_v44, %v10286_v41  ;;  %v1323_v33 = vmul.f32 %v18081_v43, %v9943_v35  ;;  %1663 = vperm.xlu0 %7371, %v10293_v58   ;;  %v1172_v27 = vld [vmem:[%s17138_s2 + $0x98] sm:$0xff]  ;;  %v1165_v44 = vld [vmem:[%s17138_s2 + $0x60] sm:$0xff]  ;;  %v18084_v60 = vld [vmem:[#allocation52_spill] sm:$0xff] }
 0x1a7   :  { %v1394_v38 = vadd.f32 %v1330_v19, %v10306_v25  ;;  %v1426_v46 = vadd.f32 %v1362_v6, %v10306_v25  ;;  %v10329_v18 = vsub.f32 %v1163_v54, %v1195_v23  ;;  %v1355_v49 = vmul.f32 %v18082_v37, %v9943_v35  ;;  %1628 = vperm.xlu1 %7372, %v10188_v39   ;;  %v18083_v35 = vld [vmem:[#allocation92_spill] sm:$0xff]  ;;  %v18088_v43 = vld [vmem:[#allocation11_spill] sm:$0xff] }
 0x1a8   :  { %v10340_v7 = vmul.f32 %v7751_v29, %v1119_v31  ;;  %1450 = vst.msk [vmem:[%s17139_s9 + $0x40] sm:$0xff] %vm1441_vm2, %v1385_v26  ;;  %1482 = vst.msk [vmem:[%s17139_s9 + $0x140] sm:$0xff] %vm1441_vm2, %v1417_v0  ;;  %v1204_v9 = vmul.f32 %v10017_v42, %v18083_v35  ;;  %v1332_v32 = vmul.f32 %v18084_v60, %v10017_v42  ;;  %v18086_v31 = vld [vmem:[#allocation95_spill] sm:$0xff] }
 0x1a9   :  { %v1197_v19 = vmul.f32 %v9970_v50, %v18085_v16  ;;  %1459 = vst.msk [vmem:[%s17139_s9 + $0x88] sm:$0xff] %vm1441_vm2, %v1394_v38  ;;  %1491 = vst.msk [vmem:[%s17139_s9 + $0x188] sm:$0xff] %vm1441_vm2, %v1426_v46  ;;  %v1387_v54 = vadd.f32 %v1323_v33, %v10329_v18  ;;  %v1419_v29 = vadd.f32 %v1355_v49, %v10329_v18  ;;  %v1174_v46 = vld [vmem:[%s17138_s2 + $0xa8] sm:$0xff]  ;;  %v18090_v49 = vld [vmem:[#allocation12_spill] sm:$0xff] }
 0x1aa   :  { %v1364_v6 = vmul.f32 %v18086_v31, %v10017_v42  ;;  %v1325_v23 = vmul.f32 %v18087_v5, %v9970_v50  ;;  %v10370_v26 = vsub.f32 %v1172_v27, %v1204_v9  ;;  %v1357_v38 = vmul.f32 %v18088_v43, %v9970_v50  ;;  %v1167_v42 = vld [vmem:[%s17138_s2 + $0x70] sm:$0xff]  ;;  %1801 = vperm.xlu0 %7371, %v9855_v24   ;;  %v18089_v50 = vld [vmem:[#allocation54_spill] sm:$0xff]  ;;  %v18091_v24 = vld [vmem:[#allocation49_spill] sm:$0xff] }
 0x1ab   :  { %v10372_v0 = vsub.f32 %v1165_v44, %v1197_v19  ;;  %v1206_v33 = vmul.f32 %v10045_v8, %v9664_v30  ;;  %1452 = vst.msk [vmem:[%s17139_s9 + $0x50] sm:$0xff] %vm1441_vm2, %v1387_v54  ;;  %1484 = vst.msk [vmem:[%s17139_s9 + $0x150] sm:$0xff] %vm1441_vm2, %v1419_v29  ;;  %v1334_v37 = vmul.f32 %v18089_v50, %v10045_v8  ;;  %1638 = vperm.xlu1 %7372, %v10208_v57   ;;  %v1176_v29 = vld [vmem:[%s17138_s2 + $0xb8] sm:$0xff]  ;;  %v18093_v31 = vld [vmem:[#allocation98_spill] sm:$0xff] }
 0x1ac   :  { %v1366_v30 = vmul.f32 %v9688_v13, %v10045_v8  ;;  %v1199_v27 = vmul.f32 %v9993_v4, %v18090_v49  ;;  %v1327_v44 = vmul.f32 %v18091_v24, %v9993_v4  ;;  %v1396_v35 = vadd.f32 %v1332_v32, %v10370_v26  ;;  %v18092_v13 = vld [vmem:[#allocation91_spill] sm:$0xff] }
 0x1ad   :  { %v1428_v9 = vadd.f32 %v1364_v6, %v10370_v26  ;;  %v1389_v60 = vadd.f32 %v1325_v23, %v10372_v0  ;;  %v1421_v16 = vadd.f32 %v1357_v38, %v10372_v0  ;;  %v10406_v19 = vsub.f32 %v1174_v46, %v1206_v33  ;;  %v1169_v6 = vld [vmem:[%s17138_s2 + $0x80] sm:$0xff]  ;;  %v18095_v23 = vld [vmem:[#allocation101_spill] sm:$0xff]  ;;  %v18097_v33 = vld [vmem:[#allocation51_spill] sm:$0xff] }
 0x1ae   :  { %v10408_v54 = vsub.f32 %v1167_v42, %v1199_v27  ;;  %v1359_v8 = vmul.f32 %v18092_v13, %v9993_v4  ;;  %v1208_v32 = vmul.f32 %v10076_v15, %v18093_v31  ;;  %1461 = vst.msk [vmem:[%s17139_s9 + $0x98] sm:$0xff] %vm1441_vm2, %v1396_v35  ;;  %v18094_v4 = vld [vmem:[#allocation57_spill] sm:$0xff]  ;;  %v1368_v43 = vmul.f32 %v18095_v23, %v10076_v15  ;;  %v18096_v38 = vld [vmem:[#allocation90_spill] sm:$0xff] }
 0x1af   :  { %1493 = vst.msk [vmem:[%s17139_s9 + $0x198] sm:$0xff] %vm1441_vm2, %v1428_v9  ;;  %1454 = vst.msk [vmem:[%s17139_s9 + $0x60] sm:$0xff] %vm1441_vm2, %v1389_v60  ;;  %v1336_v5 = vmul.f32 %v18094_v4, %v10076_v15  ;;  %v1201_v46 = vmul.f32 %v10012_v11, %v18096_v38  ;;  %v1329_v42 = vmul.f32 %v18097_v33, %v10012_v11  ;;  %1811 = vperm.xlu0 %7371, %v9921_v47   ;;  %v18098_v9 = vld [vmem:[#allocation94_spill] sm:$0xff]  ;;  %v1178_v47 = vld [vmem:[%s17138_s2 + $0xc8] sm:$0xff] }
 0x1b0   :  { %1486 = vst.msk [vmem:[%s17139_s9 + $0x160] sm:$0xff] %vm1441_vm2, %v1421_v16  ;;  %v1398_v50 = vadd.f32 %v1334_v37, %v10406_v19  ;;  %v1430_v49 = vadd.f32 %v1366_v30, %v10406_v19  ;;  %v1391_v27 = vadd.f32 %v1327_v44, %v10408_v54  ;;  %v1423_v24 = vadd.f32 %v1359_v8, %v10408_v54  ;;  %v1171_v30 = vld [vmem:[%s17138_s2 + $0x90] sm:$0xff]  ;;  %v18100_v16 = vld [vmem:[#allocation93_spill] sm:$0xff] }
 0x1b1   :  { %1648 = vperm.xlu1 %7372, %v10312_v59   ;;  %v10450_v35 = vsub.f32 %v1176_v29, %v1208_v32  ;;  %v10452_v15 = vsub.f32 %v1169_v6, %v1201_v46  ;;  %v1361_v60 = vmul.f32 %v18098_v9, %v10012_v11  ;;  %v1210_v37 = vmul.f32 %v10118_v40, %v9719_v17  ;;  %v18099_v17 = vld [vmem:[#allocation59_spill] sm:$0xff]  ;;  %v18101_v8 = vld [vmem:[#allocation53_spill] sm:$0xff] }
 0x1b2   :  { %1463 = vst.msk [vmem:[%s17139_s9 + $0xa8] sm:$0xff] %vm1441_vm2, %v1398_v50  ;;  %1495 = vst.msk [vmem:[%s17139_s9 + $0x1a8] sm:$0xff] %vm1441_vm2, %v1430_v49  ;;  %v1338_v11 = vmul.f32 %v18099_v17, %v10118_v40  ;;  %v1370_v44 = vmul.f32 %v9722_v51, %v10118_v40  ;;  %v1203_v13 = vmul.f32 %v10056_v34, %v18100_v16  ;;  %v18102_v51 = vld [vmem:[#allocation97_spill] sm:$0xff]  ;;  %v18106_v49 = vld [vmem:[#allocation55_spill] sm:$0xff] }
 0x1b3   :  { %1456 = vst.msk [vmem:[%s17139_s9 + $0x70] sm:$0xff] %vm1441_vm2, %v1391_v27  ;;  %1488 = vst.msk [vmem:[%s17139_s9 + $0x170] sm:$0xff] %vm1441_vm2, %v1423_v24  ;;  %v1331_v29 = vmul.f32 %v18101_v8, %v10056_v34  ;;  %v1400_v31 = vadd.f32 %v1336_v5, %v10450_v35  ;;  %v1432_v32 = vadd.f32 %v1368_v43, %v10450_v35  ;;  %1821 = vperm.xlu0 %7371, %v9990_v28   ;;  %v1180_v46 = vld [vmem:[%s17138_s2 + $0xd8] sm:$0xff]  ;;  %v1173_v43 = vld [vmem:[%s17138_s2 + $0xa0] sm:$0xff] }
 0x1b4   :  { %v1393_v6 = vadd.f32 %v1329_v42, %v10452_v15  ;;  %v1425_v4 = vadd.f32 %v1361_v60, %v10452_v15  ;;  %v10493_v23 = vsub.f32 %v1178_v47, %v1210_v37  ;;  %v10495_v38 = vsub.f32 %v1171_v30, %v1203_v13  ;;  %v18105_v42 = vld [vmem:[#allocation96_spill] sm:$0xff]  ;;  %v1182_v16 = vld [vmem:[%s17138_s2 + $0xe8] sm:$0xff] }
 0x1b5   :  { %v1363_v40 = vmul.f32 %v18102_v51, %v10056_v34  ;;  %v1212_v5 = vmul.f32 %v10179_v20, %v9732_v3  ;;  %1658 = vperm.xlu1 %7372, %v10340_v7   ;;  %1465 = vst.msk [vmem:[%s17139_s9 + $0xb8] sm:$0xff] %vm1441_vm2, %v1400_v31  ;;  %1497 = vst.msk [vmem:[%s17139_s9 + $0x1b8] sm:$0xff] %vm1441_vm2, %v1432_v32  ;;  %v18103_v3 = vld [vmem:[#allocation62_spill] sm:$0xff]  ;;  %v18104_v34 = vld [vmem:[#allocation105_spill] sm:$0xff]  ;;  %v1205_v50 = vmul.f32 %v10071_v55, %v18105_v42 }
 0x1b6   :  { %1458 = vst.msk [vmem:[%s17139_s9 + $0x80] sm:$0xff] %vm1441_vm2, %v1393_v6  ;;  %1490 = vst.msk [vmem:[%s17139_s9 + $0x180] sm:$0xff] %vm1441_vm2, %v1425_v4  ;;  %v1340_v28 = vmul.f32 %v18103_v3, %v10179_v20  ;;  %v1372_v33 = vmul.f32 %v18104_v34, %v10179_v20  ;;  %v1333_v27 = vmul.f32 %v18106_v49, %v10071_v55  ;;  %v18107_v20 = vld [vmem:[#allocation99_spill] sm:$0xff]  ;;  %v18109_v13 = vld [vmem:[#allocation100_spill] sm:$0xff] }
 0x1b7   :  { %v1402_v24 = vadd.f32 %v1338_v11, %v10493_v23  ;;  %v1434_v9 = vadd.f32 %v1370_v44, %v10493_v23  ;;  %v1395_v60 = vadd.f32 %v1331_v29, %v10495_v38  ;;  %v1427_v47 = vadd.f32 %v1363_v40, %v10495_v38  ;;  %v1175_v44 = vld [vmem:[%s17138_s2 + $0xb0] sm:$0xff]  ;;  %1831 = vperm.xlu0 %7371, %v10050_v22   ;;  %v18110_v29 = vld [vmem:[#allocation58_spill] sm:$0xff] }
 0x1b8   :  { %v10536_v37 = vsub.f32 %v1180_v46, %v1212_v5  ;;  %v10538_v30 = vsub.f32 %v1173_v43, %v1205_v50  ;;  %v1365_v17 = vmul.f32 %v18107_v20, %v10071_v55  ;;  %v1214_v11 = vmul.f32 %v10232_v63, %v9783_v14  ;;  %v18108_v14 = vld [vmem:[#allocation63_spill] sm:$0xff]  ;;  %v1184_v5 = vld [vmem:[%s17138_s2 + $0xf8] sm:$0xff]  ;;  %v1177_v43 = vld [vmem:[%s17138_s2 + $0xc0] sm:$0xff] }
 0x1b9   :  { %1467 = vst.msk [vmem:[%s17139_s9 + $0xc8] sm:$0xff] %vm1441_vm2, %v1402_v24  ;;  %1499 = vst.msk [vmem:[%s17139_s9 + $0x1c8] sm:$0xff] %vm1441_vm2, %v1434_v9  ;;  %v1342_v22 = vmul.f32 %v18108_v14, %v10232_v63  ;;  %v1374_v55 = vmul.f32 %v9768_v36, %v10232_v63  ;;  %v1207_v8 = vmul.f32 %v10092_v56, %v18109_v13  ;;  %1796 = vperm.xlu1 %7372, %v10082_v52   ;;  %v18111_v36 = vld [vmem:[#allocation102_spill] sm:$0xff] }
 0x1ba   :  { %1460 = vst.msk [vmem:[%s17139_s9 + $0x90] sm:$0xff] %vm1441_vm2, %v1395_v60  ;;  %1492 = vst.msk [vmem:[%s17139_s9 + $0x190] sm:$0xff] %vm1441_vm2, %v1427_v47  ;;  %v1335_v31 = vmul.f32 %v18110_v29, %v10092_v56  ;;  %v1404_v32 = vadd.f32 %v1340_v28, %v10536_v37  ;;  %v1436_v6 = vadd.f32 %v1372_v33, %v10536_v37  ;;  %v18113_v28 = vld [vmem:[#allocation103_spill] sm:$0xff]  ;;  %v18114_v33 = vld [vmem:[#allocation61_spill] sm:$0xff] }
 0x1bb   :  { %v1397_v4 = vadd.f32 %v1333_v27, %v10538_v30  ;;  %v1429_v51 = vadd.f32 %v1365_v17, %v10538_v30  ;;  %v10580_v40 = vsub.f32 %v1182_v16, %v1214_v11  ;;  %v10582_v46 = vsub.f32 %v1175_v44, %v1207_v8  ;;  %1841 = vperm.xlu0 %7371, %v10109_v12   ;;  %v1179_v12 = vld [vmem:[%s17138_s2 + $0xd0] sm:$0xff]  ;;  %v1181_v20 = vld [vmem:[%s17138_s2 + $0xe0] sm:$0xff]  ;;  %v18118_v16 = vld [vmem:[#allocation21_spill] sm:$0xff] }
 0x1bc   :  { %v1367_v63 = vmul.f32 %v18111_v36, %v10092_v56  ;;  %v1216_v52 = vmul.f32 %v10293_v58, %v9802_v48  ;;  %1469 = vst.msk [vmem:[%s17139_s9 + $0xd8] sm:$0xff] %vm1441_vm2, %v1404_v32  ;;  %1501 = vst.msk [vmem:[%s17139_s9 + $0x1d8] sm:$0xff] %vm1441_vm2, %v1436_v6  ;;  %v18112_v48 = vld [vmem:[#allocation67_spill] sm:$0xff]  ;;  %v1376_v3 = vmul.f32 %v9792_v21, %v10293_v58  ;;  %v18119_v44 = vld [vmem:[#allocation66_spill] sm:$0xff] }
 0x1bd   :  { %1462 = vst.msk [vmem:[%s17139_s9 + $0xa0] sm:$0xff] %vm1441_vm2, %v1397_v4  ;;  %1494 = vst.msk [vmem:[%s17139_s9 + $0x1a0] sm:$0xff] %vm1441_vm2, %v1429_v51  ;;  %v1344_v56 = vmul.f32 %v18112_v48, %v10293_v58  ;;  %v1209_v34 = vmul.f32 %v10188_v39, %v18113_v28  ;;  %v1337_v42 = vmul.f32 %v18114_v33, %v10188_v39  ;;  %1806 = vperm.xlu1 %7372, %v10139_v61   ;;  %v18115_v58 = vld [vmem:[#allocation104_spill] sm:$0xff]  ;;  %v18121_v4 = vld [vmem:[#allocation18_spill] sm:$0xff] }
 0x1be   :  { %v1406_v50 = vadd.f32 %v1342_v22, %v10580_v40  ;;  %v1438_v49 = vadd.f32 %v1374_v55, %v10580_v40  ;;  %v1399_v27 = vadd.f32 %v1335_v31, %v10582_v46  ;;  %v1431_v24 = vadd.f32 %v1367_v63, %v10582_v46  ;;  %v1183_v6 = vld [vmem:[%s17138_s2 + $0xf0] sm:$0xff]  ;;  %v18122_v36 = vld [vmem:[#allocation2_spill] sm:$0xff] }
 0x1bf   :  { %v10624_v9 = vsub.f32 %v1184_v5, %v1216_v52  ;;  %v10626_v21 = vsub.f32 %v1177_v43, %v1209_v34  ;;  %v1369_v60 = vmul.f32 %v18115_v58, %v10188_v39  ;;  %v1211_v47 = vmul.f32 %v10208_v57, %v9755_v53  ;;  %v18116_v53 = vld [vmem:[#allocation64_spill] sm:$0xff]  ;;  %v18117_v39 = vld [vmem:[#allocation106_spill] sm:$0xff]  ;;  %1851 = vperm.xlu0 %7371, %v10150_v1  }
 0x1c0   :  { %1471 = vst.msk [vmem:[%s17139_s9 + $0xe8] sm:$0xff] %vm1441_vm2, %v1406_v50  ;;  %1503 = vst.msk [vmem:[%s17139_s9 + $0x1e8] sm:$0xff] %vm1441_vm2, %v1438_v49  ;;  %v1339_v61 = vmul.f32 %v18116_v53, %v10208_v57  ;;  %v1371_v17 = vmul.f32 %v18117_v39, %v10208_v57  ;;  %v1213_v11 = vmul.f32 %v10312_v59, %v18118_v16  ;;  %v18120_v57 = vld [vmem:[#allocation17_spill] sm:$0xff]  ;;  %v1279_v63 = vmul.f32 0.0051020407, %v18122_v36  ;;  %v18123_v5 = vld [vmem:[#allocation20_spill] sm:$0xff] }
 0x1c1   :  { %1464 = vst.msk [vmem:[%s17139_s9 + $0xb0] sm:$0xff] %vm1441_vm2, %v1399_v27  ;;  %1496 = vst.msk [vmem:[%s17139_s9 + $0x1b0] sm:$0xff] %vm1441_vm2, %v1431_v24  ;;  %v1341_v14 = vmul.f32 %v18119_v44, %v10312_v59  ;;  %v1408_v22 = vadd.f32 %v1344_v56, %v10624_v9  ;;  %v1440_v55 = vadd.f32 %v1376_v3, %v10624_v9  ;;  %v1311_v52 = vmul.f32 0.0051020407, %v18123_v5  ;;  %v7752_v53 = vld [vmem:[%s17135_s0] sm:$0xff]  ;;  %v7753_v39 = vld [vmem:[%s17135_s0 + $0x8] sm:$0xff] }
 0x1c2   :  { %v1401_v13 = vadd.f32 %v1337_v42, %v10626_v21  ;;  %v1433_v8 = vadd.f32 %v1369_v60, %v10626_v21  ;;  %v1243_v29 = vsub.f32 %v1179_v12, %v1211_v47  ;;  %v1245_v31 = vsub.f32 %v1181_v20, %v1213_v11  ;;  %1816 = vperm.xlu1 %7372, %v10183_v2  }
 0x1c3   :  { %v1373_v32 = vmul.f32 %v18120_v57, %v10312_v59  ;;  %v1215_v51 = vmul.f32 %v10340_v7, %v18121_v4  ;;  %1473 = vst.msk [vmem:[%s17139_s9 + $0xf8] sm:$0xff] %vm1441_vm2, %v1408_v22  ;;  %1505 = vst.msk [vmem:[%s17139_s9 + $0x1f8] sm:$0xff] %vm1441_vm2, %v1440_v55  ;;  %v1343_v56 = vmul.f32 %v1279_v63, %v10340_v7  ;;  %1861 = vperm.xlu0 %7371, %v10198_v10   ;;  %v7754_v22 = vld [vmem:[%s17135_s0 + $0x10] sm:$0xff]  ;;  %v7757_v4 = vld [vmem:[%s17135_s0 + $0x28] sm:$0xff] }
 0x1c4   :  { %1466 = vst.msk [vmem:[%s17139_s9 + $0xc0] sm:$0xff] %vm1441_vm2, %v1401_v13  ;;  %1498 = vst.msk [vmem:[%s17139_s9 + $0x1c0] sm:$0xff] %vm1441_vm2, %v1433_v8  ;;  %v1403_v1 = vadd.f32 %v1339_v61, %v1243_v29  ;;  %v1435_v2 = vadd.f32 %v1371_v17, %v1243_v29  ;;  %v1405_v59 = vadd.f32 %v1341_v14, %v1245_v31  ;;  %v7755_v13 = vld [vmem:[%s17135_s0 + $0x18] sm:$0xff] }
 0x1c5   :  { %v1437_v43 = vadd.f32 %v1373_v32, %v1245_v31  ;;  %v1247_v48 = vsub.f32 %v1183_v6, %v1215_v51  ;;  %v1375_v3 = vmul.f32 %v1311_v52, %v10340_v7  ;;  %v7756_v32 = vld [vmem:[%s17135_s0 + $0x20] sm:$0xff]  ;;  %v7758_v52 = vld [vmem:[%s17135_s0 + $0x30] sm:$0xff] }
 0x1c6   :  { %1468 = vst.msk [vmem:[%s17139_s9 + $0xd0] sm:$0xff] %vm1441_vm2, %v1403_v1  ;;  %1500 = vst.msk [vmem:[%s17139_s9 + $0x1d0] sm:$0xff] %vm1441_vm2, %v1435_v2  ;;  %1826 = vperm.xlu1 %7372, %v10242_v62   ;;  %v7759_v2 = vld [vmem:[%s17135_s0 + $0x38] sm:$0xff] }
 0x1c7   :  { %1470 = vst.msk [vmem:[%s17139_s9 + $0xe0] sm:$0xff] %vm1441_vm2, %v1405_v59  ;;  %1502 = vst.msk [vmem:[%s17139_s9 + $0x1e0] sm:$0xff] %vm1441_vm2, %v1437_v43  ;;  %v1407_v10 = vadd.f32 %v1343_v56, %v1247_v48  ;;  %v1439_v7 = vadd.f32 %v1375_v3, %v1247_v48  ;;  %1871 = vperm.xlu0 %7371, %v10262_v45   ;;  %v7760_v3 = vld [vmem:[%s17135_s0 + $0x40] sm:$0xff] }
 0x1c9   :  { %1472 = vst.msk [vmem:[%s17139_s9 + $0xf0] sm:$0xff] %vm1441_vm2, %v1407_v10  ;;  %1504 = vst.msk [vmem:[%s17139_s9 + $0x1f0] sm:$0xff] %vm1441_vm2, %v1439_v7  ;;  %v7761_v7 = vld [vmem:[%s17135_s0 + $0x48] sm:$0xff]  ;;  %vm6579_vm2 = vcmask 203776  }
 0x1ca   :  { %1836 = vperm.xlu1 %7372, %v10286_v41  }
 0x1cb   :  { %1881 = vperm.xlu0 %7371, %v10306_v25  }
 0x1ce   :  { %1846 = vperm.xlu1 %7372, %v10329_v18  }
 0x1cf   :  { %1891 = vperm.xlu0 %7371, %v10370_v26  }
 0x1d2   :  { %1856 = vperm.xlu1 %7372, %v10372_v0  }
 0x1d3   :  { %1901 = vperm.xlu0 %7371, %v10406_v19  }
 0x1d6   :  { %1866 = vperm.xlu1 %7372, %v10408_v54  }
 0x1d7   :  { %1911 = vperm.xlu0 %7371, %v10450_v35  }
 0x1da   :  { %1876 = vperm.xlu1 %7372, %v10452_v15  }
 0x1db   :  { %1921 = vperm.xlu0 %7371, %v10493_v23  }
 0x1de   :  { %1886 = vperm.xlu1 %7372, %v10495_v38  }
 0x1df   :  { %1931 = vperm.xlu0 %7371, %v10536_v37  }
 0x1e2   :  { %1896 = vperm.xlu1 %7372, %v10538_v30  }
 0x1e3   :  { %1941 = vperm.xlu0 %7371, %v10580_v40  }
 0x1e4   :  { %v10737_v62 = vpop.permute.xlu1 %1513 }
 0x1e5   :  { %v10745_v25 = vpop.permute.xlu0 %1508  ;;  %v1668_v55 = vmul.f32 %v7754_v22, %v10737_v62  ;;  %v1669_v8 = vmul.f32 %v7755_v13, %v10737_v62  ;;  %v7762_v22 = vld [vmem:[%s17135_s0 + $0x50] sm:$0xff]  ;;  %v7763_v13 = vld [vmem:[%s17135_s0 + $0x58] sm:$0xff] }
 0x1e6   :  { %1906 = vperm.xlu1 %7372, %v10582_v46   ;;  %v1666_v61 = vmul.f32 %v7752_v53, %v10745_v25  ;;  %v1667_v17 = vmul.f32 %v7753_v39, %v10745_v25 }
 0x1e7   :  { %1951 = vperm.xlu0 %7371, %v10624_v9  }
 0x1e9   :  { %v10741_v45 = vpop.permute.xlu1 %1518 }
 0x1ea   :  { %1916 = vperm.xlu1 %7372, %v10626_v21   ;;  %v1670_v6 = vmul.f32 %v7756_v32, %v10741_v45  ;;  %v1671_v51 = vmul.f32 %v7757_v4, %v10741_v45 }
 0x1ed   :  { %v10743_v41 = vpop.permute.xlu1 %1523 }
 0x1ee   :  { %1926 = vperm.xlu1 %7372, %v1243_v29   ;;  %v1672_v1 = vmul.f32 %v7758_v52, %v10743_v41  ;;  %v1673_v59 = vmul.f32 %v7759_v2, %v10743_v41 }
 0x1f1   :  { %v10747_v18 = vpop.permute.xlu1 %1528 }
 0x1f2   :  { %1936 = vperm.xlu1 %7372, %v1245_v31   ;;  %v1674_v10 = vmul.f32 %v7760_v3, %v10747_v18  ;;  %v1675_v53 = vmul.f32 %v7761_v7, %v10747_v18  ;;  %v7766_v7 = vld [vmem:[%s17135_s0 + $0x70] sm:$0xff] }
 0x1f4   :  { %v10749_v26 = vpop.permute.xlu0 %1553 }
 0x1f5   :  { %v10751_v0 = vpop.permute.xlu1 %1533 }
 0x1f6   :  { %1946 = vperm.xlu1 %7372, %v1247_v48  }
 0x1f8   :  { %v10753_v19 = vpop.permute.xlu0 %1563 }
 0x1f9   :  { %v10755_v54 = vpop.permute.xlu1 %1538 }
 0x1fc   :  { %v10757_v35 = vpop.permute.xlu0 %1573 }
 0x1fd   :  { %v10759_v15 = vpop.permute.xlu1 %1543 }
 0x200   :  { %v10761_v23 = vpop.permute.xlu0 %1583 }
 0x201   :  { %v10763_v38 = vpop.permute.xlu1 %1548 }
 0x204   :  { %v10765_v37 = vpop.permute.xlu0 %1593 }
 0x205   :  { %v10767_v30 = vpop.permute.xlu1 %1558 }
 0x208   :  { %v10771_v46 = vpop.permute.xlu0 %1603 }
 0x209   :  { %v10769_v40 = vpop.permute.xlu1 %1568 }
 0x20c   :  { %v10775_v34 = vpop.permute.xlu0 %1613 }
 0x20d   :  { %v10773_v28 = vpop.permute.xlu1 %1578 }
 0x210   :  { %v10779_v42 = vpop.permute.xlu0 %1623 }
 0x211   :  { %v10777_v33 = vpop.permute.xlu1 %1588  ;;  %18124 = vst [vmem:[#allocation22_spill] sm:$0xff] %v10779_v42 }
 0x214   :  { %v10785_v27 = vpop.permute.xlu0 %1633 }
 0x215   :  { %v10781_v50 = vpop.permute.xlu1 %1598  ;;  %18125 = vst [vmem:[#allocation19_spill] sm:$0xff] %v10785_v27 }
 0x218   :  { %v10789_v9 = vpop.permute.xlu0 %1643 }
 0x219   :  { %v10783_v49 = vpop.permute.xlu1 %1608  ;;  %18126 = vst [vmem:[#allocation23_spill] sm:$0xff] %v10789_v9 }
 0x21d   :  { %v10795_v60 = vpop.permute.xlu0 %1653 }
 0x21e   :  { %v10787_v24 = vpop.permute.xlu1 %1618  ;;  %18129 = vst [vmem:[#allocation26_spill] sm:$0xff] %v10795_v60 }
 0x221   :  { %v10799_v47 = vpop.permute.xlu0 %1663 }
 0x222   :  { %v10791_v21 = vpop.permute.xlu1 %1628 }
 0x223   :  { %18127 = vst [vmem:[#allocation24_spill] sm:$0xff] %v10791_v21 }
 0x225   :  { %v10819_v14 = vpop.permute.xlu0 %1801 }
 0x226   :  { %v10793_v58 = vpop.permute.xlu1 %1638  ;;  %v10834_v29 = vadd.f32 %v10819_v14, %v1668_v55  ;;  %v10837_v31 = vadd.f32 %v10819_v14, %v1669_v8  ;;  %v1676_v55 = vmul.f32 %v7762_v22, %v10751_v0  ;;  %v1677_v8 = vmul.f32 %v7763_v13, %v10751_v0  ;;  %v7767_v22 = vld [vmem:[%s17135_s0 + $0x78] sm:$0xff] }
 0x227   :  { %18128 = vst [vmem:[#allocation25_spill] sm:$0xff] %v10793_v58 }
 0x228   :  { %18133 = vst [vmem:[#allocation29_spill] sm:$0xff] %v10834_v29  ;;  %18134 = vst [vmem:[#allocation30_spill] sm:$0xff] %v10837_v31 }
 0x22a   :  { %v10859_v5 = vpop.permute.xlu0 %1811 }
 0x22b   :  { %v10874_v43 = vadd.f32 %v10859_v5, %v1672_v1  ;;  %v10877_v48 = vadd.f32 %v10859_v5, %v1673_v59  ;;  %v7765_v1 = vld [vmem:[%s17135_s0 + $0x68] sm:$0xff] }
 0x22c   :  { %v10797_v12 = vpop.permute.xlu1 %1648  ;;  %v1679_v2 = vmul.f32 %v7765_v1, %v10755_v54 }
 0x22d   :  { %18130 = vst [vmem:[#allocation27_spill] sm:$0xff] %v10797_v12  ;;  %18137 = vst [vmem:[#allocation46_spill] sm:$0xff] %v10874_v43 }
 0x22e   :  { %18138 = vst [vmem:[#allocation68_spill] sm:$0xff] %v10877_v48 }
 0x230   :  { %v10801_v20 = vpop.permute.xlu1 %1658 }
 0x234   :  { %v10811_v16 = vpop.permute.xlu1 %1796 }
 0x235   :  { %v10814_v11 = vadd.f32 %v10811_v16, %v1666_v61  ;;  %v10817_v44 = vadd.f32 %v10811_v16, %v1667_v17  ;;  %v10899_v17 = vpop.permute.xlu0 %1821 }
 0x236   :  { %v10914_v32 = vadd.f32 %v10899_v17, %v1676_v55  ;;  %v1681_v55 = vmul.f32 %v7767_v22, %v10759_v15 }
 0x237   :  { %18131 = vst [vmem:[#allocation28_spill] sm:$0xff] %v10814_v11  ;;  %18132 = vst [vmem:[#allocation35_spill] sm:$0xff] %v10817_v44  ;;  %2212 = vrot.lane.b32.xlu0 %v10817_v44, %s7937_s28  ;;  %2210 = vrot.lane.b32.xlu1 %v10814_v11, %s7937_s28 }
 0x238   :  { %v10839_v57 = vpop.permute.xlu1 %1806  ;;  %18141 = vst [vmem:[#allocation34_spill] sm:$0xff] %v10914_v32 }
 0x239   :  { %v10854_v36 = vadd.f32 %v10839_v57, %v1670_v6  ;;  %v10857_v63 = vadd.f32 %v10839_v57, %v1671_v51  ;;  %v10917_v6 = vadd.f32 %v10899_v17, %v1677_v8  ;;  %v7764_v51 = vld [vmem:[%s17135_s0 + $0x60] sm:$0xff] }
 0x23a   :  { %v1678_v52 = vmul.f32 %v7764_v51, %v10755_v54 }
 0x23b   :  { %2216 = vrot.lane.b32.xlu0 %v10837_v31, %s7937_s28  ;;  %2214 = vrot.lane.b32.xlu1 %v10834_v29, %s7937_s28  ;;  %18135 = vst [vmem:[#allocation32_spill] sm:$0xff] %v10854_v36  ;;  %18136 = vst [vmem:[#allocation42_spill] sm:$0xff] %v10857_v63 }
 0x23c   :  { %18142 = vst [vmem:[#allocation69_spill] sm:$0xff] %v10917_v6 }
 0x23d   :  { %v10879_v56 = vpop.permute.xlu1 %1816 }
 0x23e   :  { %v10894_v61 = vadd.f32 %v10879_v56, %v1674_v10  ;;  %v10897_v39 = vadd.f32 %v10879_v56, %v1675_v53  ;;  %v10939_v10 = vpop.permute.xlu0 %1831  ;;  %v1680_v53 = vmul.f32 %v7766_v7, %v10759_v15 }
 0x23f   :  { %2220 = vrot.lane.b32.xlu0 %v10857_v63, %s7937_s28  ;;  %2218 = vrot.lane.b32.xlu1 %v10854_v36, %s7937_s28  ;;  %v10957_v8 = vadd.f32 %v10939_v10, %v1681_v55 }
 0x240   :  { %18139 = vst [vmem:[#allocation56_spill] sm:$0xff] %v10894_v61  ;;  %18140 = vst [vmem:[#allocation60_spill] sm:$0xff] %v10897_v39  ;;  %v10954_v13 = vadd.f32 %v10939_v10, %v1680_v53 }
 0x241   :  { %v10919_v4 = vpop.permute.xlu1 %1826  ;;  %18146 = vst [vmem:[#allocation4_spill] sm:$0xff] %v10957_v8 }
 0x242   :  { %v10934_v59 = vadd.f32 %v10919_v4, %v1678_v52  ;;  %v10937_v3 = vadd.f32 %v10919_v4, %v1679_v2  ;;  %18145 = vst [vmem:[#allocation3_spill] sm:$0xff] %v10954_v13  ;;  %v7768_v52 = vld [vmem:[%s17135_s0 + $0x80] sm:$0xff]  ;;  %v7769_v2 = vld [vmem:[%s17135_s0 + $0x88] sm:$0xff]  ;;  %v10979_v55 = vpop.permute.xlu0 %1841 }
 0x243   :  { %2224 = vrot.lane.b32.xlu0 %v10877_v48, %s7937_s28  ;;  %2222 = vrot.lane.b32.xlu1 %v10874_v43, %s7937_s28  ;;  %v1682_v1 = vmul.f32 %v7768_v52, %v10763_v38  ;;  %v1683_v7 = vmul.f32 %v7769_v2, %v10763_v38  ;;  %v7770_v52 = vld [vmem:[%s17135_s0 + $0x90] sm:$0xff] }
 0x244   :  { %18143 = vst [vmem:[#allocation72_spill] sm:$0xff] %v10934_v59  ;;  %18144 = vst [vmem:[#allocation73_spill] sm:$0xff] %v10937_v3  ;;  %v1684_v2 = vmul.f32 %v7770_v52, %v10749_v26  ;;  %v7772_v52 = vld [vmem:[%s17135_s0 + $0xa0] sm:$0xff] }
 0x245   :  { %v10959_v51 = vpop.permute.xlu1 %1836 }
 0x246   :  { %v10974_v53 = vadd.f32 %v10959_v51, %v1682_v1  ;;  %v10977_v22 = vadd.f32 %v10959_v51, %v1683_v7  ;;  %v10994_v1 = vadd.f32 %v10979_v55, %v1684_v2  ;;  %v11019_v48 = vpop.permute.xlu0 %1851 }
 0x247   :  { %2228 = vrot.lane.b32.xlu0 %v10897_v39, %s7937_s28  ;;  %2226 = vrot.lane.b32.xlu1 %v10894_v61, %s7937_s28 }
 0x248   :  { %18147 = vst [vmem:[#allocation74_spill] sm:$0xff] %v10974_v53  ;;  %18148 = vst [vmem:[#allocation7_spill] sm:$0xff] %v10977_v22 }
 0x249   :  { %18149 = vst [vmem:[#allocation8_spill] sm:$0xff] %v10994_v1 }
 0x24b   :  { %2232 = vrot.lane.b32.xlu0 %v10917_v6, %s7937_s28  ;;  %2230 = vrot.lane.b32.xlu1 %v10914_v32, %s7937_s28  ;;  %v10999_v6 = vpop.permute.xlu1 %1846 }
 0x24f   :  { %2236 = vrot.lane.b32.xlu0 %v10937_v3, %s7937_s28  ;;  %2234 = vrot.lane.b32.xlu1 %v10934_v59, %s7937_s28  ;;  %v11039_v31 = vpop.permute.xlu1 %1856 }
 0x253   :  { %2240 = vrot.lane.b32.xlu0 %v10957_v8, %s7937_s28  ;;  %2238 = vrot.lane.b32.xlu1 %v10954_v13, %s7937_s28  ;;  %v7771_v8 = vld [vmem:[%s17135_s0 + $0x98] sm:$0xff] }
 0x254   :  { %v1685_v3 = vmul.f32 %v7771_v8, %v10749_v26  ;;  %v1686_v8 = vmul.f32 %v7772_v52, %v10767_v30  ;;  %v7774_v52 = vld [vmem:[%s17135_s0 + $0xb0] sm:$0xff] }
 0x256   :  { %v10997_v7 = vadd.f32 %v10979_v55, %v1685_v3  ;;  %v11014_v3 = vadd.f32 %v10999_v6, %v1686_v8 }
 0x257   :  { %2244 = vrot.lane.b32.xlu0 %v10977_v22, %s7937_s28  ;;  %2242 = vrot.lane.b32.xlu1 %v10974_v53, %s7937_s28  ;;  %v7773_v22 = vld [vmem:[%s17135_s0 + $0xa8] sm:$0xff] }
 0x258   :  { %18150 = vst [vmem:[#allocation36_spill] sm:$0xff] %v10997_v7  ;;  %v1687_v39 = vmul.f32 %v7773_v22, %v10767_v30  ;;  %18151 = vst [vmem:[#allocation77_spill] sm:$0xff] %v11014_v3  ;;  %v1688_v22 = vmul.f32 %v7774_v52, %v10753_v19  ;;  %v7776_v52 = vld [vmem:[%s17135_s0 + $0xc0] sm:$0xff] }
 0x25a   :  { %v11017_v2 = vadd.f32 %v10999_v6, %v1687_v39  ;;  %v11034_v39 = vadd.f32 %v11019_v48, %v1688_v22 }
 0x25b   :  { %2248 = vrot.lane.b32.xlu0 %v10997_v7, %s7937_s28  ;;  %2246 = vrot.lane.b32.xlu1 %v10994_v1, %s7937_s28  ;;  %v7775_v7 = vld [vmem:[%s17135_s0 + $0xb8] sm:$0xff]  ;;  %v11079_v1 = vpop.permute.xlu1 %1866 }
 0x25c   :  { %18152 = vst [vmem:[#allocation78_spill] sm:$0xff] %v11017_v2  ;;  %v1689_v63 = vmul.f32 %v7775_v7, %v10753_v19  ;;  %18153 = vst [vmem:[#allocation38_spill] sm:$0xff] %v11034_v39  ;;  %v1690_v7 = vmul.f32 %v7776_v52, %v10769_v40  ;;  %v7778_v52 = vld [vmem:[%s17135_s0 + $0xd0] sm:$0xff] }
 0x25e   :  { %v11037_v8 = vadd.f32 %v11019_v48, %v1689_v63  ;;  %v11054_v63 = vadd.f32 %v11039_v31, %v1690_v7 }
 0x25f   :  { %2252 = vrot.lane.b32.xlu0 %v11017_v2, %s7937_s28  ;;  %2250 = vrot.lane.b32.xlu1 %v11014_v3, %s7937_s28  ;;  %v7777_v2 = vld [vmem:[%s17135_s0 + $0xc8] sm:$0xff]  ;;  %v11059_v3 = vpop.permute.xlu0 %1861  ;;  %v11119_v13 = vpop.permute.xlu1 %1876 }
 0x260   :  { %18154 = vst [vmem:[#allocation81_spill] sm:$0xff] %v11037_v8  ;;  %v1691_v44 = vmul.f32 %v7777_v2, %v10769_v40  ;;  %18155 = vst [vmem:[#allocation65_spill] sm:$0xff] %v11054_v63  ;;  %v1692_v2 = vmul.f32 %v7778_v52, %v10757_v35  ;;  %v7780_v52 = vld [vmem:[%s17135_s0 + $0xe0] sm:$0xff] }
 0x262   :  { %v11057_v22 = vadd.f32 %v11039_v31, %v1691_v44  ;;  %v11074_v44 = vadd.f32 %v11059_v3, %v1692_v2 }
 0x263   :  { %2256 = vrot.lane.b32.xlu0 %v11037_v8, %s7937_s28  ;;  %2254 = vrot.lane.b32.xlu1 %v11034_v39, %s7937_s28  ;;  %v7779_v8 = vld [vmem:[%s17135_s0 + $0xd8] sm:$0xff]  ;;  %v11099_v53 = vpop.permute.xlu0 %1871  ;;  %v11159_v32 = vpop.permute.xlu1 %1886 }
 0x264   :  { %18156 = vst [vmem:[#allocation33_spill] sm:$0xff] %v11057_v22  ;;  %v1693_v39 = vmul.f32 %v7779_v8, %v10757_v35  ;;  %18157 = vst [vmem:[#allocation70_spill] sm:$0xff] %v11074_v44  ;;  %v1694_v8 = vmul.f32 %v7780_v52, %v10773_v28  ;;  %v7782_v52 = vld [vmem:[%s17135_s0 + $0xf0] sm:$0xff] }
 0x266   :  { %v11077_v7 = vadd.f32 %v11059_v3, %v1693_v39  ;;  %v11094_v39 = vadd.f32 %v11079_v1, %v1694_v8 }
 0x267   :  { %2260 = vrot.lane.b32.xlu0 %v11057_v22, %s7937_s28  ;;  %2258 = vrot.lane.b32.xlu1 %v11054_v63, %s7937_s28  ;;  %v7781_v22 = vld [vmem:[%s17135_s0 + $0xe8] sm:$0xff]  ;;  %v11139_v59 = vpop.permute.xlu0 %1881  ;;  %v11199_v43 = vpop.permute.xlu1 %1896 }
 0x268   :  { %18158 = vst [vmem:[#allocation82_spill] sm:$0xff] %v11077_v7  ;;  %v1695_v63 = vmul.f32 %v7781_v22, %v10773_v28  ;;  %18159 = vst [vmem:[#allocation40_spill] sm:$0xff] %v11094_v39  ;;  %v1696_v22 = vmul.f32 %v7782_v52, %v10761_v23  ;;  %v7784_v52 = vld [vmem:[%s17135_s0 + $0x100] sm:$0xff] }
 0x26a   :  { %v11097_v2 = vadd.f32 %v11079_v1, %v1695_v63  ;;  %v11114_v63 = vadd.f32 %v11099_v53, %v1696_v22 }
 0x26b   :  { %2264 = vrot.lane.b32.xlu0 %v11077_v7, %s7937_s28  ;;  %2262 = vrot.lane.b32.xlu1 %v11074_v44, %s7937_s28  ;;  %v7783_v7 = vld [vmem:[%s17135_s0 + $0xf8] sm:$0xff]  ;;  %v11179_v61 = vpop.permute.xlu0 %1891  ;;  %v11239_v29 = vpop.permute.xlu1 %1906 }
 0x26c   :  { %18160 = vst [vmem:[#allocation6_spill] sm:$0xff] %v11097_v2  ;;  %v1697_v44 = vmul.f32 %v7783_v7, %v10761_v23  ;;  %18161 = vst [vmem:[#allocation71_spill] sm:$0xff] %v11114_v63  ;;  %v1698_v7 = vmul.f32 %v7784_v52, %v10777_v33  ;;  %v7786_v52 = vld [vmem:[%s17135_s0 + $0x110] sm:$0xff] }
 0x26d   :  { %18175 = vst [vmem:[#allocation5_spill] sm:$0xff] %v11239_v29 }
 0x26e   :  { %v11117_v8 = vadd.f32 %v11099_v53, %v1697_v44  ;;  %v11134_v44 = vadd.f32 %v11119_v13, %v1698_v7 }
 0x26f   :  { %2268 = vrot.lane.b32.xlu0 %v11097_v2, %s7937_s28  ;;  %2266 = vrot.lane.b32.xlu1 %v11094_v39, %s7937_s28  ;;  %v7785_v2 = vld [vmem:[%s17135_s0 + $0x108] sm:$0xff]  ;;  %v11219_v36 = vpop.permute.xlu0 %1901 }
 0x270   :  { %18162 = vst [vmem:[#allocation31_spill] sm:$0xff] %v11117_v8  ;;  %v1699_v39 = vmul.f32 %v7785_v2, %v10777_v33  ;;  %18163 = vst [vmem:[#allocation75_spill] sm:$0xff] %v11134_v44  ;;  %v1700_v2 = vmul.f32 %v7786_v52, %v10765_v37  ;;  %v7788_v52 = vld [vmem:[%s17135_s0 + $0x120] sm:$0xff] }
 0x272   :  { %v11137_v22 = vadd.f32 %v11119_v13, %v1699_v39  ;;  %v11154_v39 = vadd.f32 %v11139_v59, %v1700_v2 }
 0x273   :  { %2272 = vrot.lane.b32.xlu0 %v11117_v8, %s7937_s28  ;;  %2270 = vrot.lane.b32.xlu1 %v11114_v63, %s7937_s28  ;;  %v7787_v8 = vld [vmem:[%s17135_s0 + $0x118] sm:$0xff] }
 0x274   :  { %18164 = vst [vmem:[#allocation84_spill] sm:$0xff] %v11137_v22  ;;  %v1701_v63 = vmul.f32 %v7787_v8, %v10765_v37  ;;  %18165 = vst [vmem:[#allocation43_spill] sm:$0xff] %v11154_v39  ;;  %v1702_v8 = vmul.f32 %v7788_v52, %v10781_v50  ;;  %v7790_v52 = vld [vmem:[%s17135_s0 + $0x130] sm:$0xff] }
 0x276   :  { %v11157_v7 = vadd.f32 %v11139_v59, %v1701_v63  ;;  %v11174_v63 = vadd.f32 %v11159_v32, %v1702_v8 }
 0x277   :  { %2276 = vrot.lane.b32.xlu0 %v11137_v22, %s7937_s28  ;;  %2274 = vrot.lane.b32.xlu1 %v11134_v44, %s7937_s28  ;;  %v7789_v22 = vld [vmem:[%s17135_s0 + $0x128] sm:$0xff] }
 0x278   :  { %18166 = vst [vmem:[#allocation87_spill] sm:$0xff] %v11157_v7  ;;  %v1703_v44 = vmul.f32 %v7789_v22, %v10781_v50  ;;  %18167 = vst [vmem:[#allocation76_spill] sm:$0xff] %v11174_v63  ;;  %v1704_v22 = vmul.f32 %v7790_v52, %v10771_v46  ;;  %v7792_v52 = vld [vmem:[%s17135_s0 + $0x140] sm:$0xff] }
 0x27a   :  { %v11177_v2 = vadd.f32 %v11159_v32, %v1703_v44  ;;  %v11194_v44 = vadd.f32 %v11179_v61, %v1704_v22 }
 0x27b   :  { %2280 = vrot.lane.b32.xlu0 %v11157_v7, %s7937_s28  ;;  %2278 = vrot.lane.b32.xlu1 %v11154_v39, %s7937_s28  ;;  %v7791_v7 = vld [vmem:[%s17135_s0 + $0x138] sm:$0xff] }
 0x27c   :  { %18168 = vst [vmem:[#allocation37_spill] sm:$0xff] %v11177_v2  ;;  %v1705_v39 = vmul.f32 %v7791_v7, %v10771_v46  ;;  %18169 = vst [vmem:[#allocation79_spill] sm:$0xff] %v11194_v44  ;;  %v1706_v7 = vmul.f32 %v7792_v52, %v10783_v49  ;;  %v7794_v52 = vld [vmem:[%s17135_s0 + $0x150] sm:$0xff] }
 0x27e   :  { %v11197_v8 = vadd.f32 %v11179_v61, %v1705_v39  ;;  %v11214_v39 = vadd.f32 %v11199_v43, %v1706_v7 }
 0x27f   :  { %2284 = vrot.lane.b32.xlu0 %v11177_v2, %s7937_s28  ;;  %2282 = vrot.lane.b32.xlu1 %v11174_v63, %s7937_s28  ;;  %v7793_v2 = vld [vmem:[%s17135_s0 + $0x148] sm:$0xff] }
 0x280   :  { %18170 = vst [vmem:[#allocation88_spill] sm:$0xff] %v11197_v8  ;;  %v1707_v63 = vmul.f32 %v7793_v2, %v10783_v49  ;;  %18171 = vst [vmem:[#allocation45_spill] sm:$0xff] %v11214_v39  ;;  %v1708_v2 = vmul.f32 %v7794_v52, %v10775_v34  ;;  %v7796_v52 = vld [vmem:[%s17135_s0 + $0x160] sm:$0xff] }
 0x282   :  { %v11217_v22 = vadd.f32 %v11199_v43, %v1707_v63  ;;  %v11234_v63 = vadd.f32 %v11219_v36, %v1708_v2 }
 0x283   :  { %2288 = vrot.lane.b32.xlu0 %v11197_v8, %s7937_s28  ;;  %2286 = vrot.lane.b32.xlu1 %v11194_v44, %s7937_s28  ;;  %v7795_v8 = vld [vmem:[%s17135_s0 + $0x158] sm:$0xff] }
 0x284   :  { %18172 = vst [vmem:[#allocation10_spill] sm:$0xff] %v11217_v22  ;;  %v1709_v44 = vmul.f32 %v7795_v8, %v10775_v34  ;;  %18173 = vst [vmem:[#allocation80_spill] sm:$0xff] %v11234_v63  ;;  %v1710_v8 = vmul.f32 %v7796_v52, %v10787_v24  ;;  %v7798_v52 = vld [vmem:[%s17135_s0 + $0x170] sm:$0xff] }
 0x286   :  { %v11237_v7 = vadd.f32 %v11219_v36, %v1709_v44  ;;  %v11253_v44 = vpop.permute.xlu0 %1911  ;;  %v11256_v2 = vadd.f32 %v11239_v29, %v1710_v8 }
 0x287   :  { %2292 = vrot.lane.b32.xlu0 %v11217_v22, %s7937_s28  ;;  %2290 = vrot.lane.b32.xlu1 %v11214_v39, %s7937_s28  ;;  %v7797_v22 = vld [vmem:[%s17135_s0 + $0x168] sm:$0xff] }
 0x288   :  { %18174 = vst [vmem:[#allocation39_spill] sm:$0xff] %v11237_v7  ;;  %v1711_v39 = vmul.f32 %v7797_v22, %v10787_v24  ;;  %18176 = vst [vmem:[#allocation48_spill] sm:$0xff] %v11256_v2  ;;  %v1712_v22 = vmul.f32 %v7798_v52, %v10779_v42  ;;  %v7800_v52 = vld [vmem:[%s17135_s0 + $0x180] sm:$0xff] }
 0x28a   :  { %v11259_v11 = vadd.f32 %v11239_v29, %v1711_v39  ;;  %v11274_v39 = vadd.f32 %v11253_v44, %v1712_v22  ;;  %v11279_v29 = vpop.permute.xlu1 %1916 }
 0x28b   :  { %2296 = vrot.lane.b32.xlu0 %v11237_v7, %s7937_s28  ;;  %2294 = vrot.lane.b32.xlu1 %v11234_v63, %s7937_s28  ;;  %v7799_v7 = vld [vmem:[%s17135_s0 + $0x178] sm:$0xff] }
 0x28c   :  { %18177 = vst [vmem:[#allocation14_spill] sm:$0xff] %v11259_v11  ;;  %v1713_v63 = vmul.f32 %v7799_v7, %v10779_v42  ;;  %18178 = vst [vmem:[#allocation83_spill] sm:$0xff] %v11274_v39  ;;  %v1714_v7 = vmul.f32 %v7800_v52, %v10791_v21  ;;  %v11289_v42 = vpop.permute.xlu0 %1921  ;;  %v7802_v52 = vld [vmem:[%s17135_s0 + $0x190] sm:$0xff] }
 0x28d   :  { %18180 = vst [vmem:[#allocation85_spill] sm:$0xff] %v11289_v42 }
 0x28e   :  { %v11277_v8 = vadd.f32 %v11253_v44, %v1713_v63  ;;  %v11296_v63 = vadd.f32 %v11279_v29, %v1714_v7 }
 0x28f   :  { %2300 = vrot.lane.b32.xlu0 %v11259_v11, %s7937_s28  ;;  %2298 = vrot.lane.b32.xlu1 %v11256_v2, %s7937_s28  ;;  %v7801_v11 = vld [vmem:[%s17135_s0 + $0x188] sm:$0xff] }
 0x290   :  { %18179 = vst [vmem:[#allocation41_spill] sm:$0xff] %v11277_v8  ;;  %v1715_v2 = vmul.f32 %v7801_v11, %v10791_v21  ;;  %18181 = vst [vmem:[#allocation50_spill] sm:$0xff] %v11296_v63  ;;  %v1716_v11 = vmul.f32 %v7802_v52, %v10785_v27  ;;  %v7803_v21 = vld [vmem:[%s17135_s0 + $0x198] sm:$0xff]  ;;  %v11316_v7 = vpop.permute.xlu0 %1931 }
 0x292   :  { %v11299_v22 = vadd.f32 %v11279_v29, %v1715_v2  ;;  %v11314_v2 = vadd.f32 %v11289_v42, %v1716_v11 }
 0x293   :  { %2304 = vrot.lane.b32.xlu0 %v11277_v8, %s7937_s28  ;;  %2302 = vrot.lane.b32.xlu1 %v11274_v39, %s7937_s28  ;;  %v1717_v8 = vmul.f32 %v7803_v21, %v10785_v27  ;;  %v11318_v39 = vpop.permute.xlu1 %1926  ;;  %v7804_v21 = vld [vmem:[%s17135_s0 + $0x1a0] sm:$0xff] }
 0x294   :  { %18182 = vst [vmem:[#allocation86_spill] sm:$0xff] %v11299_v22  ;;  %18183 = vst [vmem:[#allocation44_spill] sm:$0xff] %v11314_v2  ;;  %v1718_v27 = vmul.f32 %v7804_v21, %v10793_v58  ;;  %v7806_v21 = vld [vmem:[%s17135_s0 + $0x1b0] sm:$0xff] }
 0x295   :  { %v11321_v52 = vadd.f32 %v11289_v42, %v1717_v8  ;;  %v1720_v42 = vmul.f32 %v7806_v21, %v10789_v9  ;;  %v7808_v21 = vld [vmem:[%s17135_s0 + $0x1c0] sm:$0xff] }
 0x296   :  { %v11336_v8 = vadd.f32 %v11318_v39, %v1718_v27 }
 0x297   :  { %2308 = vrot.lane.b32.xlu0 %v11299_v22, %s7937_s28  ;;  %2306 = vrot.lane.b32.xlu1 %v11296_v63, %s7937_s28  ;;  %18184 = vst [vmem:[#allocation9_spill] sm:$0xff] %v11321_v52  ;;  %v7805_v22 = vld [vmem:[%s17135_s0 + $0x1a8] sm:$0xff]  ;;  %v11358_v27 = vadd.f32 %v11316_v7, %v1720_v42 }
 0x298   :  { %v1719_v11 = vmul.f32 %v7805_v22, %v10793_v58  ;;  %18185 = vst [vmem:[#allocation92_spill] sm:$0xff] %v11336_v8  ;;  %v7807_v22 = vld [vmem:[%s17135_s0 + $0x1b8] sm:$0xff]  ;;  %v11349_v58 = vpop.permute.xlu0 %1941 }
 0x299   :  { %18188 = vst [vmem:[#allocation95_spill] sm:$0xff] %v11358_v27 }
 0x29a   :  { %v11339_v63 = vadd.f32 %v11318_v39, %v1719_v11 }
 0x29b   :  { %2312 = vrot.lane.b32.xlu0 %v11321_v52, %s7937_s28  ;;  %2310 = vrot.lane.b32.xlu1 %v11314_v2, %s7937_s28  ;;  %v1721_v52 = vmul.f32 %v7807_v22, %v10789_v9  ;;  %v11351_v2 = vpop.permute.xlu1 %1936  ;;  %v1722_v22 = vmul.f32 %v7808_v21, %v10797_v12  ;;  %v7809_v9 = vld [vmem:[%s17135_s0 + $0x1c8] sm:$0xff] }
 0x29c   :  { %18186 = vst [vmem:[#allocation52_spill] sm:$0xff] %v11339_v63  ;;  %18187 = vst [vmem:[#allocation89_spill] sm:$0xff] %v11351_v2  ;;  %v11375_v42 = vpop.permute.xlu0 %1951 }
 0x29d   :  { %v11361_v11 = vadd.f32 %v11316_v7, %v1721_v52  ;;  %v11378_v52 = vadd.f32 %v11351_v2, %v1722_v22 }
 0x29f   :  { %2316 = vrot.lane.b32.xlu0 %v11339_v63, %s7937_s28  ;;  %2314 = vrot.lane.b32.xlu1 %v11336_v8, %s7937_s28  ;;  %18189 = vst [vmem:[#allocation47_spill] sm:$0xff] %v11361_v11  ;;  %v1723_v63 = vmul.f32 %v7809_v9, %v10797_v12  ;;  %18190 = vst [vmem:[#allocation11_spill] sm:$0xff] %v11378_v52  ;;  %v11380_v8 = vpop.permute.xlu1 %1946  ;;  %v7810_v9 = vld [vmem:[%s17135_s0 + $0x1d0] sm:$0xff] }
 0x2a0   :  { %v1724_v12 = vmul.f32 %v7810_v9, %v10795_v60 }
 0x2a1   :  { %v11383_v21 = vadd.f32 %v11351_v2, %v1723_v63 }
 0x2a2   :  { %v11398_v63 = vadd.f32 %v11349_v58, %v1724_v12 }
 0x2a3   :  { %2320 = vrot.lane.b32.xlu0 %v11361_v11, %s7937_s28  ;;  %2318 = vrot.lane.b32.xlu1 %v11358_v27, %s7937_s28  ;;  %18191 = vst [vmem:[#allocation54_spill] sm:$0xff] %v11383_v21  ;;  %v7811_v11 = vld [vmem:[%s17135_s0 + $0x1d8] sm:$0xff] }
 0x2a4   :  { %v1725_v27 = vmul.f32 %v7811_v11, %v10795_v60  ;;  %18192 = vst [vmem:[#allocation12_spill] sm:$0xff] %v11398_v63  ;;  %v7812_v11 = vld [vmem:[%s17135_s0 + $0x1e0] sm:$0xff] }
 0x2a5   :  { %v1726_v60 = vmul.f32 %v7812_v11, %v10801_v20 }
 0x2a6   :  { %v11405_v9 = vadd.f32 %v11349_v58, %v1725_v27 }
 0x2a7   :  { %2324 = vrot.lane.b32.xlu0 %v11383_v21, %s7937_s28  ;;  %2322 = vrot.lane.b32.xlu1 %v11378_v52, %s7937_s28  ;;  %v7813_v21 = vld [vmem:[%s17135_s0 + $0x1e8] sm:$0xff]  ;;  %v11420_v27 = vadd.f32 %v11380_v8, %v1726_v60 }
 0x2a8   :  { %18195 = vst [vmem:[#allocation98_spill] sm:$0xff] %v11405_v9  ;;  %v1727_v12 = vmul.f32 %v7813_v21, %v10801_v20  ;;  %v7814_v21 = vld [vmem:[%s17135_s0 + $0x1f0] sm:$0xff] }
 0x2a9   :  { %v11400_v22 = vpop.permute.xlu1 %2210  ;;  %v11402_v2 = vpop.permute.xlu0 %2212  ;;  %18196 = vst [vmem:[#allocation57_spill] sm:$0xff] %v11420_v27  ;;  %v1728_v52 = vmul.f32 %v7814_v21, %v10799_v47 }
 0x2aa   :  { %18193 = vst [vmem:[#allocation49_spill] sm:$0xff] %v11400_v22  ;;  %18194 = vst [vmem:[#allocation91_spill] sm:$0xff] %v11402_v2  ;;  %v11427_v11 = vadd.f32 %v11380_v8, %v1727_v12 }
 0x2ab   :  { %2328 = vrot.lane.b32.xlu0 %v11405_v9, %s7937_s28  ;;  %2326 = vrot.lane.b32.xlu1 %v11398_v63, %s7937_s28  ;;  %v7815_v9 = vld [vmem:[%s17135_s0 + $0x1f8] sm:$0xff]  ;;  %v11442_v12 = vadd.f32 %v11375_v42, %v1728_v52 }
 0x2ac   :  { %18199 = vst [vmem:[#allocation51_spill] sm:$0xff] %v11427_v11  ;;  %v1729_v60 = vmul.f32 %v7815_v9, %v10799_v47  ;;  %v7816_v9 = vld [vmem:[%s17135_s0 + $0x200] sm:$0xff] }
 0x2ad   :  { %v11422_v22 = vpop.permute.xlu1 %2214  ;;  %v11424_v2 = vpop.permute.xlu0 %2216  ;;  %18200 = vst [vmem:[#allocation94_spill] sm:$0xff] %v11442_v12  ;;  %v1730_v63 = vmul.f32 %v7816_v9, %v10745_v25 }
 0x2ae   :  { %18197 = vst [vmem:[#allocation101_spill] sm:$0xff] %v11422_v22  ;;  %18198 = vst [vmem:[#allocation90_spill] sm:$0xff] %v11424_v2  ;;  %v11449_v21 = vadd.f32 %v11375_v42, %v1729_v60 }
 0x2af   :  { %2332 = vrot.lane.b32.xlu0 %v11427_v11, %s7937_s28  ;;  %2330 = vrot.lane.b32.xlu1 %v11420_v27, %s7937_s28  ;;  %v7817_v11 = vld [vmem:[%s17135_s0 + $0x208] sm:$0xff]  ;;  %v11464_v60 = vadd.f32 %v10811_v16, %v1730_v63 }
 0x2b0   :  { %18203 = vst [vmem:[#allocation53_spill] sm:$0xff] %v11449_v21  ;;  %v1731_v52 = vmul.f32 %v7817_v11, %v10745_v25  ;;  %v7818_v25 = vld [vmem:[%s17135_s0 + $0x210] sm:$0xff] }
 0x2b1   :  { %v11444_v22 = vpop.permute.xlu1 %2218  ;;  %v11446_v2 = vpop.permute.xlu0 %2220  ;;  %18204 = vst [vmem:[#allocation97_spill] sm:$0xff] %v11464_v60  ;;  %v1732_v11 = vmul.f32 %v7818_v25, %v10737_v62 }
 0x2b2   :  { %18201 = vst [vmem:[#allocation59_spill] sm:$0xff] %v11444_v22  ;;  %18202 = vst [vmem:[#allocation93_spill] sm:$0xff] %v11446_v2  ;;  %v11471_v9 = vadd.f32 %v10811_v16, %v1731_v52 }
 0x2b3   :  { %2336 = vrot.lane.b32.xlu0 %v11449_v21, %s7937_s28  ;;  %2334 = vrot.lane.b32.xlu1 %v11442_v12, %s7937_s28  ;;  %v7819_v21 = vld [vmem:[%s17135_s0 + $0x218] sm:$0xff]  ;;  %v11486_v16 = vadd.f32 %v10819_v14, %v1732_v11 }
 0x2b4   :  { %18207 = vst [vmem:[#allocation96_spill] sm:$0xff] %v11471_v9  ;;  %v1733_v63 = vmul.f32 %v7819_v21, %v10737_v62  ;;  %v7820_v62 = vld [vmem:[%s17135_s0 + $0x220] sm:$0xff] }
 0x2b5   :  { %v11466_v22 = vpop.permute.xlu1 %2222  ;;  %v11468_v2 = vpop.permute.xlu0 %2224  ;;  %18208 = vst [vmem:[#allocation55_spill] sm:$0xff] %v11486_v16  ;;  %v1734_v21 = vmul.f32 %v7820_v62, %v10741_v45 }
 0x2b6   :  { %18205 = vst [vmem:[#allocation62_spill] sm:$0xff] %v11466_v22  ;;  %18206 = vst [vmem:[#allocation105_spill] sm:$0xff] %v11468_v2  ;;  %v11493_v25 = vadd.f32 %v10819_v14, %v1733_v63  ;;  %v18393_v2 = vld [vmem:[#allocation44_spill] sm:$0xff] }
 0x2b7   :  { %2340 = vrot.lane.b32.xlu0 %v11471_v9, %s7937_s28  ;;  %2338 = vrot.lane.b32.xlu1 %v11464_v60, %s7937_s28  ;;  %v7821_v9 = vld [vmem:[%s17135_s0 + $0x228] sm:$0xff]  ;;  %v11508_v14 = vadd.f32 %v10839_v57, %v1734_v21 }
 0x2b8   :  { %18211 = vst [vmem:[#allocation100_spill] sm:$0xff] %v11493_v25  ;;  %v1735_v11 = vmul.f32 %v7821_v9, %v10741_v45  ;;  %v7822_v45 = vld [vmem:[%s17135_s0 + $0x230] sm:$0xff] }
 0x2b9   :  { %v11488_v52 = vpop.permute.xlu1 %2226  ;;  %v11490_v22 = vpop.permute.xlu0 %2228  ;;  %18212 = vst [vmem:[#allocation58_spill] sm:$0xff] %v11508_v14  ;;  %v1736_v9 = vmul.f32 %v7822_v45, %v10743_v41 }
 0x2ba   :  { %18209 = vst [vmem:[#allocation99_spill] sm:$0xff] %v11488_v52  ;;  %18210 = vst [vmem:[#allocation63_spill] sm:$0xff] %v11490_v22  ;;  %v11515_v62 = vadd.f32 %v10839_v57, %v1735_v11 }
 0x2bb   :  { %2344 = vrot.lane.b32.xlu0 %v11493_v25, %s7937_s28  ;;  %2342 = vrot.lane.b32.xlu1 %v11486_v16, %s7937_s28  ;;  %v7823_v25 = vld [vmem:[%s17135_s0 + $0x238] sm:$0xff]  ;;  %v11530_v57 = vadd.f32 %v10859_v5, %v1736_v9 }
 0x2bc   :  { %18215 = vst [vmem:[#allocation103_spill] sm:$0xff] %v11515_v62  ;;  %v1737_v21 = vmul.f32 %v7823_v25, %v10743_v41  ;;  %v7824_v41 = vld [vmem:[%s17135_s0 + $0x240] sm:$0xff] }
 0x2bd   :  { %v11510_v63 = vpop.permute.xlu1 %2230  ;;  %v11512_v52 = vpop.permute.xlu0 %2232  ;;  %18216 = vst [vmem:[#allocation61_spill] sm:$0xff] %v11530_v57  ;;  %v1738_v25 = vmul.f32 %v7824_v41, %v10747_v18 }
 0x2be   :  { %18213 = vst [vmem:[#allocation102_spill] sm:$0xff] %v11510_v63  ;;  %18214 = vst [vmem:[#allocation67_spill] sm:$0xff] %v11512_v52  ;;  %v11537_v45 = vadd.f32 %v10859_v5, %v1737_v21  ;;  %v18389_v52 = vld [vmem:[#allocation83_spill] sm:$0xff] }
 0x2bf   :  { %2348 = vrot.lane.b32.xlu0 %v11515_v62, %s7937_s28  ;;  %2346 = vrot.lane.b32.xlu1 %v11508_v14, %s7937_s28  ;;  %v7825_v62 = vld [vmem:[%s17135_s0 + $0x248] sm:$0xff]  ;;  %v11552_v5 = vadd.f32 %v10879_v56, %v1738_v25 }
 0x2c0   :  { %18219 = vst [vmem:[#allocation106_spill] sm:$0xff] %v11537_v45  ;;  %v1739_v9 = vmul.f32 %v7825_v62, %v10747_v18  ;;  %v7826_v18 = vld [vmem:[%s17135_s0 + $0x250] sm:$0xff] }
 0x2c1   :  { %v11532_v11 = vpop.permute.xlu1 %2234  ;;  %v11534_v63 = vpop.permute.xlu0 %2236  ;;  %18220 = vst [vmem:[#allocation21_spill] sm:$0xff] %v11552_v5  ;;  %v1740_v62 = vmul.f32 %v7826_v18, %v10751_v0 }
 0x2c2   :  { %18217 = vst [vmem:[#allocation104_spill] sm:$0xff] %v11532_v11  ;;  %18218 = vst [vmem:[#allocation64_spill] sm:$0xff] %v11534_v63  ;;  %v11559_v41 = vadd.f32 %v10879_v56, %v1739_v9 }
 0x2c3   :  { %2352 = vrot.lane.b32.xlu0 %v11537_v45, %s7937_s28  ;;  %2350 = vrot.lane.b32.xlu1 %v11530_v57, %s7937_s28  ;;  %v7827_v45 = vld [vmem:[%s17135_s0 + $0x258] sm:$0xff]  ;;  %v11574_v56 = vadd.f32 %v10899_v17, %v1740_v62 }
 0x2c4   :  { %18223 = vst [vmem:[#allocation18_spill] sm:$0xff] %v11559_v41  ;;  %v1741_v25 = vmul.f32 %v7827_v45, %v10751_v0  ;;  %v7828_v0 = vld [vmem:[%s17135_s0 + $0x260] sm:$0xff] }
 0x2c5   :  { %v11554_v21 = vpop.permute.xlu1 %2238  ;;  %v11556_v11 = vpop.permute.xlu0 %2240  ;;  %18224 = vst [vmem:[#allocation2_spill] sm:$0xff] %v11574_v56  ;;  %v1742_v45 = vmul.f32 %v7828_v0, %v10755_v54 }
 0x2c6   :  { %18221 = vst [vmem:[#allocation66_spill] sm:$0xff] %v11554_v21  ;;  %18222 = vst [vmem:[#allocation17_spill] sm:$0xff] %v11556_v11  ;;  %v11581_v18 = vadd.f32 %v10899_v17, %v1741_v25  ;;  %v18385_v11 = vld [vmem:[#allocation80_spill] sm:$0xff] }
 0x2c7   :  { %2356 = vrot.lane.b32.xlu0 %v11559_v41, %s7937_s28  ;;  %2354 = vrot.lane.b32.xlu1 %v11552_v5, %s7937_s28  ;;  %v7829_v41 = vld [vmem:[%s17135_s0 + $0x268] sm:$0xff]  ;;  %v11596_v17 = vadd.f32 %v10919_v4, %v1742_v45 }
 0x2c8   :  { %18227 = vst [vmem:[#allocation108_spill] sm:$0xff] %v11581_v18  ;;  %v1743_v62 = vmul.f32 %v7829_v41, %v10755_v54  ;;  %v7830_v54 = vld [vmem:[%s17135_s0 + $0x270] sm:$0xff] }
 0x2c9   :  { %v11576_v9 = vpop.permute.xlu1 %2242  ;;  %v11578_v21 = vpop.permute.xlu0 %2244  ;;  %18228 = vst [vmem:[#allocation109_spill] sm:$0xff] %v11596_v17  ;;  %v1744_v41 = vmul.f32 %v7830_v54, %v10759_v15 }
 0x2ca   :  { %18225 = vst [vmem:[#allocation20_spill] sm:$0xff] %v11576_v9  ;;  %18226 = vst [vmem:[#allocation107_spill] sm:$0xff] %v11578_v21  ;;  %v11603_v0 = vadd.f32 %v10919_v4, %v1743_v62 }
 0x2cb   :  { %2360 = vrot.lane.b32.xlu0 %v11581_v18, %s7937_s28  ;;  %2358 = vrot.lane.b32.xlu1 %v11574_v56, %s7937_s28  ;;  %v7831_v18 = vld [vmem:[%s17135_s0 + $0x278] sm:$0xff]  ;;  %v11618_v4 = vadd.f32 %v10939_v10, %v1744_v41 }
 0x2cc   :  { %18231 = vst [vmem:[#allocation112_spill] sm:$0xff] %v11603_v0  ;;  %v1745_v45 = vmul.f32 %v7831_v18, %v10759_v15  ;;  %v7832_v15 = vld [vmem:[%s17135_s0 + $0x280] sm:$0xff] }
 0x2cd   :  { %v11598_v25 = vpop.permute.xlu1 %2246  ;;  %v11600_v9 = vpop.permute.xlu0 %2248  ;;  %18232 = vst [vmem:[#allocation113_spill] sm:$0xff] %v11618_v4  ;;  %v1746_v18 = vmul.f32 %v7832_v15, %v10763_v38 }
 0x2ce   :  { %18229 = vst [vmem:[#allocation110_spill] sm:$0xff] %v11598_v25  ;;  %18230 = vst [vmem:[#allocation111_spill] sm:$0xff] %v11600_v9  ;;  %v11625_v54 = vadd.f32 %v10939_v10, %v1745_v45  ;;  %v18381_v9 = vld [vmem:[#allocation79_spill] sm:$0xff] }
 0x2cf   :  { %2364 = vrot.lane.b32.xlu0 %v11603_v0, %s7937_s28  ;;  %2362 = vrot.lane.b32.xlu1 %v11596_v17, %s7937_s28  ;;  %v7833_v0 = vld [vmem:[%s17135_s0 + $0x288] sm:$0xff]  ;;  %v11640_v10 = vadd.f32 %v10959_v51, %v1746_v18 }
 0x2d0   :  { %18235 = vst [vmem:[#allocation116_spill] sm:$0xff] %v11625_v54  ;;  %v1747_v41 = vmul.f32 %v7833_v0, %v10763_v38  ;;  %v7834_v38 = vld [vmem:[%s17135_s0 + $0x290] sm:$0xff] }
 0x2d1   :  { %v11620_v62 = vpop.permute.xlu1 %2250  ;;  %v11622_v25 = vpop.permute.xlu0 %2252  ;;  %18236 = vst [vmem:[#allocation117_spill] sm:$0xff] %v11640_v10  ;;  %v1748_v0 = vmul.f32 %v7834_v38, %v10749_v26 }
 0x2d2   :  { %18233 = vst [vmem:[#allocation114_spill] sm:$0xff] %v11620_v62  ;;  %18234 = vst [vmem:[#allocation115_spill] sm:$0xff] %v11622_v25  ;;  %v11647_v15 = vadd.f32 %v10959_v51, %v1747_v41 }
 0x2d3   :  { %2368 = vrot.lane.b32.xlu0 %v11625_v54, %s7937_s28  ;;  %2366 = vrot.lane.b32.xlu1 %v11618_v4, %s7937_s28  ;;  %v7835_v54 = vld [vmem:[%s17135_s0 + $0x298] sm:$0xff]  ;;  %v11662_v51 = vadd.f32 %v10979_v55, %v1748_v0 }
 0x2d4   :  { %18239 = vst [vmem:[#allocation120_spill] sm:$0xff] %v11647_v15  ;;  %v1749_v18 = vmul.f32 %v7835_v54, %v10749_v26  ;;  %v7836_v26 = vld [vmem:[%s17135_s0 + $0x2a0] sm:$0xff] }
 0x2d5   :  { %v11642_v45 = vpop.permute.xlu1 %2254  ;;  %v11644_v62 = vpop.permute.xlu0 %2256  ;;  %18240 = vst [vmem:[#allocation121_spill] sm:$0xff] %v11662_v51  ;;  %v1750_v54 = vmul.f32 %v7836_v26, %v10767_v30 }
 0x2d6   :  { %18237 = vst [vmem:[#allocation118_spill] sm:$0xff] %v11642_v45  ;;  %18238 = vst [vmem:[#allocation119_spill] sm:$0xff] %v11644_v62  ;;  %v11669_v38 = vadd.f32 %v10979_v55, %v1749_v18  ;;  %v18377_v62 = vld [vmem:[#allocation43_spill] sm:$0xff] }
 0x2d7   :  { %2372 = vrot.lane.b32.xlu0 %v11647_v15, %s7937_s28  ;;  %2370 = vrot.lane.b32.xlu1 %v11640_v10, %s7937_s28  ;;  %v7837_v15 = vld [vmem:[%s17135_s0 + $0x2a8] sm:$0xff]  ;;  %v11684_v55 = vadd.f32 %v10999_v6, %v1750_v54 }
 0x2d8   :  { %18243 = vst [vmem:[#allocation124_spill] sm:$0xff] %v11669_v38  ;;  %v1751_v0 = vmul.f32 %v7837_v15, %v10767_v30  ;;  %v7838_v30 = vld [vmem:[%s17135_s0 + $0x2b0] sm:$0xff] }
 0x2d9   :  { %v11664_v41 = vpop.permute.xlu1 %2258  ;;  %v11666_v45 = vpop.permute.xlu0 %2260  ;;  %18244 = vst [vmem:[#allocation125_spill] sm:$0xff] %v11684_v55  ;;  %v1752_v15 = vmul.f32 %v7838_v30, %v10753_v19 }
 0x2da   :  { %18241 = vst [vmem:[#allocation122_spill] sm:$0xff] %v11664_v41  ;;  %18242 = vst [vmem:[#allocation123_spill] sm:$0xff] %v11666_v45  ;;  %v11691_v26 = vadd.f32 %v10999_v6, %v1751_v0 }
 0x2db   :  { %2376 = vrot.lane.b32.xlu0 %v11669_v38, %s7937_s28  ;;  %2374 = vrot.lane.b32.xlu1 %v11662_v51, %s7937_s28  ;;  %v7839_v38 = vld [vmem:[%s17135_s0 + $0x2b8] sm:$0xff]  ;;  %v11706_v6 = vadd.f32 %v11019_v48, %v1752_v15 }
 0x2dc   :  { %18247 = vst [vmem:[#allocation128_spill] sm:$0xff] %v11691_v26  ;;  %v1753_v54 = vmul.f32 %v7839_v38, %v10753_v19  ;;  %v7840_v19 = vld [vmem:[%s17135_s0 + $0x2c0] sm:$0xff] }
 0x2dd   :  { %v11686_v18 = vpop.permute.xlu1 %2262  ;;  %v11688_v41 = vpop.permute.xlu0 %2264  ;;  %18248 = vst [vmem:[#allocation129_spill] sm:$0xff] %v11706_v6  ;;  %v1754_v38 = vmul.f32 %v7840_v19, %v10769_v40 }
 0x2de   :  { %18245 = vst [vmem:[#allocation126_spill] sm:$0xff] %v11686_v18  ;;  %18246 = vst [vmem:[#allocation127_spill] sm:$0xff] %v11688_v41  ;;  %v11713_v30 = vadd.f32 %v11019_v48, %v1753_v54  ;;  %v18373_v18 = vld [vmem:[#allocation71_spill] sm:$0xff] }
 0x2df   :  { %2380 = vrot.lane.b32.xlu0 %v11691_v26, %s7937_s28  ;;  %2378 = vrot.lane.b32.xlu1 %v11684_v55, %s7937_s28  ;;  %v7841_v26 = vld [vmem:[%s17135_s0 + $0x2c8] sm:$0xff]  ;;  %v11728_v48 = vadd.f32 %v11039_v31, %v1754_v38 }
 0x2e0   :  { %18251 = vst [vmem:[#allocation132_spill] sm:$0xff] %v11713_v30  ;;  %v1755_v15 = vmul.f32 %v7841_v26, %v10769_v40  ;;  %v7842_v40 = vld [vmem:[%s17135_s0 + $0x2d0] sm:$0xff] }
 0x2e1   :  { %v11708_v0 = vpop.permute.xlu1 %2266  ;;  %v11710_v45 = vpop.permute.xlu0 %2268  ;;  %18252 = vst [vmem:[#allocation133_spill] sm:$0xff] %v11728_v48  ;;  %v1756_v26 = vmul.f32 %v7842_v40, %v10757_v35 }
 0x2e2   :  { %18249 = vst [vmem:[#allocation130_spill] sm:$0xff] %v11708_v0  ;;  %18250 = vst [vmem:[#allocation131_spill] sm:$0xff] %v11710_v45  ;;  %v11735_v19 = vadd.f32 %v11039_v31, %v1755_v15 }
 0x2e3   :  { %2384 = vrot.lane.b32.xlu0 %v11713_v30, %s7937_s28  ;;  %2382 = vrot.lane.b32.xlu1 %v11706_v6, %s7937_s28  ;;  %v7843_v30 = vld [vmem:[%s17135_s0 + $0x2d8] sm:$0xff]  ;;  %v11750_v31 = vadd.f32 %v11059_v3, %v1756_v26 }
 0x2e4   :  { %18255 = vst [vmem:[#allocation136_spill] sm:$0xff] %v11735_v19  ;;  %v1757_v38 = vmul.f32 %v7843_v30, %v10757_v35  ;;  %v7844_v35 = vld [vmem:[%s17135_s0 + $0x2e0] sm:$0xff] }
 0x2e5   :  { %v11730_v54 = vpop.permute.xlu1 %2270  ;;  %v11732_v0 = vpop.permute.xlu0 %2272  ;;  %18256 = vst [vmem:[#allocation137_spill] sm:$0xff] %v11750_v31  ;;  %v1758_v30 = vmul.f32 %v7844_v35, %v10773_v28 }
 0x2e6   :  { %18253 = vst [vmem:[#allocation134_spill] sm:$0xff] %v11730_v54  ;;  %18254 = vst [vmem:[#allocation135_spill] sm:$0xff] %v11732_v0  ;;  %v11757_v40 = vadd.f32 %v11059_v3, %v1757_v38  ;;  %v18369_v54 = vld [vmem:[#allocation70_spill] sm:$0xff] }
 0x2e7   :  { %2388 = vrot.lane.b32.xlu0 %v11735_v19, %s7937_s28  ;;  %2386 = vrot.lane.b32.xlu1 %v11728_v48, %s7937_s28  ;;  %v7845_v19 = vld [vmem:[%s17135_s0 + $0x2e8] sm:$0xff]  ;;  %v11772_v3 = vadd.f32 %v11079_v1, %v1758_v30 }
 0x2e8   :  { %18259 = vst [vmem:[#allocation140_spill] sm:$0xff] %v11757_v40  ;;  %v1759_v26 = vmul.f32 %v7845_v19, %v10773_v28  ;;  %v7846_v28 = vld [vmem:[%s17135_s0 + $0x2f0] sm:$0xff] }
 0x2e9   :  { %v11752_v15 = vpop.permute.xlu1 %2274  ;;  %v11754_v45 = vpop.permute.xlu0 %2276  ;;  %18260 = vst [vmem:[#allocation141_spill] sm:$0xff] %v11772_v3  ;;  %v1760_v19 = vmul.f32 %v7846_v28, %v10761_v23 }
 0x2ea   :  { %18257 = vst [vmem:[#allocation138_spill] sm:$0xff] %v11752_v15  ;;  %18258 = vst [vmem:[#allocation139_spill] sm:$0xff] %v11754_v45  ;;  %v11779_v35 = vadd.f32 %v11079_v1, %v1759_v26 }
 0x2eb   :  { %2392 = vrot.lane.b32.xlu0 %v11757_v40, %s7937_s28  ;;  %2390 = vrot.lane.b32.xlu1 %v11750_v31, %s7937_s28  ;;  %v7847_v40 = vld [vmem:[%s17135_s0 + $0x2f8] sm:$0xff]  ;;  %v11794_v1 = vadd.f32 %v11099_v53, %v1760_v19 }
 0x2ec   :  { %18263 = vst [vmem:[#allocation144_spill] sm:$0xff] %v11779_v35  ;;  %v1761_v30 = vmul.f32 %v7847_v40, %v10761_v23  ;;  %v7848_v23 = vld [vmem:[%s17135_s0 + $0x300] sm:$0xff] }
 0x2ed   :  { %v11774_v38 = vpop.permute.xlu1 %2278  ;;  %v11776_v15 = vpop.permute.xlu0 %2280  ;;  %18264 = vst [vmem:[#allocation145_spill] sm:$0xff] %v11794_v1  ;;  %v1762_v40 = vmul.f32 %v7848_v23, %v10777_v33 }
 0x2ee   :  { %18261 = vst [vmem:[#allocation142_spill] sm:$0xff] %v11774_v38  ;;  %18262 = vst [vmem:[#allocation143_spill] sm:$0xff] %v11776_v15  ;;  %v11801_v28 = vadd.f32 %v11099_v53, %v1761_v30  ;;  %v18365_v38 = vld [vmem:[#allocation38_spill] sm:$0xff] }
 0x2ef   :  { %2396 = vrot.lane.b32.xlu0 %v11779_v35, %s7937_s28  ;;  %2394 = vrot.lane.b32.xlu1 %v11772_v3, %s7937_s28  ;;  %v7849_v35 = vld [vmem:[%s17135_s0 + $0x308] sm:$0xff]  ;;  %v11816_v53 = vadd.f32 %v11119_v13, %v1762_v40 }
 0x2f0   :  { %18267 = vst [vmem:[#allocation148_spill] sm:$0xff] %v11801_v28  ;;  %v1763_v19 = vmul.f32 %v7849_v35, %v10777_v33  ;;  %v7850_v33 = vld [vmem:[%s17135_s0 + $0x310] sm:$0xff] }
 0x2f1   :  { %v11796_v26 = vpop.permute.xlu1 %2282  ;;  %v11798_v45 = vpop.permute.xlu0 %2284  ;;  %18268 = vst [vmem:[#allocation149_spill] sm:$0xff] %v11816_v53  ;;  %v1764_v35 = vmul.f32 %v7850_v33, %v10765_v37 }
 0x2f2   :  { %18265 = vst [vmem:[#allocation146_spill] sm:$0xff] %v11796_v26  ;;  %18266 = vst [vmem:[#allocation147_spill] sm:$0xff] %v11798_v45  ;;  %v11823_v23 = vadd.f32 %v11119_v13, %v1763_v19 }
 0x2f3   :  { %2400 = vrot.lane.b32.xlu0 %v11801_v28, %s7937_s28  ;;  %2398 = vrot.lane.b32.xlu1 %v11794_v1, %s7937_s28  ;;  %v7851_v28 = vld [vmem:[%s17135_s0 + $0x318] sm:$0xff]  ;;  %v11838_v13 = vadd.f32 %v11139_v59, %v1764_v35 }
 0x2f4   :  { %18271 = vst [vmem:[#allocation152_spill] sm:$0xff] %v11823_v23  ;;  %v1765_v40 = vmul.f32 %v7851_v28, %v10765_v37  ;;  %v7852_v37 = vld [vmem:[%s17135_s0 + $0x320] sm:$0xff] }
 0x2f5   :  { %v11818_v30 = vpop.permute.xlu1 %2286  ;;  %v11820_v26 = vpop.permute.xlu0 %2288  ;;  %18272 = vst [vmem:[#allocation153_spill] sm:$0xff] %v11838_v13  ;;  %v1766_v28 = vmul.f32 %v7852_v37, %v10781_v50 }
 0x2f6   :  { %18269 = vst [vmem:[#allocation150_spill] sm:$0xff] %v11818_v30  ;;  %18270 = vst [vmem:[#allocation151_spill] sm:$0xff] %v11820_v26  ;;  %v11845_v33 = vadd.f32 %v11139_v59, %v1765_v40  ;;  %v18361_v30 = vld [vmem:[#allocation8_spill] sm:$0xff] }
 0x2f7   :  { %2404 = vrot.lane.b32.xlu0 %v11823_v23, %s7937_s28  ;;  %2402 = vrot.lane.b32.xlu1 %v11816_v53, %s7937_s28  ;;  %v7853_v23 = vld [vmem:[%s17135_s0 + $0x328] sm:$0xff]  ;;  %v11860_v59 = vadd.f32 %v11159_v32, %v1766_v28 }
 0x2f8   :  { %18275 = vst [vmem:[#allocation156_spill] sm:$0xff] %v11845_v33  ;;  %v1767_v35 = vmul.f32 %v7853_v23, %v10781_v50  ;;  %v7854_v50 = vld [vmem:[%s17135_s0 + $0x330] sm:$0xff] }
 0x2f9   :  { %v11840_v19 = vpop.permute.xlu1 %2290  ;;  %v11842_v45 = vpop.permute.xlu0 %2292  ;;  %18276 = vst [vmem:[#allocation157_spill] sm:$0xff] %v11860_v59  ;;  %v1768_v23 = vmul.f32 %v7854_v50, %v10771_v46 }
 0x2fa   :  { %18273 = vst [vmem:[#allocation154_spill] sm:$0xff] %v11840_v19  ;;  %18274 = vst [vmem:[#allocation155_spill] sm:$0xff] %v11842_v45  ;;  %v11867_v37 = vadd.f32 %v11159_v32, %v1767_v35 }
 0x2fb   :  { %2406 = vrot.lane.b32.xlu1 %v11838_v13, %s7937_s28  ;;  %2408 = vrot.lane.b32.xlu0 %v11845_v33, %s7937_s28  ;;  %v7855_v33 = vld [vmem:[%s17135_s0 + $0x338] sm:$0xff]  ;;  %v11882_v32 = vadd.f32 %v11179_v61, %v1768_v23 }
 0x2fc   :  { %18279 = vst [vmem:[#allocation160_spill] sm:$0xff] %v11867_v37  ;;  %v1769_v28 = vmul.f32 %v7855_v33, %v10771_v46  ;;  %v7856_v46 = vld [vmem:[%s17135_s0 + $0x340] sm:$0xff] }
 0x2fd   :  { %v11862_v40 = vpop.permute.xlu1 %2294  ;;  %v11864_v19 = vpop.permute.xlu0 %2296  ;;  %18280 = vst [vmem:[#allocation161_spill] sm:$0xff] %v11882_v32  ;;  %v1770_v33 = vmul.f32 %v7856_v46, %v10783_v49 }
 0x2fe   :  { %18277 = vst [vmem:[#allocation158_spill] sm:$0xff] %v11862_v40  ;;  %18278 = vst [vmem:[#allocation159_spill] sm:$0xff] %v11864_v19  ;;  %v11889_v50 = vadd.f32 %v11179_v61, %v1769_v28 }
 0x2ff   :  { %2410 = vrot.lane.b32.xlu1 %v11860_v59, %s7937_s28  ;;  %2412 = vrot.lane.b32.xlu0 %v11867_v37, %s7937_s28  ;;  %v7857_v37 = vld [vmem:[%s17135_s0 + $0x348] sm:$0xff]  ;;  %v11904_v61 = vadd.f32 %v11199_v43, %v1770_v33 }
 0x300   :  { %18283 = vst [vmem:[#allocation164_spill] sm:$0xff] %v11889_v50  ;;  %v1771_v23 = vmul.f32 %v7857_v37, %v10783_v49  ;;  %v7858_v49 = vld [vmem:[%s17135_s0 + $0x350] sm:$0xff] }
 0x301   :  { %v11884_v35 = vpop.permute.xlu1 %2298  ;;  %v11886_v45 = vpop.permute.xlu0 %2300  ;;  %18284 = vst [vmem:[#allocation165_spill] sm:$0xff] %v11904_v61  ;;  %v1772_v37 = vmul.f32 %v7858_v49, %v10775_v34 }
 0x302   :  { %18281 = vst [vmem:[#allocation162_spill] sm:$0xff] %v11884_v35  ;;  %18282 = vst [vmem:[#allocation163_spill] sm:$0xff] %v11886_v45  ;;  %v11911_v46 = vadd.f32 %v11199_v43, %v1771_v23 }
 0x303   :  { %2414 = vrot.lane.b32.xlu1 %v11882_v32, %s7937_s28  ;;  %2416 = vrot.lane.b32.xlu0 %v11889_v50, %s7937_s28  ;;  %v7859_v50 = vld [vmem:[%s17135_s0 + $0x358] sm:$0xff]  ;;  %v11926_v43 = vadd.f32 %v11219_v36, %v1772_v37 }
 0x304   :  { %18287 = vst [vmem:[#allocation168_spill] sm:$0xff] %v11911_v46  ;;  %v1773_v33 = vmul.f32 %v7859_v50, %v10775_v34  ;;  %v7860_v34 = vld [vmem:[%s17135_s0 + $0x360] sm:$0xff] }
 0x305   :  { %v11906_v28 = vpop.permute.xlu1 %2302  ;;  %v11908_v35 = vpop.permute.xlu0 %2304  ;;  %18288 = vst [vmem:[#allocation169_spill] sm:$0xff] %v11926_v43  ;;  %v1774_v50 = vmul.f32 %v7860_v34, %v10787_v24 }
 0x306   :  { %18285 = vst [vmem:[#allocation166_spill] sm:$0xff] %v11906_v28  ;;  %18286 = vst [vmem:[#allocation167_spill] sm:$0xff] %v11908_v35  ;;  %v11933_v49 = vadd.f32 %v11219_v36, %v1773_v33  ;;  %v18292_v36 = vld [vmem:[#allocation5_spill] sm:$0xff] }
 0x307   :  { %2418 = vrot.lane.b32.xlu1 %v11904_v61, %s7937_s28  ;;  %2420 = vrot.lane.b32.xlu0 %v11911_v46, %s7937_s28  ;;  %v7861_v46 = vld [vmem:[%s17135_s0 + $0x368] sm:$0xff]  ;;  %v11948_v33 = vadd.f32 %v18292_v36, %v1774_v50 }
 0x308   :  { %18291 = vst [vmem:[#allocation172_spill] sm:$0xff] %v11933_v49  ;;  %v1775_v37 = vmul.f32 %v7861_v46, %v10787_v24  ;;  %v7862_v24 = vld [vmem:[%s17135_s0 + $0x370] sm:$0xff]  ;;  %v18297_v46 = vld [vmem:[#allocation22_spill] sm:$0xff] }
 0x309   :  { %v11928_v23 = vpop.permute.xlu1 %2306  ;;  %v11930_v45 = vpop.permute.xlu0 %2308  ;;  %18293 = vst [vmem:[#allocation5_spill] sm:$0xff] %v11948_v33  ;;  %v1776_v28 = vmul.f32 %v7862_v24, %v18297_v46 }
 0x30a   :  { %18289 = vst [vmem:[#allocation170_spill] sm:$0xff] %v11928_v23  ;;  %18290 = vst [vmem:[#allocation171_spill] sm:$0xff] %v11930_v45  ;;  %v11955_v34 = vadd.f32 %v18292_v36, %v1775_v37 }
 0x30b   :  { %2422 = vrot.lane.b32.xlu1 %v11926_v43, %s7937_s28  ;;  %2424 = vrot.lane.b32.xlu0 %v11933_v49, %s7937_s28  ;;  %v7863_v49 = vld [vmem:[%s17135_s0 + $0x378] sm:$0xff]  ;;  %v11970_v37 = vadd.f32 %v11253_v44, %v1776_v28 }
 0x30c   :  { %18296 = vst [vmem:[#allocation175_spill] sm:$0xff] %v11955_v34  ;;  %v1777_v50 = vmul.f32 %v7863_v49, %v18297_v46  ;;  %v7864_v49 = vld [vmem:[%s17135_s0 + $0x380] sm:$0xff]  ;;  %v18302_v46 = vld [vmem:[#allocation24_spill] sm:$0xff] }
 0x30d   :  { %v11950_v23 = vpop.permute.xlu1 %2310  ;;  %v11952_v45 = vpop.permute.xlu0 %2312  ;;  %18298 = vst [vmem:[#allocation22_spill] sm:$0xff] %v11970_v37 }
 0x30e   :  { %18294 = vst [vmem:[#allocation173_spill] sm:$0xff] %v11950_v23  ;;  %18295 = vst [vmem:[#allocation174_spill] sm:$0xff] %v11952_v45  ;;  %v11977_v24 = vadd.f32 %v11253_v44, %v1777_v50  ;;  %v1778_v45 = vmul.f32 %v7864_v49, %v18302_v46 }
 0x30f   :  { %2426 = vrot.lane.b32.xlu1 %v11948_v33, %s7937_s28  ;;  %2428 = vrot.lane.b32.xlu0 %v11955_v34, %s7937_s28  ;;  %v7865_v34 = vld [vmem:[%s17135_s0 + $0x388] sm:$0xff] }
 0x310   :  { %18301 = vst [vmem:[#allocation178_spill] sm:$0xff] %v11977_v24  ;;  %v1779_v28 = vmul.f32 %v7865_v34, %v18302_v46  ;;  %v11992_v44 = vadd.f32 %v11279_v29, %v1778_v45  ;;  %v7866_v34 = vld [vmem:[%s17135_s0 + $0x390] sm:$0xff]  ;;  %v18307_v46 = vld [vmem:[#allocation19_spill] sm:$0xff] }
 0x311   :  { %v11972_v36 = vpop.permute.xlu1 %2314  ;;  %v11974_v23 = vpop.permute.xlu0 %2316 }
 0x312   :  { %18299 = vst [vmem:[#allocation176_spill] sm:$0xff] %v11972_v36  ;;  %18300 = vst [vmem:[#allocation177_spill] sm:$0xff] %v11974_v23  ;;  %v11999_v49 = vadd.f32 %v11279_v29, %v1779_v28  ;;  %v1780_v23 = vmul.f32 %v7866_v34, %v18307_v46  ;;  %v18308_v29 = vld [vmem:[#allocation85_spill] sm:$0xff] }
 0x313   :  { %2430 = vrot.lane.b32.xlu1 %v11970_v37, %s7937_s28  ;;  %2432 = vrot.lane.b32.xlu0 %v11977_v24, %s7937_s28  ;;  %18303 = vst [vmem:[#allocation24_spill] sm:$0xff] %v11992_v44  ;;  %v7867_v24 = vld [vmem:[%s17135_s0 + $0x398] sm:$0xff] }
 0x314   :  { %18306 = vst [vmem:[#allocation181_spill] sm:$0xff] %v11999_v49  ;;  %v1781_v45 = vmul.f32 %v7867_v24, %v18307_v46  ;;  %v12014_v28 = vadd.f32 %v18308_v29, %v1780_v23  ;;  %v7868_v24 = vld [vmem:[%s17135_s0 + $0x3a0] sm:$0xff]  ;;  %v18313_v46 = vld [vmem:[#allocation25_spill] sm:$0xff] }
 0x315   :  { %v11994_v50 = vpop.permute.xlu1 %2318  ;;  %v11996_v36 = vpop.permute.xlu0 %2320  ;;  %v1782_v35 = vmul.f32 %v7868_v24, %v18313_v46 }
 0x316   :  { %18304 = vst [vmem:[#allocation179_spill] sm:$0xff] %v11994_v50  ;;  %18305 = vst [vmem:[#allocation180_spill] sm:$0xff] %v11996_v36  ;;  %v12021_v34 = vadd.f32 %v18308_v29, %v1781_v45 }
 0x317   :  { %2434 = vrot.lane.b32.xlu1 %v11992_v44, %s7937_s28  ;;  %2436 = vrot.lane.b32.xlu0 %v11999_v49, %s7937_s28  ;;  %18309 = vst [vmem:[#allocation19_spill] sm:$0xff] %v12014_v28  ;;  %v7869_v49 = vld [vmem:[%s17135_s0 + $0x3a8] sm:$0xff]  ;;  %v12036_v45 = vadd.f32 %v11318_v39, %v1782_v35 }
 0x318   :  { %18312 = vst [vmem:[#allocation183_spill] sm:$0xff] %v12021_v34  ;;  %v1783_v23 = vmul.f32 %v7869_v49, %v18313_v46  ;;  %v7870_v49 = vld [vmem:[%s17135_s0 + $0x3b0] sm:$0xff]  ;;  %v18318_v46 = vld [vmem:[#allocation23_spill] sm:$0xff] }
 0x319   :  { %v12016_v50 = vpop.permute.xlu1 %2322  ;;  %v12018_v36 = vpop.permute.xlu0 %2324  ;;  %18314 = vst [vmem:[#allocation25_spill] sm:$0xff] %v12036_v45 }
 0x31a   :  { %18310 = vst [vmem:[#allocation85_spill] sm:$0xff] %v12016_v50  ;;  %18311 = vst [vmem:[#allocation182_spill] sm:$0xff] %v12018_v36  ;;  %v12043_v24 = vadd.f32 %v11318_v39, %v1783_v23  ;;  %v1784_v36 = vmul.f32 %v7870_v49, %v18318_v46 }
 0x31b   :  { %2438 = vrot.lane.b32.xlu1 %v12014_v28, %s7937_s28  ;;  %2440 = vrot.lane.b32.xlu0 %v12021_v34, %s7937_s28  ;;  %v7871_v34 = vld [vmem:[%s17135_s0 + $0x3b8] sm:$0xff] }
 0x31c   :  { %18317 = vst [vmem:[#allocation186_spill] sm:$0xff] %v12043_v24  ;;  %v1785_v35 = vmul.f32 %v7871_v34, %v18318_v46  ;;  %v12058_v39 = vadd.f32 %v11316_v7, %v1784_v36  ;;  %v7872_v34 = vld [vmem:[%s17135_s0 + $0x3c0] sm:$0xff]  ;;  %v18323_v46 = vld [vmem:[#allocation27_spill] sm:$0xff] }
 0x31d   :  { %v12038_v29 = vpop.permute.xlu1 %2326  ;;  %v12040_v50 = vpop.permute.xlu0 %2328 }
 0x31e   :  { %18315 = vst [vmem:[#allocation184_spill] sm:$0xff] %v12038_v29  ;;  %18316 = vst [vmem:[#allocation185_spill] sm:$0xff] %v12040_v50  ;;  %v12065_v49 = vadd.f32 %v11316_v7, %v1785_v35  ;;  %v1786_v50 = vmul.f32 %v7872_v34, %v18323_v46  ;;  %v18324_v7 = vld [vmem:[#allocation89_spill] sm:$0xff] }
 0x31f   :  { %2442 = vrot.lane.b32.xlu1 %v12036_v45, %s7937_s28  ;;  %2444 = vrot.lane.b32.xlu0 %v12043_v24, %s7937_s28  ;;  %18319 = vst [vmem:[#allocation23_spill] sm:$0xff] %v12058_v39  ;;  %v7873_v24 = vld [vmem:[%s17135_s0 + $0x3c8] sm:$0xff] }
 0x320   :  { %18322 = vst [vmem:[#allocation189_spill] sm:$0xff] %v12065_v49  ;;  %v1787_v36 = vmul.f32 %v7873_v24, %v18323_v46  ;;  %v12080_v35 = vadd.f32 %v18324_v7, %v1786_v50  ;;  %v7874_v24 = vld [vmem:[%s17135_s0 + $0x3d0] sm:$0xff]  ;;  %v18329_v46 = vld [vmem:[#allocation26_spill] sm:$0xff] }
 0x321   :  { %v12060_v23 = vpop.permute.xlu1 %2330  ;;  %v12062_v29 = vpop.permute.xlu0 %2332  ;;  %v1788_v40 = vmul.f32 %v7874_v24, %v18329_v46 }
 0x322   :  { %18320 = vst [vmem:[#allocation187_spill] sm:$0xff] %v12060_v23  ;;  %18321 = vst [vmem:[#allocation188_spill] sm:$0xff] %v12062_v29  ;;  %v12087_v34 = vadd.f32 %v18324_v7, %v1787_v36 }
 0x323   :  { %2446 = vrot.lane.b32.xlu1 %v12058_v39, %s7937_s28  ;;  %2448 = vrot.lane.b32.xlu0 %v12065_v49, %s7937_s28  ;;  %18325 = vst [vmem:[#allocation27_spill] sm:$0xff] %v12080_v35  ;;  %v7875_v49 = vld [vmem:[%s17135_s0 + $0x3d8] sm:$0xff]  ;;  %v12102_v36 = vadd.f32 %v11349_v58, %v1788_v40 }
 0x324   :  { %18328 = vst [vmem:[#allocation191_spill] sm:$0xff] %v12087_v34  ;;  %v1789_v50 = vmul.f32 %v7875_v49, %v18329_v46  ;;  %v7876_v49 = vld [vmem:[%s17135_s0 + $0x3e0] sm:$0xff] }
 0x325   :  { %v12082_v23 = vpop.permute.xlu1 %2334  ;;  %v12084_v29 = vpop.permute.xlu0 %2336  ;;  %18330 = vst [vmem:[#allocation26_spill] sm:$0xff] %v12102_v36  ;;  %v1790_v46 = vmul.f32 %v7876_v49, %v10801_v20 }
 0x326   :  { %18326 = vst [vmem:[#allocation89_spill] sm:$0xff] %v12082_v23  ;;  %18327 = vst [vmem:[#allocation190_spill] sm:$0xff] %v12084_v29  ;;  %v12109_v24 = vadd.f32 %v11349_v58, %v1789_v50  ;;  %v18357_v29 = vld [vmem:[#allocation3_spill] sm:$0xff] }
 0x327   :  { %2450 = vrot.lane.b32.xlu1 %v12080_v35, %s7937_s28  ;;  %2452 = vrot.lane.b32.xlu0 %v12087_v34, %s7937_s28  ;;  %v7877_v34 = vld [vmem:[%s17135_s0 + $0x3e8] sm:$0xff]  ;;  %v12124_v58 = vadd.f32 %v11380_v8, %v1790_v46 }
 0x328   :  { %18333 = vst [vmem:[#allocation194_spill] sm:$0xff] %v12109_v24  ;;  %v1791_v40 = vmul.f32 %v7877_v34, %v10801_v20  ;;  %v7878_v20 = vld [vmem:[%s17135_s0 + $0x3f0] sm:$0xff] }
 0x329   :  { %v12104_v7 = vpop.permute.xlu1 %2338  ;;  %v12106_v23 = vpop.permute.xlu0 %2340  ;;  %18334 = vst [vmem:[#allocation195_spill] sm:$0xff] %v12124_v58  ;;  %v1792_v34 = vmul.f32 %v7878_v20, %v10799_v47 }
 0x32a   :  { %18331 = vst [vmem:[#allocation192_spill] sm:$0xff] %v12104_v7  ;;  %18332 = vst [vmem:[#allocation193_spill] sm:$0xff] %v12106_v23  ;;  %v12131_v49 = vadd.f32 %v11380_v8, %v1791_v40 }
 0x32b   :  { %2454 = vrot.lane.b32.xlu1 %v12102_v36, %s7937_s28  ;;  %2456 = vrot.lane.b32.xlu0 %v12109_v24, %s7937_s28  ;;  %v7879_v24 = vld [vmem:[%s17135_s0 + $0x3f8] sm:$0xff]  ;;  %v12146_v8 = vadd.f32 %v11375_v42, %v1792_v34  ;;  %s7938_s0 = smov 67   ;;  %v18344_v34 = vld [vmem:[#allocation28_spill] sm:$0xff] }
 0x32c   :  { %18337 = vst [vmem:[#allocation198_spill] sm:$0xff] %v12131_v49  ;;  %v1793_v46 = vmul.f32 %v7879_v24, %v10799_v47 }
 0x32d   :  { %v12126_v50 = vpop.permute.xlu1 %2342  ;;  %v12128_v7 = vpop.permute.xlu0 %2344  ;;  %18338 = vst [vmem:[#allocation199_spill] sm:$0xff] %v12146_v8 }
 0x32e   :  { %18335 = vst [vmem:[#allocation196_spill] sm:$0xff] %v12126_v50  ;;  %18336 = vst [vmem:[#allocation197_spill] sm:$0xff] %v12128_v7  ;;  %v12153_v20 = vadd.f32 %v11375_v42, %v1793_v46  ;;  %v18348_v46 = vld [vmem:[#allocation32_spill] sm:$0xff]  ;;  %v18353_v7 = vld [vmem:[#allocation34_spill] sm:$0xff] }
 0x32f   :  { %2458 = vrot.lane.b32.xlu1 %v12124_v58, %s7937_s28  ;;  %2460 = vrot.lane.b32.xlu0 %v12131_v49, %s7937_s28  ;;  %v18345_v49 = vld [vmem:[#allocation29_spill] sm:$0xff] }
 0x330   :  { %18341 = vst [vmem:[#allocation202_spill] sm:$0xff] %v12153_v20 }
 0x331   :  { %v12148_v40 = vpop.permute.xlu1 %2346  ;;  %v12150_v50 = vpop.permute.xlu0 %2348 }
 0x332   :  { %18339 = vst [vmem:[#allocation200_spill] sm:$0xff] %v12148_v40  ;;  %18340 = vst [vmem:[#allocation201_spill] sm:$0xff] %v12150_v50  ;;  %v18352_v50 = vld [vmem:[#allocation56_spill] sm:$0xff] }
 0x333   :  { %2462 = vrot.lane.b32.xlu1 %v12146_v8, %s7937_s28  ;;  %2464 = vrot.lane.b32.xlu0 %v12153_v20, %s7937_s28  ;;  %v18349_v20 = vld [vmem:[#allocation46_spill] sm:$0xff]  ;;  %s7939_s28 = smov 126  }
 0x335   :  { %v12159_v47 = vpop.permute.xlu1 %2350  ;;  %v12161_v24 = vpop.permute.xlu0 %2352 }
 0x336   :  { %18342 = vst [vmem:[#allocation203_spill] sm:$0xff] %v12159_v47  ;;  %18343 = vst [vmem:[#allocation204_spill] sm:$0xff] %v12161_v24 }
 0x337   :  { %2659 = vrot.lane.b32.xlu1 %v18344_v34, %s7938_s0  ;;  %2661 = vrot.lane.b32.xlu0 %v18345_v49, %s7938_s0 }
 0x339   :  { %v12167_v40 = vpop.permute.xlu1 %2354  ;;  %v12169_v42 = vpop.permute.xlu0 %2356 }
 0x33a   :  { %18346 = vst [vmem:[#allocation28_spill] sm:$0xff] %v12167_v40  ;;  %18347 = vst [vmem:[#allocation29_spill] sm:$0xff] %v12169_v42  ;;  %v18356_v42 = vld [vmem:[#allocation72_spill] sm:$0xff] }
 0x33b   :  { %2663 = vrot.lane.b32.xlu1 %v18348_v46, %s7938_s0  ;;  %2665 = vrot.lane.b32.xlu0 %v18349_v20, %s7938_s0 }
 0x33d   :  { %v12175_v47 = vpop.permute.xlu1 %2358  ;;  %v12177_v24 = vpop.permute.xlu0 %2360 }
 0x33e   :  { %18350 = vst [vmem:[#allocation32_spill] sm:$0xff] %v12175_v47  ;;  %18351 = vst [vmem:[#allocation46_spill] sm:$0xff] %v12177_v24  ;;  %v18360_v24 = vld [vmem:[#allocation74_spill] sm:$0xff] }
 0x33f   :  { %2667 = vrot.lane.b32.xlu1 %v18352_v50, %s7938_s0  ;;  %2669 = vrot.lane.b32.xlu0 %v18353_v7, %s7938_s0 }
 0x341   :  { %v12183_v23 = vpop.permute.xlu1 %2362  ;;  %v12185_v40 = vpop.permute.xlu0 %2364 }
 0x342   :  { %18354 = vst [vmem:[#allocation56_spill] sm:$0xff] %v12183_v23  ;;  %18355 = vst [vmem:[#allocation34_spill] sm:$0xff] %v12185_v40  ;;  %v18364_v40 = vld [vmem:[#allocation77_spill] sm:$0xff] }
 0x343   :  { %2671 = vrot.lane.b32.xlu1 %v18356_v42, %s7938_s0  ;;  %2673 = vrot.lane.b32.xlu0 %v18357_v29, %s7938_s0 }
 0x345   :  { %v12191_v19 = vpop.permute.xlu1 %2366  ;;  %v12193_v47 = vpop.permute.xlu0 %2368 }
 0x346   :  { %18358 = vst [vmem:[#allocation72_spill] sm:$0xff] %v12191_v19  ;;  %18359 = vst [vmem:[#allocation3_spill] sm:$0xff] %v12193_v47  ;;  %v18368_v47 = vld [vmem:[#allocation65_spill] sm:$0xff] }
 0x347   :  { %2675 = vrot.lane.b32.xlu1 %v18360_v24, %s7938_s0  ;;  %2677 = vrot.lane.b32.xlu0 %v18361_v30, %s7938_s0 }
 0x349   :  { %v12199_v26 = vpop.permute.xlu1 %2370  ;;  %v12201_v23 = vpop.permute.xlu0 %2372 }
 0x34a   :  { %18362 = vst [vmem:[#allocation74_spill] sm:$0xff] %v12199_v26  ;;  %18363 = vst [vmem:[#allocation205_spill] sm:$0xff] %v12201_v23  ;;  %v18372_v23 = vld [vmem:[#allocation40_spill] sm:$0xff] }
 0x34b   :  { %2679 = vrot.lane.b32.xlu1 %v18364_v40, %s7938_s0  ;;  %2681 = vrot.lane.b32.xlu0 %v18365_v38, %s7938_s0 }
 0x34d   :  { %v12207_v15 = vpop.permute.xlu1 %2374  ;;  %v12209_v19 = vpop.permute.xlu0 %2376 }
 0x34e   :  { %18366 = vst [vmem:[#allocation206_spill] sm:$0xff] %v12207_v15  ;;  %18367 = vst [vmem:[#allocation207_spill] sm:$0xff] %v12209_v19  ;;  %v18376_v19 = vld [vmem:[#allocation75_spill] sm:$0xff] }
 0x34f   :  { %2683 = vrot.lane.b32.xlu1 %v18368_v47, %s7938_s0  ;;  %2685 = vrot.lane.b32.xlu0 %v18369_v54, %s7938_s0 }
 0x351   :  { %v12215_v0 = vpop.permute.xlu1 %2378  ;;  %v12217_v26 = vpop.permute.xlu0 %2380 }
 0x352   :  { %18370 = vst [vmem:[#allocation208_spill] sm:$0xff] %v12215_v0  ;;  %18371 = vst [vmem:[#allocation209_spill] sm:$0xff] %v12217_v26  ;;  %v18380_v26 = vld [vmem:[#allocation76_spill] sm:$0xff] }
 0x353   :  { %2687 = vrot.lane.b32.xlu1 %v18372_v23, %s7938_s0  ;;  %2689 = vrot.lane.b32.xlu0 %v18373_v18, %s7938_s0 }
 0x355   :  { %v12223_v41 = vpop.permute.xlu1 %2382  ;;  %v12225_v15 = vpop.permute.xlu0 %2384 }
 0x356   :  { %18374 = vst [vmem:[#allocation210_spill] sm:$0xff] %v12223_v41  ;;  %18375 = vst [vmem:[#allocation211_spill] sm:$0xff] %v12225_v15  ;;  %v18384_v15 = vld [vmem:[#allocation45_spill] sm:$0xff] }
 0x357   :  { %2691 = vrot.lane.b32.xlu1 %v18376_v19, %s7938_s0  ;;  %2693 = vrot.lane.b32.xlu0 %v18377_v62, %s7938_s0 }
 0x359   :  { %v12231_v25 = vpop.permute.xlu1 %2386  ;;  %v12233_v0 = vpop.permute.xlu0 %2388 }
 0x35a   :  { %18378 = vst [vmem:[#allocation43_spill] sm:$0xff] %v12231_v25  ;;  %18379 = vst [vmem:[#allocation212_spill] sm:$0xff] %v12233_v0  ;;  %v18388_v0 = vld [vmem:[#allocation48_spill] sm:$0xff] }
 0x35b   :  { %2695 = vrot.lane.b32.xlu1 %v18380_v26, %s7938_s0  ;;  %2697 = vrot.lane.b32.xlu0 %v18381_v9, %s7938_s0 }
 0x35d   :  { %v12239_v21 = vpop.permute.xlu1 %2390  ;;  %v12241_v41 = vpop.permute.xlu0 %2392 }
 0x35e   :  { %18382 = vst [vmem:[#allocation79_spill] sm:$0xff] %v12239_v21  ;;  %18383 = vst [vmem:[#allocation213_spill] sm:$0xff] %v12241_v41  ;;  %v18392_v41 = vld [vmem:[#allocation50_spill] sm:$0xff] }
 0x35f   :  { %2699 = vrot.lane.b32.xlu1 %v18384_v15, %s7938_s0  ;;  %2701 = vrot.lane.b32.xlu0 %v18385_v11, %s7938_s0 }
 0x361   :  { %v12247_v63 = vpop.permute.xlu1 %2394  ;;  %v12249_v25 = vpop.permute.xlu0 %2396 }
 0x362   :  { %18386 = vst [vmem:[#allocation214_spill] sm:$0xff] %v12247_v63  ;;  %18387 = vst [vmem:[#allocation215_spill] sm:$0xff] %v12249_v25  ;;  %v18396_v25 = vld [vmem:[#allocation92_spill] sm:$0xff] }
 0x363   :  { %2703 = vrot.lane.b32.xlu1 %v18388_v0, %s7938_s0  ;;  %2705 = vrot.lane.b32.xlu0 %v18389_v52, %s7938_s0  ;;  %v18397_v0 = vld [vmem:[#allocation95_spill] sm:$0xff] }
 0x365   :  { %v12255_v22 = vpop.permute.xlu1 %2398  ;;  %v12257_v21 = vpop.permute.xlu0 %2400 }
 0x366   :  { %18390 = vst [vmem:[#allocation216_spill] sm:$0xff] %v12255_v22  ;;  %18391 = vst [vmem:[#allocation217_spill] sm:$0xff] %v12257_v21  ;;  %v18400_v21 = vld [vmem:[#allocation11_spill] sm:$0xff] }
 0x367   :  { %2707 = vrot.lane.b32.xlu1 %v18392_v41, %s7938_s0  ;;  %2709 = vrot.lane.b32.xlu0 %v18393_v2, %s7938_s0  ;;  %v18401_v41 = vld [vmem:[#allocation12_spill] sm:$0xff] }
 0x369   :  { %v12263_v11 = vpop.permute.xlu1 %2402  ;;  %v12265_v63 = vpop.permute.xlu0 %2404 }
 0x36a   :  { %18394 = vst [vmem:[#allocation218_spill] sm:$0xff] %v12263_v11  ;;  %18395 = vst [vmem:[#allocation219_spill] sm:$0xff] %v12265_v63 }
 0x36b   :  { %2711 = vrot.lane.b32.xlu1 %v18396_v25, %s7938_s0  ;;  %2713 = vrot.lane.b32.xlu0 %v18397_v0, %s7938_s0  ;;  %v18517_v0 = vmov 0  }
 0x36d   :  { %v12271_v52 = vpop.permute.xlu1 %2406  ;;  %v12273_v22 = vpop.permute.xlu0 %2408 }
 0x36e   :  { %18398 = vst [vmem:[#allocation220_spill] sm:$0xff] %v12271_v52  ;;  %18399 = vst [vmem:[#allocation221_spill] sm:$0xff] %v12273_v22 }
 0x36f   :  { %2715 = vrot.lane.b32.xlu1 %v18400_v21, %s7938_s0  ;;  %2717 = vrot.lane.b32.xlu0 %v18401_v41, %s7938_s0 }
 0x371   :  { %v12279_v2 = vpop.permute.xlu1 %2410  ;;  %v12281_v11 = vpop.permute.xlu0 %2412 }
 0x372   :  { %18402 = vst [vmem:[#allocation222_spill] sm:$0xff] %v12279_v2  ;;  %18403 = vst [vmem:[#allocation223_spill] sm:$0xff] %v12281_v11 }
 0x373   :  { %2719 = vrot.lane.b32.xlu1 %v11420_v27, %s7938_s0  ;;  %2721 = vrot.lane.b32.xlu0 %v11442_v12, %s7938_s0 }
 0x375   :  { %v12287_v63 = vpop.permute.xlu1 %2414  ;;  %v12289_v52 = vpop.permute.xlu0 %2416 }
 0x376   :  { %18404 = vst [vmem:[#allocation224_spill] sm:$0xff] %v12287_v63  ;;  %18405 = vst [vmem:[#allocation225_spill] sm:$0xff] %v12289_v52 }
 0x377   :  { %2723 = vrot.lane.b32.xlu1 %v11464_v60, %s7938_s0  ;;  %2725 = vrot.lane.b32.xlu0 %v11486_v16, %s7938_s0 }
 0x379   :  { %v12295_v22 = vpop.permute.xlu1 %2418  ;;  %v12297_v2 = vpop.permute.xlu0 %2420 }
 0x37a   :  { %18406 = vst [vmem:[#allocation226_spill] sm:$0xff] %v12295_v22  ;;  %18407 = vst [vmem:[#allocation227_spill] sm:$0xff] %v12297_v2 }
 0x37b   :  { %2727 = vrot.lane.b32.xlu1 %v11508_v14, %s7938_s0  ;;  %2729 = vrot.lane.b32.xlu0 %v11530_v57, %s7938_s0  ;;  %v18454_v57 = vld [vmem:[#allocation7_spill] sm:$0xff]  ;;  %v18457_v14 = vld [vmem:[#allocation36_spill] sm:$0xff] }
 0x37d   :  { %v12303_v11 = vpop.permute.xlu1 %2422  ;;  %v12305_v63 = vpop.permute.xlu0 %2424 }
 0x37e   :  { %18408 = vst [vmem:[#allocation228_spill] sm:$0xff] %v12303_v11  ;;  %18409 = vst [vmem:[#allocation229_spill] sm:$0xff] %v12305_v63 }
 0x37f   :  { %2731 = vrot.lane.b32.xlu1 %v11552_v5, %s7938_s0  ;;  %2733 = vrot.lane.b32.xlu0 %v11574_v56, %s7938_s0 }
 0x381   :  { %v12311_v52 = vpop.permute.xlu1 %2426  ;;  %v12313_v22 = vpop.permute.xlu0 %2428 }
 0x382   :  { %18410 = vst [vmem:[#allocation230_spill] sm:$0xff] %v12311_v52  ;;  %18411 = vst [vmem:[#allocation231_spill] sm:$0xff] %v12313_v22 }
 0x383   :  { %2735 = vrot.lane.b32.xlu1 %v11596_v17, %s7938_s0  ;;  %2737 = vrot.lane.b32.xlu0 %v11618_v4, %s7938_s0 }
 0x385   :  { %v12319_v2 = vpop.permute.xlu1 %2430  ;;  %v12321_v11 = vpop.permute.xlu0 %2432 }
 0x386   :  { %18412 = vst [vmem:[#allocation232_spill] sm:$0xff] %v12319_v2  ;;  %18413 = vst [vmem:[#allocation233_spill] sm:$0xff] %v12321_v11 }
 0x387   :  { %2739 = vrot.lane.b32.xlu1 %v11640_v10, %s7938_s0  ;;  %2741 = vrot.lane.b32.xlu0 %v11662_v51, %s7938_s0  ;;  %v18448_v51 = vld [vmem:[#allocation73_spill] sm:$0xff]  ;;  %v18451_v10 = vld [vmem:[#allocation4_spill] sm:$0xff] }
 0x389   :  { %v12327_v63 = vpop.permute.xlu1 %2434  ;;  %v12329_v52 = vpop.permute.xlu0 %2436 }
 0x38a   :  { %18414 = vst [vmem:[#allocation234_spill] sm:$0xff] %v12327_v63  ;;  %18415 = vst [vmem:[#allocation235_spill] sm:$0xff] %v12329_v52 }
 0x38b   :  { %2743 = vrot.lane.b32.xlu1 %v11684_v55, %s7938_s0  ;;  %2745 = vrot.lane.b32.xlu0 %v11706_v6, %s7938_s0 }
 0x38d   :  { %v12335_v22 = vpop.permute.xlu1 %2438  ;;  %v12337_v2 = vpop.permute.xlu0 %2440 }
 0x38e   :  { %18416 = vst [vmem:[#allocation236_spill] sm:$0xff] %v12335_v22  ;;  %18417 = vst [vmem:[#allocation237_spill] sm:$0xff] %v12337_v2 }
 0x38f   :  { %2747 = vrot.lane.b32.xlu1 %v11728_v48, %s7938_s0  ;;  %2749 = vrot.lane.b32.xlu0 %v11750_v31, %s7938_s0 }
 0x391   :  { %v12343_v11 = vpop.permute.xlu1 %2442  ;;  %v12345_v63 = vpop.permute.xlu0 %2444 }
 0x392   :  { %18418 = vst [vmem:[#allocation238_spill] sm:$0xff] %v12343_v11  ;;  %18419 = vst [vmem:[#allocation239_spill] sm:$0xff] %v12345_v63 }
 0x393   :  { %2751 = vrot.lane.b32.xlu1 %v11772_v3, %s7938_s0  ;;  %2753 = vrot.lane.b32.xlu0 %v11794_v1, %s7938_s0  ;;  %v18445_v3 = vld [vmem:[#allocation69_spill] sm:$0xff] }
 0x395   :  { %v12351_v52 = vpop.permute.xlu1 %2446  ;;  %v12353_v22 = vpop.permute.xlu0 %2448 }
 0x396   :  { %18420 = vst [vmem:[#allocation240_spill] sm:$0xff] %v12351_v52  ;;  %18421 = vst [vmem:[#allocation241_spill] sm:$0xff] %v12353_v22 }
 0x397   :  { %2755 = vrot.lane.b32.xlu1 %v11816_v53, %s7938_s0  ;;  %2757 = vrot.lane.b32.xlu0 %v11838_v13, %s7938_s0  ;;  %v18442_v53 = vld [vmem:[#allocation60_spill] sm:$0xff] }
 0x399   :  { %v12359_v2 = vpop.permute.xlu1 %2450  ;;  %v12361_v11 = vpop.permute.xlu0 %2452 }
 0x39a   :  { %18422 = vst [vmem:[#allocation242_spill] sm:$0xff] %v12359_v2  ;;  %18423 = vst [vmem:[#allocation243_spill] sm:$0xff] %v12361_v11 }
 0x39b   :  { %2759 = vrot.lane.b32.xlu1 %v11860_v59, %s7938_s0  ;;  %2761 = vrot.lane.b32.xlu0 %v11882_v32, %s7938_s0  ;;  %v18439_v32 = vld [vmem:[#allocation68_spill] sm:$0xff] }
 0x39d   :  { %v12367_v63 = vpop.permute.xlu1 %2454  ;;  %v12369_v52 = vpop.permute.xlu0 %2456 }
 0x39e   :  { %18424 = vst [vmem:[#allocation244_spill] sm:$0xff] %v12367_v63  ;;  %18425 = vst [vmem:[#allocation245_spill] sm:$0xff] %v12369_v52 }
 0x39f   :  { %2763 = vrot.lane.b32.xlu1 %v11904_v61, %s7938_s0  ;;  %2765 = vrot.lane.b32.xlu0 %v11926_v43, %s7938_s0 }
 0x3a1   :  { %v12375_v22 = vpop.permute.xlu1 %2458  ;;  %v12377_v2 = vpop.permute.xlu0 %2460 }
 0x3a2   :  { %18426 = vst [vmem:[#allocation246_spill] sm:$0xff] %v12375_v22  ;;  %18427 = vst [vmem:[#allocation247_spill] sm:$0xff] %v12377_v2 }
 0x3a3   :  { %2767 = vrot.lane.b32.xlu1 %v11948_v33, %s7938_s0  ;;  %2769 = vrot.lane.b32.xlu0 %v11970_v37, %s7938_s0  ;;  %v18436_v33 = vld [vmem:[#allocation42_spill] sm:$0xff] }
 0x3a5   :  { %v12383_v11 = vpop.permute.xlu1 %2462  ;;  %v12385_v63 = vpop.permute.xlu0 %2464 }
 0x3a6   :  { %18428 = vst [vmem:[#allocation248_spill] sm:$0xff] %v12383_v11  ;;  %18429 = vst [vmem:[#allocation249_spill] sm:$0xff] %v12385_v63 }
 0x3a7   :  { %2771 = vrot.lane.b32.xlu1 %v11992_v44, %s7938_s0  ;;  %2773 = vrot.lane.b32.xlu0 %v12014_v28, %s7938_s0 }
 0x3a9   :  { %v12391_v52 = vpop.permute.xlu1 %2659  ;;  %v12393_v22 = vpop.permute.xlu0 %2661 }
 0x3ab   :  { %2775 = vrot.lane.b32.xlu1 %v12036_v45, %s7938_s0  ;;  %2777 = vrot.lane.b32.xlu0 %v12058_v39, %s7938_s0 }
 0x3ad   :  { %v12399_v2 = vpop.permute.xlu1 %2663  ;;  %v12401_v11 = vpop.permute.xlu0 %2665 }
 0x3af   :  { %2779 = vrot.lane.b32.xlu1 %v12080_v35, %s7938_s0  ;;  %2781 = vrot.lane.b32.xlu0 %v12102_v36, %s7938_s0  ;;  %v18430_v36 = vld [vmem:[#allocation35_spill] sm:$0xff] }
 0x3b1   :  { %v12407_v63 = vpop.permute.xlu1 %2667  ;;  %v12409_v28 = vpop.permute.xlu0 %2669 }
 0x3b3   :  { %2783 = vrot.lane.b32.xlu1 %v12124_v58, %s7938_s0  ;;  %2785 = vrot.lane.b32.xlu0 %v12146_v8, %s7938_s0  ;;  %v18433_v8 = vld [vmem:[#allocation30_spill] sm:$0xff] }
 0x3b5   :  { %v12415_v39 = vpop.permute.xlu1 %2671  ;;  %v12417_v45 = vpop.permute.xlu0 %2673 }
 0x3b7   :  { %3044 = vrot.lane.b32.xlu1 %v18344_v34, %s7939_s28  ;;  %3046 = vrot.lane.b32.xlu0 %v18430_v36, %s7939_s28 }
 0x3b9   :  { %v12423_v35 = vpop.permute.xlu1 %2675  ;;  %v12425_v44 = vpop.permute.xlu0 %2677 }
 0x3ba   :  { %18431 = vst [vmem:[#allocation35_spill] sm:$0xff] %v12423_v35  ;;  %18432 = vst [vmem:[#allocation250_spill] sm:$0xff] %v12425_v44 }
 0x3bb   :  { %3048 = vrot.lane.b32.xlu1 %v18345_v49, %s7939_s28  ;;  %3050 = vrot.lane.b32.xlu0 %v18433_v8, %s7939_s28 }
 0x3bd   :  { %v12431_v58 = vpop.permute.xlu1 %2679  ;;  %v12433_v37 = vpop.permute.xlu0 %2681 }
 0x3be   :  { %18434 = vst [vmem:[#allocation30_spill] sm:$0xff] %v12431_v58  ;;  %18435 = vst [vmem:[#allocation251_spill] sm:$0xff] %v12433_v37 }
 0x3bf   :  { %3052 = vrot.lane.b32.xlu1 %v18348_v46, %s7939_s28  ;;  %3054 = vrot.lane.b32.xlu0 %v18436_v33, %s7939_s28 }
 0x3c1   :  { %v12439_v43 = vpop.permute.xlu1 %2683  ;;  %v12441_v61 = vpop.permute.xlu0 %2685 }
 0x3c2   :  { %18437 = vst [vmem:[#allocation42_spill] sm:$0xff] %v12439_v43  ;;  %18438 = vst [vmem:[#allocation252_spill] sm:$0xff] %v12441_v61  ;;  %v18519_v43 = vld [vmem:[#allocation49_spill] sm:$0xff] }
 0x3c3   :  { %3056 = vrot.lane.b32.xlu1 %v18349_v20, %s7939_s28  ;;  %3058 = vrot.lane.b32.xlu0 %v18439_v32, %s7939_s28 }
 0x3c5   :  { %v12447_v59 = vpop.permute.xlu1 %2687  ;;  %v12449_v13 = vpop.permute.xlu0 %2689 }
 0x3c6   :  { %18440 = vst [vmem:[#allocation68_spill] sm:$0xff] %v12447_v59  ;;  %18441 = vst [vmem:[#allocation253_spill] sm:$0xff] %v12449_v13  ;;  %v3878_v59 = vld [vmem:[%s17140_s6] sm:$0x3]  ;;  %s7941_s6 = smov 54  }
 0x3c7   :  { %3060 = vrot.lane.b32.xlu1 %v18352_v50, %s7939_s28  ;;  %3062 = vrot.lane.b32.xlu0 %v18442_v53, %s7939_s28  ;;  %vm3879_vm3 = vcmp.ne.f32.partialorder %v3878_v59, 0.0 }
 0x3c9   :  { %v12455_v1 = vpop.permute.xlu1 %2691  ;;  %v12457_v31 = vpop.permute.xlu0 %2693 }
 0x3ca   :  { %18443 = vst [vmem:[#allocation60_spill] sm:$0xff] %v12455_v1  ;;  %18444 = vst [vmem:[#allocation254_spill] sm:$0xff] %v12457_v31 }
 0x3cb   :  { %3064 = vrot.lane.b32.xlu1 %v18353_v7, %s7939_s28  ;;  %3066 = vrot.lane.b32.xlu0 %v18445_v3, %s7939_s28 }
 0x3cd   :  { %v12463_v6 = vpop.permute.xlu1 %2695  ;;  %v12465_v48 = vpop.permute.xlu0 %2697 }
 0x3ce   :  { %18446 = vst [vmem:[#allocation69_spill] sm:$0xff] %v12463_v6  ;;  %18447 = vst [vmem:[#allocation255_spill] sm:$0xff] %v12465_v48 }
 0x3cf   :  { %3068 = vrot.lane.b32.xlu1 %v18356_v42, %s7939_s28  ;;  %3070 = vrot.lane.b32.xlu0 %v18448_v51, %s7939_s28 }
 0x3d1   :  { %v12471_v55 = vpop.permute.xlu1 %2699  ;;  %v12473_v4 = vpop.permute.xlu0 %2701 }
 0x3d2   :  { %18449 = vst [vmem:[#allocation73_spill] sm:$0xff] %v12471_v55  ;;  %18450 = vst [vmem:[#allocation256_spill] sm:$0xff] %v12473_v4 }
 0x3d3   :  { %3072 = vrot.lane.b32.xlu1 %v18357_v29, %s7939_s28  ;;  %3074 = vrot.lane.b32.xlu0 %v18451_v10, %s7939_s28 }
 0x3d5   :  { %v12479_v56 = vpop.permute.xlu1 %2703  ;;  %v12481_v17 = vpop.permute.xlu0 %2705 }
 0x3d6   :  { %18452 = vst [vmem:[#allocation4_spill] sm:$0xff] %v12479_v56  ;;  %18453 = vst [vmem:[#allocation257_spill] sm:$0xff] %v12481_v17  ;;  %v18460_v17 = vld [vmem:[#allocation78_spill] sm:$0xff] }
 0x3d7   :  { %3076 = vrot.lane.b32.xlu1 %v18360_v24, %s7939_s28  ;;  %3078 = vrot.lane.b32.xlu0 %v18454_v57, %s7939_s28 }
 0x3d9   :  { %v12487_v5 = vpop.permute.xlu1 %2707  ;;  %v12489_v16 = vpop.permute.xlu0 %2709 }
 0x3da   :  { %18455 = vst [vmem:[#allocation258_spill] sm:$0xff] %v12487_v5  ;;  %18456 = vst [vmem:[#allocation259_spill] sm:$0xff] %v12489_v16  ;;  %v18463_v16 = vld [vmem:[#allocation81_spill] sm:$0xff] }
 0x3db   :  { %3080 = vrot.lane.b32.xlu1 %v18361_v30, %s7939_s28  ;;  %3082 = vrot.lane.b32.xlu0 %v18457_v14, %s7939_s28 }
 0x3dd   :  { %v12495_v60 = vpop.permute.xlu1 %2711  ;;  %v12497_v56 = vpop.permute.xlu0 %2713 }
 0x3de   :  { %18458 = vst [vmem:[#allocation260_spill] sm:$0xff] %v12495_v60  ;;  %18459 = vst [vmem:[#allocation261_spill] sm:$0xff] %v12497_v56  ;;  %v18466_v56 = vld [vmem:[#allocation33_spill] sm:$0xff] }
 0x3df   :  { %3084 = vrot.lane.b32.xlu1 %v18364_v40, %s7939_s28  ;;  %3086 = vrot.lane.b32.xlu0 %v18460_v17, %s7939_s28  ;;  %v18520_v17 = vld [vmem:[#allocation13_spill] sm:$0xff] }
 0x3e1   :  { %v12503_v4 = vpop.permute.xlu1 %2715  ;;  %v12505_v5 = vpop.permute.xlu0 %2717 }
 0x3e2   :  { %18461 = vst [vmem:[#allocation262_spill] sm:$0xff] %v12503_v4  ;;  %18462 = vst [vmem:[#allocation263_spill] sm:$0xff] %v12505_v5  ;;  %v18469_v5 = vld [vmem:[#allocation82_spill] sm:$0xff] }
 0x3e3   :  { %3088 = vrot.lane.b32.xlu1 %v18365_v38, %s7939_s28  ;;  %3090 = vrot.lane.b32.xlu0 %v18463_v16, %s7939_s28 }
 0x3e5   :  { %v12511_v55 = vpop.permute.xlu1 %2719  ;;  %v12513_v60 = vpop.permute.xlu0 %2721 }
 0x3e6   :  { %18464 = vst [vmem:[#allocation264_spill] sm:$0xff] %v12511_v55  ;;  %18465 = vst [vmem:[#allocation265_spill] sm:$0xff] %v12513_v60  ;;  %v18472_v60 = vld [vmem:[#allocation6_spill] sm:$0xff] }
 0x3e7   :  { %3092 = vrot.lane.b32.xlu1 %v18368_v47, %s7939_s28  ;;  %3094 = vrot.lane.b32.xlu0 %v18466_v56, %s7939_s28  ;;  %v12681_v56 = vsel %vm3879_vm3, 1, %v18517_v0 }
 0x3e9   :  { %v12519_v48 = vpop.permute.xlu1 %2723  ;;  %v12521_v4 = vpop.permute.xlu0 %2725 }
 0x3ea   :  { %18467 = vst [vmem:[#allocation266_spill] sm:$0xff] %v12519_v48  ;;  %18468 = vst [vmem:[#allocation267_spill] sm:$0xff] %v12521_v4  ;;  %v18475_v4 = vld [vmem:[#allocation31_spill] sm:$0xff] }
 0x3eb   :  { %3096 = vrot.lane.b32.xlu1 %v18369_v54, %s7939_s28  ;;  %3098 = vrot.lane.b32.xlu0 %v18469_v5, %s7939_s28  ;;  %v18515_v5 = vld [vmem:[#allocation44_spill] sm:$0xff] }
 0x3ed   :  { %v12527_v6 = vpop.permute.xlu1 %2727  ;;  %v12529_v55 = vpop.permute.xlu0 %2729 }
 0x3ee   :  { %18470 = vst [vmem:[#allocation268_spill] sm:$0xff] %v12527_v6  ;;  %18471 = vst [vmem:[#allocation269_spill] sm:$0xff] %v12529_v55  ;;  %v18478_v55 = vld [vmem:[#allocation84_spill] sm:$0xff] }
 0x3ef   :  { %3100 = vrot.lane.b32.xlu1 %v18372_v23, %s7939_s28  ;;  %3102 = vrot.lane.b32.xlu0 %v18472_v60, %s7939_s28 }
 0x3f1   :  { %v12535_v31 = vpop.permute.xlu1 %2731  ;;  %v12537_v48 = vpop.permute.xlu0 %2733 }
 0x3f2   :  { %18473 = vst [vmem:[#allocation270_spill] sm:$0xff] %v12535_v31  ;;  %18474 = vst [vmem:[#allocation271_spill] sm:$0xff] %v12537_v48  ;;  %v18481_v48 = vld [vmem:[#allocation87_spill] sm:$0xff] }
 0x3f3   :  { %3104 = vrot.lane.b32.xlu1 %v18373_v18, %s7939_s28  ;;  %3106 = vrot.lane.b32.xlu0 %v18475_v4, %s7939_s28 }
 0x3f5   :  { %v12543_v12 = vpop.permute.xlu1 %2735  ;;  %v12545_v6 = vpop.permute.xlu0 %2737 }
 0x3f6   :  { %18476 = vst [vmem:[#allocation272_spill] sm:$0xff] %v12543_v12  ;;  %18477 = vst [vmem:[#allocation273_spill] sm:$0xff] %v12545_v6  ;;  %v18484_v6 = vld [vmem:[#allocation37_spill] sm:$0xff] }
 0x3f7   :  { %3108 = vrot.lane.b32.xlu1 %v18376_v19, %s7939_s28  ;;  %3110 = vrot.lane.b32.xlu0 %v18478_v55, %s7939_s28 }
 0x3f9   :  { %v12551_v1 = vpop.permute.xlu1 %2739  ;;  %v12553_v31 = vpop.permute.xlu0 %2741 }
 0x3fa   :  { %18479 = vst [vmem:[#allocation274_spill] sm:$0xff] %v12551_v1  ;;  %18480 = vst [vmem:[#allocation275_spill] sm:$0xff] %v12553_v31  ;;  %v18489_v31 = vld [vmem:[#allocation88_spill] sm:$0xff] }
 0x3fb   :  { %3112 = vrot.lane.b32.xlu1 %v18377_v62, %s7939_s28  ;;  %3114 = vrot.lane.b32.xlu0 %v18481_v48, %s7939_s28 }
 0x3fd   :  { %v12559_v4 = vpop.permute.xlu1 %2743  ;;  %v12561_v12 = vpop.permute.xlu0 %2745 }
 0x3fe   :  { %18482 = vst [vmem:[#allocation276_spill] sm:$0xff] %v12559_v4  ;;  %18483 = vst [vmem:[#allocation277_spill] sm:$0xff] %v12561_v12 }
 0x3ff   :  { %3116 = vrot.lane.b32.xlu1 %v18380_v26, %s7939_s28  ;;  %3118 = vrot.lane.b32.xlu0 %v18484_v6, %s7939_s28 }
 0x401   :  { %v12567_v55 = vpop.permute.xlu1 %2747  ;;  %v12569_v1 = vpop.permute.xlu0 %2749 }
 0x402   :  { %18485 = vst [vmem:[#allocation278_spill] sm:$0xff] %v12567_v55  ;;  %18486 = vst [vmem:[#allocation279_spill] sm:$0xff] %v12569_v1 }
 0x403   :  { %3493 = vrot.lane.b32.xlu1 %v18344_v34, %s7940_s7  ;;  %3120 = vrot.lane.b32.xlu0 %v18381_v9, %s7939_s28 }
 0x405   :  { %v12575_v4 = vpop.permute.xlu1 %2751  ;;  %v12577_v12 = vpop.permute.xlu0 %2753 }
 0x406   :  { %18487 = vst [vmem:[#allocation280_spill] sm:$0xff] %v12575_v4  ;;  %18488 = vst [vmem:[#allocation281_spill] sm:$0xff] %v12577_v12  ;;  %v18494_v12 = vld [vmem:[#allocation10_spill] sm:$0xff] }
 0x407   :  { %3495 = vrot.lane.b32.xlu1 %v18345_v49, %s7940_s7  ;;  %3122 = vrot.lane.b32.xlu0 %v18489_v31, %s7939_s28 }
 0x409   :  { %v12583_v55 = vpop.permute.xlu1 %2755  ;;  %v12585_v1 = vpop.permute.xlu0 %2757 }
 0x40a   :  { %18490 = vst [vmem:[#allocation282_spill] sm:$0xff] %v12583_v55  ;;  %18491 = vst [vmem:[#allocation283_spill] sm:$0xff] %v12585_v1  ;;  %v18497_v1 = vld [vmem:[#allocation80_spill] sm:$0xff] }
 0x40b   :  { %3497 = vrot.lane.b32.xlu1 %v18348_v46, %s7940_s7  ;;  %3124 = vrot.lane.b32.xlu0 %v18384_v15, %s7939_s28 }
 0x40d   :  { %v12591_v6 = vpop.permute.xlu1 %2759  ;;  %v12593_v4 = vpop.permute.xlu0 %2761 }
 0x40e   :  { %18492 = vst [vmem:[#allocation284_spill] sm:$0xff] %v12591_v6  ;;  %18493 = vst [vmem:[#allocation285_spill] sm:$0xff] %v12593_v4  ;;  %v18500_v4 = vld [vmem:[#allocation39_spill] sm:$0xff] }
 0x40f   :  { %3499 = vrot.lane.b32.xlu1 %v18349_v20, %s7940_s7  ;;  %3126 = vrot.lane.b32.xlu0 %v18494_v12, %s7939_s28 }
 0x411   :  { %v12599_v31 = vpop.permute.xlu1 %2763  ;;  %v12601_v55 = vpop.permute.xlu0 %2765 }
 0x412   :  { %18495 = vst [vmem:[#allocation286_spill] sm:$0xff] %v12599_v31  ;;  %18496 = vst [vmem:[#allocation287_spill] sm:$0xff] %v12601_v55  ;;  %v18503_v55 = vld [vmem:[#allocation48_spill] sm:$0xff] }
 0x413   :  { %3501 = vrot.lane.b32.xlu1 %v18352_v50, %s7940_s7  ;;  %3128 = vrot.lane.b32.xlu0 %v18497_v1, %s7939_s28 }
 0x415   :  { %v12607_v48 = vpop.permute.xlu1 %2767  ;;  %v12609_v6 = vpop.permute.xlu0 %2769 }
 0x416   :  { %18498 = vst [vmem:[#allocation288_spill] sm:$0xff] %v12607_v48  ;;  %18499 = vst [vmem:[#allocation289_spill] sm:$0xff] %v12609_v6  ;;  %v18506_v6 = vld [vmem:[#allocation14_spill] sm:$0xff] }
 0x417   :  { %3503 = vrot.lane.b32.xlu1 %v18353_v7, %s7940_s7  ;;  %3130 = vrot.lane.b32.xlu0 %v18500_v4, %s7939_s28 }
 0x419   :  { %v12615_v12 = vpop.permute.xlu1 %2771  ;;  %v12617_v31 = vpop.permute.xlu0 %2773 }
 0x41a   :  { %18501 = vst [vmem:[#allocation290_spill] sm:$0xff] %v12615_v12  ;;  %18502 = vst [vmem:[#allocation291_spill] sm:$0xff] %v12617_v31  ;;  %v18509_v31 = vld [vmem:[#allocation83_spill] sm:$0xff] }
 0x41b   :  { %3505 = vrot.lane.b32.xlu1 %v18356_v42, %s7940_s7  ;;  %3132 = vrot.lane.b32.xlu0 %v18503_v55, %s7939_s28 }
 0x41d   :  { %v12623_v13 = vpop.permute.xlu1 %2775  ;;  %v12625_v48 = vpop.permute.xlu0 %2777 }
 0x41e   :  { %18504 = vst [vmem:[#allocation292_spill] sm:$0xff] %v12623_v13  ;;  %18505 = vst [vmem:[#allocation293_spill] sm:$0xff] %v12625_v48  ;;  %v18512_v48 = vld [vmem:[#allocation41_spill] sm:$0xff] }
 0x41f   :  { %3507 = vrot.lane.b32.xlu1 %v18357_v29, %s7940_s7  ;;  %3134 = vrot.lane.b32.xlu0 %v18506_v6, %s7939_s28 }
 0x421   :  { %v12631_v4 = vpop.permute.xlu1 %2779  ;;  %v12633_v12 = vpop.permute.xlu0 %2781 }
 0x422   :  { %18507 = vst [vmem:[#allocation294_spill] sm:$0xff] %v12631_v4  ;;  %18508 = vst [vmem:[#allocation295_spill] sm:$0xff] %v12633_v12  ;;  %v18513_v12 = vld [vmem:[#allocation50_spill] sm:$0xff] }
 0x423   :  { %3509 = vrot.lane.b32.xlu1 %v18360_v24, %s7940_s7  ;;  %3136 = vrot.lane.b32.xlu0 %v18509_v31, %s7939_s28 }
 0x425   :  { %v12639_v27 = vpop.permute.xlu1 %2783  ;;  %v12641_v13 = vpop.permute.xlu0 %2785 }
 0x426   :  { %18510 = vst [vmem:[#allocation296_spill] sm:$0xff] %v12639_v27  ;;  %18511 = vst [vmem:[#allocation297_spill] sm:$0xff] %v12641_v13  ;;  %v18514_v13 = vld [vmem:[#allocation86_spill] sm:$0xff] }
 0x427   :  { %3511 = vrot.lane.b32.xlu1 %v18361_v30, %s7940_s7  ;;  %3138 = vrot.lane.b32.xlu0 %v18512_v48, %s7939_s28 }
 0x429   :  { %v3045_v6 = vpop.permute.xlu1 %3044  ;;  %v12647_v4 = vpop.permute.xlu0 %3046 }
 0x42b   :  { %3513 = vrot.lane.b32.xlu1 %v18364_v40, %s7940_s7  ;;  %3140 = vrot.lane.b32.xlu0 %v18513_v12, %s7939_s28  ;;  %v6015_v12 = vld [vmem:[%s17141_s5 + $0x58] sm:$0xff] }
 0x42d   :  { %v12653_v41 = vpop.permute.xlu1 %3048  ;;  %v12655_v27 = vpop.permute.xlu0 %3050 }
 0x42f   :  { %3515 = vrot.lane.b32.xlu1 %v18365_v38, %s7940_s7  ;;  %3142 = vrot.lane.b32.xlu0 %v18514_v13, %s7939_s28  ;;  %v18516_v13 = vld [vmem:[#allocation9_spill] sm:$0xff]  ;;  %v18521_v38 = vsub.s32 0, %v18520_v17 }
 0x431   :  { %v12661_v48 = vpop.permute.xlu1 %3052  ;;  %v12663_v60 = vpop.permute.xlu0 %3054  ;;  %v12693_v58 = vrot.slane %v12681_v56, %v18521_v38 }
 0x433   :  { %3517 = vrot.lane.b32.xlu1 %v18368_v47, %s7940_s7  ;;  %3144 = vrot.lane.b32.xlu0 %v18515_v5, %s7939_s28  ;;  %v18518_v47 = vld [vmem:[#allocation91_spill] sm:$0xff]  ;;  %vm3889_vm6 = vcmp.eq.s32.totalorder %v12693_v58, 1 }
 0x434   :  { %v2467_v16 = vsel %vm2466_vm4, %v18519_v43, %v18518_v47 }
 0x435   :  { %v12672_v61 = vpop.permute.xlu1 %3056  ;;  %v12674_v21 = vpop.permute.xlu0 %3058  ;;  %v2916_v0 = vmax.f32 %v18344_v34, %v2467_v16 }
 0x437   :  { %3519 = vrot.lane.b32.xlu1 %v18369_v54, %s7940_s7  ;;  %3146 = vrot.lane.b32.xlu0 %v18516_v13, %s7939_s28  ;;  %v3301_v13 = vsel %vm3300_vm5, %v3045_v6, %v12647_v4 }
 0x438   :  { %v3750_v54 = vmax.f32 %v2916_v0, %v3301_v13 }
 0x439   :  { %v12686_v59 = vpop.permute.xlu1 %3060  ;;  %v12688_v37 = vpop.permute.xlu0 %3062 }
 0x43a   :  { %v12713_v6 = vsel %vm3889_vm6, %v2916_v0, %v3750_v54  ;;  %v6019_v54 = vld [vmem:[%s17141_s5 + $0x78] sm:$0xff] }
 0x43b   :  { %3521 = vrot.lane.b32.xlu1 %v18372_v23, %s7940_s7  ;;  %3148 = vrot.lane.b32.xlu0 %v18396_v25, %s7939_s28  ;;  %v17621_v23 = vmov 0.0   ;;  %v6017_v25 = vld [vmem:[%s17141_s5 + $0x68] sm:$0xff] }
 0x43c   :  { %6129 = vmatprep.subr.mxu0 %v17621_v23 }
 0x43d   :  { %v12702_v43 = vpop.permute.xlu1 %3064  ;;  %v12707_v38 = vpop.permute.xlu0 %3066  ;;  %6130 = vmatpush1.msra.mxu0 %v6019_v54  ;;  %v6016_v54 = vld [vmem:[%s17141_s5 + $0x60] sm:$0xff] }
 0x43e   :  { %6131 = vmatprep.subr.mxu0 %v17621_v23 }
 0x43f   :  { %3523 = vrot.lane.b32.xlu1 %v18373_v18, %s7940_s7 }
 0x441   :  { %v12709_v40 = vpop.permute.xlu1 %3068  ;;  %v12719_v13 = vpop.permute.xlu0 %3070 }
 0x443   :  { %4596 = vrot.lane.b32.xlu1 %v12713_v6, %s7941_s6 }
 0x445   :  { %v12717_v16 = vpop.permute.xlu1 %3072  ;;  %v12731_v0 = vpop.permute.xlu0 %3074 }
 0x447   :  { %3525 = vrot.lane.b32.xlu1 %v18376_v19, %s7940_s7  ;;  %v6018_v19 = vld [vmem:[%s17141_s5 + $0x70] sm:$0xff] }
 0x448   :  { %6132 = vmatpush1.msra.mxu0 %v6018_v19 }
 0x449   :  { %v12723_v34 = vpop.permute.xlu1 %3076  ;;  %6133 = vmatprep.subr.mxu0 %v17621_v23  ;;  %v12745_v14 = vpop.permute.xlu0 %3078 }
 0x44a   :  { %6134 = vmatpush1.msra.mxu0 %v6017_v25  ;;  %v6014_v25 = vld [vmem:[%s17141_s5 + $0x50] sm:$0xff] }
 0x44b   :  { %5430 = vrot.lane.b32.xlu1 %v12713_v6, %s7942_s17  ;;  %6135 = vmatprep.subr.mxu0 %v17621_v23 }
 0x44c   :  { %6136 = vmatpush1.msra.mxu0 %v6016_v54 }
 0x44d   :  { %v12733_v18 = vpop.permute.xlu1 %3080  ;;  %6137 = vmatprep.subr.mxu0 %v17621_v23  ;;  %v12764_v44 = vpop.permute.xlu0 %3082 }
 0x44e   :  { %18522 = vst [vmem:[#allocation91_spill] sm:$0xff] %v12733_v18  ;;  %6138 = vmatpush1.msra.mxu0 %v6015_v12  ;;  %18525 = vst [vmem:[#allocation298_spill] sm:$0xff] %v12764_v44  ;;  %v6012_v12 = vld [vmem:[%s17141_s5 + $0x40] sm:$0xff]  ;;  %v6026_v18 = vld [vmem:[%s17141_s5 + $0xb0] sm:$0xff]  ;;  %v18538_v44 = vsub.s32 1, %v18520_v17 }
 0x44f   :  { %6139 = vmatprep.subr.mxu0 %v17621_v23 }
 0x450   :  { %6140 = vmatpush1.msra.mxu0 %v6014_v25  ;;  %v12843_v35 = vrot.slane %v12681_v56, %v18538_v44 }
 0x451   :  { %v12743_v5 = vpop.permute.xlu1 %3084  ;;  %6141 = vmatprep.subr.mxu0 %v17621_v23  ;;  %v12779_v57 = vpop.permute.xlu0 %3086 }
 0x452   :  { %18523 = vst [vmem:[#allocation49_spill] sm:$0xff] %v12743_v5  ;;  %v6013_v5 = vld [vmem:[%s17141_s5 + $0x48] sm:$0xff]  ;;  %18528 = vst [vmem:[#allocation301_spill] sm:$0xff] %v12779_v57  ;;  %vm3890_vm10 = vcmp.eq.s32.totalorder %v12843_v35, 1 }
 0x453   :  { %6142 = vmatpush1.msra.mxu0 %v6013_v5  ;;  %v6010_v5 = vld [vmem:[%s17141_s5 + $0x30] sm:$0xff] }
 0x454   :  { %6143 = vmatprep.subr.mxu0 %v17621_v23 }
 0x455   :  { %v12755_v19 = vpop.permute.xlu1 %3088  ;;  %6144 = vmatpush1.msra.mxu0 %v6012_v12  ;;  %v12798_v57 = vpop.permute.xlu0 %3090 }
 0x456   :  { %18524 = vst [vmem:[#allocation13_spill] sm:$0xff] %v12755_v19  ;;  %v6011_v19 = vld [vmem:[%s17141_s5 + $0x38] sm:$0xff]  ;;  %6145 = vmatprep.subr.mxu0 %v17621_v23  ;;  %18530 = vst [vmem:[#allocation303_spill] sm:$0xff] %v12798_v57 }
 0x457   :  { %6146 = vmatpush1.msra.mxu0 %v6011_v19  ;;  %v6008_v19 = vld [vmem:[%s17141_s5 + $0x20] sm:$0xff] }
 0x458   :  { %6147 = vmatprep.subr.mxu0 %v17621_v23 }
 0x459   :  { %v12767_v54 = vpop.permute.xlu1 %3092  ;;  %6148 = vmatpush1.msra.mxu0 %v6010_v5  ;;  %v12813_v57 = vpop.permute.xlu0 %3094 }
 0x45a   :  { %18526 = vst [vmem:[#allocation299_spill] sm:$0xff] %v12767_v54  ;;  %v6009_v54 = vld [vmem:[%s17141_s5 + $0x28] sm:$0xff]  ;;  %6149 = vmatprep.subr.mxu0 %v17621_v23  ;;  %18533 = vst [vmem:[#allocation306_spill] sm:$0xff] %v12813_v57  ;;  %v18536_v57 = vld [vmem:[#allocation101_spill] sm:$0xff] }
 0x45b   :  { %6150 = vmatpush1.msra.mxu0 %v6009_v54  ;;  %v6006_v54 = vld [vmem:[%s17141_s5 + $0x10] sm:$0xff] }
 0x45c   :  { %6151 = vmatprep.subr.mxu0 %v17621_v23 }
 0x45d   :  { %v12777_v25 = vpop.permute.xlu1 %3096  ;;  %6152 = vmatpush1.msra.mxu0 %v6008_v19  ;;  %v12832_v30 = vpop.permute.xlu0 %3098 }
 0x45e   :  { %18527 = vst [vmem:[#allocation300_spill] sm:$0xff] %v12777_v25  ;;  %v6007_v25 = vld [vmem:[%s17141_s5 + $0x18] sm:$0xff]  ;;  %6153 = vmatprep.subr.mxu0 %v17621_v23 }
 0x45f   :  { %6154 = vmatpush1.msra.mxu0 %v6007_v25  ;;  %v6004_v25 = vld [vmem:[%s17141_s5] sm:$0xff] }
 0x460   :  { %6155 = vmatprep.subr.mxu0 %v17621_v23 }
 0x461   :  { %v12789_v12 = vpop.permute.xlu1 %3100  ;;  %6156 = vmatpush1.msra.mxu0 %v6006_v54  ;;  %v6028_v54 = vld [vmem:[%s17141_s5 + $0xc0] sm:$0xf]  ;;  %v12862_v44 = vpop.permute.xlu0 %3102 }
 0x462   :  { %18529 = vst [vmem:[#allocation302_spill] sm:$0xff] %v12789_v12  ;;  %v6005_v12 = vld [vmem:[%s17141_s5 + $0x8] sm:$0xff]  ;;  %6157 = vmatprep.subr.mxu0 %v17621_v23 }
 0x463   :  { %6158 = vmatpush1.msra.mxu0 %v6005_v12  ;;  %v6027_v12 = vld [vmem:[%s17141_s5 + $0xb8] sm:$0xff] }
 0x464   :  { %6159 = vmatprep.subr.mxu0 %v17621_v23 }
 0x465   :  { %v12801_v5 = vpop.permute.xlu1 %3104  ;;  %6160 = vmatpush1.msra.mxu0 %v6004_v25 }
 0x466   :  { %18531 = vst [vmem:[#allocation304_spill] sm:$0xff] %v12801_v5  ;;  %6175 = vmatprep.subr.mxu0 %v17621_v23 }
 0x467   :  { %7087 = vmatpush2.msk.msra.mxu0 %vm6125_vm7, %v6028_v54  ;;  %v3302_v54 = vsel %vm3300_vm5, %v12653_v41, %v12655_v27 }
 0x468   :  { %6177 = vmatprep.subr.mxu0 %v17621_v23 }
 0x469   :  { %v12811_v19 = vpop.permute.xlu1 %3108  ;;  %6178 = vmatpush2.msra.mxu0 %v6027_v12  ;;  %v6025_v12 = vld [vmem:[%s17141_s5 + $0xa8] sm:$0xff] }
 0x46a   :  { %18532 = vst [vmem:[#allocation305_spill] sm:$0xff] %v12811_v19  ;;  %v18535_v19 = vld [vmem:[#allocation90_spill] sm:$0xff]  ;;  %6179 = vmatprep.subr.mxu0 %v17621_v23 }
 0x46b   :  { %v2468_v25 = vsel %vm2466_vm4, %v18536_v57, %v18535_v19  ;;  %v2852_v57 = vsel %vm2851_vm8, %v18518_v47, %v12391_v52  ;;  %6180 = vmatpush2.msra.mxu0 %v6026_v18  ;;  %v2853_v41 = vsel %vm2851_vm8, %v18535_v19, %v12393_v22  ;;  %v6024_v18 = vld [vmem:[%s17141_s5 + $0xa0] sm:$0xff] }
 0x46c   :  { %6181 = vmatprep.subr.mxu0 %v17621_v23  ;;  %v2917_v56 = vmax.f32 %v18430_v36, %v2852_v57  ;;  %v6023_v36 = vld [vmem:[%s17141_s5 + $0x98] sm:$0xff]  ;;  %v2919_v22 = vmax.f32 %v18433_v8, %v2853_v41  ;;  %v6022_v57 = vld [vmem:[%s17141_s5 + $0x90] sm:$0xff]  ;;  %v6021_v8 = vld [vmem:[%s17141_s5 + $0x88] sm:$0xff] }
 0x46d   :  { %v12820_v5 = vpop.permute.xlu1 %3112  ;;  %6182 = vmatpush2.msra.mxu0 %v6025_v12  ;;  %v12894_v12 = vpop.permute.xlu0 %3106  ;;  %v18540_v41 = vld [vmem:[#allocation59_spill] sm:$0xff] }
 0x46e   :  { %18534 = vst [vmem:[#allocation307_spill] sm:$0xff] %v12820_v5  ;;  %6183 = vmatprep.subr.mxu0 %v17621_v23 }
 0x46f   :  { %6184 = vmatpush2.msra.mxu0 %v6024_v18  ;;  %v3303_v18 = vsel %vm3300_vm5, %v12661_v48, %v12663_v60  ;;  %v18542_v48 = vld [vmem:[#allocation62_spill] sm:$0xff] }
 0x470   :  { %6185 = vmatprep.subr.mxu0 %v17621_v23 }
 0x471   :  { %v12835_v5 = vpop.permute.xlu1 %3116  ;;  %6186 = vmatpush2.msra.mxu0 %v6023_v36  ;;  %v12916_v36 = vpop.permute.xlu0 %3110 }
 0x472   :  { %18537 = vst [vmem:[#allocation90_spill] sm:$0xff] %v12835_v5  ;;  %v2918_v5 = vmax.f32 %v18345_v49, %v2468_v25  ;;  %6187 = vmatprep.subr.mxu0 %v17621_v23 }
 0x473   :  { %6188 = vmatpush2.msra.mxu0 %v6022_v57  ;;  %v18541_v57 = vld [vmem:[#allocation105_spill] sm:$0xff] }
 0x474   :  { %v3752_v17 = vmax.f32 %v2918_v5, %v3302_v54  ;;  %6189 = vmatprep.subr.mxu0 %v17621_v23 }
 0x475   :  { %v3494_v52 = vpop.permute.xlu1 %3493  ;;  %6190 = vmatpush2.msra.mxu0 %v6021_v8 }
 0x476   :  { %v3686_v49 = vsel %vm3685_vm9, %v12647_v4, %v3494_v52  ;;  %v12877_v19 = vsel %vm3889_vm6, %v2918_v5, %v3752_v17  ;;  %v6020_v17 = vld [vmem:[%s17141_s5 + $0x80] sm:$0xff]  ;;  %6191 = vmatprep.subr.mxu0 %v17621_v23  ;;  %v18539_v52 = vld [vmem:[#allocation93_spill] sm:$0xff] }
 0x477   :  { %v3751_v47 = vmax.f32 %v2917_v56, %v3686_v49  ;;  %v2469_v49 = vsel %vm2466_vm4, %v18540_v41, %v18539_v52  ;;  %6192 = vmatpush2.msra.mxu0 %v6020_v17  ;;  %v2854_v8 = vsel %vm2851_vm8, %v18539_v52, %v12399_v2  ;;  %v3304_v17 = vsel %vm3300_vm5, %v12672_v61, %v12674_v21  ;;  %v18570_v23 = vld [vmem:[#allocation250_spill] sm:$0xff] }
 0x478   :  { %v2921_v52 = vmax.f32 %v18436_v33, %v2854_v8 }
 0x479   :  { %v3496_v4 = vpop.permute.xlu1 %3495  ;;  %v12881_v25 = vsel %vm3890_vm10, %v2917_v56, %v3751_v47  ;;  %v7373_v56 = vpack.i.bf16 %v12877_v19, %v12713_v6  ;;  %v2920_v47 = vmax.f32 %v18348_v46, %v2469_v49  ;;  %v2855_v49 = vsel %vm2851_vm8, %v18541_v57, %v12401_v11 }
 0x47a   :  { %v3687_v54 = vsel %vm3685_vm9, %v12655_v27, %v3496_v4  ;;  %4149 = vrot.lane.b32.xlu0 %v12881_v25, %s7944_s18  ;;  %v2923_v33 = vmax.f32 %v18439_v32, %v2855_v49  ;;  %v18545_v49 = vld [vmem:[#allocation67_spill] sm:$0xff] }
 0x47b   :  { %v3753_v5 = vmax.f32 %v2919_v22, %v3687_v54  ;;  %v2470_v54 = vsel %vm2466_vm4, %v18542_v48, %v18541_v57  ;;  %v18543_v57 = vld [vmem:[#allocation63_spill] sm:$0xff] }
 0x47c   :  { %v2922_v2 = vmax.f32 %v18349_v20, %v2470_v54  ;;  %v18544_v48 = vld [vmem:[#allocation99_spill] sm:$0xff] }
 0x47d   :  { %v12901_v27 = vsel %vm3890_vm10, %v2919_v22, %v3753_v5  ;;  %v3754_v22 = vmax.f32 %v2920_v47, %v3303_v18  ;;  %v3498_v4 = vpop.permute.xlu1 %3497  ;;  %v12932_v5 = vpop.permute.xlu0 %3114  ;;  %v2471_v54 = vsel %vm2466_vm4, %v18544_v48, %v18543_v57 }
 0x47e   :  { %4153 = vrot.lane.b32.xlu1 %v12901_v27, %s7944_s18  ;;  %7374 = vrot.lane.b32.xlu0 %v7373_v56, %s7944_s18  ;;  %v3756_v18 = vmax.f32 %v2922_v2, %v3304_v17  ;;  %v3305_v17 = vsel %vm3300_vm5, %v12686_v59, %v12688_v37 }
 0x47f   :  { %v12936_v46 = vsel %vm3889_vm6, %v2920_v47, %v3754_v22 }
 0x480   :  { %v12963_v20 = vsel %vm3889_vm6, %v2922_v2, %v3756_v18  ;;  %v2924_v2 = vmax.f32 %v18352_v50, %v2471_v54  ;;  %v18546_v18 = vld [vmem:[#allocation102_spill] sm:$0xff] }
 0x481   :  { %v3500_v41 = vpop.permute.xlu1 %3499  ;;  %v12952_v47 = vpop.permute.xlu0 %3118  ;;  %v7383_v32 = vpack.i.bf16 %v12963_v20, %v12936_v46  ;;  %v2472_v59 = vsel %vm2466_vm4, %v18546_v18, %v18545_v49 }
 0x482   :  { %3527 = vrot.lane.b32.xlu1 %v18377_v62, %s7940_s7  ;;  %4983 = vrot.lane.b32.xlu0 %v12881_v25, %s7945_s21 }
 0x485   :  { %v3502_v8 = vpop.permute.xlu1 %3501 }
 0x486   :  { %5432 = vrot.lane.b32.xlu1 %v12877_v19, %s7942_s17  ;;  %7379 = vrot.lane.b32.xlu0 %v7373_v56, %s7945_s21  ;;  %v3688_v56 = vsel %vm3685_vm9, %v12663_v60, %v3498_v4  ;;  %v3689_v60 = vsel %vm3685_vm9, %v12674_v21, %v3500_v41  ;;  %v12973_v21 = vpop.permute.xlu0 %3120 }
 0x487   :  { %v3755_v61 = vmax.f32 %v2921_v52, %v3688_v56  ;;  %v3757_v11 = vmax.f32 %v2923_v33, %v3689_v60 }
 0x489   :  { %v12967_v22 = vsel %vm3890_vm10, %v2921_v52, %v3755_v61  ;;  %v12979_v4 = vsel %vm3890_vm10, %v2923_v33, %v3757_v11  ;;  %v3758_v52 = vmax.f32 %v2924_v2, %v3305_v17  ;;  %v3504_v41 = vpop.permute.xlu1 %3503  ;;  %v2856_v61 = vsel %vm2851_vm8, %v18543_v57, %v12407_v63 }
 0x48a   :  { %4598 = vrot.lane.b32.xlu0 %v12877_v19, %s7941_s6  ;;  %4600 = vrot.lane.b32.xlu1 %v12936_v46, %s7941_s6  ;;  %v12990_v56 = vpop.permute.xlu0 %3122  ;;  %v3306_v33 = vsel %vm3300_vm5, %v12702_v43, %v12707_v38  ;;  %v3690_v11 = vsel %vm3685_vm9, %v12688_v37, %v3502_v8  ;;  %v2926_v63 = vmax.f32 %v18353_v7, %v2472_v59 }
 0x48b   :  { %v13010_v50 = vsel %vm3889_vm6, %v2924_v2, %v3758_v52  ;;  %v2857_v57 = vsel %vm2851_vm8, %v18545_v49, %v12409_v28  ;;  %v3691_v37 = vsel %vm3685_vm9, %v12707_v38, %v3504_v41  ;;  %v18550_v41 = vld [vmem:[#allocation64_spill] sm:$0xff] }
 0x48c   :  { %v3760_v54 = vmax.f32 %v2926_v63, %v3306_v33  ;;  %v18551_v49 = vld [vmem:[#allocation104_spill] sm:$0xff] }
 0x48d   :  { %v3506_v48 = vpop.permute.xlu1 %3505  ;;  %v2473_v18 = vsel %vm2466_vm4, %v18551_v49, %v18550_v41 }
 0x48e   :  { %4987 = vrot.lane.b32.xlu0 %v12901_v27, %s7945_s21  ;;  %3529 = vrot.lane.b32.xlu1 %v18380_v26, %s7940_s7  ;;  %v13006_v60 = vpop.permute.xlu0 %3124  ;;  %v13037_v7 = vsel %vm3889_vm6, %v2926_v63, %v3760_v54  ;;  %v18554_v54 = vld [vmem:[#allocation66_spill] sm:$0xff] }
 0x48f   :  { %18547 = vst [vmem:[#allocation101_spill] sm:$0xff] %v13006_v60 }
 0x491   :  { %v3508_v2 = vpop.permute.xlu1 %3507 }
 0x492   :  { %4157 = vrot.lane.b32.xlu0 %v12967_v22, %s7944_s18  ;;  %5434 = vrot.lane.b32.xlu1 %v12936_v46, %s7942_s17  ;;  %v13026_v17 = vpop.permute.xlu0 %3126 }
 0x493   :  { %18548 = vst [vmem:[#allocation93_spill] sm:$0xff] %v13026_v17 }
 0x495   :  { %v3510_v59 = vpop.permute.xlu1 %3509 }
 0x496   :  { %4161 = vrot.lane.b32.xlu1 %v12979_v4, %s7944_s18  ;;  %7384 = vrot.lane.b32.xlu0 %v7383_v32, %s7944_s18  ;;  %v13047_v38 = vpop.permute.xlu0 %3128 }
 0x497   :  { %18549 = vst [vmem:[#allocation59_spill] sm:$0xff] %v13047_v38  ;;  %v18605_v38 = vld [vmem:[#allocation42_spill] sm:$0xff] }
 0x49a   :  { %3531 = vrot.lane.b32.xlu1 %v18381_v9, %s7940_s7  ;;  %4991 = vrot.lane.b32.xlu0 %v12967_v22, %s7945_s21  ;;  %v13064_v33 = vpop.permute.xlu0 %3130 }
 0x49b   :  { %18552 = vst [vmem:[#allocation105_spill] sm:$0xff] %v13064_v33 }
 0x49e   :  { %5436 = vrot.lane.b32.xlu1 %v12963_v20, %s7942_s17  ;;  %7389 = vrot.lane.b32.xlu0 %v7383_v32, %s7945_s21  ;;  %v2925_v32 = vmax.f32 %v18442_v53, %v2856_v61  ;;  %v2927_v53 = vmax.f32 %v18445_v3, %v2857_v57  ;;  %v7393_v3 = vpack.i.bf16 %v13037_v7, %v13010_v50  ;;  %v18553_v57 = vld [vmem:[#allocation17_spill] sm:$0xff] }
 0x49f   :  { %v3307_v61 = vsel %vm3300_vm5, %v12709_v40, %v12719_v13  ;;  %v2474_v40 = vsel %vm2466_vm4, %v18554_v54, %v18553_v57 }
 0x4a0   :  { %v3759_v43 = vmax.f32 %v2925_v32, %v3690_v11  ;;  %v3761_v28 = vmax.f32 %v2927_v53, %v3691_v37  ;;  %v2928_v11 = vmax.f32 %v18356_v42, %v2473_v18  ;;  %v13080_v37 = vpop.permute.xlu0 %3132 }
 0x4a1   :  { %18555 = vst [vmem:[#allocation62_spill] sm:$0xff] %v13080_v37  ;;  %v18587_v37 = vld [vmem:[#allocation30_spill] sm:$0xff] }
 0x4a2   :  { %4602 = vrot.lane.b32.xlu0 %v12963_v20, %s7941_s6  ;;  %4604 = vrot.lane.b32.xlu1 %v13010_v50, %s7941_s6  ;;  %v13041_v8 = vsel %vm3890_vm10, %v2925_v32, %v3759_v43  ;;  %v13053_v52 = vsel %vm3890_vm10, %v2927_v53, %v3761_v28  ;;  %v3762_v63 = vmax.f32 %v2928_v11, %v3307_v61  ;;  %v3512_v32 = vpop.permute.xlu1 %3511 }
 0x4a3   :  { %v2858_v43 = vsel %vm2851_vm8, %v18550_v41, %v12415_v39  ;;  %v3308_v53 = vsel %vm3300_vm5, %v12717_v16, %v12731_v0  ;;  %v3692_v28 = vsel %vm3685_vm9, %v12719_v13, %v3506_v48  ;;  %v2930_v39 = vmax.f32 %v18357_v29, %v2474_v40 }
 0x4a4   :  { %v13084_v42 = vsel %vm3889_vm6, %v2928_v11, %v3762_v63  ;;  %v2859_v41 = vsel %vm2851_vm8, %v18553_v57, %v12417_v45  ;;  %v3693_v13 = vsel %vm3685_vm9, %v12731_v0, %v3508_v2  ;;  %v13104_v48 = vpop.permute.xlu0 %3134  ;;  %v18558_v63 = vld [vmem:[#allocation107_spill] sm:$0xff]  ;;  %v18559_v57 = vld [vmem:[#allocation20_spill] sm:$0xff] }
 0x4a5   :  { %v3764_v16 = vmax.f32 %v2930_v39, %v3308_v53  ;;  %18556 = vst [vmem:[#allocation63_spill] sm:$0xff] %v13104_v48  ;;  %v2475_v54 = vsel %vm2466_vm4, %v18559_v57, %v18558_v63  ;;  %v18567_v57 = vld [vmem:[#allocation91_spill] sm:$0xff] }
 0x4a6   :  { %4995 = vrot.lane.b32.xlu0 %v12979_v4, %s7945_s21  ;;  %3533 = vrot.lane.b32.xlu1 %v18384_v15, %s7940_s7  ;;  %v13100_v49 = vpop.permute.xlu1 %3513 }
 0x4a7   :  { %v13113_v45 = vsel %vm3889_vm6, %v2930_v39, %v3764_v16 }
 0x4a8   :  { %v13125_v2 = vpop.permute.xlu0 %3136 }
 0x4a9   :  { %18557 = vst [vmem:[#allocation99_spill] sm:$0xff] %v13125_v2 }
 0x4aa   :  { %4165 = vrot.lane.b32.xlu0 %v13041_v8, %s7944_s18  ;;  %5438 = vrot.lane.b32.xlu1 %v13010_v50, %s7942_s17  ;;  %v13119_v0 = vpop.permute.xlu1 %3515 }
 0x4ac   :  { %v13144_v53 = vpop.permute.xlu0 %3138 }
 0x4ad   :  { %18560 = vst [vmem:[#allocation67_spill] sm:$0xff] %v13144_v53 }
 0x4ae   :  { %4169 = vrot.lane.b32.xlu1 %v13053_v52, %s7944_s18  ;;  %7394 = vrot.lane.b32.xlu0 %v7393_v3, %s7944_s18  ;;  %v13139_v40 = vpop.permute.xlu1 %3517 }
 0x4b2   :  { %3535 = vrot.lane.b32.xlu1 %v18497_v1, %s7940_s7  ;;  %4999 = vrot.lane.b32.xlu0 %v13041_v8, %s7945_s21 }
 0x4b6   :  { %5440 = vrot.lane.b32.xlu1 %v13037_v7, %s7942_s17  ;;  %7399 = vrot.lane.b32.xlu0 %v7393_v3, %s7945_s21  ;;  %v2929_v3 = vmax.f32 %v18448_v51, %v2858_v43  ;;  %v2931_v51 = vmax.f32 %v18451_v10, %v2859_v41  ;;  %v7403_v10 = vpack.i.bf16 %v13113_v45, %v13084_v42  ;;  %v18561_v41 = vld [vmem:[#allocation111_spill] sm:$0xff] }
 0x4b7   :  { %v3309_v43 = vsel %vm3300_vm5, %v12723_v34, %v12745_v14  ;;  %v18562_v34 = vld [vmem:[#allocation110_spill] sm:$0xff] }
 0x4b8   :  { %v3763_v18 = vmax.f32 %v2929_v3, %v3692_v28  ;;  %v3765_v29 = vmax.f32 %v2931_v51, %v3693_v13  ;;  %v2932_v28 = vmax.f32 %v18360_v24, %v2475_v54  ;;  %v2476_v16 = vsel %vm2466_vm4, %v18562_v34, %v18561_v41  ;;  %v18569_v34 = vld [vmem:[#allocation7_spill] sm:$0xff] }
 0x4ba   :  { %4606 = vrot.lane.b32.xlu0 %v13037_v7, %s7941_s6  ;;  %4608 = vrot.lane.b32.xlu1 %v13084_v42, %s7941_s6  ;;  %v13117_v61 = vsel %vm3890_vm10, %v2929_v3, %v3763_v18  ;;  %v13131_v11 = vsel %vm3890_vm10, %v2931_v51, %v3765_v29  ;;  %v3766_v39 = vmax.f32 %v2932_v28, %v3309_v43  ;;  %v13151_v3 = vpop.permute.xlu1 %3519  ;;  %v18563_v18 = vld [vmem:[#allocation35_spill] sm:$0xff]  ;;  %v13162_v51 = vpop.permute.xlu0 %3140  ;;  %v18566_v29 = vld [vmem:[#allocation298_spill] sm:$0xff] }
 0x4bb   :  { %v2860_v13 = vsel %vm2851_vm8, %v18558_v63, %v18563_v18  ;;  %18564 = vst [vmem:[#allocation102_spill] sm:$0xff] %v13162_v51  ;;  %v3310_v54 = vsel %vm3300_vm5, %v18567_v57, %v18566_v29  ;;  %v18568_v63 = vld [vmem:[#allocation8_spill] sm:$0xff] }
 0x4bc   :  { %v13166_v24 = vsel %vm3889_vm6, %v2932_v28, %v3766_v39  ;;  %v2934_v43 = vmax.f32 %v18568_v63, %v2476_v16  ;;  %v2933_v18 = vmax.f32 %v18569_v34, %v2860_v13  ;;  %v2861_v28 = vsel %vm2851_vm8, %v18561_v41, %v18570_v23  ;;  %v18573_v16 = vld [vmem:[#allocation36_spill] sm:$0xff] }
 0x4bd   :  { %18565 = vst [vmem:[#allocation64_spill] sm:$0xff] %v13166_v24  ;;  %v2935_v13 = vmax.f32 %v18573_v16, %v2861_v28  ;;  %v18580_v28 = vld [vmem:[#allocation301_spill] sm:$0xff] }
 0x4be   :  { %5003 = vrot.lane.b32.xlu0 %v13053_v52, %s7945_s21  ;;  %3537 = vrot.lane.b32.xlu1 %v18503_v55, %s7940_s7  ;;  %v13182_v39 = vpop.permute.xlu1 %3521  ;;  %v3768_v57 = vmax.f32 %v2934_v43, %v3310_v54  ;;  %v18572_v55 = vld [vmem:[#allocation50_spill] sm:$0xff] }
 0x4c0   :  { %v13195_v23 = vsel %vm3889_vm6, %v2934_v43, %v3768_v57  ;;  %v18579_v43 = vld [vmem:[#allocation114_spill] sm:$0xff]  ;;  %v18581_v57 = vld [vmem:[#allocation49_spill] sm:$0xff] }
 0x4c1   :  { %18574 = vst [vmem:[#allocation17_spill] sm:$0xff] %v13195_v23 }
 0x4c2   :  { %4173 = vrot.lane.b32.xlu0 %v13117_v61, %s7944_s18  ;;  %5442 = vrot.lane.b32.xlu1 %v13084_v42, %s7942_s17 }
 0x4c6   :  { %4177 = vrot.lane.b32.xlu1 %v13131_v11, %s7944_s18  ;;  %7404 = vrot.lane.b32.xlu0 %v7403_v10, %s7944_s18 }
 0x4ca   :  { %3539 = vrot.lane.b32.xlu1 %v18509_v31, %s7940_s7  ;;  %5007 = vrot.lane.b32.xlu0 %v13117_v61, %s7945_s21 }
 0x4ce   :  { %5444 = vrot.lane.b32.xlu1 %v13113_v45, %s7942_s17  ;;  %7409 = vrot.lane.b32.xlu0 %v7403_v10, %s7945_s21  ;;  %v3694_v10 = vsel %vm3685_vm9, %v12745_v14, %v3510_v59  ;;  %v3695_v14 = vsel %vm3685_vm9, %v18566_v29, %v3512_v32  ;;  %v13186_v59 = vpop.permute.xlu0 %3142  ;;  %v13201_v32 = vpop.permute.xlu1 %3523 }
 0x4cf   :  { %v3767_v51 = vmax.f32 %v2933_v18, %v3694_v10  ;;  %18571 = vst [vmem:[#allocation104_spill] sm:$0xff] %v13186_v59  ;;  %v3769_v41 = vmax.f32 %v2935_v13, %v3695_v14  ;;  %v7413_v10 = vpack.i.bf16 %v13195_v23, %v13166_v24  ;;  %v3311_v14 = vsel %vm3300_vm5, %v18581_v57, %v18580_v28  ;;  %v18586_v57 = vld [vmem:[#allocation118_spill] sm:$0xff] }
 0x4d1   :  { %v13199_v54 = vsel %vm3890_vm10, %v2933_v18, %v3767_v51  ;;  %v13213_v63 = vsel %vm3890_vm10, %v2935_v13, %v3769_v41  ;;  %v18578_v51 = vld [vmem:[#allocation115_spill] sm:$0xff]  ;;  %v18584_v13 = vld [vmem:[#allocation77_spill] sm:$0xff] }
 0x4d2   :  { %4610 = vrot.lane.b32.xlu0 %v13113_v45, %s7941_s6  ;;  %4612 = vrot.lane.b32.xlu1 %v13166_v24, %s7941_s6  ;;  %18575 = vst [vmem:[#allocation66_spill] sm:$0xff] %v13199_v54  ;;  %v13207_v29 = vpop.permute.xlu0 %3144  ;;  %18577 = vst [vmem:[#allocation20_spill] sm:$0xff] %v13213_v63  ;;  %v2477_v34 = vsel %vm2466_vm4, %v18579_v43, %v18578_v51  ;;  %v4597_v18 = vpop.permute.xlu1 %4596  ;;  %v18585_v43 = vld [vmem:[#allocation119_spill] sm:$0xff] }
 0x4d3   :  { %18576 = vst [vmem:[#allocation107_spill] sm:$0xff] %v13207_v29  ;;  %v2936_v41 = vmax.f32 %v18584_v13, %v2477_v34  ;;  %v18591_v13 = vld [vmem:[#allocation13_spill] sm:$0xff] }
 0x4d5   :  { %v3770_v59 = vmax.f32 %v2936_v41, %v3311_v14  ;;  %v18590_v14 = vld [vmem:[#allocation303_spill] sm:$0xff] }
 0x4d6   :  { %3541 = vrot.lane.b32.xlu1 %v18572_v55, %s7940_s7  ;;  %5011 = vrot.lane.b32.xlu0 %v13131_v11, %s7945_s21  ;;  %v13224_v16 = vpop.permute.xlu0 %3146  ;;  %v18583_v55 = vld [vmem:[#allocation44_spill] sm:$0xff]  ;;  %v13231_v29 = vpop.permute.xlu1 %3525  ;;  %v3312_v48 = vsel %vm3300_vm5, %v18591_v13, %v18590_v14 }
 0x4d7   :  { %18582 = vst [vmem:[#allocation111_spill] sm:$0xff] %v13224_v16  ;;  %v2478_v16 = vsel %vm2466_vm4, %v18586_v57, %v18585_v43  ;;  %v13246_v34 = vsel %vm3889_vm6, %v2936_v41, %v3770_v59  ;;  %v18593_v57 = vld [vmem:[#allocation78_spill] sm:$0xff]  ;;  %v18594_v13 = vld [vmem:[#allocation52_spill] sm:$0xff] }
 0x4d8   :  { %18589 = vst [vmem:[#allocation35_spill] sm:$0xff] %v13246_v34 }
 0x4da   :  { %5446 = vrot.lane.b32.xlu1 %v13166_v24, %s7942_s17  ;;  %4181 = vrot.lane.b32.xlu0 %v13199_v54, %s7944_s18  ;;  %v13242_v31 = vpop.permute.xlu0 %3148  ;;  %v5431_v59 = vpop.permute.xlu1 %5430 }
 0x4db   :  { %18588 = vst [vmem:[#allocation110_spill] sm:$0xff] %v13242_v31 }
 0x4de   :  { %4185 = vrot.lane.b32.xlu1 %v13213_v63, %s7944_s18  ;;  %7414 = vrot.lane.b32.xlu0 %v7413_v10, %s7944_s18 }
 0x4e2   :  { %3543 = vrot.lane.b32.xlu1 %v18583_v55, %s7940_s7  ;;  %5015 = vrot.lane.b32.xlu0 %v13199_v54, %s7945_s21  ;;  %v2862_v55 = vsel %vm2851_vm8, %v18578_v51, %v18587_v37  ;;  %v18592_v37 = vld [vmem:[#allocation38_spill] sm:$0xff] }
 0x4e3   :  { %v2938_v51 = vmax.f32 %v18592_v37, %v2478_v16  ;;  %v2937_v31 = vmax.f32 %v18593_v57, %v2862_v55 }
 0x4e5   :  { %v3772_v2 = vmax.f32 %v2938_v51, %v3312_v48 }
 0x4e6   :  { %5448 = vrot.lane.b32.xlu1 %v13195_v23, %s7942_s17  ;;  %7419 = vrot.lane.b32.xlu0 %v7413_v10, %s7945_s21  ;;  %v3696_v10 = vsel %vm3685_vm9, %v18580_v28, %v13100_v49 }
 0x4e7   :  { %v3771_v53 = vmax.f32 %v2937_v31, %v3696_v10  ;;  %v13266_v15 = vsel %vm3889_vm6, %v2938_v51, %v3772_v2  ;;  %v18596_v51 = vld [vmem:[#allocation16_spill] sm:$0xff] }
 0x4e8   :  { %vm5827_vm14 = vcmp.eq.s32.totalorder %v18596_v51, 1 }
 0x4e9   :  { %v13271_v55 = vsel %vm3890_vm10, %v2937_v31, %v3771_v53 }
 0x4ea   :  { %4616 = vrot.lane.b32.xlu1 %v13246_v34, %s7941_s6  ;;  %4614 = vrot.lane.b32.xlu0 %v13195_v23, %s7941_s6  ;;  %18595 = vst [vmem:[#allocation298_spill] sm:$0xff] %v13271_v55  ;;  %v18606_v23 = vld [vmem:[#allocation300_spill] sm:$0xff] }
 0x4ec   :  { %v4150_v41 = vpop.permute.xlu0 %4149 }
 0x4ed   :  { %v4789_v16 = vsel %vm4788_vm11, %v4150_v41, %v4597_v18  ;;  %v7428_v18 = vpack.i.bf16 %v13266_v15, %v13246_v34 }
 0x4ee   :  { %3150 = vrot.lane.b32.xlu1 %v18594_v13, %s7939_s28  ;;  %5019 = vrot.lane.b32.xlu0 %v13213_v63, %s7945_s21  ;;  %v4854_v10 = vmax.f32 %v12881_v25, %v4789_v16  ;;  %v18597_v13 = vld [vmem:[#allocation251_spill] sm:$0xff]  ;;  %v3314_v63 = vsel %vm3300_vm5, %v18606_v23, %v12832_v30 }
 0x4ef   :  { %v2863_v25 = vsel %vm2851_vm8, %v18585_v43, %v18597_v13  ;;  %v18599_v13 = vld [vmem:[#allocation15_spill] sm:$0xff] }
 0x4f0   :  { %v4154_v49 = vpop.permute.xlu1 %4153  ;;  %v7375_v28 = vpop.permute.xlu0 %7374  ;;  %vm5826_vm1 = vcmp.eq.s32.totalorder %v18599_v13, 1 }
 0x4f1   :  { %v7376_v48 = vunpack.i.l.bf16 %v7375_v28  ;;  %v7377_v1 = vunpack.i.h.bf16 %v7375_v28 }
 0x4f2   :  { %5023 = vrot.lane.b32.xlu1 %v13271_v55, %s7945_s21  ;;  %4189 = vrot.lane.b32.xlu0 %v13271_v55, %s7944_s18 }
 0x4f3   :  { %v4404_v57 = vsel %vm4403_vm13, %v7376_v48, %v4150_v41  ;;  %v18598_v41 = vld [vmem:[#allocation92_spill] sm:$0xff]  ;;  %v18600_v48 = vld [vmem:[#allocation127_spill] sm:$0xff] }
 0x4f4   :  { %v13278_v37 = vpop.permute.xlu1 %3527  ;;  %v4984_v2 = vpop.permute.xlu0 %4983  ;;  %v4853_v43 = vmax.f32 %v12713_v6, %v4404_v57 }
 0x4f5   :  { %v5623_v31 = vsel %vm5622_vm12, %v4984_v2, %v5431_v59  ;;  %v3697_v59 = vsel %vm3685_vm9, %v18590_v14, %v13119_v0  ;;  %v18604_v0 = vld [vmem:[#allocation122_spill] sm:$0xff] }
 0x4f6   :  { %v5688_v53 = vmax.f32 %v4854_v10, %v5623_v31  ;;  %7429 = vrot.lane.b32.xlu1 %v7428_v18, %s7945_s21  ;;  %7424 = vrot.lane.b32.xlu0 %v7428_v18, %s7944_s18  ;;  %v18602_v18 = vld [vmem:[#allocation81_spill] sm:$0xff] }
 0x4f8   :  { %v5433_v16 = vpop.permute.xlu1 %5432  ;;  %v7380_v55 = vpop.permute.xlu0 %7379  ;;  %v5829_v60 = vsel %vm5827_vm14, %v4854_v10, %v5688_v53  ;;  %v18601_v10 = vld [vmem:[#allocation126_spill] sm:$0xff]  ;;  %v18603_v53 = vld [vmem:[#allocation123_spill] sm:$0xff] }
 0x4f9   :  { %v7381_v17 = vunpack.i.l.bf16 %v7380_v55  ;;  %7088 = vmatprep.mubr.msk.f32.mxu0 %vm159_vm0, %v5829_v60  ;;  %v2480_v28 = vsel %vm2466_vm4, %v18601_v10, %v18600_v48  ;;  %v2939_v60 = vmax.f32 %v18602_v18, %v2863_v25  ;;  %v2479_v14 = vsel %vm2466_vm4, %v18604_v0, %v18603_v53  ;;  %v18608_v0 = vld [vmem:[#allocation306_spill] sm:$0xff] }
 0x4fa   :  { %4618 = vrot.lane.b32.xlu1 %v13266_v15, %s7941_s6  ;;  %3545 = vrot.lane.b32.xlu0 %v18598_v41, %s7940_s7  ;;  %v2864_v41 = vsel %vm2851_vm8, %v18603_v53, %v18605_v38  ;;  %v3698_v24 = vsel %vm3685_vm9, %v18608_v0, %v13139_v40  ;;  %v18609_v38 = vld [vmem:[#allocation47_spill] sm:$0xff]  ;;  %v18611_v53 = vld [vmem:[#allocation33_spill] sm:$0xff] }
 0x4fb   :  { %v5238_v31 = vsel %vm5237_vm15, %v7381_v17, %v4984_v2  ;;  %v3773_v10 = vmax.f32 %v2939_v60, %v3697_v59  ;;  %v4405_v17 = vsel %vm4403_vm13, %v7377_v1, %v4154_v49  ;;  %v18607_v2 = vld [vmem:[#allocation70_spill] sm:$0xff]  ;;  %v18610_v59 = vld [vmem:[#allocation65_spill] sm:$0xff]  ;;  %v7382_v1 = vunpack.i.h.bf16 %v7380_v55 }
 0x4fc   :  { %v4601_v33 = vpop.permute.xlu1 %4600  ;;  %v4599_v6 = vpop.permute.xlu0 %4598  ;;  %v5687_v57 = vmax.f32 %v4853_v43, %v5238_v31  ;;  %v2942_v18 = vmax.f32 %v18607_v2, %v2480_v28  ;;  %v2940_v31 = vmax.f32 %v18610_v59, %v2479_v14 }
 0x4fd   :  { %v4790_v25 = vsel %vm4788_vm11, %v4154_v49, %v4599_v6  ;;  %v2941_v6 = vmax.f32 %v18611_v53, %v2864_v41  ;;  %v18612_v49 = vld [vmem:[#allocation299_spill] sm:$0xff]  ;;  %v13341_v55 = vsel %vm3890_vm10, %v2939_v60, %v3773_v10 }
 0x4fe   :  { %3154 = vrot.lane.b32.xlu1 %v18609_v38, %s7939_s28  ;;  %5450 = vrot.lane.b32.xlu0 %v13246_v34, %s7942_s17  ;;  %v5828_v23 = vsel %vm5826_vm1, %v4853_v43, %v5687_v57  ;;  %v3313_v28 = vsel %vm3300_vm5, %v18612_v49, %v18608_v0  ;;  %v3776_v40 = vmax.f32 %v2942_v18, %v3314_v63  ;;  %v18613_v10 = vld [vmem:[#allocation95_spill] sm:$0xff] }
 0x4ff   :  { %6194 = vmatmul.mubr.f32.vlgmr.msra.gmra.mxu0 %v5828_v23  ;;  %v4856_v2 = vmax.f32 %v12901_v27, %v4790_v25  ;;  %v4855_v34 = vmax.f32 %v12877_v19, %v4405_v17  ;;  %v3775_v54 = vmax.f32 %v2941_v6, %v3698_v24  ;;  %v3774_v27 = vmax.f32 %v2940_v31, %v3313_v28 }
 0x500   :  { %v13334_v38 = vpop.permute.xlu1 %3529  ;;  %v4988_v26 = vpop.permute.xlu0 %4987 }
 0x501   :  { %v5239_v43 = vsel %vm5237_vm15, %v7382_v1, %v4988_v26  ;;  %v5624_v14 = vsel %vm5622_vm12, %v4988_v26, %v5433_v16  ;;  %v13353_v16 = vsel %vm3889_vm6, %v2942_v18, %v3776_v40  ;;  %v13358_v60 = vsel %vm3890_vm10, %v2941_v6, %v3775_v54  ;;  %v18614_v1 = vld [vmem:[#allocation54_spill] sm:$0xff] }
 0x502   :  { %v5689_v41 = vmax.f32 %v4855_v34, %v5239_v43  ;;  %v5690_v57 = vmax.f32 %v4856_v2, %v5624_v14  ;;  %5027 = vrot.lane.b32.xlu1 %v13341_v55, %s7945_s21  ;;  %4193 = vrot.lane.b32.xlu0 %v13341_v55, %s7944_s18  ;;  %v13366_v25 = vsel %vm3889_vm6, %v2940_v31, %v3774_v27 }
 0x503   :  { %v7433_v18 = vpack.i.bf16 %v13353_v16, %v13366_v25 }
 0x504   :  { %v5435_v63 = vpop.permute.xlu1 %5434  ;;  %v4158_v19 = vpop.permute.xlu0 %4157  ;;  %v5831_v24 = vsel %vm5827_vm14, %v4856_v2, %v5690_v57  ;;  %v5830_v26 = vsel %vm5826_vm1, %v4855_v34, %v5689_v41 }
 0x505   :  { %7089 = vmatprep.mubr.msk.f32.mxu0 %vm159_vm0, %v5831_v24  ;;  %v4791_v0 = vsel %vm4788_vm11, %v4158_v19, %v4601_v33  ;;  %v18615_v24 = vld [vmem:[#allocation11_spill] sm:$0xff] }
 0x506   :  { %4197 = vrot.lane.b32.xlu1 %v13358_v60, %s7944_s18  ;;  %3152 = vrot.lane.b32.xlu0 %v18613_v10, %s7939_s28  ;;  %v4858_v23 = vmax.f32 %v12967_v22, %v4791_v0 }
 0x507   :  { %6199 = vmatmul.mubr.f32.gmra.mxu0 %v5830_v26 }
 0x508   :  { %v4162_v34 = vpop.permute.xlu1 %4161  ;;  %v7385_v17 = vpop.permute.xlu0 %7384 }
 0x509   :  { %v7386_v54 = vunpack.i.l.bf16 %v7385_v17  ;;  %v7387_v22 = vunpack.i.h.bf16 %v7385_v17 }
 0x50a   :  { %7434 = vrot.lane.b32.xlu1 %v7433_v18, %s7944_s18  ;;  %3547 = vrot.lane.b32.xlu0 %v18613_v10, %s7940_s7 }
 0x50b   :  { %v4406_v33 = vsel %vm4403_vm13, %v7386_v54, %v4158_v19  ;;  %v4407_v19 = vsel %vm4403_vm13, %v7387_v22, %v4162_v34 }
 0x50c   :  { %v13375_v59 = vpop.permute.xlu1 %3531  ;;  %v4992_v31 = vpop.permute.xlu0 %4991  ;;  %v4857_v43 = vmax.f32 %v12936_v46, %v4406_v33  ;;  %v18616_v46 = vld [vmem:[#allocation252_spill] sm:$0xff] }
 0x50d   :  { %v5625_v53 = vsel %vm5622_vm12, %v4992_v31, %v5435_v63  ;;  %v2865_v0 = vsel %vm2851_vm8, %v18600_v48, %v18616_v46  ;;  %v3700_v46 = vsel %vm3685_vm9, %v12862_v44, %v13182_v39 }
 0x50e   :  { %v5692_v6 = vmax.f32 %v4858_v23, %v5625_v53  ;;  %3158 = vrot.lane.b32.xlu1 %v18614_v1, %s7939_s28  ;;  %5452 = vrot.lane.b32.xlu0 %v13266_v15, %s7942_s17 }
 0x510   :  { %v5437_v49 = vpop.permute.xlu1 %5436  ;;  %v7390_v28 = vpop.permute.xlu0 %7389  ;;  %v5833_v40 = vsel %vm5827_vm14, %v4858_v23, %v5692_v6  ;;  %v3699_v6 = vsel %vm3685_vm9, %v12832_v30, %v13151_v3 }
 0x511   :  { %v7391_v2 = vunpack.i.l.bf16 %v7390_v28  ;;  %7090 = vmatprep.mubr.msk.f32.mxu0 %vm159_vm0, %v5833_v40  ;;  %v7392_v17 = vunpack.i.h.bf16 %v7390_v28  ;;  %v18618_v40 = vld [vmem:[#allocation135_spill] sm:$0xff] }
 0x512   :  { %5031 = vrot.lane.b32.xlu1 %v13358_v60, %s7945_s21  ;;  %4620 = vrot.lane.b32.xlu0 %v13366_v25, %s7941_s6 }
 0x513   :  { %v5240_v14 = vsel %vm5237_vm15, %v7391_v2, %v4992_v31  ;;  %v18620_v2 = vld [vmem:[#allocation68_spill] sm:$0xff] }
 0x514   :  { %v4605_v41 = vpop.permute.xlu1 %4604  ;;  %v4603_v57 = vpop.permute.xlu0 %4602  ;;  %v5691_v27 = vmax.f32 %v4857_v43, %v5240_v14 }
 0x515   :  { %v4792_v63 = vsel %vm4788_vm11, %v4162_v34, %v4603_v57  ;;  %v4859_v34 = vmax.f32 %v12963_v20, %v4407_v19  ;;  %v18619_v20 = vld [vmem:[#allocation134_spill] sm:$0xff] }
 0x516   :  { %7439 = vrot.lane.b32.xlu1 %v7433_v18, %s7945_s21  ;;  %3156 = vrot.lane.b32.xlu0 %v18615_v24, %s7939_s28  ;;  %v5832_v26 = vsel %vm5826_vm1, %v4857_v43, %v5691_v27  ;;  %v4860_v54 = vmax.f32 %v12979_v4, %v4792_v63  ;;  %v18617_v4 = vld [vmem:[#allocation82_spill] sm:$0xff]  ;;  %v2482_v22 = vsel %vm2466_vm4, %v18619_v20, %v18618_v40 }
 0x517   :  { %6204 = vmatmul.mubr.f32.gmra.mxu0 %v5832_v26  ;;  %v2943_v48 = vmax.f32 %v18617_v4, %v2865_v0  ;;  %v18622_v27 = vld [vmem:[#allocation130_spill] sm:$0xff]  ;;  %v18623_v26 = vld [vmem:[#allocation304_spill] sm:$0xff] }
 0x518   :  { %v13403_v23 = vpop.permute.xlu1 %3533  ;;  %v4996_v31 = vpop.permute.xlu0 %4995  ;;  %v18624_v0 = vld [vmem:[#allocation98_spill] sm:$0xff] }
 0x519   :  { %v5241_v18 = vsel %vm5237_vm15, %v7392_v17, %v4996_v31  ;;  %v5626_v53 = vsel %vm5622_vm12, %v4996_v31, %v5437_v49  ;;  %v18621_v49 = vld [vmem:[#allocation131_spill] sm:$0xff]  ;;  %v3777_v19 = vmax.f32 %v2943_v48, %v3699_v6  ;;  %v3316_v17 = vsel %vm3300_vm5, %v18623_v26, %v12894_v12  ;;  %v18629_v26 = vld [vmem:[#allocation12_spill] sm:$0xff] }
 0x51a   :  { %v5693_v33 = vmax.f32 %v4859_v34, %v5241_v18  ;;  %v5694_v28 = vmax.f32 %v4860_v54, %v5626_v53  ;;  %4622 = vrot.lane.b32.xlu1 %v13353_v16, %s7941_s6  ;;  %3549 = vrot.lane.b32.xlu0 %v18615_v24, %s7940_s7  ;;  %v2866_v43 = vsel %vm2851_vm8, %v18621_v49, %v18620_v2  ;;  %v18627_v53 = vld [vmem:[#allocation40_spill] sm:$0xff] }
 0x51b   :  { %v2481_v63 = vsel %vm2466_vm4, %v18622_v27, %v18621_v49 }
 0x51c   :  { %v5439_v14 = vpop.permute.xlu1 %5438  ;;  %v4166_v30 = vpop.permute.xlu0 %4165  ;;  %v5835_v3 = vsel %vm5827_vm14, %v4860_v54, %v5694_v28  ;;  %v5834_v57 = vsel %vm5826_vm1, %v4859_v34, %v5693_v33  ;;  %v18625_v54 = vld [vmem:[#allocation71_spill] sm:$0xff]  ;;  %v18626_v34 = vld [vmem:[#allocation6_spill] sm:$0xff]  ;;  %v2944_v6 = vmax.f32 %v18627_v53, %v2481_v63 }
 0x51d   :  { %7091 = vmatprep.mubr.msk.f32.mxu0 %vm159_vm0, %v5835_v3  ;;  %v2946_v31 = vmax.f32 %v18625_v54, %v2482_v22  ;;  %v2945_v18 = vmax.f32 %v18626_v34, %v2866_v43  ;;  %v18628_v33 = vld [vmem:[#allocation302_spill] sm:$0xff]  ;;  %v4793_v49 = vsel %vm4788_vm11, %v4166_v30, %v4605_v41  ;;  %v13449_v3 = vsel %vm3890_vm10, %v2943_v48, %v3777_v19 }
 0x51e   :  { %3162 = vrot.lane.b32.xlu1 %v18624_v0, %s7939_s28  ;;  %5454 = vrot.lane.b32.xlu0 %v13366_v25, %s7942_s17  ;;  %v3315_v28 = vsel %vm3300_vm5, %v18628_v33, %v12862_v44  ;;  %v4862_v44 = vmax.f32 %v13041_v8, %v4793_v49 }
 0x51f   :  { %6209 = vmatmul.mubr.f32.gmra.mxu0 %v5834_v57  ;;  %v3780_v39 = vmax.f32 %v2946_v31, %v3316_v17  ;;  %v3779_v2 = vmax.f32 %v2945_v18, %v3700_v46  ;;  %v3778_v22 = vmax.f32 %v2944_v6, %v3315_v28 }
 0x520   :  { %v4170_v4 = vpop.permute.xlu1 %4169  ;;  %v7395_v20 = vpop.permute.xlu0 %7394 }
 0x521   :  { %v7396_v43 = vunpack.i.l.bf16 %v7395_v20  ;;  %v13460_v41 = vsel %vm3889_vm6, %v2946_v31, %v3780_v39  ;;  %v13465_v63 = vsel %vm3890_vm10, %v2945_v18, %v3779_v2  ;;  %v13473_v8 = vsel %vm3889_vm6, %v2944_v6, %v3778_v22 }
 0x522   :  { %5035 = vrot.lane.b32.xlu1 %v13449_v3, %s7945_s21  ;;  %4201 = vrot.lane.b32.xlu0 %v13449_v3, %s7944_s18  ;;  %v7443_v31 = vpack.i.bf16 %v13460_v41, %v13473_v8  ;;  %v7397_v34 = vunpack.i.h.bf16 %v7395_v20  ;;  %v18630_v20 = vld [vmem:[#allocation51_spill] sm:$0xff] }
 0x523   :  { %v4408_v17 = vsel %vm4403_vm13, %v7396_v43, %v4166_v30 }
 0x524   :  { %v13456_v57 = vpop.permute.xlu1 %3535  ;;  %v5000_v27 = vpop.permute.xlu0 %4999  ;;  %v4861_v53 = vmax.f32 %v13010_v50, %v4408_v17  ;;  %v4409_v2 = vsel %vm4403_vm13, %v7397_v34, %v4170_v4  ;;  %v18632_v34 = vld [vmem:[#allocation253_spill] sm:$0xff] }
 0x525   :  { %v5627_v48 = vsel %vm5622_vm12, %v5000_v27, %v5439_v14 }
 0x526   :  { %v5696_v19 = vmax.f32 %v4862_v44, %v5627_v48  ;;  %4205 = vrot.lane.b32.xlu1 %v13465_v63, %s7944_s18  ;;  %3160 = vrot.lane.b32.xlu0 %v18629_v26, %s7939_s28 }
 0x528   :  { %v5441_v46 = vpop.permute.xlu1 %5440  ;;  %v7400_v54 = vpop.permute.xlu0 %7399  ;;  %v5837_v14 = vsel %vm5827_vm14, %v4862_v44, %v5696_v19 }
 0x529   :  { %v7401_v18 = vunpack.i.l.bf16 %v7400_v54  ;;  %7092 = vmatprep.mubr.msk.f32.mxu0 %vm159_vm0, %v5837_v14  ;;  %v7402_v22 = vunpack.i.h.bf16 %v7400_v54 }
 0x52a   :  { %7444 = vrot.lane.b32.xlu1 %v7443_v31, %s7944_s18  ;;  %3551 = vrot.lane.b32.xlu0 %v18629_v26, %s7940_s7 }
 0x52b   :  { %v5242_v30 = vsel %vm5237_vm15, %v7401_v18, %v5000_v27  ;;  %v4863_v27 = vmax.f32 %v13037_v7, %v4409_v2  ;;  %v2867_v18 = vsel %vm2851_vm8, %v18618_v40, %v18632_v34 }
 0x52c   :  { %v4609_v6 = vpop.permute.xlu1 %4608  ;;  %v4607_v33 = vpop.permute.xlu0 %4606  ;;  %v5695_v28 = vmax.f32 %v4861_v53, %v5242_v30 }
 0x52d   :  { %v4794_v39 = vsel %vm4788_vm11, %v4170_v4, %v4607_v33 }
 0x52e   :  { %3166 = vrot.lane.b32.xlu1 %v18630_v20, %s7939_s28  ;;  %5456 = vrot.lane.b32.xlu0 %v13353_v16, %s7942_s17  ;;  %v5836_v49 = vsel %vm5826_vm1, %v4861_v53, %v5695_v28  ;;  %v4864_v50 = vmax.f32 %v13053_v52, %v4794_v39  ;;  %v3701_v28 = vsel %vm3685_vm9, %v12894_v12, %v13201_v32  ;;  %v18634_v39 = vld [vmem:[#allocation142_spill] sm:$0xff] }
 0x52f   :  { %6214 = vmatmul.mubr.f32.gmra.mxu0 %v5836_v49  ;;  %v18635_v49 = vld [vmem:[#allocation31_spill] sm:$0xff] }
 0x530   :  { %v13495_v43 = vpop.permute.xlu1 %3537  ;;  %v5004_v44 = vpop.permute.xlu0 %5003  ;;  %v2947_v40 = vmax.f32 %v18635_v49, %v2867_v18 }
 0x531   :  { %v5243_v4 = vsel %vm5237_vm15, %v7402_v22, %v5004_v44  ;;  %v5628_v48 = vsel %vm5622_vm12, %v5004_v44, %v5441_v46  ;;  %v18631_v46 = vld [vmem:[#allocation57_spill] sm:$0xff]  ;;  %v18637_v44 = vld [vmem:[#allocation139_spill] sm:$0xff] }
 0x532   :  { %v5697_v19 = vmax.f32 %v4863_v27, %v5243_v4  ;;  %v5698_v17 = vmax.f32 %v4864_v50, %v5628_v48  ;;  %5039 = vrot.lane.b32.xlu1 %v13465_v63, %s7945_s21  ;;  %4624 = vrot.lane.b32.xlu0 %v13473_v8, %s7941_s6  ;;  %v18638_v4 = vld [vmem:[#allocation138_spill] sm:$0xff] }
 0x533   :  { %v2483_v48 = vsel %vm2466_vm4, %v18638_v4, %v18637_v44 }
 0x534   :  { %v5443_v54 = vpop.permute.xlu1 %5442  ;;  %v4174_v14 = vpop.permute.xlu0 %4173  ;;  %v5839_v52 = vsel %vm5827_vm14, %v4864_v50, %v5698_v17  ;;  %v5838_v7 = vsel %vm5826_vm1, %v4863_v27, %v5697_v19  ;;  %v18636_v50 = vld [vmem:[#allocation60_spill] sm:$0xff]  ;;  %v18639_v19 = vld [vmem:[#allocation307_spill] sm:$0xff] }
 0x535   :  { %7093 = vmatprep.mubr.msk.f32.mxu0 %vm159_vm0, %v5839_v52  ;;  %v4795_v33 = vsel %vm4788_vm11, %v4174_v14, %v4609_v6  ;;  %v2868_v6 = vsel %vm2851_vm8, %v18637_v44, %v18636_v50  ;;  %v3318_v17 = vsel %vm3300_vm5, %v18639_v19, %v12932_v5  ;;  %v3781_v52 = vmax.f32 %v2947_v40, %v3701_v28  ;;  %v18642_v28 = vld [vmem:[#allocation75_spill] sm:$0xff] }
 0x536   :  { %7449 = vrot.lane.b32.xlu1 %v7443_v31, %s7945_s21  ;;  %3164 = vrot.lane.b32.xlu0 %v18631_v46, %s7939_s28  ;;  %v18633_v31 = vld [vmem:[#allocation143_spill] sm:$0xff]  ;;  %v4866_v27 = vmax.f32 %v13117_v61, %v4795_v33  ;;  %v3702_v61 = vsel %vm3685_vm9, %v12916_v36, %v13231_v29  ;;  %v18640_v33 = vld [vmem:[#allocation53_spill] sm:$0xff]  ;;  %v2948_v44 = vmax.f32 %v18642_v28, %v2483_v48 }
 0x537   :  { %6219 = vmatmul.mubr.f32.gmra.mxu0 %v5838_v7  ;;  %v2484_v2 = vsel %vm2466_vm4, %v18634_v39, %v18633_v31  ;;  %v18641_v39 = vld [vmem:[#allocation84_spill] sm:$0xff] }
 0x538   :  { %v4178_v53 = vpop.permute.xlu1 %4177  ;;  %v7405_v30 = vpop.permute.xlu0 %7404  ;;  %v2950_v34 = vmax.f32 %v18377_v62, %v2484_v2  ;;  %v2949_v49 = vmax.f32 %v18641_v39, %v2868_v6 }
 0x539   :  { %v7406_v22 = vunpack.i.l.bf16 %v7405_v30 }
 0x53a   :  { %4626 = vrot.lane.b32.xlu1 %v13460_v41, %s7941_s6  ;;  %3553 = vrot.lane.b32.xlu0 %v18631_v46, %s7940_s7  ;;  %v3784_v2 = vmax.f32 %v2950_v34, %v3318_v17 }
 0x53b   :  { %v4410_v50 = vsel %vm4403_vm13, %v7406_v22, %v4174_v14  ;;  %v13559_v14 = vsel %vm3890_vm10, %v2947_v40, %v3781_v52 }
 0x53c   :  { %v13531_v12 = vpop.permute.xlu1 %3539  ;;  %v5008_v32 = vpop.permute.xlu0 %5007  ;;  %v13569_v17 = vsel %vm3889_vm6, %v2950_v34, %v3784_v2 }
 0x53d   :  { %v5629_v7 = vsel %vm5622_vm12, %v5008_v32, %v5443_v54  ;;  %v18643_v54 = vld [vmem:[#allocation305_spill] sm:$0xff]  ;;  %18644 = vst [vmem:[#allocation91_spill] sm:$0xff] %v13569_v17 }
 0x53e   :  { %v5700_v18 = vmax.f32 %v4866_v27, %v5629_v7  ;;  %3170 = vrot.lane.b32.xlu1 %v18640_v33, %s7939_s28  ;;  %5458 = vrot.lane.b32.xlu0 %v13473_v8, %s7942_s17  ;;  %v3317_v62 = vsel %vm3300_vm5, %v18643_v54, %v12916_v36  ;;  %v3783_v7 = vmax.f32 %v2949_v49, %v3702_v61  ;;  %v7407_v33 = vunpack.i.h.bf16 %v7405_v30 }
 0x53f   :  { %v4865_v36 = vmax.f32 %v13084_v42, %v4410_v50  ;;  %v3782_v22 = vmax.f32 %v2948_v44, %v3317_v62  ;;  %v18645_v42 = vld [vmem:[#allocation94_spill] sm:$0xff]  ;;  %v3703_v62 = vsel %vm3685_vm9, %v12932_v5, %v13278_v37  ;;  %v18648_v5 = vld [vmem:[#allocation151_spill] sm:$0xff] }
 0x540   :  { %v5445_v4 = vpop.permute.xlu1 %5444  ;;  %v7410_v29 = vpop.permute.xlu0 %7409  ;;  %v5841_v19 = vsel %vm5827_vm14, %v4866_v27, %v5700_v18  ;;  %v13574_v52 = vsel %vm3890_vm10, %v2949_v49, %v3783_v7  ;;  %v4411_v61 = vsel %vm4403_vm13, %v7407_v33, %v4178_v53  ;;  %v18646_v18 = vld [vmem:[#allocation254_spill] sm:$0xff] }
 0x541   :  { %v7411_v46 = vunpack.i.l.bf16 %v7410_v29  ;;  %7094 = vmatprep.mubr.msk.f32.mxu0 %vm159_vm0, %v5841_v19  ;;  %v7412_v34 = vunpack.i.h.bf16 %v7410_v29  ;;  %v2869_v39 = vsel %vm2851_vm8, %v18633_v31, %v18646_v18  ;;  %v4867_v50 = vmax.f32 %v13113_v45, %v4411_v61  ;;  %v18649_v37 = vld [vmem:[#allocation150_spill] sm:$0xff] }
 0x542   :  { %5043 = vrot.lane.b32.xlu1 %v13559_v14, %s7945_s21  ;;  %4209 = vrot.lane.b32.xlu0 %v13559_v14, %s7944_s18  ;;  %v18653_v18 = vld [vmem:[#allocation146_spill] sm:$0xff] }
 0x543   :  { %v5244_v6 = vsel %vm5237_vm15, %v7411_v46, %v5008_v32  ;;  %v13585_v32 = vsel %vm3889_vm6, %v2948_v44, %v3782_v22  ;;  %v2486_v22 = vsel %vm2466_vm4, %v18649_v37, %v18648_v5 }
 0x544   :  { %v4613_v27 = vpop.permute.xlu1 %4612  ;;  %v4611_v30 = vpop.permute.xlu0 %4610  ;;  %v5699_v48 = vmax.f32 %v4865_v36, %v5244_v6  ;;  %v7453_v28 = vpack.i.bf16 %v13569_v17, %v13585_v32  ;;  %v18650_v6 = vld [vmem:[#allocation69_spill] sm:$0xff] }
 0x545   :  { %v4796_v40 = vsel %vm4788_vm11, %v4178_v53, %v4611_v30  ;;  %v18651_v30 = vld [vmem:[#allocation147_spill] sm:$0xff] }
 0x546   :  { %4213 = vrot.lane.b32.xlu1 %v13574_v52, %s7944_s18  ;;  %3168 = vrot.lane.b32.xlu0 %v18645_v42, %s7939_s28  ;;  %v5840_v46 = vsel %vm5826_vm1, %v4865_v36, %v5699_v48  ;;  %v4868_v53 = vmax.f32 %v13131_v11, %v4796_v40  ;;  %v18647_v11 = vld [vmem:[#allocation87_spill] sm:$0xff]  ;;  %v2870_v48 = vsel %vm2851_vm8, %v18651_v30, %v18650_v6 }
 0x547   :  { %6224 = vmatmul.mubr.f32.gmra.mxu0 %v5840_v46  ;;  %v2951_v45 = vmax.f32 %v18647_v11, %v2869_v39  ;;  %v2485_v39 = vsel %vm2466_vm4, %v18653_v18, %v18651_v30 }
 0x548   :  { %v13591_v33 = vpop.permute.xlu1 %3541  ;;  %v5012_v49 = vpop.permute.xlu0 %5011 }
 0x549   :  { %v5245_v54 = vsel %vm5237_vm15, %v7412_v34, %v5012_v49  ;;  %v5630_v44 = vsel %vm5622_vm12, %v5012_v49, %v5445_v4  ;;  %v3785_v36 = vmax.f32 %v2951_v45, %v3703_v62  ;;  %v3704_v49 = vsel %vm3685_vm9, %v12952_v47, %v13334_v38  ;;  %v18655_v62 = vld [vmem:[#allocation90_spill] sm:$0xff] }
 0x54a   :  { %v5701_v2 = vmax.f32 %v4867_v50, %v5245_v54  ;;  %v5702_v31 = vmax.f32 %v4868_v53, %v5630_v44  ;;  %7454 = vrot.lane.b32.xlu1 %v7453_v28, %s7944_s18  ;;  %3555 = vrot.lane.b32.xlu0 %v18645_v42, %s7940_s7 }
 0x54b   :  { %v13623_v34 = vsel %vm3890_vm10, %v2951_v45, %v3785_v36  ;;  %v18657_v45 = vld [vmem:[#allocation76_spill] sm:$0xff] }
 0x54c   :  { %v5447_v29 = vpop.permute.xlu1 %5446  ;;  %v4182_v19 = vpop.permute.xlu0 %4181  ;;  %v5843_v7 = vsel %vm5827_vm14, %v4868_v53, %v5702_v31  ;;  %v5842_v4 = vsel %vm5826_vm1, %v4867_v50, %v5701_v2  ;;  %18652 = vst [vmem:[#allocation8_spill] sm:$0xff] %v13623_v34  ;;  %v3320_v53 = vsel %vm3300_vm5, %v12973_v21, %v12990_v56  ;;  %v18654_v50 = vld [vmem:[#allocation37_spill] sm:$0xff]  ;;  %v3319_v2 = vsel %vm3300_vm5, %v18655_v62, %v12952_v47  ;;  %v18656_v21 = vld [vmem:[#allocation66_spill] sm:$0xff] }
 0x54d   :  { %7095 = vmatprep.mubr.msk.f32.mxu0 %vm159_vm0, %v5843_v7  ;;  %v4797_v46 = vsel %vm4788_vm11, %v4182_v19, %v4613_v27  ;;  %v2954_v27 = vmax.f32 %v18381_v9, %v2486_v22  ;;  %v2953_v54 = vmax.f32 %v18654_v50, %v2870_v48  ;;  %v2952_v7 = vmax.f32 %v18657_v45, %v2485_v39 }
 0x54e   :  { %5462 = vrot.lane.b32.xlu1 %v13585_v32, %s7942_s17  ;;  %5460 = vrot.lane.b32.xlu0 %v13460_v41, %s7942_s17  ;;  %v4870_v31 = vmax.f32 %v18656_v21, %v4797_v46 }
 0x54f   :  { %6229 = vmatmul.mubr.f32.gmra.mxu0 %v5842_v4  ;;  %v3788_v4 = vmax.f32 %v2954_v27, %v3320_v53  ;;  %v3787_v36 = vmax.f32 %v2953_v54, %v3704_v49  ;;  %v3786_v9 = vmax.f32 %v2952_v7, %v3319_v2 }
 0x550   :  { %v4186_v40 = vpop.permute.xlu1 %4185  ;;  %v7415_v61 = vpop.permute.xlu0 %7414 }
 0x551   :  { %v7416_v44 = vunpack.i.l.bf16 %v7415_v61  ;;  %v13657_v46 = vsel %vm3889_vm6, %v2954_v27, %v3788_v4  ;;  %v13662_v39 = vsel %vm3890_vm10, %v2953_v54, %v3787_v36  ;;  %v13670_v49 = vsel %vm3889_vm6, %v2952_v7, %v3786_v9  ;;  %v18662_v27 = vld [vmem:[#allocation255_spill] sm:$0xff]  ;;  %v18664_v4 = vld [vmem:[#allocation20_spill] sm:$0xff] }
 0x552   :  { %4217 = vrot.lane.b32.xlu1 %v13623_v34, %s7944_s18  ;;  %4628 = vrot.lane.b32.xlu0 %v13585_v32, %s7941_s6  ;;  %18658 = vst [vmem:[#allocation7_spill] sm:$0xff] %v13657_v46  ;;  %18659 = vst [vmem:[#allocation250_spill] sm:$0xff] %v13662_v39  ;;  %v2871_v50 = vsel %vm2851_vm8, %v18648_v5, %v18662_v27  ;;  %v7463_v62 = vpack.i.bf16 %v13657_v46, %v13670_v49 }
 0x553   :  { %v4412_v47 = vsel %vm4403_vm13, %v7416_v44, %v4182_v19  ;;  %v18660_v19 = vld [vmem:[#allocation64_spill] sm:$0xff]  ;;  %18661 = vst [vmem:[#allocation36_spill] sm:$0xff] %v13670_v49 }
 0x554   :  { %v13644_v11 = vpop.permute.xlu1 %3543  ;;  %v5016_v38 = vpop.permute.xlu0 %5015  ;;  %v4869_v53 = vmax.f32 %v18660_v19, %v4412_v47 }
 0x555   :  { %v5631_v37 = vsel %vm5622_vm12, %v5016_v38, %v5447_v29  ;;  %v7417_v29 = vunpack.i.h.bf16 %v7415_v61 }
 0x556   :  { %v5704_v6 = vmax.f32 %v4870_v31, %v5631_v37  ;;  %5051 = vrot.lane.b32.xlu1 %v13623_v34, %s7945_s21  ;;  %5047 = vrot.lane.b32.xlu0 %v13574_v52, %s7945_s21 }
 0x557   :  { %v4413_v21 = vsel %vm4403_vm13, %v7417_v29, %v4186_v40 }
 0x558   :  { %v5449_v22 = vpop.permute.xlu1 %5448  ;;  %v7420_v30 = vpop.permute.xlu0 %7419  ;;  %v5845_v48 = vsel %vm5827_vm14, %v4870_v31, %v5704_v6  ;;  %v3705_v31 = vsel %vm3685_vm9, %v12990_v56, %v13375_v59  ;;  %v18665_v6 = vld [vmem:[#allocation17_spill] sm:$0xff] }
 0x559   :  { %v7421_v18 = vunpack.i.l.bf16 %v7420_v30  ;;  %7096 = vmatprep.mubr.msk.f32.mxu0 %vm159_vm0, %v5845_v48  ;;  %v7422_v7 = vunpack.i.h.bf16 %v7420_v30  ;;  %v4871_v9 = vmax.f32 %v18665_v6, %v4413_v21  ;;  %v18666_v30 = vld [vmem:[#allocation159_spill] sm:$0xff]  ;;  %v18671_v21 = vld [vmem:[#allocation154_spill] sm:$0xff] }
 0x55a   :  { %4221 = vrot.lane.b32.xlu1 %v13662_v39, %s7944_s18  ;;  %7459 = vrot.lane.b32.xlu0 %v7453_v28, %s7945_s21  ;;  %v18676_v6 = vld [vmem:[#allocation10_spill] sm:$0xff] }
 0x55b   :  { %v5246_v61 = vsel %vm5237_vm15, %v7421_v18, %v5016_v38  ;;  %v18663_v38 = vld [vmem:[#allocation88_spill] sm:$0xff]  ;;  %v18667_v18 = vld [vmem:[#allocation158_spill] sm:$0xff] }
 0x55c   :  { %v4617_v44 = vpop.permute.xlu1 %4616  ;;  %v4615_v54 = vpop.permute.xlu0 %4614  ;;  %v5703_v2 = vmax.f32 %v4869_v53, %v5246_v61  ;;  %v2955_v45 = vmax.f32 %v18663_v38, %v2871_v50  ;;  %v2488_v19 = vsel %vm2466_vm4, %v18667_v18, %v18666_v30  ;;  %v18669_v61 = vld [vmem:[#allocation155_spill] sm:$0xff] }
 0x55d   :  { %v4798_v28 = vsel %vm4788_vm11, %v4186_v40, %v4615_v54  ;;  %v18673_v38 = vld [vmem:[#allocation59_spill] sm:$0xff] }
 0x55e   :  { %7464 = vrot.lane.b32.xlu1 %v7463_v62, %s7944_s18  ;;  %4630 = vrot.lane.b32.xlu0 %v13569_v17, %s7941_s6  ;;  %v5844_v5 = vsel %vm5826_vm1, %v4869_v53, %v5703_v2  ;;  %v4872_v36 = vmax.f32 %v18664_v4, %v4798_v28  ;;  %v3789_v56 = vmax.f32 %v2955_v45, %v3705_v31  ;;  %v18668_v53 = vld [vmem:[#allocation73_spill] sm:$0xff] }
 0x55f   :  { %6234 = vmatmul.mubr.f32.gmra.mxu0 %v5844_v5  ;;  %v2872_v27 = vsel %vm2851_vm8, %v18669_v61, %v18668_v53  ;;  %v2487_v31 = vsel %vm2466_vm4, %v18671_v21, %v18669_v61  ;;  %v18672_v5 = vld [vmem:[#allocation105_spill] sm:$0xff] }
 0x560   :  { %v13690_v37 = vpop.permute.xlu1 %3150  ;;  %v5020_v40 = vpop.permute.xlu0 %5019  ;;  %v13712_v28 = vsel %vm3890_vm10, %v2955_v45, %v3789_v56  ;;  %v18674_v4 = vld [vmem:[#allocation93_spill] sm:$0xff]  ;;  %v18675_v45 = vld [vmem:[#allocation80_spill] sm:$0xff] }
 0x561   :  { %v5247_v59 = vsel %vm5237_vm15, %v7422_v7, %v5020_v40  ;;  %v5632_v47 = vsel %vm5622_vm12, %v5020_v40, %v5449_v22  ;;  %18670 = vst [vmem:[#allocation115_spill] sm:$0xff] %v13712_v28  ;;  %v3322_v7 = vsel %vm3300_vm5, %v18673_v38, %v18672_v5  ;;  %v2958_v40 = vmax.f32 %v18675_v45, %v2488_v19  ;;  %v18677_v56 = vld [vmem:[#allocation101_spill] sm:$0xff] }
 0x562   :  { %v5705_v48 = vmax.f32 %v4871_v9, %v5247_v59  ;;  %v5706_v29 = vmax.f32 %v4872_v36, %v5632_v47  ;;  %5466 = vrot.lane.b32.xlu1 %v13670_v49, %s7942_s17  ;;  %5464 = vrot.lane.b32.xlu0 %v13569_v17, %s7942_s17  ;;  %v3321_v59 = vsel %vm3300_vm5, %v18677_v56, %v18674_v4 }
 0x563   :  { %v3792_v18 = vmax.f32 %v2958_v40, %v3322_v7 }
 0x564   :  { %v5024_v50 = vpop.permute.xlu1 %5023  ;;  %v4190_v54 = vpop.permute.xlu0 %4189  ;;  %v5847_v22 = vsel %vm5827_vm14, %v4872_v36, %v5706_v29  ;;  %v5846_v2 = vsel %vm5826_vm1, %v4871_v9, %v5705_v48  ;;  %v3706_v36 = vsel %vm3685_vm9, %v18674_v4, %v13403_v23  ;;  %v2957_v9 = vmax.f32 %v18676_v6, %v2872_v27  ;;  %v18678_v29 = vld [vmem:[#allocation45_spill] sm:$0xff]  ;;  %v18681_v4 = vld [vmem:[#allocation35_spill] sm:$0xff] }
 0x565   :  { %7097 = vmatprep.mubr.msk.f32.mxu0 %vm159_vm0, %v5847_v22  ;;  %v2956_v23 = vmax.f32 %v18678_v29, %v2487_v31  ;;  %v13744_v21 = vsel %vm3889_vm6, %v2958_v40, %v3792_v18  ;;  %v4799_v31 = vsel %vm4788_vm11, %v4190_v54, %v4617_v44  ;;  %v18683_v40 = vld [vmem:[#allocation256_spill] sm:$0xff] }
 0x566   :  { %4225 = vrot.lane.b32.xlu1 %v13712_v28, %s7944_s18  ;;  %4632 = vrot.lane.b32.xlu0 %v13670_v49, %s7941_s6  ;;  %v3791_v53 = vmax.f32 %v2957_v9, %v3706_v36  ;;  %18679 = vst [vmem:[#allocation114_spill] sm:$0xff] %v13744_v21  ;;  %v2873_v44 = vsel %vm2851_vm8, %v18666_v30, %v18683_v40  ;;  %v18688_v40 = vld [vmem:[#allocation4_spill] sm:$0xff] }
 0x567   :  { %6239 = vmatmul.mubr.f32.gmra.mxu0 %v5846_v2  ;;  %v3790_v19 = vmax.f32 %v2956_v23, %v3321_v59 }
 0x568   :  { %v13732_v47 = vpop.permute.xlu1 %7429  ;;  %v7425_v48 = vpop.permute.xlu0 %7424  ;;  %v13750_v7 = vsel %vm3890_vm10, %v2957_v9, %v3791_v53  ;;  %v18685_v53 = vld [vmem:[#allocation39_spill] sm:$0xff] }
 0x569   :  { %v7426_v61 = vunpack.i.l.bf16 %v7425_v48  ;;  %v7431_v38 = vunpack.i.l.bf16 %v13732_v47  ;;  %18680 = vst [vmem:[#allocation301_spill] sm:$0xff] %v13750_v7  ;;  %v13758_v45 = vsel %vm3889_vm6, %v2956_v23, %v3790_v19  ;;  %v3707_v23 = vsel %vm3685_vm9, %v18672_v5, %v13456_v57  ;;  %v18687_v5 = vld [vmem:[#allocation166_spill] sm:$0xff] }
 0x56a   :  { %5059 = vrot.lane.b32.xlu1 %v13712_v28, %s7945_s21  ;;  %5055 = vrot.lane.b32.xlu0 %v13662_v39, %s7945_s21  ;;  %18682 = vst [vmem:[#allocation49_spill] sm:$0xff] %v13758_v45  ;;  %v7473_v59 = vpack.i.bf16 %v13744_v21, %v13758_v45 }
 0x56b   :  { %v4414_v27 = vsel %vm4403_vm13, %v7426_v61, %v4190_v54  ;;  %v18684_v54 = vld [vmem:[#allocation298_spill] sm:$0xff]  ;;  %v5248_v29 = vsel %vm5237_vm15, %v7431_v38, %v5024_v50  ;;  %v2959_v61 = vmax.f32 %v18685_v53, %v2873_v44  ;;  %v18689_v44 = vld [vmem:[#allocation163_spill] sm:$0xff] }
 0x56c   :  { %v4619_v22 = vpop.permute.xlu1 %4618  ;;  %v13740_v2 = vpop.permute.xlu0 %3545  ;;  %v4873_v36 = vmax.f32 %v18681_v4, %v4414_v27  ;;  %v4874_v6 = vmax.f32 %v18684_v54, %v4799_v31  ;;  %v2874_v54 = vsel %vm2851_vm8, %v18689_v44, %v18688_v40 }
 0x56d   :  { %v3793_v4 = vmax.f32 %v2959_v61, %v3707_v23  ;;  %v18691_v23 = vld [vmem:[#allocation162_spill] sm:$0xff] }
 0x56e   :  { %4229 = vrot.lane.b32.xlu1 %v13750_v7, %s7944_s18  ;;  %7469 = vrot.lane.b32.xlu0 %v7463_v62, %s7945_s21  ;;  %v5707_v30 = vmax.f32 %v4873_v36, %v5248_v29 }
 0x56f   :  { %v13796_v29 = vsel %vm3890_vm10, %v2959_v61, %v3793_v4  ;;  %v18696_v4 = vld [vmem:[#allocation14_spill] sm:$0xff] }
 0x570   :  { %v13764_v56 = vpop.permute.xlu1 %3154  ;;  %v5451_v9 = vpop.permute.xlu0 %5450  ;;  %v5848_v57 = vsel %vm5826_vm1, %v4873_v36, %v5707_v30  ;;  %18690 = vst [vmem:[#allocation77_spill] sm:$0xff] %v13796_v29  ;;  %v2489_v36 = vsel %vm2466_vm4, %v18691_v23, %v18689_v44  ;;  %v18693_v30 = vld [vmem:[#allocation99_spill] sm:$0xff]  ;;  %v18697_v44 = vld [vmem:[#allocation62_spill] sm:$0xff] }
 0x571   :  { %v5633_v62 = vsel %vm5622_vm12, %v5024_v50, %v5451_v9  ;;  %v18686_v50 = vld [vmem:[#allocation167_spill] sm:$0xff] }
 0x572   :  { %v5708_v18 = vmax.f32 %v4874_v6, %v5633_v62  ;;  %7474 = vrot.lane.b32.xlu1 %v7473_v59, %s7944_s18  ;;  %4634 = vrot.lane.b32.xlu0 %v13657_v46, %s7941_s6  ;;  %v2490_v38 = vsel %vm2466_vm4, %v18687_v5, %v18686_v50  ;;  %v7427_v62 = vunpack.i.h.bf16 %v7425_v48  ;;  %v18695_v48 = vld [vmem:[#allocation83_spill] sm:$0xff]  ;;  %v2961_v5 = vmax.f32 %v18696_v4, %v2874_v54 }
 0x573   :  { %v2962_v61 = vmax.f32 %v18695_v48, %v2490_v38 }
 0x574   :  { %v5028_v19 = vpop.permute.xlu1 %5027  ;;  %v4194_v27 = vpop.permute.xlu0 %4193  ;;  %v5849_v31 = vsel %vm5827_vm14, %v4874_v6, %v5708_v18  ;;  %v18692_v18 = vld [vmem:[#allocation67_spill] sm:$0xff] }
 0x575   :  { %7098 = vmatprep.mubr.msk.f32.mxu0 %vm159_vm0, %v5849_v31  ;;  %v3324_v53 = vsel %vm3300_vm5, %v18693_v30, %v18692_v18  ;;  %v18694_v31 = vld [vmem:[#allocation63_spill] sm:$0xff]  ;;  %v4415_v40 = vsel %vm4403_vm13, %v7427_v62, %v4194_v27  ;;  %v7432_v62 = vunpack.i.h.bf16 %v13732_v47 }
 0x576   :  { %5470 = vrot.lane.b32.xlu1 %v13758_v45, %s7942_s17  ;;  %5468 = vrot.lane.b32.xlu0 %v13657_v46, %s7942_s17  ;;  %v3323_v23 = vsel %vm3300_vm5, %v18697_v44, %v18694_v31  ;;  %v3796_v49 = vmax.f32 %v2962_v61, %v3324_v53  ;;  %v4875_v38 = vmax.f32 %v13266_v15, %v4415_v40 }
 0x577   :  { %6244 = vmatmul.mubr.f32.gmra.mxu0 %v5848_v57  ;;  %v3708_v57 = vsel %vm3685_vm9, %v18694_v31, %v13495_v43  ;;  %v18698_v43 = vld [vmem:[#allocation48_spill] sm:$0xff]  ;;  %v5249_v15 = vsel %vm5237_vm15, %v7432_v62, %v5028_v19  ;;  %v18704_v62 = vld [vmem:[#allocation258_spill] sm:$0xff] }
 0x578   :  { %v4198_v6 = vpop.permute.xlu1 %4197  ;;  %v13792_v9 = vpop.permute.xlu0 %3152  ;;  %v2960_v46 = vmax.f32 %v18698_v43, %v2489_v36  ;;  %v3795_v39 = vmax.f32 %v2961_v5, %v3708_v57  ;;  %v13834_v53 = vsel %vm3889_vm6, %v2962_v61, %v3796_v49  ;;  %v18700_v49 = vld [vmem:[#allocation257_spill] sm:$0xff] }
 0x57a   :  { %4233 = vrot.lane.b32.xlu1 %v13796_v29, %s7944_s18  ;;  %4636 = vrot.lane.b32.xlu0 %v13758_v45, %s7941_s6  ;;  %v4800_v45 = vsel %vm4788_vm11, %v4194_v27, %v4619_v22  ;;  %v3794_v54 = vmax.f32 %v2960_v46, %v3323_v23  ;;  %v13840_v27 = vsel %vm3890_vm10, %v2961_v5, %v3795_v39 }
 0x57b   :  { %v4876_v31 = vmax.f32 %v13341_v55, %v4800_v45  ;;  %v5709_v55 = vmax.f32 %v4875_v38, %v5249_v15  ;;  %v2875_v45 = vsel %vm2851_vm8, %v18686_v50, %v18700_v49  ;;  %v18701_v50 = vld [vmem:[#allocation41_spill] sm:$0xff] }
 0x57c   :  { %v13817_v30 = vpop.permute.xlu1 %7434  ;;  %v13819_v28 = vpop.permute.xlu0 %3547  ;;  %v13847_v47 = vsel %vm3889_vm6, %v2960_v46, %v3794_v54  ;;  %v2963_v5 = vmax.f32 %v18701_v50, %v2875_v45  ;;  %v18706_v45 = vld [vmem:[#allocation170_spill] sm:$0xff] }
 0x57d   :  { %18699 = vst [vmem:[#allocation119_spill] sm:$0xff] %v13847_v47  ;;  %v7483_v4 = vpack.i.bf16 %v13834_v53, %v13847_v47  ;;  %v5850_v46 = vsel %vm5826_vm1, %v4875_v38, %v5709_v55  ;;  %v7436_v43 = vunpack.i.l.bf16 %v13817_v30  ;;  %v18703_v38 = vld [vmem:[#allocation173_spill] sm:$0xff] }
 0x57e   :  { %5067 = vrot.lane.b32.xlu1 %v13796_v29, %s7945_s21  ;;  %5063 = vrot.lane.b32.xlu0 %v13750_v7, %s7945_s21  ;;  %v18713_v7 = vld [vmem:[#allocation50_spill] sm:$0xff] }
 0x57f   :  { %v4416_v49 = vsel %vm4403_vm13, %v7436_v43, %v4198_v6 }
 0x580   :  { %v13830_v48 = vpop.permute.xlu1 %3158  ;;  %v5453_v36 = vpop.permute.xlu0 %5452 }
 0x581   :  { %v5634_v22 = vsel %vm5622_vm12, %v5028_v19, %v5453_v36 }
 0x582   :  { %v5710_v57 = vmax.f32 %v4876_v31, %v5634_v22  ;;  %4237 = vrot.lane.b32.xlu1 %v13840_v27, %s7944_s18  ;;  %7479 = vrot.lane.b32.xlu0 %v7473_v59, %s7945_s21  ;;  %v3709_v59 = vsel %vm3685_vm9, %v18692_v18, %v13531_v12  ;;  %v18702_v18 = vld [vmem:[#allocation174_spill] sm:$0xff] }
 0x583   :  { %v3797_v23 = vmax.f32 %v2963_v5, %v3709_v59  ;;  %v2492_v54 = vsel %vm2466_vm4, %v18703_v38, %v18702_v18  ;;  %v18707_v59 = vld [vmem:[#allocation111_spill] sm:$0xff]  ;;  %v18709_v38 = vld [vmem:[#allocation104_spill] sm:$0xff] }
 0x584   :  { %v5032_v19 = vpop.permute.xlu1 %5031  ;;  %v4621_v61 = vpop.permute.xlu0 %4620  ;;  %v5851_v39 = vsel %vm5827_vm14, %v4876_v31, %v5710_v57  ;;  %v18705_v31 = vld [vmem:[#allocation171_spill] sm:$0xff] }
 0x585   :  { %7099 = vmatprep.mubr.msk.f32.mxu0 %vm159_vm0, %v5851_v39  ;;  %v2876_v36 = vsel %vm2851_vm8, %v18705_v31, %v18704_v62  ;;  %v4801_v57 = vsel %vm4788_vm11, %v4198_v6, %v4621_v61  ;;  %v13887_v55 = vsel %vm3890_vm10, %v2963_v5, %v3797_v23  ;;  %v2491_v39 = vsel %vm2466_vm4, %v18706_v45, %v18705_v31  ;;  %v18710_v61 = vld [vmem:[#allocation44_spill] sm:$0xff]  ;;  %v18711_v5 = vld [vmem:[#allocation86_spill] sm:$0xff] }
 0x586   :  { %7484 = vrot.lane.b32.xlu1 %v7483_v4, %s7944_s18  ;;  %4638 = vrot.lane.b32.xlu0 %v13744_v21, %s7941_s6  ;;  %v3710_v62 = vsel %vm3685_vm9, %v18709_v38, %v13591_v33  ;;  %v2966_v6 = vmax.f32 %v18710_v61, %v2492_v54  ;;  %v2965_v23 = vmax.f32 %v18711_v5, %v2876_v36  ;;  %v18712_v31 = vld [vmem:[#allocation102_spill] sm:$0xff] }
 0x587   :  { %6249 = vmatmul.mubr.f32.gmra.mxu0 %v5850_v46  ;;  %v18708_v46 = vld [vmem:[#allocation107_spill] sm:$0xff]  ;;  %v3325_v45 = vsel %vm3300_vm5, %v18712_v31, %v18709_v38  ;;  %v2964_v34 = vmax.f32 %v18713_v7, %v2491_v39 }
 0x588   :  { %v13866_v40 = vpop.permute.xlu1 %7439  ;;  %v13868_v44 = vpop.permute.xlu0 %3156  ;;  %v3326_v50 = vsel %vm3300_vm5, %v18708_v46, %v18707_v59  ;;  %v4878_v46 = vmax.f32 %v13358_v60, %v4801_v57  ;;  %v3799_v17 = vmax.f32 %v2965_v23, %v3710_v62 }
 0x589   :  { %v7441_v12 = vunpack.i.l.bf16 %v13866_v40  ;;  %v3798_v60 = vmax.f32 %v2964_v34, %v3325_v45  ;;  %v18717_v45 = vld [vmem:[#allocation176_spill] sm:$0xff] }
 0x58a   :  { %5474 = vrot.lane.b32.xlu1 %v13847_v47, %s7942_s17  ;;  %5472 = vrot.lane.b32.xlu0 %v13744_v21, %s7942_s17  ;;  %v4877_v21 = vmax.f32 %v13366_v25, %v4416_v49 }
 0x58b   :  { %v5250_v43 = vsel %vm5237_vm15, %v7441_v12, %v5032_v19  ;;  %v13937_v39 = vsel %vm3889_vm6, %v2964_v34, %v3798_v60  ;;  %v18715_v34 = vld [vmem:[#allocation9_spill] sm:$0xff] }
 0x58c   :  { %v4623_v15 = vpop.permute.xlu1 %4622  ;;  %v13882_v22 = vpop.permute.xlu0 %3549  ;;  %v5711_v12 = vmax.f32 %v4877_v21, %v5250_v43 }
 0x58e   :  { %4241 = vrot.lane.b32.xlu1 %v13887_v55, %s7944_s18  ;;  %4640 = vrot.lane.b32.xlu0 %v13847_v47, %s7941_s6  ;;  %v3800_v47 = vmax.f32 %v2966_v6, %v3326_v50  ;;  %v5852_v49 = vsel %vm5826_vm1, %v4877_v21, %v5711_v12  ;;  %v3711_v21 = vsel %vm3685_vm9, %v18707_v59, %v13644_v11  ;;  %v7442_v11 = vunpack.i.h.bf16 %v13866_v40  ;;  %v18716_v59 = vld [vmem:[#allocation177_spill] sm:$0xff]  ;;  %v18720_v12 = vld [vmem:[#allocation260_spill] sm:$0xff] }
 0x58f   :  { %v3712_v40 = vsel %vm3685_vm9, %v13690_v37, %v13740_v2 }
 0x590   :  { %v13910_v29 = vpop.permute.xlu1 %3162  ;;  %v5455_v33 = vpop.permute.xlu0 %5454  ;;  %v13923_v7 = vsel %vm3889_vm6, %v2966_v6, %v3800_v47  ;;  %v18714_v47 = vld [vmem:[#allocation259_spill] sm:$0xff] }
 0x591   :  { %v5635_v54 = vsel %vm5622_vm12, %v5032_v19, %v5455_v33  ;;  %v13928_v19 = vsel %vm3890_vm10, %v2965_v23, %v3799_v17  ;;  %v2877_v50 = vsel %vm2851_vm8, %v18702_v18, %v18714_v47  ;;  %v7493_v61 = vpack.i.bf16 %v13923_v7, %v13937_v39  ;;  %v18718_v33 = vld [vmem:[#allocation180_spill] sm:$0xff] }
 0x592   :  { %v5712_v36 = vmax.f32 %v4878_v46, %v5635_v54  ;;  %5075 = vrot.lane.b32.xlu1 %v13887_v55, %s7945_s21  ;;  %5071 = vrot.lane.b32.xlu0 %v13840_v27, %s7945_s21  ;;  %v2967_v6 = vmax.f32 %v18715_v34, %v2877_v50  ;;  %v18719_v54 = vld [vmem:[#allocation179_spill] sm:$0xff]  ;;  %v3328_v50 = vsel %vm3300_vm5, %v13792_v9, %v13764_v56  ;;  %v18722_v34 = vld [vmem:[#allocation110_spill] sm:$0xff] }
 0x594   :  { %v5036_v57 = vpop.permute.xlu1 %5035  ;;  %v4202_v38 = vpop.permute.xlu0 %4201  ;;  %v5853_v25 = vsel %vm5827_vm14, %v4878_v46, %v5712_v36  ;;  %v3801_v43 = vmax.f32 %v2967_v6, %v3711_v21  ;;  %v2493_v46 = vsel %vm2466_vm4, %v18717_v45, %v18716_v59  ;;  %v2494_v36 = vsel %vm2466_vm4, %v18719_v54, %v18718_v33  ;;  %v18721_v21 = vld [vmem:[#allocation52_spill] sm:$0xff] }
 0x595   :  { %7100 = vmatprep.mubr.msk.f32.mxu0 %vm159_vm0, %v5853_v25  ;;  %v5251_v25 = vsel %vm5237_vm15, %v7442_v11, %v5036_v57 }
 0x596   :  { %4245 = vrot.lane.b32.xlu1 %v13928_v19, %s7944_s18  ;;  %7489 = vrot.lane.b32.xlu0 %v7483_v4, %s7945_s21  ;;  %v7437_v4 = vunpack.i.h.bf16 %v13817_v30  ;;  %v4802_v30 = vsel %vm4788_vm11, %v4202_v38, %v4623_v15  ;;  %v13985_v47 = vsel %vm3890_vm10, %v2967_v6, %v3801_v43  ;;  %v3327_v6 = vsel %vm3300_vm5, %v18722_v34, %v13690_v37 }
 0x597   :  { %6254 = vmatmul.mubr.f32.gmra.mxu0 %v5852_v49  ;;  %v4880_v15 = vmax.f32 %v13449_v3, %v4802_v30  ;;  %v18723_v30 = vld [vmem:[#allocation92_spill] sm:$0xff] }
 0x598   :  { %v4206_v62 = vpop.permute.xlu1 %4205  ;;  %v13942_v17 = vpop.permute.xlu0 %3160  ;;  %v4417_v18 = vsel %vm4403_vm13, %v7437_v4, %v4202_v38  ;;  %v2970_v4 = vmax.f32 %v18613_v10, %v2494_v36  ;;  %v2968_v11 = vmax.f32 %v18723_v30, %v2493_v46  ;;  %v18726_v30 = vld [vmem:[#allocation185_spill] sm:$0xff] }
 0x599   :  { %v4879_v31 = vmax.f32 %v13353_v16, %v4417_v18  ;;  %v2878_v16 = vsel %vm2851_vm8, %v18716_v59, %v18720_v12 }
 0x59a   :  { %7494 = vrot.lane.b32.xlu1 %v7493_v61, %s7944_s18  ;;  %4642 = vrot.lane.b32.xlu0 %v13834_v53, %s7941_s6  ;;  %v3804_v45 = vmax.f32 %v2970_v4, %v3328_v50  ;;  %v3802_v37 = vmax.f32 %v2968_v11, %v3327_v6 }
 0x59b   :  { %v5713_v2 = vmax.f32 %v4879_v31, %v5251_v25 }
 0x59c   :  { %v13955_v5 = vpop.permute.xlu1 %7444  ;;  %v13957_v23 = vpop.permute.xlu0 %3551  ;;  %v14015_v46 = vsel %vm3889_vm6, %v2970_v4, %v3804_v45  ;;  %v18729_v45 = vld [vmem:[#allocation182_spill] sm:$0xff] }
 0x59d   :  { %v5854_v10 = vsel %vm5826_vm1, %v4879_v31, %v5713_v2  ;;  %v7446_v12 = vunpack.i.l.bf16 %v13955_v5  ;;  %v14027_v31 = vsel %vm3889_vm6, %v2968_v11, %v3802_v37  ;;  %v3713_v2 = vsel %vm3685_vm9, %v13764_v56, %v13819_v28  ;;  %v18727_v11 = vld [vmem:[#allocation184_spill] sm:$0xff] }
 0x59e   :  { %5478 = vrot.lane.b32.xlu1 %v13937_v39, %s7942_s17  ;;  %5476 = vrot.lane.b32.xlu0 %v13834_v53, %s7942_s17  ;;  %v7503_v50 = vpack.i.bf16 %v14015_v46, %v14027_v31 }
 0x5a0   :  { %v13976_v60 = vpop.permute.xlu1 %3166  ;;  %v5457_v38 = vpop.permute.xlu0 %5456 }
 0x5a1   :  { %v5636_v49 = vsel %vm5622_vm12, %v5036_v57, %v5457_v38  ;;  %v2969_v57 = vmax.f32 %v18721_v21, %v2878_v16  ;;  %v18724_v38 = vld [vmem:[#allocation261_spill] sm:$0xff] }
 0x5a2   :  { %v5714_v3 = vmax.f32 %v4880_v15, %v5636_v49  ;;  %4249 = vrot.lane.b32.xlu1 %v13985_v47, %s7944_s18  ;;  %4644 = vrot.lane.b32.xlu0 %v13937_v39, %s7941_s6 }
 0x5a3   :  { %v3803_v59 = vmax.f32 %v2969_v57, %v3712_v40  ;;  %v2879_v40 = vsel %vm2851_vm8, %v18718_v33, %v18724_v38  ;;  %v18725_v33 = vld [vmem:[#allocation47_spill] sm:$0xff] }
 0x5a4   :  { %v5040_v18 = vpop.permute.xlu1 %5039  ;;  %v4625_v43 = vpop.permute.xlu0 %4624  ;;  %v5855_v9 = vsel %vm5827_vm14, %v4880_v15, %v5714_v3  ;;  %v4418_v3 = vsel %vm4403_vm13, %v7446_v12, %v4206_v62  ;;  %v2971_v4 = vmax.f32 %v18725_v33, %v2879_v40  ;;  %v18730_v12 = vld [vmem:[#allocation85_spill] sm:$0xff]  ;;  %v3714_v40 = vsel %vm3685_vm9, %v13830_v48, %v13882_v22 }
 0x5a5   :  { %7101 = vmatprep.mubr.msk.f32.mxu0 %vm159_vm0, %v5855_v9  ;;  %v14020_v16 = vsel %vm3890_vm10, %v2969_v57, %v3803_v59  ;;  %v18728_v59 = vld [vmem:[#allocation262_spill] sm:$0xff]  ;;  %v3329_v22 = vsel %vm3300_vm5, %v13868_v44, %v13830_v48 }
 0x5a6   :  { %5083 = vrot.lane.b32.xlu1 %v13985_v47, %s7945_s21  ;;  %5079 = vrot.lane.b32.xlu0 %v13928_v19, %s7945_s21 }
 0x5a7   :  { %6259 = vmatmul.mubr.f32.gmra.mxu0 %v5854_v10  ;;  %v2880_v10 = vsel %vm2851_vm8, %v18729_v45, %v18728_v59 }
 0x5a8   :  { %v14009_v54 = vpop.permute.xlu1 %7449  ;;  %v14011_v36 = vpop.permute.xlu0 %3164  ;;  %v2973_v33 = vmax.f32 %v18614_v1, %v2880_v10 }
 0x5a9   :  { %v7451_v15 = vunpack.i.l.bf16 %v14009_v54 }
 0x5aa   :  { %7499 = vrot.lane.b32.xlu0 %v7493_v61, %s7945_s21  ;;  %4253 = vrot.lane.b32.xlu1 %v14020_v16, %s7944_s18  ;;  %v4803_v61 = vsel %vm4788_vm11, %v4206_v62, %v4625_v43  ;;  %v4881_v62 = vmax.f32 %v13473_v8, %v4418_v3  ;;  %v3805_v43 = vmax.f32 %v2971_v4, %v3713_v2 }
 0x5ab   :  { %v5252_v21 = vsel %vm5237_vm15, %v7451_v15, %v5040_v18  ;;  %v4882_v57 = vmax.f32 %v13465_v63, %v4803_v61  ;;  %v2496_v63 = vsel %vm2466_vm4, %v18727_v11, %v18726_v30  ;;  %v2495_v15 = vsel %vm2466_vm4, %v18730_v12, %v18729_v45 }
 0x5ac   :  { %v4627_v25 = vpop.permute.xlu1 %4626  ;;  %v14033_v49 = vpop.permute.xlu0 %3553  ;;  %v5715_v56 = vmax.f32 %v4881_v62, %v5252_v21  ;;  %v14070_v38 = vsel %vm3890_vm10, %v2971_v4, %v3805_v43  ;;  %v3330_v61 = vsel %vm3300_vm5, %v13942_v17, %v13910_v29  ;;  %v2974_v2 = vmax.f32 %v18629_v26, %v2496_v63 }
 0x5ad   :  { %v2972_v21 = vmax.f32 %v18615_v24, %v2495_v15  ;;  %v7447_v43 = vunpack.i.h.bf16 %v13955_v5 }
 0x5ae   :  { %4646 = vrot.lane.b32.xlu0 %v13923_v7, %s7941_s6  ;;  %7504 = vrot.lane.b32.xlu1 %v7503_v50, %s7944_s18  ;;  %v5856_v3 = vsel %vm5826_vm1, %v4881_v62, %v5715_v56  ;;  %v7452_v56 = vunpack.i.h.bf16 %v14009_v54  ;;  %v3715_v54 = vsel %vm3685_vm9, %v13910_v29, %v13957_v23 }
 0x5af   :  { %v3806_v1 = vmax.f32 %v2972_v21, %v3329_v22 }
 0x5b0   :  { %v14048_v34 = vpop.permute.xlu1 %3170  ;;  %v5459_v6 = vpop.permute.xlu0 %5458 }
 0x5b1   :  { %v5637_v9 = vsel %vm5622_vm12, %v5040_v18, %v5459_v6  ;;  %v3808_v6 = vmax.f32 %v2974_v2, %v3330_v61 }
 0x5b2   :  { %v5716_v28 = vmax.f32 %v4882_v57, %v5637_v9  ;;  %5480 = vrot.lane.b32.xlu0 %v13923_v7, %s7942_s17  ;;  %5482 = vrot.lane.b32.xlu1 %v14027_v31, %s7942_s17 }
 0x5b3   :  { %v14104_v24 = vsel %vm3889_vm6, %v2974_v2, %v3808_v6  ;;  %v18734_v2 = vld [vmem:[#allocation190_spill] sm:$0xff] }
 0x5b4   :  { %v5044_v8 = vpop.permute.xlu1 %5043  ;;  %v4210_v37 = vpop.permute.xlu0 %4209  ;;  %v5857_v18 = vsel %vm5827_vm14, %v4882_v57, %v5716_v28  ;;  %v3807_v57 = vmax.f32 %v2973_v33, %v3714_v40  ;;  %v14117_v28 = vsel %vm3889_vm6, %v2972_v21, %v3806_v1  ;;  %v18736_v21 = vld [vmem:[#allocation264_spill] sm:$0xff] }
 0x5b5   :  { %7102 = vmatprep.mubr.msk.f32.mxu0 %vm159_vm0, %v5857_v18  ;;  %v4419_v26 = vsel %vm4403_vm13, %v7447_v43, %v4210_v37  ;;  %v4804_v44 = vsel %vm4788_vm11, %v4210_v37, %v4627_v25  ;;  %v18732_v25 = vld [vmem:[#allocation263_spill] sm:$0xff]  ;;  %v5253_v10 = vsel %vm5237_vm15, %v7452_v56, %v5044_v8 }
 0x5b6   :  { %4648 = vrot.lane.b32.xlu0 %v14027_v31, %s7941_s6  ;;  %4257 = vrot.lane.b32.xlu1 %v14070_v38, %s7944_s18  ;;  %v14109_v5 = vsel %vm3890_vm10, %v2973_v33, %v3807_v57  ;;  %v4883_v9 = vmax.f32 %v13460_v41, %v4419_v26  ;;  %v2881_v63 = vsel %vm2851_vm8, %v18726_v30, %v18732_v25  ;;  %v18735_v33 = vld [vmem:[#allocation89_spill] sm:$0xff]  ;;  %v18737_v57 = vld [vmem:[#allocation188_spill] sm:$0xff] }
 0x5b7   :  { %6264 = vmatmul.mubr.f32.gmra.mxu0 %v5856_v3  ;;  %v4884_v59 = vmax.f32 %v13559_v14, %v4804_v44  ;;  %v2975_v30 = vmax.f32 %v18624_v0, %v2881_v63  ;;  %v2498_v22 = vsel %vm2466_vm4, %v18735_v33, %v18734_v2  ;;  %v2882_v6 = vsel %vm2851_vm8, %v18737_v57, %v18736_v21  ;;  %v18738_v44 = vld [vmem:[#allocation187_spill] sm:$0xff] }
 0x5b8   :  { %v14089_v4 = vpop.permute.xlu1 %4213  ;;  %v3169_v17 = vpop.permute.xlu0 %3168  ;;  %v5717_v14 = vmax.f32 %v4883_v9, %v5253_v10  ;;  %v2977_v10 = vmax.f32 %v18630_v20, %v2882_v6 }
 0x5b9   :  { %v3809_v61 = vmax.f32 %v2975_v30, %v3715_v54 }
 0x5ba   :  { %5087 = vrot.lane.b32.xlu0 %v14020_v16, %s7945_s21  ;;  %5091 = vrot.lane.b32.xlu1 %v14070_v38, %s7945_s21  ;;  %v5858_v0 = vsel %vm5826_vm1, %v4883_v9, %v5717_v14  ;;  %v2497_v9 = vsel %vm2466_vm4, %v18738_v44, %v18737_v57  ;;  %v18740_v57 = vld [vmem:[#allocation265_spill] sm:$0xff] }
 0x5bb   :  { %v14167_v63 = vsel %vm3890_vm10, %v2975_v30, %v3809_v61  ;;  %v2883_v6 = vsel %vm2851_vm8, %v18734_v2, %v18740_v57  ;;  %v18747_v57 = vld [vmem:[#allocation36_spill] sm:$0xff] }
 0x5bc   :  { %v14098_v62 = vpop.permute.xlu1 %7454  ;;  %v14100_v48 = vpop.permute.xlu0 %3555 }
 0x5bd   :  { %v7456_v29 = vunpack.i.l.bf16 %v14098_v62 }
 0x5be   :  { %7509 = vrot.lane.b32.xlu0 %v7503_v50, %s7945_s21  ;;  %4261 = vrot.lane.b32.xlu1 %v14109_v5, %s7944_s18  ;;  %v14128_v50 = vpack.i.bf16 %v14104_v24, %v14117_v28 }
 0x5bf   :  { %v14120_v11 = vpop.f32.mrf.mxu0 }
 0x5c0   :  { %18731 = vst [vmem:[#allocation118_spill] sm:$0xff] %v14120_v11  ;;  %v5463_v41 = vpop.permute.xlu1 %5462  ;;  %v5461_v45 = vpop.permute.xlu0 %5460  ;;  %v18776_v11 = vld [vmem:[#allocation125_spill] sm:$0xff] }
 0x5c1   :  { %v5638_v37 = vsel %vm5622_vm12, %v5044_v8, %v5461_v45  ;;  %v6197_v18 = vpop.f32.mrf.mxu0 }
 0x5c2   :  { %v5718_v12 = vmax.f32 %v4884_v59, %v5638_v37  ;;  %4650 = vrot.lane.b32.xlu0 %v14015_v46, %s7941_s6  ;;  %7514 = vrot.lane.b32.xlu1 %v14128_v50, %s7944_s18  ;;  %v4420_v37 = vsel %vm4403_vm13, %v7456_v29, %v14089_v4 }
 0x5c3   :  { %v4885_v20 = vmax.f32 %v13585_v32, %v4420_v37 }
 0x5c4   :  { %v4218_v15 = vpop.permute.xlu1 %4217  ;;  %v4629_v40 = vpop.permute.xlu0 %4628  ;;  %v5859_v8 = vsel %vm5827_vm14, %v4884_v59, %v5718_v12  ;;  %v3716_v59 = vsel %vm3685_vm9, %v13976_v60, %v14033_v49  ;;  %v3331_v49 = vsel %vm3300_vm5, %v14011_v36, %v13976_v60  ;;  %v18739_v12 = vld [vmem:[#allocation57_spill] sm:$0xff]  ;;  %v7457_v36 = vunpack.i.h.bf16 %v14098_v62 }
 0x5c5   :  { %v4805_v3 = vsel %vm4788_vm11, %v14089_v4, %v4629_v40  ;;  %7103 = vmatprep.mubr.msk.f32.mxu0 %vm159_vm0, %v5859_v8  ;;  %v2976_v14 = vmax.f32 %v18739_v12, %v2497_v9  ;;  %v3811_v30 = vmax.f32 %v2977_v10, %v3716_v59 }
 0x5c6   :  { %5484 = vrot.lane.b32.xlu0 %v14015_v46, %s7942_s17  ;;  %5486 = vrot.lane.b32.xlu1 %v14117_v28, %s7942_s17  ;;  %v4886_v43 = vmax.f32 %v13574_v52, %v4805_v3  ;;  %v3332_v52 = vsel %vm3300_vm5, %v3169_v17, %v14048_v34  ;;  %v4421_v33 = vsel %vm4403_vm13, %v7457_v36, %v4218_v15 }
 0x5c7   :  { %v14152_v23 = vpop.f32.mrf.mxu0  ;;  %6269 = vmatmul.mubr.f32.gmra.mxu0 %v5858_v0  ;;  %v3810_v60 = vmax.f32 %v2976_v14, %v3331_v49  ;;  %v14208_v32 = vsel %vm3890_vm10, %v2977_v10, %v3811_v30  ;;  %v18745_v30 = vld [vmem:[#allocation250_spill] sm:$0xff] }
 0x5c8   :  { %18733 = vst [vmem:[#allocation30_spill] sm:$0xff] %v14152_v23  ;;  %v5052_v1 = vpop.permute.xlu1 %5051  ;;  %v5048_v26 = vpop.permute.xlu0 %5047  ;;  %v18777_v23 = vld [vmem:[#allocation120_spill] sm:$0xff] }
 0x5c9   :  { %v5639_v56 = vsel %vm5622_vm12, %v5048_v26, %v5463_v41  ;;  %v6202_v25 = vpop.f32.mrf.mxu0  ;;  %v2978_v41 = vmax.f32 %v18645_v42, %v2498_v22  ;;  %v14218_v21 = vsel %vm3889_vm6, %v2976_v14, %v3810_v60 }
 0x5ca   :  { %v5720_v45 = vmax.f32 %v4886_v43, %v5639_v56  ;;  %4652 = vrot.lane.b32.xlu0 %v14117_v28, %s7941_s6  ;;  %4265 = vrot.lane.b32.xlu1 %v14167_v63, %s7944_s18 }
 0x5cb   :  { %v3812_v40 = vmax.f32 %v2978_v41, %v3332_v52  ;;  %v3717_v52 = vsel %vm3685_vm9, %v14048_v34, %v14100_v48 }
 0x5cc   :  { %v14185_v18 = vpop.permute.xlu1 %4221  ;;  %v7460_v17 = vpop.permute.xlu0 %7459  ;;  %v5861_v54 = vsel %vm5827_vm14, %v4886_v43, %v5720_v45  ;;  %v18741_v43 = vld [vmem:[#allocation91_spill] sm:$0xff] }
 0x5cd   :  { %v7461_v42 = vunpack.i.l.bf16 %v7460_v17  ;;  %7104 = vmatprep.mubr.msk.f32.mxu0 %vm159_vm0, %v5861_v54  ;;  %v7462_v4 = vunpack.i.h.bf16 %v7460_v17  ;;  %v14202_v29 = vsel %vm3889_vm6, %v2978_v41, %v3812_v40  ;;  %v18743_v41 = vld [vmem:[#allocation53_spill] sm:$0xff] }
 0x5ce   :  { %5095 = vrot.lane.b32.xlu0 %v14109_v5, %s7945_s21  ;;  %5099 = vrot.lane.b32.xlu1 %v14167_v63, %s7945_s21  ;;  %v7523_v25 = vpack.i.bf16 %v14202_v29, %v14218_v21  ;;  %v2979_v10 = vmax.f32 %v18743_v41, %v2883_v6 }
 0x5cf   :  { %v5254_v8 = vsel %vm5237_vm15, %v7461_v42, %v5048_v26  ;;  %v4887_v26 = vmax.f32 %v18741_v43, %v4421_v33 }
 0x5d0   :  { %v14198_v61 = vpop.permute.xlu1 %7464  ;;  %v4631_v3 = vpop.permute.xlu0 %4630  ;;  %v5719_v0 = vmax.f32 %v4885_v20, %v5254_v8  ;;  %v3813_v54 = vmax.f32 %v2979_v10, %v3717_v52  ;;  %v18748_v52 = vld [vmem:[#allocation97_spill] sm:$0xff] }
 0x5d1   :  { %v4806_v22 = vsel %vm4788_vm11, %v4218_v15, %v4631_v3  ;;  %v5255_v15 = vsel %vm5237_vm15, %v7462_v4, %v5052_v1  ;;  %v7466_v14 = vunpack.i.l.bf16 %v14198_v61  ;;  %v7467_v43 = vunpack.i.h.bf16 %v14198_v61 }
 0x5d2   :  { %7519 = vrot.lane.b32.xlu0 %v14128_v50, %s7945_s21  ;;  %4269 = vrot.lane.b32.xlu1 %v14208_v32, %s7944_s18  ;;  %v5860_v62 = vsel %vm5826_vm1, %v4885_v20, %v5719_v0  ;;  %v18742_v50 = vld [vmem:[#allocation8_spill] sm:$0xff]  ;;  %v5721_v2 = vmax.f32 %v4887_v26, %v5255_v15  ;;  %v14254_v36 = vsel %vm3890_vm10, %v2979_v10, %v3813_v54  ;;  %v18750_v10 = vld [vmem:[#allocation115_spill] sm:$0xff] }
 0x5d3   :  { %6274 = vmatmul.mubr.f32.gmra.mxu0 %v5860_v62  ;;  %v4888_v44 = vmax.f32 %v18742_v50, %v4806_v22  ;;  %v4422_v3 = vsel %vm4403_vm13, %v7466_v14, %v14185_v18 }
 0x5d4   :  { %v5467_v9 = vpop.permute.xlu1 %5466  ;;  %v5465_v56 = vpop.permute.xlu0 %5464  ;;  %v5862_v12 = vsel %vm5826_vm1, %v4887_v26, %v5721_v2  ;;  %v4889_v6 = vmax.f32 %v18747_v57, %v4422_v3  ;;  %v18749_v2 = vld [vmem:[#allocation7_spill] sm:$0xff] }
 0x5d5   :  { %v5640_v59 = vsel %vm5622_vm12, %v5052_v1, %v5465_v56 }
 0x5d6   :  { %v5722_v45 = vmax.f32 %v4888_v44, %v5640_v59  ;;  %4654 = vrot.lane.b32.xlu0 %v14104_v24, %s7941_s6  ;;  %7524 = vrot.lane.b32.xlu1 %v7523_v25, %s7944_s18 }
 0x5d7   :  { %v14236_v37 = vpop.f32.mrf.mxu0 }
 0x5d8   :  { %18744 = vst [vmem:[#allocation303_spill] sm:$0xff] %v14236_v37  ;;  %v4226_v49 = vpop.permute.xlu1 %4225  ;;  %v4633_v17 = vpop.permute.xlu0 %4632  ;;  %v5863_v1 = vsel %vm5827_vm14, %v4888_v44, %v5722_v45 }
 0x5d9   :  { %v4807_v34 = vsel %vm4788_vm11, %v14185_v18, %v4633_v17  ;;  %v6207_v48 = vpop.f32.mrf.mxu0  ;;  %7105 = vmatprep.mubr.msk.f32.mxu0 %vm159_vm0, %v5863_v1  ;;  %v4423_v56 = vsel %vm4403_vm13, %v7467_v43, %v4226_v49  ;;  %v18755_v43 = vld [vmem:[#allocation58_spill] sm:$0xff] }
 0x5da   :  { %5488 = vrot.lane.b32.xlu0 %v14104_v24, %s7942_s17  ;;  %5490 = vrot.lane.b32.xlu1 %v14218_v21, %s7942_s17  ;;  %v4890_v40 = vmax.f32 %v18745_v30, %v4807_v34  ;;  %v4891_v41 = vmax.f32 %v18749_v2, %v4423_v56 }
 0x5db   :  { %6279 = vmatmul.mubr.f32.gmra.mxu0 %v5862_v12 }
 0x5dc   :  { %v5060_v42 = vpop.permute.xlu1 %5059  ;;  %v5056_v20 = vpop.permute.xlu0 %5055 }
 0x5dd   :  { %v5641_v60 = vsel %vm5622_vm12, %v5056_v20, %v5467_v9 }
 0x5de   :  { %v5724_v4 = vmax.f32 %v4890_v40, %v5641_v60  ;;  %4656 = vrot.lane.b32.xlu0 %v14218_v21, %s7941_s6  ;;  %4273 = vrot.lane.b32.xlu1 %v14254_v36, %s7944_s18 }
 0x5df   :  { %v14260_v8 = vpop.f32.mrf.mxu0 }
 0x5e0   :  { %18746 = vst [vmem:[#allocation13_spill] sm:$0xff] %v14260_v8  ;;  %v4230_v0 = vpop.permute.xlu1 %4229  ;;  %v7470_v33 = vpop.permute.xlu0 %7469  ;;  %v5865_v22 = vsel %vm5827_vm14, %v4890_v40, %v5724_v4  ;;  %v18751_v40 = vld [vmem:[#allocation100_spill] sm:$0xff]  ;;  %v18753_v4 = vld [vmem:[#allocation301_spill] sm:$0xff] }
 0x5e1   :  { %v7471_v62 = vunpack.i.l.bf16 %v7470_v33  ;;  %v6212_v15 = vpop.f32.mrf.mxu0  ;;  %7106 = vmatprep.mubr.msk.f32.mxu0 %vm159_vm0, %v5865_v22  ;;  %v7472_v18 = vunpack.i.h.bf16 %v7470_v33 }
 0x5e2   :  { %5103 = vrot.lane.b32.xlu0 %v14208_v32, %s7945_s21  ;;  %5107 = vrot.lane.b32.xlu1 %v14254_v36, %s7945_s21 }
 0x5e3   :  { %v5256_v26 = vsel %vm5237_vm15, %v7471_v62, %v5056_v20  ;;  %v5257_v61 = vsel %vm5237_vm15, %v7472_v18, %v5060_v42 }
 0x5e4   :  { %v7475_v50 = vpop.permute.xlu1 %7474  ;;  %v4635_v44 = vpop.permute.xlu0 %4634  ;;  %v5723_v9 = vmax.f32 %v4889_v6, %v5256_v26 }
 0x5e5   :  { %v4808_v59 = vsel %vm4788_vm11, %v4226_v49, %v4635_v44  ;;  %v7476_v20 = vunpack.i.l.bf16 %v7475_v50  ;;  %v7477_v2 = vunpack.i.h.bf16 %v7475_v50 }
 0x5e6   :  { %7529 = vrot.lane.b32.xlu0 %v7523_v25, %s7945_s21  ;;  %3172 = vrot.lane.b32.xlu1 %v18748_v52, %s7939_s28  ;;  %v5864_v45 = vsel %vm5826_vm1, %v4889_v6, %v5723_v9  ;;  %v4892_v17 = vmax.f32 %v18750_v10, %v4808_v59  ;;  %v5725_v25 = vmax.f32 %v4891_v41, %v5257_v61  ;;  %v18754_v6 = vld [vmem:[#allocation96_spill] sm:$0xff]  ;;  %v18756_v59 = vld [vmem:[#allocation55_spill] sm:$0xff] }
 0x5e7   :  { %6284 = vmatmul.mubr.f32.gmra.mxu0 %v5864_v45  ;;  %v4424_v18 = vsel %vm4403_vm13, %v7476_v20, %v4230_v0  ;;  %v18757_v45 = vld [vmem:[#allocation49_spill] sm:$0xff] }
 0x5e8   :  { %v5471_v1 = vpop.permute.xlu1 %5470  ;;  %v5469_v54 = vpop.permute.xlu0 %5468  ;;  %v4893_v61 = vmax.f32 %v18757_v45, %v4424_v18  ;;  %v18761_v20 = vld [vmem:[#allocation77_spill] sm:$0xff] }
 0x5e9   :  { %v5642_v34 = vsel %vm5622_vm12, %v5060_v42, %v5469_v54  ;;  %v5866_v42 = vsel %vm5826_vm1, %v4891_v41, %v5725_v25 }
 0x5ea   :  { %v5726_v49 = vmax.f32 %v4892_v17, %v5642_v34  ;;  %4658 = vrot.lane.b32.xlu0 %v14202_v29, %s7941_s6  ;;  %3557 = vrot.lane.b32.xlu1 %v18748_v52, %s7940_s7 }
 0x5ec   :  { %v4234_v48 = vpop.permute.xlu1 %4233  ;;  %v4637_v12 = vpop.permute.xlu0 %4636  ;;  %v5867_v14 = vsel %vm5827_vm14, %v4892_v17, %v5726_v49 }
 0x5ed   :  { %v4809_v30 = vsel %vm4788_vm11, %v4230_v0, %v4637_v12  ;;  %7107 = vmatprep.mubr.msk.f32.mxu0 %vm159_vm0, %v5867_v14  ;;  %v4425_v34 = vsel %vm4403_vm13, %v7477_v2, %v4234_v48  ;;  %v18759_v12 = vld [vmem:[#allocation106_spill] sm:$0xff] }
 0x5ee   :  { %5492 = vrot.lane.b32.xlu0 %v14202_v29, %s7942_s17  ;;  %3178 = vrot.lane.b32.xlu1 %v18751_v40, %s7939_s28  ;;  %v4894_v3 = vmax.f32 %v18753_v4, %v4809_v30  ;;  %v18760_v30 = vld [vmem:[#allocation114_spill] sm:$0xff] }
 0x5ef   :  { %6289 = vmatmul.mubr.f32.gmra.mxu0 %v5866_v42  ;;  %v14299_v60 = vpop.f32.mrf.mxu0  ;;  %v4895_v42 = vmax.f32 %v18760_v30, %v4425_v34 }
 0x5f0   :  { %18752 = vst [vmem:[#allocation38_spill] sm:$0xff] %v14299_v60  ;;  %v5068_v33 = vpop.permute.xlu1 %5067  ;;  %v5064_v22 = vpop.permute.xlu0 %5063  ;;  %v18784_v60 = vld [vmem:[#allocation141_spill] sm:$0xff] }
 0x5f1   :  { %v5643_v62 = vsel %vm5622_vm12, %v5064_v22, %v5471_v1  ;;  %v6217_v15 = vpop.f32.mrf.mxu0 }
 0x5f2   :  { %v5728_v57 = vmax.f32 %v4894_v3, %v5643_v62  ;;  %3174 = vrot.lane.b32.xlu0 %v18754_v6, %s7939_s28  ;;  %3180 = vrot.lane.b32.xlu1 %v18755_v43, %s7939_s28  ;;  %v18762_v15 = vld [vmem:[#allocation103_spill] sm:$0xff] }
 0x5f4   :  { %v4238_v26 = vpop.permute.xlu1 %4237  ;;  %v7480_v44 = vpop.permute.xlu0 %7479  ;;  %v5869_v9 = vsel %vm5827_vm14, %v4894_v3, %v5728_v57  ;;  %v18763_v57 = vld [vmem:[#allocation21_spill] sm:$0xff] }
 0x5f5   :  { %v7481_v56 = vunpack.i.l.bf16 %v7480_v44  ;;  %7108 = vmatprep.mubr.msk.f32.mxu0 %vm159_vm0, %v5869_v9  ;;  %v7482_v41 = vunpack.i.h.bf16 %v7480_v44 }
 0x5f6   :  { %3176 = vrot.lane.b32.xlu0 %v18756_v59, %s7939_s28  ;;  %3561 = vrot.lane.b32.xlu1 %v18755_v43, %s7940_s7 }
 0x5f7   :  { %v14316_v10 = vpop.f32.mrf.mxu0  ;;  %v5258_v0 = vsel %vm5237_vm15, %v7481_v56, %v5064_v22  ;;  %v5259_v14 = vsel %vm5237_vm15, %v7482_v41, %v5068_v33 }
 0x5f8   :  { %18758 = vst [vmem:[#allocation78_spill] sm:$0xff] %v14316_v10  ;;  %v7485_v17 = vpop.permute.xlu1 %7484  ;;  %v4639_v1 = vpop.permute.xlu0 %4638  ;;  %v5727_v54 = vmax.f32 %v4893_v61, %v5258_v0  ;;  %v5729_v18 = vmax.f32 %v4895_v42, %v5259_v14 }
 0x5f9   :  { %v4810_v49 = vsel %vm4788_vm11, %v4234_v48, %v4639_v1  ;;  %v6222_v25 = vpop.f32.mrf.mxu0  ;;  %v7486_v2 = vunpack.i.l.bf16 %v7485_v17 }
 0x5fa   :  { %3559 = vrot.lane.b32.xlu0 %v18756_v59, %s7940_s7  ;;  %3186 = vrot.lane.b32.xlu1 %v18759_v12, %s7939_s28  ;;  %v5868_v50 = vsel %vm5826_vm1, %v4893_v61, %v5727_v54  ;;  %v4896_v4 = vmax.f32 %v18761_v20, %v4810_v49  ;;  %v18764_v61 = vld [vmem:[#allocation61_spill] sm:$0xff]  ;;  %v18765_v49 = vld [vmem:[#allocation108_spill] sm:$0xff] }
 0x5fb   :  { %6294 = vmatmul.mubr.f32.gmra.mxu0 %v5868_v50  ;;  %v4426_v50 = vsel %vm4403_vm13, %v7486_v2, %v4238_v26 }
 0x5fc   :  { %v5475_v3 = vpop.permute.xlu1 %5474  ;;  %v5473_v22 = vpop.permute.xlu0 %5472 }
 0x5fd   :  { %v5644_v48 = vsel %vm5622_vm12, %v5068_v33, %v5473_v22  ;;  %v5870_v33 = vsel %vm5826_vm1, %v4895_v42, %v5729_v18  ;;  %v18769_v22 = vld [vmem:[#allocation119_spill] sm:$0xff] }
 0x5fe   :  { %v5730_v62 = vmax.f32 %v4896_v4, %v5644_v48  ;;  %3182 = vrot.lane.b32.xlu0 %v18762_v15, %s7939_s28  ;;  %3188 = vrot.lane.b32.xlu1 %v18763_v57, %s7939_s28  ;;  %v4897_v48 = vmax.f32 %v18769_v22, %v4426_v50  ;;  %v18771_v22 = vld [vmem:[#allocation116_spill] sm:$0xff] }
 0x600   :  { %v4242_v44 = vpop.permute.xlu1 %4241  ;;  %v4641_v9 = vpop.permute.xlu0 %4640  ;;  %v5871_v56 = vsel %vm5827_vm14, %v4896_v4, %v5730_v62  ;;  %v18767_v4 = vld [vmem:[#allocation18_spill] sm:$0xff]  ;;  %v7487_v62 = vunpack.i.h.bf16 %v7485_v17 }
 0x601   :  { %v4811_v45 = vsel %vm4788_vm11, %v4238_v26, %v4641_v9  ;;  %7109 = vmatprep.mubr.msk.f32.mxu0 %vm159_vm0, %v5871_v56 }
 0x602   :  { %3184 = vrot.lane.b32.xlu0 %v18764_v61, %s7939_s28  ;;  %3565 = vrot.lane.b32.xlu1 %v18763_v57, %s7940_s7  ;;  %v4898_v41 = vmax.f32 %v13840_v27, %v4811_v45 }
 0x603   :  { %6299 = vmatmul.mubr.f32.gmra.mxu0 %v5870_v33  ;;  %v4427_v33 = vsel %vm4403_vm13, %v7487_v62, %v4242_v44 }
 0x604   :  { %v5076_v0 = vpop.permute.xlu1 %5075  ;;  %v5072_v1 = vpop.permute.xlu0 %5071 }
 0x605   :  { %v5645_v54 = vsel %vm5622_vm12, %v5072_v1, %v5475_v3  ;;  %v18768_v3 = vld [vmem:[#allocation109_spill] sm:$0xff] }
 0x606   :  { %v5732_v34 = vmax.f32 %v4898_v41, %v5645_v54  ;;  %3563 = vrot.lane.b32.xlu0 %v18764_v61, %s7940_s7  ;;  %3194 = vrot.lane.b32.xlu1 %v18765_v49, %s7939_s28 }
 0x607   :  { %v14351_v25 = vpop.f32.mrf.mxu0 }
 0x608   :  { %18766 = vst [vmem:[#allocation251_spill] sm:$0xff] %v14351_v25  ;;  %v4246_v14 = vpop.permute.xlu1 %4245  ;;  %v7490_v30 = vpop.permute.xlu0 %7489  ;;  %v5873_v27 = vsel %vm5827_vm14, %v4898_v41, %v5732_v34  ;;  %v18770_v41 = vld [vmem:[#allocation2_spill] sm:$0xff]  ;;  %v4899_v34 = vmax.f32 %v13834_v53, %v4427_v33 }
 0x609   :  { %v7491_v42 = vunpack.i.l.bf16 %v7490_v30  ;;  %v6227_v20 = vpop.f32.mrf.mxu0  ;;  %7110 = vmatprep.mubr.msk.f32.mxu0 %vm159_vm0, %v5873_v27  ;;  %v7492_v18 = vunpack.i.h.bf16 %v7490_v30 }
 0x60a   :  { %3190 = vrot.lane.b32.xlu0 %v18767_v4, %s7939_s28  ;;  %3196 = vrot.lane.b32.xlu1 %v18768_v3, %s7939_s28 }
 0x60b   :  { %v5260_v26 = vsel %vm5237_vm15, %v7491_v42, %v5072_v1  ;;  %v5261_v1 = vsel %vm5237_vm15, %v7492_v18, %v5076_v0  ;;  %v18773_v18 = vld [vmem:[#allocation112_spill] sm:$0xff] }
 0x60c   :  { %v7495_v9 = vpop.permute.xlu1 %7494  ;;  %v4643_v56 = vpop.permute.xlu0 %4642  ;;  %v5731_v45 = vmax.f32 %v4897_v48, %v5260_v26 }
 0x60d   :  { %v4812_v2 = vsel %vm4788_vm11, %v4242_v44, %v4643_v56 }
 0x60e   :  { %3569 = vrot.lane.b32.xlu1 %v18768_v3, %s7940_s7  ;;  %3192 = vrot.lane.b32.xlu0 %v18770_v41, %s7939_s28  ;;  %v5872_v54 = vsel %vm5826_vm1, %v4897_v48, %v5731_v45  ;;  %v4900_v50 = vmax.f32 %v13887_v55, %v4812_v2  ;;  %v5733_v48 = vmax.f32 %v4899_v34, %v5261_v1  ;;  %v7496_v45 = vunpack.i.l.bf16 %v7495_v9 }
 0x60f   :  { %v14371_v17 = vpop.f32.mrf.mxu0  ;;  %6304 = vmatmul.mubr.f32.gmra.mxu0 %v5872_v54 }
 0x610   :  { %v5479_v30 = vpop.permute.xlu1 %5478  ;;  %v5477_v44 = vpop.permute.xlu0 %5476  ;;  %v5874_v56 = vsel %vm5826_vm1, %v4899_v34, %v5733_v48 }
 0x611   :  { %v5646_v27 = vsel %vm5622_vm12, %v5076_v0, %v5477_v44  ;;  %v6232_v42 = vpop.f32.mrf.mxu0  ;;  %v18772_v0 = vld [vmem:[#allocation117_spill] sm:$0xff] }
 0x612   :  { %v5734_v20 = vmax.f32 %v4900_v50, %v5646_v27  ;;  %3202 = vrot.lane.b32.xlu1 %v18771_v22, %s7939_s28  ;;  %3567 = vrot.lane.b32.xlu0 %v18770_v41, %s7940_s7  ;;  %v18774_v44 = vld [vmem:[#allocation113_spill] sm:$0xff]  ;;  %v4428_v27 = vsel %vm4403_vm13, %v7496_v45, %v4246_v14 }
 0x614   :  { %v4250_v62 = vpop.permute.xlu1 %4249  ;;  %v4645_v26 = vpop.permute.xlu0 %4644  ;;  %v5875_v53 = vsel %vm5827_vm14, %v4900_v50, %v5734_v20 }
 0x615   :  { %v4813_v55 = vsel %vm4788_vm11, %v4246_v14, %v4645_v26  ;;  %7111 = vmatprep.mubr.msk.f32.mxu0 %vm159_vm0, %v5875_v53  ;;  %v7497_v26 = vunpack.i.h.bf16 %v7495_v9 }
 0x616   :  { %3204 = vrot.lane.b32.xlu1 %v18772_v0, %s7939_s28  ;;  %3198 = vrot.lane.b32.xlu0 %v18773_v18, %s7939_s28  ;;  %v4902_v33 = vmax.f32 %v13928_v19, %v4813_v55  ;;  %v18775_v19 = vld [vmem:[#allocation124_spill] sm:$0xff] }
 0x617   :  { %6309 = vmatmul.mubr.f32.gmra.mxu0 %v5874_v56 }
 0x618   :  { %v5084_v2 = vpop.permute.xlu1 %5083  ;;  %v5080_v54 = vpop.permute.xlu0 %5079 }
 0x619   :  { %v5647_v1 = vsel %vm5622_vm12, %v5080_v54, %v5479_v30  ;;  %v4901_v30 = vmax.f32 %v13937_v39, %v4428_v27 }
 0x61a   :  { %v5736_v50 = vmax.f32 %v4902_v33, %v5647_v1  ;;  %3573 = vrot.lane.b32.xlu1 %v18772_v0, %s7940_s7  ;;  %3200 = vrot.lane.b32.xlu0 %v18774_v44, %s7939_s28  ;;  %v4429_v1 = vsel %vm4403_vm13, %v7497_v26, %v4250_v62 }
 0x61c   :  { %v4254_v42 = vpop.permute.xlu1 %4253  ;;  %v7500_v20 = vpop.permute.xlu0 %7499  ;;  %v5877_v34 = vsel %vm5827_vm14, %v4902_v33, %v5736_v50 }
 0x61d   :  { %v7501_v48 = vunpack.i.l.bf16 %v7500_v20  ;;  %7112 = vmatprep.mubr.msk.f32.mxu0 %vm159_vm0, %v5877_v34  ;;  %v7502_v53 = vunpack.i.h.bf16 %v7500_v20 }
 0x61e   :  { %3210 = vrot.lane.b32.xlu1 %v18775_v19, %s7939_s28  ;;  %3571 = vrot.lane.b32.xlu0 %v18774_v44, %s7940_s7 }
 0x61f   :  { %v14406_v55 = vpop.f32.mrf.mxu0  ;;  %v5262_v14 = vsel %vm5237_vm15, %v7501_v48, %v5080_v54  ;;  %v5263_v9 = vsel %vm5237_vm15, %v7502_v53, %v5084_v2  ;;  %v4903_v54 = vmax.f32 %v13923_v7, %v4429_v1 }
 0x620   :  { %v7505_v56 = vpop.permute.xlu1 %7504  ;;  %v4647_v45 = vpop.permute.xlu0 %4646  ;;  %v5735_v33 = vmax.f32 %v4901_v30, %v5262_v14  ;;  %v18778_v14 = vld [vmem:[#allocation121_spill] sm:$0xff] }
 0x621   :  { %v4814_v50 = vsel %vm4788_vm11, %v4250_v62, %v4647_v45  ;;  %v6237_v34 = vpop.f32.mrf.mxu0  ;;  %v5737_v45 = vmax.f32 %v4903_v54, %v5263_v9 }
 0x622   :  { %3212 = vrot.lane.b32.xlu1 %v18776_v11, %s7939_s28  ;;  %3206 = vrot.lane.b32.xlu0 %v18777_v23, %s7939_s28  ;;  %v5876_v39 = vsel %vm5826_vm1, %v4901_v30, %v5735_v33  ;;  %v4904_v27 = vmax.f32 %v13985_v47, %v4814_v50  ;;  %v7506_v34 = vunpack.i.l.bf16 %v7505_v56 }
 0x623   :  { %6314 = vmatmul.mubr.f32.gmra.mxu0 %v5876_v39  ;;  %v5878_v50 = vsel %vm5826_vm1, %v4903_v54, %v5737_v45 }
 0x624   :  { %v5483_v20 = vpop.permute.xlu1 %5482  ;;  %v5481_v48 = vpop.permute.xlu0 %5480 }
 0x625   :  { %v5648_v62 = vsel %vm5622_vm12, %v5084_v2, %v5481_v48  ;;  %v18779_v2 = vld [vmem:[#allocation132_spill] sm:$0xff] }
 0x626   :  { %v5738_v26 = vmax.f32 %v4904_v27, %v5648_v62  ;;  %3577 = vrot.lane.b32.xlu1 %v18776_v11, %s7940_s7  ;;  %3208 = vrot.lane.b32.xlu0 %v18778_v14, %s7939_s28 }
 0x627   :  { %v14425_v30 = vpop.f32.mrf.mxu0 }
 0x628   :  { %v4258_v33 = vpop.permute.xlu1 %4257  ;;  %v4649_v53 = vpop.permute.xlu0 %4648  ;;  %v5879_v7 = vsel %vm5827_vm14, %v4904_v27, %v5738_v26  ;;  %v18780_v26 = vld [vmem:[#allocation133_spill] sm:$0xff] }
 0x629   :  { %v4815_v47 = vsel %vm4788_vm11, %v4254_v42, %v4649_v53  ;;  %v6242_v1 = vpop.f32.mrf.mxu0  ;;  %7113 = vmatprep.mubr.msk.f32.mxu0 %vm159_vm0, %v5879_v7  ;;  %v18781_v53 = vld [vmem:[#allocation128_spill] sm:$0xff]  ;;  %v4430_v7 = vsel %vm4403_vm13, %v7506_v34, %v4254_v42 }
 0x62a   :  { %3218 = vrot.lane.b32.xlu1 %v18779_v2, %s7939_s28  ;;  %3575 = vrot.lane.b32.xlu0 %v18778_v14, %s7940_s7  ;;  %v4906_v39 = vmax.f32 %v14020_v16, %v4815_v47  ;;  %v18782_v16 = vld [vmem:[#allocation129_spill] sm:$0xff]  ;;  %v7507_v47 = vunpack.i.h.bf16 %v7505_v56 }
 0x62b   :  { %6319 = vmatmul.mubr.f32.gmra.mxu0 %v5878_v50 }
 0x62c   :  { %v5092_v9 = vpop.permute.xlu1 %5091  ;;  %v5088_v27 = vpop.permute.xlu0 %5087 }
 0x62d   :  { %v5649_v48 = vsel %vm5622_vm12, %v5088_v27, %v5483_v20  ;;  %v4905_v20 = vmax.f32 %v14027_v31, %v4430_v7 }
 0x62e   :  { %v5740_v62 = vmax.f32 %v4906_v39, %v5649_v48  ;;  %3220 = vrot.lane.b32.xlu1 %v18780_v26, %s7939_s28  ;;  %3214 = vrot.lane.b32.xlu0 %v18781_v53, %s7939_s28 }
 0x630   :  { %v4262_v1 = vpop.permute.xlu1 %4261  ;;  %v7510_v37 = vpop.permute.xlu0 %7509  ;;  %v5881_v54 = vsel %vm5827_vm14, %v4906_v39, %v5740_v62  ;;  %v4431_v39 = vsel %vm4403_vm13, %v7507_v47, %v4258_v33 }
 0x631   :  { %v7511_v45 = vunpack.i.l.bf16 %v7510_v37  ;;  %7114 = vmatprep.mubr.msk.f32.mxu0 %vm159_vm0, %v5881_v54  ;;  %v7512_v50 = vunpack.i.h.bf16 %v7510_v37  ;;  %v18783_v54 = vld [vmem:[#allocation140_spill] sm:$0xff] }
 0x632   :  { %3581 = vrot.lane.b32.xlu1 %v18780_v26, %s7940_s7  ;;  %3216 = vrot.lane.b32.xlu0 %v18782_v16, %s7939_s28 }
 0x633   :  { %v5264_v42 = vsel %vm5237_vm15, %v7511_v45, %v5088_v27  ;;  %v5265_v37 = vsel %vm5237_vm15, %v7512_v50, %v5092_v9  ;;  %v4907_v27 = vmax.f32 %v14015_v46, %v4431_v39 }
 0x634   :  { %v7515_v34 = vpop.permute.xlu1 %7514  ;;  %v4651_v48 = vpop.permute.xlu0 %4650  ;;  %v5739_v8 = vmax.f32 %v4905_v20, %v5264_v42 }
 0x635   :  { %v4816_v62 = vsel %vm4788_vm11, %v4258_v33, %v4651_v48  ;;  %v7516_v39 = vunpack.i.l.bf16 %v7515_v34 }
 0x636   :  { %3226 = vrot.lane.b32.xlu1 %v18783_v54, %s7939_s28  ;;  %3579 = vrot.lane.b32.xlu0 %v18782_v16, %s7940_s7  ;;  %v5880_v31 = vsel %vm5826_vm1, %v4905_v20, %v5739_v8  ;;  %v4908_v7 = vmax.f32 %v14070_v38, %v4816_v62  ;;  %v18785_v8 = vld [vmem:[#allocation136_spill] sm:$0xff]  ;;  %v5741_v20 = vmax.f32 %v4907_v27, %v5265_v37 }
 0x637   :  { %v14461_v56 = vpop.f32.mrf.mxu0  ;;  %6324 = vmatmul.mubr.f32.gmra.mxu0 %v5880_v31 }
 0x638   :  { %v5487_v45 = vpop.permute.xlu1 %5486  ;;  %v5485_v33 = vpop.permute.xlu0 %5484  ;;  %v5882_v50 = vsel %vm5826_vm1, %v4907_v27, %v5741_v20 }
 0x639   :  { %v5650_v47 = vsel %vm5622_vm12, %v5092_v9, %v5485_v33  ;;  %v6247_v42 = vpop.f32.mrf.mxu0  ;;  %v18786_v9 = vld [vmem:[#allocation137_spill] sm:$0xff] }
 0x63a   :  { %v5742_v48 = vmax.f32 %v4908_v7, %v5650_v47  ;;  %3228 = vrot.lane.b32.xlu1 %v18784_v60, %s7939_s28  ;;  %3222 = vrot.lane.b32.xlu0 %v18785_v8, %s7939_s28  ;;  %v18787_v47 = vld [vmem:[#allocation148_spill] sm:$0xff]  ;;  %v4432_v42 = vsel %vm4403_vm13, %v7516_v39, %v4262_v1 }
 0x63c   :  { %v4266_v31 = vpop.permute.xlu1 %4265  ;;  %v4653_v10 = vpop.permute.xlu0 %4652  ;;  %v5883_v46 = vsel %vm5827_vm14, %v4908_v7, %v5742_v48 }
 0x63d   :  { %v4817_v38 = vsel %vm4788_vm11, %v4262_v1, %v4653_v10  ;;  %7115 = vmatprep.mubr.msk.f32.mxu0 %vm159_vm0, %v5883_v46 }
 0x63e   :  { %3585 = vrot.lane.b32.xlu1 %v18784_v60, %s7940_s7  ;;  %3224 = vrot.lane.b32.xlu0 %v18786_v9, %s7939_s28  ;;  %v4910_v62 = vmax.f32 %v14109_v5, %v4817_v38  ;;  %v7517_v5 = vunpack.i.h.bf16 %v7515_v34  ;;  %v18789_v34 = vld [vmem:[#allocation145_spill] sm:$0xff] }
 0x63f   :  { %6329 = vmatmul.mubr.f32.gmra.mxu0 %v5882_v50  ;;  %v4909_v50 = vmax.f32 %v14117_v28, %v4432_v42 }
 0x640   :  { %v5100_v37 = vpop.permute.xlu1 %5099  ;;  %v5096_v33 = vpop.permute.xlu0 %5095  ;;  %v4433_v1 = vsel %vm4403_vm13, %v7517_v5, %v4266_v31 }
 0x641   :  { %v5651_v7 = vsel %vm5622_vm12, %v5096_v33, %v5487_v45  ;;  %v18788_v45 = vld [vmem:[#allocation144_spill] sm:$0xff]  ;;  %v4911_v42 = vmax.f32 %v14104_v24, %v4433_v1 }
 0x642   :  { %v5744_v10 = vmax.f32 %v4910_v62, %v5651_v7  ;;  %3234 = vrot.lane.b32.xlu1 %v18787_v47, %s7939_s28  ;;  %3583 = vrot.lane.b32.xlu0 %v18786_v9, %s7940_s7 }
 0x644   :  { %v4270_v48 = vpop.permute.xlu1 %4269  ;;  %v7520_v46 = vpop.permute.xlu0 %7519  ;;  %v5885_v27 = vsel %vm5827_vm14, %v4910_v62, %v5744_v10 }
 0x645   :  { %v7521_v20 = vunpack.i.l.bf16 %v7520_v46  ;;  %7116 = vmatprep.mubr.msk.f32.mxu0 %vm159_vm0, %v5885_v27  ;;  %v7522_v38 = vunpack.i.h.bf16 %v7520_v46 }
 0x646   :  { %3230 = vrot.lane.b32.xlu0 %v18788_v45, %s7939_s28 }
 0x647   :  { %v14494_v7 = vpop.f32.mrf.mxu0  ;;  %v5266_v47 = vsel %vm5237_vm15, %v7521_v20, %v5096_v33  ;;  %v5267_v28 = vsel %vm5237_vm15, %v7522_v38, %v5100_v37 }
 0x648   :  { %v7525_v39 = vpop.permute.xlu1 %7524  ;;  %v4655_v60 = vpop.permute.xlu0 %4654  ;;  %v5743_v25 = vmax.f32 %v4909_v50, %v5266_v47  ;;  %v5745_v5 = vmax.f32 %v4911_v42, %v5267_v28 }
 0x649   :  { %v4818_v62 = vsel %vm4788_vm11, %v4266_v31, %v4655_v60  ;;  %v6252_v10 = vpop.f32.mrf.mxu0 }
 0x64a   :  { %3232 = vrot.lane.b32.xlu0 %v18789_v34, %s7939_s28  ;;  %v5884_v46 = vsel %vm5826_vm1, %v4909_v50, %v5743_v25  ;;  %v4912_v33 = vmax.f32 %v14167_v63, %v4818_v62  ;;  %v5886_v24 = vsel %vm5826_vm1, %v4911_v42, %v5745_v5  ;;  %v7526_v63 = vunpack.i.l.bf16 %v7525_v39 }
 0x64b   :  { %6334 = vmatmul.mubr.f32.gmra.mxu0 %v5884_v46  ;;  %v7527_v5 = vunpack.i.h.bf16 %v7525_v39 }
 0x64c   :  { %v5491_v27 = vpop.permute.xlu1 %5490  ;;  %v5489_v20 = vpop.permute.xlu0 %5488 }
 0x64d   :  { %v5652_v47 = vsel %vm5622_vm12, %v5100_v37, %v5489_v20 }
 0x64e   :  { %v5746_v60 = vmax.f32 %v4912_v33, %v5652_v47  ;;  %3587 = vrot.lane.b32.xlu0 %v18789_v34, %s7940_s7 }
 0x650   :  { %v4274_v31 = vpop.permute.xlu1 %4273  ;;  %v4657_v10 = vpop.permute.xlu0 %4656  ;;  %v5887_v25 = vsel %vm5827_vm14, %v4912_v33, %v5746_v60  ;;  %v4434_v33 = vsel %vm4403_vm13, %v7526_v63, %v4270_v48 }
 0x651   :  { %v4819_v38 = vsel %vm4788_vm11, %v4270_v48, %v4657_v10  ;;  %7117 = vmatprep.mubr.msk.f32.mxu0 %vm159_vm0, %v5887_v25  ;;  %v4913_v25 = vmax.f32 %v14218_v21, %v4434_v33 }
 0x652   :  { %6339 = vmatmul.mubr.f32.gmra.mxu0 %v5886_v24  ;;  %v4914_v37 = vmax.f32 %v14208_v32, %v4819_v38  ;;  %v4435_v38 = vsel %vm4403_vm13, %v7527_v5, %v4274_v31 }
 0x654   :  { %v5108_v50 = vpop.permute.xlu1 %5107  ;;  %v5104_v1 = vpop.permute.xlu0 %5103 }
 0x655   :  { %v5653_v62 = vsel %vm5622_vm12, %v5104_v1, %v5491_v27 }
 0x656   :  { %v5748_v46 = vmax.f32 %v4914_v37, %v5653_v62 }
 0x657   :  { %v14517_v28 = vpop.f32.mrf.mxu0 }
 0x658   :  { %v3173_v20 = vpop.permute.xlu1 %3172  ;;  %v7530_v47 = vpop.permute.xlu0 %7529  ;;  %v5889_v60 = vsel %vm5827_vm14, %v4914_v37, %v5748_v46 }
 0x659   :  { %v7531_v10 = vunpack.i.l.bf16 %v7530_v47  ;;  %v6257_v42 = vpop.f32.mrf.mxu0  ;;  %7118 = vmatprep.mubr.msk.f32.mxu0 %vm159_vm0, %v5889_v60  ;;  %v7532_v32 = vunpack.i.h.bf16 %v7530_v47  ;;  %v4915_v60 = vmax.f32 %v14202_v29, %v4435_v38  ;;  %v18791_v47 = vld [vmem:[#allocation192_spill] sm:$0xff] }
 0x65a   :  { %v18792_v42 = vld [vmem:[#allocation266_spill] sm:$0xff] }
 0x65b   :  { %v5268_v27 = vsel %vm5237_vm15, %v7531_v10, %v5104_v1  ;;  %v5269_v46 = vsel %vm5237_vm15, %v7532_v32, %v5108_v50  ;;  %v18790_v1 = vld [vmem:[#allocation193_spill] sm:$0xff] }
 0x65c   :  { %v3558_v24 = vpop.permute.xlu1 %3557  ;;  %v4659_v62 = vpop.permute.xlu0 %4658  ;;  %v5747_v48 = vmax.f32 %v4913_v25, %v5268_v27  ;;  %v2499_v10 = vsel %vm2466_vm4, %v18791_v47, %v18790_v1 }
 0x65d   :  { %v4820_v63 = vsel %vm4788_vm11, %v4274_v31, %v4659_v62  ;;  %v2884_v31 = vsel %vm2851_vm8, %v18790_v1, %v18792_v42  ;;  %v2980_v32 = vmax.f32 %v18748_v52, %v2499_v10 }
 0x65e   :  { %v5888_v37 = vsel %vm5826_vm1, %v4913_v25, %v5747_v48  ;;  %v4916_v39 = vmax.f32 %v14254_v36, %v4820_v63  ;;  %v5749_v25 = vmax.f32 %v4915_v60, %v5269_v46  ;;  %v2981_v29 = vmax.f32 %v18754_v6, %v2884_v31  ;;  %v18793_v48 = vld [vmem:[#allocation197_spill] sm:$0xff]  ;;  %v18794_v63 = vld [vmem:[#allocation196_spill] sm:$0xff] }
 0x65f   :  { %6344 = vmatmul.mubr.f32.gmra.mxu0 %v5888_v37  ;;  %v2500_v37 = vsel %vm2466_vm4, %v18794_v63, %v18793_v48 }
 0x660   :  { %v3179_v21 = vpop.permute.xlu1 %3178  ;;  %v5493_v33 = vpop.permute.xlu0 %5492  ;;  %v5890_v52 = vsel %vm5826_vm1, %v4915_v60, %v5749_v25 }
 0x661   :  { %v5654_v5 = vsel %vm5622_vm12, %v5108_v50, %v5493_v33 }
 0x662   :  { %v5750_v27 = vmax.f32 %v4916_v39, %v5654_v5 }
 0x664   :  { %v3181_v38 = vpop.permute.xlu1 %3180  ;;  %v3175_v36 = vpop.permute.xlu0 %3174  ;;  %v5891_v62 = vsel %vm5827_vm14, %v4916_v39, %v5750_v27  ;;  %v2982_v39 = vmax.f32 %v18756_v59, %v2500_v37  ;;  %v18798_v27 = vld [vmem:[#allocation149_spill] sm:$0xff] }
 0x665   :  { %v3333_v47 = vsel %vm3300_vm5, %v3173_v20, %v3175_v36  ;;  %v3718_v1 = vsel %vm3685_vm9, %v3175_v36, %v3558_v24  ;;  %7119 = vmatprep.mubr.msk.f32.mxu0 %vm159_vm0, %v5891_v62 }
 0x666   :  { %v3814_v50 = vmax.f32 %v2980_v32, %v3333_v47  ;;  %v3815_v6 = vmax.f32 %v2981_v29, %v3718_v1  ;;  %6349 = vmatmul.mubr.f32.gmra.mxu0 %v5890_v52  ;;  %v18800_v1 = vld [vmem:[#allocation152_spill] sm:$0xff] }
 0x667   :  { %v14551_v46 = vpop.f32.mrf.mxu0 }
 0x668   :  { %v3562_v33 = vpop.permute.xlu1 %3561  ;;  %v3177_v10 = vpop.permute.xlu0 %3176  ;;  %v14556_v42 = vsel %vm3890_vm10, %v2981_v29, %v3815_v6  ;;  %v14560_v20 = vsel %vm3889_vm6, %v2980_v32, %v3814_v50  ;;  %v18799_v29 = vld [vmem:[#allocation267_spill] sm:$0xff] }
 0x669   :  { %18795 = vst [vmem:[#allocation127_spill] sm:$0xff] %v14556_v42  ;;  %18796 = vst [vmem:[#allocation126_spill] sm:$0xff] %v14560_v20  ;;  %v3334_v24 = vsel %vm3300_vm5, %v3177_v10, %v3179_v21  ;;  %v6262_v60 = vpop.f32.mrf.mxu0  ;;  %4277 = vrot.lane.b32.xlu1 %v14556_v42, %s7944_s18  ;;  %4660 = vrot.lane.b32.xlu0 %v14560_v20, %s7941_s6  ;;  %v2885_v36 = vsel %vm2851_vm8, %v18793_v48, %v18799_v29 }
 0x66a   :  { %v3816_v59 = vmax.f32 %v2982_v39, %v3334_v24  ;;  %v2983_v37 = vmax.f32 %v18751_v40, %v2885_v36  ;;  %v18802_v24 = vld [vmem:[#allocation153_spill] sm:$0xff] }
 0x66b   :  { %v18803_v60 = vld [vmem:[#allocation201_spill] sm:$0xff] }
 0x66c   :  { %v14569_v31 = vsel %vm3889_vm6, %v2982_v39, %v3816_v59  ;;  %v3560_v5 = vpop.permute.xlu0 %3559  ;;  %v3187_v25 = vpop.permute.xlu1 %3186  ;;  %v18804_v59 = vld [vmem:[#allocation200_spill] sm:$0xff] }
 0x66d   :  { %18797 = vst [vmem:[#allocation81_spill] sm:$0xff] %v14569_v31  ;;  %3236 = vrot.lane.b32.xlu0 %v18798_v27, %s7939_s28  ;;  %v7533_v32 = vpack.i.bf16 %v14569_v31, %v14560_v20  ;;  %v3719_v63 = vsel %vm3685_vm9, %v3179_v21, %v3560_v5  ;;  %v2501_v5 = vsel %vm2466_vm4, %v18804_v59, %v18803_v60 }
 0x66e   :  { %v3817_v52 = vmax.f32 %v2983_v37, %v3719_v63  ;;  %v18805_v63 = vld [vmem:[#allocation204_spill] sm:$0xff]  ;;  %v2984_v59 = vmax.f32 %v18755_v43, %v2501_v5 }
 0x66f   :  { %7534 = vrot.lane.b32.xlu1 %v7533_v32, %s7944_s18 }
 0x670   :  { %v3183_v62 = vpop.permute.xlu0 %3182  ;;  %v14583_v47 = vpop.permute.xlu1 %3188  ;;  %v14595_v6 = vsel %vm3890_vm10, %v2983_v37, %v3817_v52  ;;  %v18806_v37 = vld [vmem:[#allocation203_spill] sm:$0xff]  ;;  %v18807_v52 = vld [vmem:[#allocation268_spill] sm:$0xff] }
 0x671   :  { %3589 = vrot.lane.b32.xlu0 %v18798_v27, %s7940_s7  ;;  %18801 = vst [vmem:[#allocation123_spill] sm:$0xff] %v14595_v6  ;;  %v3335_v13 = vsel %vm3300_vm5, %v3181_v38, %v3183_v62  ;;  %v3720_v51 = vsel %vm3685_vm9, %v3183_v62, %v3562_v33 }
 0x672   :  { %v3818_v27 = vmax.f32 %v2984_v59, %v3335_v13 }
 0x673   :  { %3238 = vrot.lane.b32.xlu1 %v18800_v1, %s7939_s28 }
 0x674   :  { %v3185_v50 = vpop.permute.xlu0 %3184  ;;  %v14597_v40 = vpop.permute.xlu1 %3565 }
 0x675   :  { %5494 = vrot.lane.b32.xlu0 %v14560_v20, %s7942_s17  ;;  %v3336_v20 = vsel %vm3300_vm5, %v3185_v50, %v3187_v25 }
 0x677   :  { %v14589_v48 = vpop.f32.mrf.mxu0  ;;  %5111 = vrot.lane.b32.xlu1 %v14556_v42, %s7945_s21  ;;  %v18808_v42 = vld [vmem:[#allocation156_spill] sm:$0xff] }
 0x678   :  { %v3564_v21 = vpop.permute.xlu0 %3563  ;;  %v14609_v29 = vpop.permute.xlu1 %3194 }
 0x679   :  { %v6267_v39 = vpop.f32.mrf.mxu0  ;;  %4281 = vrot.lane.b32.xlu0 %v14595_v6, %s7944_s18 }
 0x67a   :  { %v2886_v39 = vsel %vm2851_vm8, %v18803_v60, %v18807_v52  ;;  %v18813_v52 = vld [vmem:[#allocation269_spill] sm:$0xff] }
 0x67b   :  { %7539 = vrot.lane.b32.xlu1 %v7533_v32, %s7945_s21  ;;  %v2502_v32 = vsel %vm2466_vm4, %v18806_v37, %v18805_v63  ;;  %v2985_v1 = vmax.f32 %v18762_v15, %v2886_v39  ;;  %v14645_v15 = vsel %vm3889_vm6, %v2984_v59, %v3818_v27  ;;  %v18812_v27 = vld [vmem:[#allocation157_spill] sm:$0xff]  ;;  %v2887_v39 = vsel %vm2851_vm8, %v18805_v63, %v18813_v52 }
 0x67c   :  { %v14602_v10 = vpop.permute.xlu0 %3190  ;;  %v2986_v37 = vmax.f32 %v18764_v61, %v2502_v32  ;;  %v14633_v38 = vpop.permute.xlu1 %3196  ;;  %18809 = vst [vmem:[#allocation122_spill] sm:$0xff] %v14645_v15  ;;  %v3721_v59 = vsel %vm3685_vm9, %v3187_v25, %v3564_v21 }
 0x67d   :  { %3240 = vrot.lane.b32.xlu0 %v18802_v24, %s7939_s28  ;;  %v3819_v43 = vmax.f32 %v2985_v1, %v3720_v51 }
 0x67e   :  { %v3820_v5 = vmax.f32 %v2986_v37, %v3336_v20 }
 0x67f   :  { %4662 = vrot.lane.b32.xlu1 %v14569_v31, %s7941_s6  ;;  %v14655_v51 = vsel %vm3890_vm10, %v2985_v1, %v3819_v43  ;;  %v2987_v43 = vmax.f32 %v18759_v12, %v2887_v39 }
 0x680   :  { %v14613_v36 = vpop.permute.xlu0 %3192  ;;  %v14651_v61 = vsel %vm3889_vm6, %v2986_v37, %v3820_v5  ;;  %18811 = vst [vmem:[#allocation300_spill] sm:$0xff] %v14655_v51  ;;  %v14657_v20 = vpop.permute.xlu1 %3569  ;;  %v18814_v5 = vld [vmem:[#allocation160_spill] sm:$0xff] }
 0x681   :  { %3591 = vrot.lane.b32.xlu0 %v18802_v24, %s7940_s7  ;;  %18810 = vst [vmem:[#allocation42_spill] sm:$0xff] %v14651_v61  ;;  %v7543_v32 = vpack.i.bf16 %v14651_v61, %v14645_v15 }
 0x683   :  { %3242 = vrot.lane.b32.xlu1 %v18808_v42, %s7939_s28  ;;  %v18823_v42 = vld [vmem:[#allocation270_spill] sm:$0xff] }
 0x684   :  { %v14631_v60 = vpop.permute.xlu0 %3567  ;;  %v14674_v37 = vpop.permute.xlu1 %3202 }
 0x685   :  { %5496 = vrot.lane.b32.xlu0 %v14569_v31, %s7942_s17  ;;  %v3821_v31 = vmax.f32 %v2987_v43, %v3721_v59 }
 0x687   :  { %v14637_v33 = vpop.f32.mrf.mxu0  ;;  %5115 = vrot.lane.b32.xlu1 %v14595_v6, %s7945_s21  ;;  %v14693_v12 = vsel %vm3890_vm10, %v2987_v43, %v3821_v31  ;;  %v18820_v6 = vld [vmem:[#allocation28_spill] sm:$0xff]  ;;  %v18821_v43 = vld [vmem:[#allocation46_spill] sm:$0xff] }
 0x688   :  { %v14641_v62 = vpop.permute.xlu0 %3198  ;;  %v14687_v25 = vpop.permute.xlu1 %3204  ;;  %18816 = vst [vmem:[#allocation306_spill] sm:$0xff] %v14693_v12 }
 0x689   :  { %v6272_v13 = vpop.f32.mrf.mxu0  ;;  %4664 = vrot.lane.b32.xlu0 %v14645_v15, %s7941_s6 }
 0x68b   :  { %4285 = vrot.lane.b32.xlu1 %v14655_v51, %s7944_s18 }
 0x68c   :  { %v14661_v50 = vpop.permute.xlu0 %3200  ;;  %v14702_v59 = vpop.permute.xlu1 %3573 }
 0x68d   :  { %3244 = vrot.lane.b32.xlu0 %v18812_v27, %s7939_s28 }
 0x68f   :  { %7544 = vrot.lane.b32.xlu1 %v7543_v32, %s7944_s18 }
 0x690   :  { %v14671_v1 = vpop.permute.xlu0 %3571 }
 0x691   :  { %3593 = vrot.lane.b32.xlu0 %v18812_v27, %s7940_s7 }
 0x693   :  { %3246 = vrot.lane.b32.xlu1 %v18814_v5, %s7939_s28  ;;  %v14681_v13 = vpop.f32.mrf.mxu0  ;;  %v18822_v5 = vld [vmem:[#allocation32_spill] sm:$0xff] }
 0x694   :  { %18815 = vst [vmem:[#allocation70_spill] sm:$0xff] %v14681_v13  ;;  %v14683_v63 = vpop.permute.xlu0 %3206  ;;  %v2504_v27 = vsel %vm2466_vm4, %v18822_v5, %v18821_v43  ;;  %v3722_v13 = vsel %vm3685_vm9, %v14602_v10, %v14597_v40  ;;  %v3338_v5 = vsel %vm3300_vm5, %v14613_v36, %v14609_v29 }
 0x695   :  { %5498 = vrot.lane.b32.xlu0 %v14645_v15, %s7942_s17  ;;  %v6277_v52 = vpop.f32.mrf.mxu0  ;;  %v18818_v15 = vld [vmem:[#allocation161_spill] sm:$0xff] }
 0x697   :  { %5119 = vrot.lane.b32.xlu1 %v14655_v51, %s7945_s21  ;;  %v18819_v51 = vld [vmem:[#allocation29_spill] sm:$0xff] }
 0x698   :  { %v14697_v21 = vpop.permute.xlu0 %3208  ;;  %v2503_v31 = vsel %vm2466_vm4, %v18820_v6, %v18819_v51 }
 0x699   :  { %4289 = vrot.lane.b32.xlu0 %v14693_v12, %s7944_s18  ;;  %v2988_v6 = vmax.f32 %v18763_v57, %v2503_v31 }
 0x69b   :  { %v14699_v39 = vpop.f32.mrf.mxu0  ;;  %7549 = vrot.lane.b32.xlu1 %v7543_v32, %s7945_s21  ;;  %v2888_v32 = vsel %vm2851_vm8, %v18819_v51, %v18823_v42  ;;  %v14731_v42 = vpop.permute.xlu1 %3210  ;;  %v18824_v51 = vld [vmem:[#allocation164_spill] sm:$0xff] }
 0x69c   :  { %18817 = vst [vmem:[#allocation65_spill] sm:$0xff] %v14699_v39  ;;  %v14720_v24 = vpop.permute.xlu0 %3575  ;;  %v2989_v45 = vmax.f32 %v18767_v4, %v2888_v32 }
 0x69d   :  { %v6282_v52 = vpop.f32.mrf.mxu0  ;;  %3248 = vrot.lane.b32.xlu0 %v18818_v15, %s7939_s28 }
 0x69e   :  { %v3337_v52 = vsel %vm3300_vm5, %v14583_v47, %v14602_v10  ;;  %v2990_v47 = vmax.f32 %v18770_v41, %v2504_v27  ;;  %v3823_v57 = vmax.f32 %v2989_v45, %v3722_v13 }
 0x69f   :  { %4666 = vrot.lane.b32.xlu1 %v14651_v61, %s7941_s6  ;;  %v14749_v41 = vpop.permute.xlu1 %3212 }
 0x6a0   :  { %v3824_v31 = vmax.f32 %v2990_v47, %v3338_v5  ;;  %v14739_v40 = vpop.permute.xlu0 %3214  ;;  %v14759_v13 = vsel %vm3890_vm10, %v2989_v45, %v3823_v57  ;;  %v3723_v45 = vsel %vm3685_vm9, %v14609_v29, %v14631_v60 }
 0x6a1   :  { %3595 = vrot.lane.b32.xlu0 %v18818_v15, %s7940_s7  ;;  %v3822_v15 = vmax.f32 %v2988_v6, %v3337_v52  ;;  %18828 = vst [vmem:[#allocation54_spill] sm:$0xff] %v14759_v13 }
 0x6a2   :  { %v14755_v27 = vsel %vm3889_vm6, %v2990_v47, %v3824_v31 }
 0x6a3   :  { %3250 = vrot.lane.b32.xlu1 %v18824_v51, %s7939_s28  ;;  %v14747_v36 = vsel %vm3889_vm6, %v2988_v6, %v3822_v15  ;;  %18827 = vst [vmem:[#allocation95_spill] sm:$0xff] %v14755_v27  ;;  %v18829_v15 = vld [vmem:[#allocation165_spill] sm:$0xff]  ;;  %v18830_v6 = vld [vmem:[#allocation271_spill] sm:$0xff]  ;;  %v14772_v47 = vpop.permute.xlu1 %3577  ;;  %v18839_v51 = vld [vmem:[#allocation72_spill] sm:$0xff] }
 0x6a4   :  { %18826 = vst [vmem:[#allocation299_spill] sm:$0xff] %v14747_v36  ;;  %v14763_v32 = vpop.permute.xlu0 %3216  ;;  %v7553_v52 = vpack.i.bf16 %v14755_v27, %v14747_v36  ;;  %v2889_v5 = vsel %vm2851_vm8, %v18821_v43, %v18830_v6  ;;  %v18832_v43 = vld [vmem:[#allocation168_spill] sm:$0xff] }
 0x6a5   :  { %5500 = vrot.lane.b32.xlu0 %v14651_v61, %s7942_s17 }
 0x6a7   :  { %5123 = vrot.lane.b32.xlu1 %v14693_v12, %s7945_s21  ;;  %v14743_v10 = vpop.f32.mrf.mxu0  ;;  %v14787_v12 = vpop.permute.xlu1 %3218 }
 0x6a8   :  { %18825 = vst [vmem:[#allocation33_spill] sm:$0xff] %v14743_v10  ;;  %v14783_v61 = vpop.permute.xlu0 %3579  ;;  %v3724_v10 = vsel %vm3685_vm9, %v14641_v62, %v14657_v20 }
 0x6a9   :  { %4668 = vrot.lane.b32.xlu0 %v14747_v36, %s7941_s6  ;;  %v6287_v4 = vpop.f32.mrf.mxu0 }
 0x6aa   :  { %v2991_v4 = vmax.f32 %v18765_v49, %v2889_v5 }
 0x6ab   :  { %4293 = vrot.lane.b32.xlu1 %v14759_v13, %s7944_s18  ;;  %v14801_v49 = vpop.permute.xlu1 %3220 }
 0x6ac   :  { %v3825_v6 = vmax.f32 %v2991_v4, %v3723_v45  ;;  %v14797_v60 = vpop.permute.xlu0 %3222  ;;  %v18835_v45 = vld [vmem:[#allocation169_spill] sm:$0xff] }
 0x6ad   :  { %3252 = vrot.lane.b32.xlu0 %v18829_v15, %s7939_s28 }
 0x6ae   :  { %v14795_v29 = vsel %vm3890_vm10, %v2991_v4, %v3825_v6 }
 0x6af   :  { %v14774_v31 = vpop.f32.mrf.mxu0  ;;  %7554 = vrot.lane.b32.xlu1 %v7553_v52, %s7944_s18  ;;  %18833 = vst [vmem:[#allocation252_spill] sm:$0xff] %v14795_v29  ;;  %v14824_v39 = vpop.permute.xlu1 %3581 }
 0x6b0   :  { %18831 = vst [vmem:[#allocation11_spill] sm:$0xff] %v14774_v31  ;;  %v14811_v6 = vpop.permute.xlu0 %3224 }
 0x6b1   :  { %v6292_v57 = vpop.f32.mrf.mxu0  ;;  %3597 = vrot.lane.b32.xlu0 %v18829_v15, %s7940_s7 }
 0x6b3   :  { %3254 = vrot.lane.b32.xlu1 %v18832_v43, %s7939_s28  ;;  %v18838_v43 = vld [vmem:[#allocation3_spill] sm:$0xff] }
 0x6b4   :  { %v2506_v15 = vsel %vm2466_vm4, %v18839_v51, %v18838_v43  ;;  %v3340_v51 = vsel %vm3300_vm5, %v14661_v50, %v14674_v37 }
 0x6b5   :  { %5502 = vrot.lane.b32.xlu0 %v14747_v36, %s7942_s17  ;;  %v18836_v36 = vld [vmem:[#allocation34_spill] sm:$0xff] }
 0x6b7   :  { %5127 = vrot.lane.b32.xlu1 %v14759_v13, %s7945_s21  ;;  %v18837_v13 = vld [vmem:[#allocation56_spill] sm:$0xff] }
 0x6b8   :  { %v2505_v4 = vsel %vm2466_vm4, %v18837_v13, %v18836_v36 }
 0x6b9   :  { %4297 = vrot.lane.b32.xlu0 %v14795_v29, %s7944_s18  ;;  %v2992_v13 = vmax.f32 %v18768_v3, %v2505_v4  ;;  %v14845_v4 = vpop.permute.xlu1 %3226 }
 0x6bb   :  { %7559 = vrot.lane.b32.xlu1 %v7553_v52, %s7945_s21  ;;  %v14804_v5 = vpop.f32.mrf.mxu0  ;;  %v18840_v52 = vld [vmem:[#allocation272_spill] sm:$0xff] }
 0x6bc   :  { %18834 = vst [vmem:[#allocation82_spill] sm:$0xff] %v14804_v5  ;;  %v2890_v34 = vsel %vm2851_vm8, %v18836_v36, %v18840_v52  ;;  %v18841_v52 = vld [vmem:[#allocation172_spill] sm:$0xff]  ;;  %v14841_v5 = vpop.permute.xlu0 %3583 }
 0x6bd   :  { %3256 = vrot.lane.b32.xlu0 %v18835_v45, %s7939_s28  ;;  %v6297_v57 = vpop.f32.mrf.mxu0  ;;  %v2993_v31 = vmax.f32 %v18773_v18, %v2890_v34  ;;  %v5957_v18 = vld [vmem:[%s17142_s3 + $0x8] sm:$0xff] }
 0x6be   :  { %v3339_v57 = vsel %vm3300_vm5, %v14633_v38, %v14641_v62  ;;  %v2994_v38 = vmax.f32 %v18774_v44, %v2506_v15  ;;  %6498 = vmatprep.mubr.f32.mxu1 %v5957_v18  ;;  %6981 = vmatprep.mubr.f32.mxu0 %v5957_v18  ;;  %v14870_v15 = vpop.permute.xlu1 %3228 }
 0x6bf   :  { %4670 = vrot.lane.b32.xlu1 %v14755_v27, %s7941_s6  ;;  %v3827_v62 = vmax.f32 %v2993_v31, %v3724_v10 }
 0x6c0   :  { %v3828_v20 = vmax.f32 %v2994_v38, %v3340_v51  ;;  %v14866_v10 = vpop.permute.xlu0 %3230 }
 0x6c1   :  { %3599 = vrot.lane.b32.xlu0 %v18835_v45, %s7940_s7  ;;  %v3826_v45 = vmax.f32 %v2992_v13, %v3339_v57  ;;  %v14864_v34 = vsel %vm3890_vm10, %v2993_v31, %v3827_v62 }
 0x6c2   :  { %v14860_v44 = vsel %vm3889_vm6, %v2994_v38, %v3828_v20  ;;  %18844 = vst [vmem:[#allocation68_spill] sm:$0xff] %v14864_v34  ;;  %v3725_v38 = vsel %vm3685_vm9, %v14674_v37, %v14671_v1  ;;  %v14890_v18 = vpop.permute.xlu1 %3585 }
 0x6c3   :  { %v14835_v36 = vpop.f32.mrf.mxu0  ;;  %3258 = vrot.lane.b32.xlu1 %v18841_v52, %s7939_s28  ;;  %v14851_v50 = vsel %vm3889_vm6, %v2992_v13, %v3826_v45  ;;  %18843 = vst [vmem:[#allocation134_spill] sm:$0xff] %v14860_v44  ;;  %v18845_v45 = vld [vmem:[#allocation5_spill] sm:$0xff] }
 0x6c4   :  { %18842 = vst [vmem:[#allocation135_spill] sm:$0xff] %v14851_v50  ;;  %v7563_v57 = vpack.i.bf16 %v14860_v44, %v14851_v50  ;;  %v18846_v13 = vld [vmem:[#allocation273_spill] sm:$0xff] }
 0x6c5   :  { %v6302_v3 = vpop.f32.mrf.mxu0  ;;  %5504 = vrot.lane.b32.xlu0 %v14755_v27, %s7942_s17  ;;  %v2891_v51 = vsel %vm2851_vm8, %v18838_v43, %v18846_v13  ;;  %v18847_v43 = vld [vmem:[#allocation175_spill] sm:$0xff]  ;;  %v18856_v27 = vld [vmem:[#allocation206_spill] sm:$0xff] }
 0x6c6   :  { %v14885_v3 = vpop.permute.xlu0 %3232  ;;  %v2995_v20 = vmax.f32 %v18771_v22, %v2891_v51  ;;  %v14906_v22 = vpop.permute.xlu1 %3234 }
 0x6c7   :  { %5131 = vrot.lane.b32.xlu1 %v14795_v29, %s7945_s21  ;;  %v18857_v29 = vld [vmem:[#allocation274_spill] sm:$0xff] }
 0x6c8   :  { %v3829_v13 = vmax.f32 %v2995_v20, %v3725_v38 }
 0x6c9   :  { %4672 = vrot.lane.b32.xlu0 %v14851_v50, %s7941_s6 }
 0x6ca   :  { %v14896_v52 = vpop.permute.xlu0 %3587  ;;  %v14904_v37 = vsel %vm3890_vm10, %v2995_v20, %v3829_v13 }
 0x6cb   :  { %4301 = vrot.lane.b32.xlu1 %v14864_v34, %s7944_s18  ;;  %18848 = vst [vmem:[#allocation131_spill] sm:$0xff] %v14904_v37 }
 0x6cd   :  { %3260 = vrot.lane.b32.xlu0 %v18845_v45, %s7939_s28 }
 0x6cf   :  { %7564 = vrot.lane.b32.xlu1 %v7563_v57, %s7944_s18  ;;  %v14880_v31 = vpop.f32.mrf.mxu0 }
 0x6d1   :  { %3601 = vrot.lane.b32.xlu0 %v18845_v45, %s7940_s7  ;;  %v6307_v62 = vpop.f32.mrf.mxu0 }
 0x6d3   :  { %3262 = vrot.lane.b32.xlu1 %v18847_v43, %s7939_s28  ;;  %v18851_v43 = vld [vmem:[#allocation22_spill] sm:$0xff] }
 0x6d5   :  { %5506 = vrot.lane.b32.xlu0 %v14851_v50, %s7942_s17  ;;  %v18852_v50 = vld [vmem:[#allocation205_spill] sm:$0xff] }
 0x6d6   :  { %v2892_v45 = vsel %vm2851_vm8, %v18852_v50, %v18857_v29  ;;  %v18859_v29 = vld [vmem:[#allocation178_spill] sm:$0xff] }
 0x6d7   :  { %v14898_v1 = vpop.f32.mrf.mxu0  ;;  %5135 = vrot.lane.b32.xlu1 %v14864_v34, %s7945_s21  ;;  %v18853_v34 = vld [vmem:[#allocation74_spill] sm:$0xff] }
 0x6d8   :  { %v2507_v20 = vsel %vm2466_vm4, %v18853_v34, %v18852_v50 }
 0x6d9   :  { %v6312_v51 = vpop.f32.mrf.mxu0  ;;  %4305 = vrot.lane.b32.xlu0 %v14904_v37, %s7944_s18  ;;  %v2996_v34 = vmax.f32 %v18772_v0, %v2507_v20 }
 0x6da   :  { %v18855_v51 = vld [vmem:[#allocation207_spill] sm:$0xff] }
 0x6db   :  { %7569 = vrot.lane.b32.xlu1 %v7563_v57, %s7945_s21  ;;  %v14911_v38 = vpop.permute.xlu0 %4660  ;;  %v14913_v62 = vpop.permute.xlu1 %4277  ;;  %v2508_v57 = vsel %vm2466_vm4, %v18856_v27, %v18855_v51  ;;  %v3342_v27 = vsel %vm3300_vm5, %v14697_v21, %v14731_v42 }
 0x6dc   :  { %18849 = vst [vmem:[#allocation130_spill] sm:$0xff] %v14911_v38  ;;  %18850 = vst [vmem:[#allocation304_spill] sm:$0xff] %v14913_v62  ;;  %v3341_v62 = vsel %vm3300_vm5, %v14687_v25, %v14683_v63 }
 0x6dd   :  { %3264 = vrot.lane.b32.xlu0 %v18851_v43, %s7939_s28  ;;  %v3830_v0 = vmax.f32 %v2996_v34, %v3341_v62 }
 0x6df   :  { %4674 = vrot.lane.b32.xlu1 %v14860_v44, %s7941_s6  ;;  %v14922_v13 = vpop.permute.xlu0 %3236 }
 0x6e0   :  { %18854 = vst [vmem:[#allocation98_spill] sm:$0xff] %v14922_v13  ;;  %v3726_v13 = vsel %vm3685_vm9, %v14683_v63, %v14702_v59 }
 0x6e1   :  { %v14933_v38 = vpop.permute.xlu1 %7534  ;;  %3603 = vrot.lane.b32.xlu0 %v18851_v43, %s7940_s7  ;;  %v2997_v43 = vmax.f32 %v18777_v23, %v2892_v45 }
 0x6e2   :  { %18858 = vst [vmem:[#allocation71_spill] sm:$0xff] %v14933_v38  ;;  %v2998_v38 = vmax.f32 %v18778_v14, %v2508_v57 }
 0x6e3   :  { %3266 = vrot.lane.b32.xlu1 %v18859_v29, %s7939_s28  ;;  %v14946_v50 = vpop.permute.xlu0 %3589  ;;  %v14948_v25 = vpop.f32.mrf.mxu0  ;;  %v3831_v59 = vmax.f32 %v2997_v43, %v3726_v13 }
 0x6e4   :  { %18860 = vst [vmem:[#allocation6_spill] sm:$0xff] %v14946_v50  ;;  %v3832_v21 = vmax.f32 %v2998_v38, %v3342_v27  ;;  %v14962_v50 = vsel %vm3889_vm6, %v2996_v34, %v3830_v0  ;;  %v18868_v27 = vld [vmem:[#allocation24_spill] sm:$0xff]  ;;  %v18869_v0 = vld [vmem:[#allocation275_spill] sm:$0xff] }
 0x6e5   :  { %v14952_v20 = vpop.permute.xlu1 %3238  ;;  %5508 = vrot.lane.b32.xlu0 %v14860_v44, %s7942_s17  ;;  %v6317_v63 = vpop.f32.mrf.mxu0  ;;  %18862 = vst [vmem:[#allocation302_spill] sm:$0xff] %v14962_v50  ;;  %v14974_v45 = vsel %vm3890_vm10, %v2997_v43, %v3831_v59  ;;  %v2893_v43 = vsel %vm2851_vm8, %v18855_v51, %v18869_v0  ;;  %v3727_v59 = vsel %vm3685_vm9, %v14731_v42, %v14720_v24  ;;  %v18871_v44 = vld [vmem:[#allocation181_spill] sm:$0xff] }
 0x6e6   :  { %v14970_v23 = vsel %vm3889_vm6, %v2998_v38, %v3832_v21  ;;  %18865 = vst [vmem:[#allocation253_spill] sm:$0xff] %v14974_v45 }
 0x6e7   :  { %5139 = vrot.lane.b32.xlu1 %v14904_v37, %s7945_s21  ;;  %v14958_v29 = vpop.permute.xlu0 %5494  ;;  %18864 = vst [vmem:[#allocation51_spill] sm:$0xff] %v14970_v23  ;;  %v7573_v38 = vpack.i.bf16 %v14970_v23, %v14962_v50 }
 0x6e8   :  { %18861 = vst [vmem:[#allocation40_spill] sm:$0xff] %v14958_v29 }
 0x6e9   :  { %v14964_v14 = vpop.permute.xlu1 %5111  ;;  %4676 = vrot.lane.b32.xlu0 %v14962_v50, %s7941_s6 }
 0x6ea   :  { %18863 = vst [vmem:[#allocation12_spill] sm:$0xff] %v14964_v14 }
 0x6eb   :  { %v14976_v62 = vpop.f32.mrf.mxu0  ;;  %4309 = vrot.lane.b32.xlu1 %v14974_v45, %s7944_s18  ;;  %v14980_v13 = vpop.permute.xlu0 %4281 }
 0x6ec   :  { %18866 = vst [vmem:[#allocation143_spill] sm:$0xff] %v14980_v13  ;;  %v18882_v13 = vld [vmem:[#allocation276_spill] sm:$0xff] }
 0x6ed   :  { %v6322_v57 = vpop.f32.mrf.mxu0  ;;  %v14982_v34 = vpop.permute.xlu1 %7539  ;;  %3268 = vrot.lane.b32.xlu0 %v18868_v27, %s7939_s28 }
 0x6ee   :  { %18867 = vst [vmem:[#allocation142_spill] sm:$0xff] %v14982_v34  ;;  %v2999_v57 = vmax.f32 %v18775_v19, %v2893_v43 }
 0x6ef   :  { %7574 = vrot.lane.b32.xlu1 %v7573_v38, %s7944_s18  ;;  %v14992_v63 = vpop.permute.xlu0 %3240 }
 0x6f0   :  { %v3833_v51 = vmax.f32 %v2999_v57, %v3727_v59 }
 0x6f1   :  { %v14997_v21 = vpop.permute.xlu1 %4662  ;;  %3605 = vrot.lane.b32.xlu0 %v18868_v27, %s7940_s7 }
 0x6f2   :  { %18870 = vst [vmem:[#allocation31_spill] sm:$0xff] %v14997_v21  ;;  %v15018_v19 = vsel %vm3890_vm10, %v2999_v57, %v3833_v51  ;;  %v3343_v21 = vsel %vm3300_vm5, %v14749_v41, %v14739_v40 }
 0x6f3   :  { %3270 = vrot.lane.b32.xlu1 %v18871_v44, %s7939_s28  ;;  %v15004_v37 = vpop.permute.xlu0 %3591  ;;  %18873 = vst [vmem:[#allocation139_spill] sm:$0xff] %v15018_v19 }
 0x6f5   :  { %v15006_v0 = vpop.permute.xlu1 %3242  ;;  %5510 = vrot.lane.b32.xlu0 %v14962_v50, %s7942_s17  ;;  %v18877_v50 = vld [vmem:[#allocation19_spill] sm:$0xff] }
 0x6f7   :  { %5143 = vrot.lane.b32.xlu1 %v14974_v45, %s7945_s21  ;;  %v15012_v24 = vpop.permute.xlu0 %5496  ;;  %v15014_v42 = vpop.f32.mrf.mxu0  ;;  %v18878_v45 = vld [vmem:[#allocation209_spill] sm:$0xff] }
 0x6f8   :  { %18872 = vst [vmem:[#allocation60_spill] sm:$0xff] %v15012_v24  ;;  %v18879_v24 = vld [vmem:[#allocation208_spill] sm:$0xff] }
 0x6f9   :  { %v15020_v43 = vpop.permute.xlu1 %5115  ;;  %4313 = vrot.lane.b32.xlu0 %v15018_v19, %s7944_s18  ;;  %v6327_v59 = vpop.f32.mrf.mxu0  ;;  %v2509_v57 = vsel %vm2466_vm4, %v18879_v24, %v18878_v45 }
 0x6fa   :  { %18874 = vst [vmem:[#allocation138_spill] sm:$0xff] %v15020_v43  ;;  %v18880_v59 = vld [vmem:[#allocation211_spill] sm:$0xff]  ;;  %v3000_v29 = vmax.f32 %v18776_v11, %v2509_v57 }
 0x6fb   :  { %7579 = vrot.lane.b32.xlu1 %v7573_v38, %s7945_s21  ;;  %v15025_v44 = vpop.permute.xlu0 %4664  ;;  %v18881_v38 = vld [vmem:[#allocation210_spill] sm:$0xff] }
 0x6fc   :  { %18875 = vst [vmem:[#allocation307_spill] sm:$0xff] %v15025_v44  ;;  %v2510_v44 = vsel %vm2466_vm4, %v18881_v38, %v18880_v59  ;;  %v3728_v38 = vsel %vm3685_vm9, %v14739_v40, %v14772_v47 }
 0x6fd   :  { %v15027_v27 = vpop.permute.xlu1 %4285  ;;  %3272 = vrot.lane.b32.xlu0 %v18877_v50, %s7939_s28 }
 0x6fe   :  { %18876 = vst [vmem:[#allocation84_spill] sm:$0xff] %v15027_v27  ;;  %v2894_v27 = vsel %vm2851_vm8, %v18878_v45, %v18882_v13  ;;  %v3344_v45 = vsel %vm3300_vm5, %v14763_v32, %v14787_v12  ;;  %v18884_v13 = vld [vmem:[#allocation183_spill] sm:$0xff] }
 0x6ff   :  { %v15034_v51 = vpop.f32.mrf.mxu0  ;;  %4678 = vrot.lane.b32.xlu1 %v14970_v23, %s7941_s6  ;;  %v15038_v43 = vpop.permute.xlu0 %3244 }
 0x701   :  { %v6332_v24 = vpop.f32.mrf.mxu0  ;;  %v15049_v14 = vpop.permute.xlu1 %7544  ;;  %3607 = vrot.lane.b32.xlu0 %v18877_v50, %s7940_s7  ;;  %v3834_v50 = vmax.f32 %v3000_v29, %v3343_v21  ;;  %v18890_v21 = vld [vmem:[#allocation25_spill] sm:$0xff] }
 0x702   :  { %18883 = vst [vmem:[#allocation75_spill] sm:$0xff] %v15049_v14  ;;  %v3002_v24 = vmax.f32 %v18782_v16, %v2510_v44  ;;  %v3001_v14 = vmax.f32 %v18781_v53, %v2894_v27 }
 0x703   :  { %3274 = vrot.lane.b32.xlu1 %v18884_v13, %s7939_s28  ;;  %v15062_v41 = vpop.permute.xlu0 %3593  ;;  %v15076_v47 = vsel %vm3889_vm6, %v3000_v29, %v3834_v50 }
 0x704   :  { %v3835_v11 = vmax.f32 %v3001_v14, %v3728_v38  ;;  %v3836_v40 = vmax.f32 %v3002_v24, %v3344_v45  ;;  %18885 = vst [vmem:[#allocation305_spill] sm:$0xff] %v15076_v47  ;;  %v18891_v45 = vld [vmem:[#allocation277_spill] sm:$0xff] }
 0x705   :  { %v15066_v34 = vpop.permute.xlu1 %3246  ;;  %5512 = vrot.lane.b32.xlu0 %v14970_v23, %s7942_s17  ;;  %v18893_v23 = vld [vmem:[#allocation186_spill] sm:$0xff] }
 0x706   :  { %v15084_v53 = vsel %vm3889_vm6, %v3002_v24, %v3836_v40  ;;  %v15088_v44 = vsel %vm3890_vm10, %v3001_v14, %v3835_v11  ;;  %v2895_v14 = vsel %vm2851_vm8, %v18880_v59, %v18891_v45  ;;  %v3729_v11 = vsel %vm3685_vm9, %v14787_v12, %v14783_v61 }
 0x707   :  { %5147 = vrot.lane.b32.xlu1 %v15018_v19, %s7945_s21  ;;  %v15072_v32 = vpop.permute.xlu0 %5498  ;;  %18887 = vst [vmem:[#allocation254_spill] sm:$0xff] %v15084_v53  ;;  %18888 = vst [vmem:[#allocation87_spill] sm:$0xff] %v15088_v44  ;;  %v7583_v38 = vpack.i.bf16 %v15084_v53, %v15076_v47 }
 0x709   :  { %v15078_v16 = vpop.permute.xlu1 %5119  ;;  %4680 = vrot.lane.b32.xlu0 %v15076_v47, %s7941_s6 }
 0x70a   :  { %18886 = vst [vmem:[#allocation94_spill] sm:$0xff] %v15078_v16 }
 0x70b   :  { %4317 = vrot.lane.b32.xlu1 %v15088_v44, %s7944_s18  ;;  %v15092_v27 = vpop.permute.xlu0 %4289  ;;  %v15094_v29 = vpop.f32.mrf.mxu0 }
 0x70c   :  { %18889 = vst [vmem:[#allocation151_spill] sm:$0xff] %v15092_v27 }
 0x70d   :  { %v15096_v50 = vpop.permute.xlu1 %7549  ;;  %3276 = vrot.lane.b32.xlu0 %v18890_v21, %s7939_s28  ;;  %v6337_v57 = vpop.f32.mrf.mxu0 }
 0x70e   :  { %v3003_v57 = vmax.f32 %v18779_v2, %v2895_v14 }
 0x70f   :  { %7584 = vrot.lane.b32.xlu1 %v7583_v38, %s7944_s18  ;;  %v15106_v24 = vpop.permute.xlu0 %3248 }
 0x710   :  { %v3837_v45 = vmax.f32 %v3003_v57, %v3729_v11  ;;  %v18899_v11 = vld [vmem:[#allocation23_spill] sm:$0xff] }
 0x711   :  { %v15111_v40 = vpop.permute.xlu1 %4666  ;;  %3609 = vrot.lane.b32.xlu0 %v18890_v21, %s7940_s7  ;;  %v18901_v21 = vld [vmem:[#allocation43_spill] sm:$0xff] }
 0x712   :  { %18892 = vst [vmem:[#allocation150_spill] sm:$0xff] %v15111_v40  ;;  %v6340_v13 = vpop.f32.mrf.mxu0  ;;  %v15130_v2 = vsel %vm3890_vm10, %v3003_v57, %v3837_v45 }
 0x713   :  { %3278 = vrot.lane.b32.xlu1 %v18893_v23, %s7939_s28  ;;  %v15118_v59 = vpop.permute.xlu0 %3595  ;;  %18895 = vst [vmem:[#allocation147_spill] sm:$0xff] %v15130_v2  ;;  %v18900_v23 = vld [vmem:[#allocation212_spill] sm:$0xff] }
 0x714   :  { %v6342_v19 = vpop.f32.mrf.mxu0 }
 0x715   :  { %v15120_v27 = vpop.permute.xlu1 %3250  ;;  %5514 = vrot.lane.b32.xlu0 %v15076_v47, %s7942_s17  ;;  %v2511_v47 = vsel %vm2466_vm4, %v18901_v21, %v18900_v23 }
 0x717   :  { %5151 = vrot.lane.b32.xlu1 %v15088_v44, %s7945_s21  ;;  %v15126_v61 = vpop.permute.xlu0 %5500  ;;  %v18903_v44 = vld [vmem:[#allocation213_spill] sm:$0xff] }
 0x718   :  { %18894 = vst [vmem:[#allocation69_spill] sm:$0xff] %v15126_v61  ;;  %v3345_v61 = vsel %vm3300_vm5, %v14801_v49, %v14797_v60 }
 0x719   :  { %v15132_v12 = vpop.permute.xlu1 %5123  ;;  %4321 = vrot.lane.b32.xlu0 %v15130_v2, %s7944_s18 }
 0x71a   :  { %18896 = vst [vmem:[#allocation146_spill] sm:$0xff] %v15132_v12  ;;  %v18904_v12 = vld [vmem:[#allocation79_spill] sm:$0xff] }
 0x71b   :  { %7589 = vrot.lane.b32.xlu1 %v7583_v38, %s7945_s21  ;;  %v15137_v19 = vpop.permute.xlu0 %4668  ;;  %v2512_v38 = vsel %vm2466_vm4, %v18904_v12, %v18903_v44  ;;  %v3730_v12 = vsel %vm3685_vm9, %v14797_v60, %v14824_v39 }
 0x71c   :  { %18897 = vst [vmem:[#allocation37_spill] sm:$0xff] %v15137_v19  ;;  %v18905_v19 = vld [vmem:[#allocation278_spill] sm:$0xff] }
 0x71d   :  { %v15139_v14 = vpop.permute.xlu1 %4293  ;;  %3280 = vrot.lane.b32.xlu0 %v18899_v11, %s7939_s28 }
 0x71e   :  { %18898 = vst [vmem:[#allocation90_spill] sm:$0xff] %v15139_v14  ;;  %v2896_v14 = vsel %vm2851_vm8, %v18900_v23, %v18905_v19  ;;  %v3346_v23 = vsel %vm3300_vm5, %v14811_v6, %v14845_v4  ;;  %v18907_v19 = vld [vmem:[#allocation189_spill] sm:$0xff] }
 0x71f   :  { %4682 = vrot.lane.b32.xlu1 %v15084_v53, %s7941_s6  ;;  %v15148_v57 = vpop.permute.xlu0 %3252  ;;  %v6345_v45 = vpop.f32.mrf.mxu0 }
 0x720   :  { %18902 = vst [vmem:[#allocation66_spill] sm:$0xff] %v15148_v57  ;;  %v3004_v57 = vmax.f32 %v18780_v26, %v2511_v47 }
 0x721   :  { %v15159_v40 = vpop.permute.xlu1 %7554  ;;  %3611 = vrot.lane.b32.xlu0 %v18899_v11, %s7940_s7  ;;  %v6347_v21 = vpop.f32.mrf.mxu0  ;;  %v3005_v11 = vmax.f32 %v18785_v8, %v2896_v14 }
 0x722   :  { %18906 = vst [vmem:[#allocation76_spill] sm:$0xff] %v15159_v40  ;;  %v3006_v40 = vmax.f32 %v18786_v9, %v2512_v38  ;;  %v3838_v21 = vmax.f32 %v3004_v57, %v3345_v61  ;;  %v18921_v38 = vld [vmem:[#allocation214_spill] sm:$0xff] }
 0x723   :  { %3282 = vrot.lane.b32.xlu1 %v18907_v19, %s7939_s28  ;;  %v15172_v49 = vpop.permute.xlu0 %3597  ;;  %v3839_v26 = vmax.f32 %v3005_v11, %v3730_v12  ;;  %v5970_v19 = vld [vmem:[%s17142_s3 + $0x70] sm:$0xff] }
 0x724   :  { %v3840_v39 = vmax.f32 %v3006_v40, %v3346_v23  ;;  %v15187_v8 = vsel %vm3889_vm6, %v3004_v57, %v3838_v21  ;;  %v18923_v21 = vld [vmem:[#allocation13_spill] sm:$0xff] }
 0x725   :  { %v15176_v16 = vpop.permute.xlu1 %3254  ;;  %5516 = vrot.lane.b32.xlu0 %v15084_v53, %s7942_s17  ;;  %18908 = vst [vmem:[#allocation64_spill] sm:$0xff] %v15187_v8  ;;  %v15200_v14 = vsel %vm3890_vm10, %v3005_v11, %v3839_v26  ;;  %v18924_v26 = vld [vmem:[#allocation217_spill] sm:$0xff] }
 0x726   :  { %v6350_v60 = vpop.f32.mrf.mxu0  ;;  %v15195_v61 = vsel %vm3889_vm6, %v3006_v40, %v3840_v39  ;;  %18910 = vst [vmem:[#allocation88_spill] sm:$0xff] %v15200_v14  ;;  %v18912_v40 = vld [vmem:[#allocation279_spill] sm:$0xff]  ;;  %v18925_v39 = vld [vmem:[#allocation216_spill] sm:$0xff] }
 0x727   :  { %5155 = vrot.lane.b32.xlu1 %v15130_v2, %s7945_s21  ;;  %v15182_v6 = vpop.permute.xlu0 %5502  ;;  %7169 = vmatprep.subr.mxu1 %v6350_v60  ;;  %18909 = vst [vmem:[#allocation255_spill] sm:$0xff] %v15195_v61  ;;  %v2897_v11 = vsel %vm2851_vm8, %v18903_v44, %v18912_v40  ;;  %v18913_v44 = vld [vmem:[#allocation191_spill] sm:$0xff]  ;;  %v2514_v60 = vsel %vm2466_vm4, %v18925_v39, %v18924_v26  ;;  %v18965_v2 = vld [vmem:[#allocation152_spill] sm:$0xff] }
 0x728   :  { %v6352_v47 = vpop.f32.mrf.mxu0  ;;  %7170 = vmatpush3.msra.mxu1 %v14637_v33  ;;  %v3347_v40 = vsel %vm3300_vm5, %v14870_v15, %v14866_v10  ;;  %v18930_v15 = vld [vmem:[#allocation194_spill] sm:$0xff] }
 0x729   :  { %v15189_v9 = vpop.permute.xlu1 %5127  ;;  %4684 = vrot.lane.b32.xlu0 %v15187_v8, %s7941_s6  ;;  %7171 = vmatprep.subr.mxu1 %v6345_v45  ;;  %v18911_v45 = vld [vmem:[#allocation27_spill] sm:$0xff]  ;;  %v18926_v47 = vld [vmem:[#allocation280_spill] sm:$0xff] }
 0x72a   :  { %7172 = vmatpush3.msra.mxu1 %v14589_v48  ;;  %v7593_v48 = vpack.i.bf16 %v15195_v61, %v15187_v8 }
 0x72b   :  { %4325 = vrot.lane.b32.xlu1 %v15200_v14, %s7944_s18  ;;  %v15204_v33 = vpop.permute.xlu0 %4297  ;;  %7173 = vmatprep.subr.mxu1 %v6340_v13 }
 0x72c   :  { %7174 = vmatpush3.msra.mxu1 %v14551_v46  ;;  %v3731_v46 = vsel %vm3685_vm9, %v14845_v4, %v14841_v5 }
 0x72d   :  { %v15207_v57 = vpop.permute.xlu1 %7559  ;;  %3284 = vrot.lane.b32.xlu0 %v18911_v45, %s7939_s28  ;;  %7175 = vmatprep.subr.mxu1 %v15094_v29 }
 0x72e   :  { %7176 = vmatpush3.msra.mxu1 %v14517_v28  ;;  %v3007_v28 = vmax.f32 %v18783_v54, %v2897_v11 }
 0x72f   :  { %7594 = vrot.lane.b32.xlu1 %v7593_v48, %s7944_s18  ;;  %v15219_v13 = vpop.permute.xlu0 %3256  ;;  %7177 = vmatprep.subr.mxu1 %v15034_v51 }
 0x730   :  { %7178 = vmatpush3.msra.mxu1 %v14494_v7  ;;  %v3841_v7 = vmax.f32 %v3007_v28, %v3731_v46  ;;  %v18927_v46 = vld [vmem:[#allocation33_spill] sm:$0xff] }
 0x731   :  { %v15226_v29 = vpop.permute.xlu1 %4670  ;;  %3613 = vrot.lane.b32.xlu0 %v18911_v45, %s7940_s7  ;;  %7179 = vmatprep.subr.mxu1 %v15014_v42  ;;  %v18919_v42 = vld [vmem:[#allocation38_spill] sm:$0xff] }
 0x732   :  { %7180 = vmatpush3.msra.mxu1 %v14461_v56 }
 0x733   :  { %3286 = vrot.lane.b32.xlu1 %v18913_v44, %s7939_s28  ;;  %v15235_v51 = vpop.permute.xlu0 %3599  ;;  %7181 = vmatprep.subr.mxu1 %v14976_v62  ;;  %v18918_v62 = vld [vmem:[#allocation82_spill] sm:$0xff] }
 0x734   :  { %7182 = vmatpush3.msra.mxu1 %v14425_v30  ;;  %v15253_v30 = vsel %vm3890_vm10, %v3007_v28, %v3841_v7  ;;  %v18928_v28 = vld [vmem:[#allocation141_spill] sm:$0xff] }
 0x735   :  { %v15239_v5 = vpop.permute.xlu1 %3258  ;;  %5518 = vrot.lane.b32.xlu0 %v15187_v8, %s7942_s17  ;;  %7183 = vmatprep.subr.mxu1 %v14948_v25  ;;  %18914 = vst [vmem:[#allocation20_spill] sm:$0xff] %v15253_v30  ;;  %v18917_v25 = vld [vmem:[#allocation26_spill] sm:$0xff]  ;;  %v18960_v8 = vld [vmem:[#allocation149_spill] sm:$0xff] }
 0x736   :  { %7184 = vmatpush3.msra.mxu1 %v14406_v55  ;;  %v18915_v55 = vld [vmem:[#allocation251_spill] sm:$0xff] }
 0x737   :  { %5159 = vrot.lane.b32.xlu1 %v15200_v14, %s7945_s21  ;;  %v15247_v54 = vpop.permute.xlu0 %5504  ;;  %7185 = vmatprep.subr.mxu1 %v14898_v1  ;;  %v18962_v14 = vld [vmem:[#allocation202_spill] sm:$0xff] }
 0x738   :  { %7186 = vmatpush3.msra.mxu1 %v14371_v17  ;;  %v18916_v17 = vld [vmem:[#allocation78_spill] sm:$0xff] }
 0x739   :  { %v15255_v56 = vpop.permute.xlu1 %5131  ;;  %4329 = vrot.lane.b32.xlu0 %v15253_v30, %s7944_s18  ;;  %7187 = vmatprep.subr.mxu1 %v14880_v31  ;;  %v18920_v31 = vld [vmem:[#allocation215_spill] sm:$0xff] }
 0x73a   :  { %7188 = vmatpush3.msra.mxu1 %v18915_v55  ;;  %v2513_v12 = vsel %vm2466_vm4, %v18921_v38, %v18920_v31  ;;  %v18929_v55 = vld [vmem:[#allocation303_spill] sm:$0xff]  ;;  %v18933_v38 = vld [vmem:[#allocation145_spill] sm:$0xff] }
 0x73b   :  { %7599 = vrot.lane.b32.xlu1 %v7593_v48, %s7945_s21  ;;  %v15262_v4 = vpop.permute.xlu0 %4672  ;;  %7189 = vmatprep.subr.mxu1 %v14835_v36  ;;  %v18922_v36 = vld [vmem:[#allocation11_spill] sm:$0xff]  ;;  %v2898_v48 = vsel %vm2851_vm8, %v18920_v31, %v18926_v47  ;;  %v3008_v7 = vmax.f32 %v18928_v28, %v2513_v12  ;;  %v18932_v31 = vld [vmem:[#allocation65_spill] sm:$0xff]  ;;  %v18934_v12 = vld [vmem:[#allocation144_spill] sm:$0xff] }
 0x73c   :  { %7190 = vmatpush3.msra.mxu1 %v18916_v17  ;;  %v3732_v17 = vsel %vm3685_vm9, %v14866_v10, %v14890_v18  ;;  %v18935_v47 = vld [vmem:[#allocation30_spill] sm:$0xff] }
 0x73d   :  { %v15266_v1 = vpop.permute.xlu1 %4301  ;;  %3288 = vrot.lane.b32.xlu0 %v18917_v25, %s7939_s28  ;;  %7191 = vmatprep.subr.mxu1 %v18918_v62  ;;  %v3348_v62 = vsel %vm3300_vm5, %v14885_v3, %v14906_v22  ;;  %v3842_v39 = vmax.f32 %v3008_v7, %v3347_v40  ;;  %v5956_v10 = vld [vmem:[%s17142_s3] sm:$0xff] }
 0x73e   :  { %7192 = vmatpush3.msra.mxu1 %v18919_v42  ;;  %v18936_v3 = vld [vmem:[#allocation70_spill] sm:$0xff] }
 0x73f   :  { %4686 = vrot.lane.b32.xlu1 %v15195_v61, %s7941_s6  ;;  %v15277_v23 = vpop.permute.xlu0 %3260  ;;  %7193 = vmatprep.subr.mxu1 %v18922_v36  ;;  %v3010_v36 = vmax.f32 %v18933_v38, %v2514_v60  ;;  %v5959_v60 = vld [vmem:[%s17142_s3 + $0x18] sm:$0xff]  ;;  %v18937_v40 = vld [vmem:[#allocation118_spill] sm:$0xff]  ;;  %v18939_v38 = vmov 0.0  }
 0x740   :  { %7194 = vmatpush3.msra.mxu1 %v18923_v21  ;;  %v3009_v21 = vmax.f32 %v18934_v12, %v2898_v48 }
 0x741   :  { %v15290_v11 = vpop.permute.xlu1 %7564  ;;  %3615 = vrot.lane.b32.xlu0 %v18917_v25, %s7940_s7  ;;  %7195 = vmatprep.subr.mxu1 %v18927_v46  ;;  %v3844_v48 = vmax.f32 %v3010_v36, %v3348_v62  ;;  %v5961_v62 = vld [vmem:[%s17142_s3 + $0x28] sm:$0xff]  ;;  %v18954_v25 = vld [vmem:[#allocation218_spill] sm:$0xff] }
 0x742   :  { %7196 = vmatpush3.msra.mxu1 %v18929_v55  ;;  %v3843_v46 = vmax.f32 %v3009_v21, %v3732_v17  ;;  %v15329_v55 = vsel %vm3889_vm6, %v3008_v7, %v3842_v39  ;;  %v7880_v7 = vld [vmem:[%s17141_s5 + $0x78] sm:$0xff] }
 0x743   :  { %3290 = vrot.lane.b32.xlu1 %v18930_v15, %s7939_s28  ;;  %v15305_v42 = vpop.permute.xlu0 %3601  ;;  %7197 = vmatprep.subr.mxu1 %v18932_v31  ;;  %18938 = vst [vmem:[#allocation159_spill] sm:$0xff] %v15329_v55  ;;  %v5958_v31 = vld [vmem:[%s17142_s3 + $0x10] sm:$0xff]  ;;  %v15347_v12 = vsel %vm3889_vm6, %v3010_v36, %v3844_v48  ;;  %v7882_v48 = vld [vmem:[%s17141_s5 + $0x68] sm:$0xff]  ;;  %v5964_v15 = vld [vmem:[%s17142_s3 + $0x40] sm:$0xff] }
 0x744   :  { %18931 = vst [vmem:[#allocation17_spill] sm:$0xff] %v15305_v42  ;;  %7198 = vmatpush3.msra.mxu1 %v18935_v47  ;;  %18940 = vst [vmem:[#allocation158_spill] sm:$0xff] %v15347_v12  ;;  %v15351_v39 = vsel %vm3890_vm10, %v3009_v21, %v3843_v46  ;;  %v7881_v36 = vld [vmem:[%s17141_s5 + $0x70] sm:$0xff]  ;;  %v5963_v46 = vld [vmem:[%s17142_s3 + $0x38] sm:$0xff] }
 0x745   :  { %v15314_v18 = vpop.permute.xlu1 %3262  ;;  %5520 = vrot.lane.b32.xlu0 %v15195_v61, %s7942_s17  ;;  %7199 = vmatprep.subr.mxu1 %v18936_v3  ;;  %18941 = vst [vmem:[#allocation73_spill] sm:$0xff] %v15351_v39  ;;  %v18942_v3 = vld [vmem:[#allocation195_spill] sm:$0xff]  ;;  %v18959_v61 = vld [vmem:[#allocation98_spill] sm:$0xff] }
 0x746   :  { %7200 = vmatpush3.msra.mxu1 %v18937_v40  ;;  %v18943_v40 = vld [vmem:[#allocation281_spill] sm:$0xff] }
 0x747   :  { %5163 = vrot.lane.b32.xlu1 %v15253_v30, %s7945_s21  ;;  %v15325_v28 = vpop.permute.xlu0 %5506  ;;  %6499 = vmatmul.mubr.f32.vlgmr.msra.gmra.mxu1 %v5956_v10  ;;  %v5960_v10 = vld [vmem:[%s17142_s3 + $0x20] sm:$0xff] }
 0x748   :  { %6503 = vmatprep.mubr.f32.mxu1 %v5959_v60  ;;  %6692 = vmatprep.subr.mxu1 %v18939_v38  ;;  %v7603_v60 = vpack.i.bf16 %v15347_v12, %v15329_v55  ;;  %v18958_v30 = vld [vmem:[#allocation282_spill] sm:$0xff] }
 0x749   :  { %v15335_v17 = vpop.permute.xlu1 %5135  ;;  %4688 = vrot.lane.b32.xlu0 %v15329_v55, %s7941_s6  ;;  %6693 = vmatpush1.msra.mxu1 %v7880_v7  ;;  %v5962_v7 = vld [vmem:[%s17142_s3 + $0x30] sm:$0xff] }
 0x74a   :  { %6694 = vmatprep.subr.mxu1 %v18939_v38 }
 0x74b   :  { %4333 = vrot.lane.b32.xlu1 %v15351_v39, %s7944_s18  ;;  %v15356_v47 = vpop.permute.xlu0 %4305  ;;  %6504 = vmatmul.mubr.f32.gmra.mxu1 %v5958_v31  ;;  %v2899_v31 = vsel %vm2851_vm8, %v18924_v26, %v18943_v40  ;;  %v5965_v26 = vld [vmem:[%s17142_s3 + $0x48] sm:$0xff] }
 0x74c   :  { %6508 = vmatprep.mubr.f32.mxu1 %v5961_v62  ;;  %6695 = vmatpush1.msra.mxu1 %v7881_v36  ;;  %v3733_v36 = vsel %vm3685_vm9, %v14906_v22, %v14896_v52  ;;  %v18946_v52 = vld [vmem:[#allocation198_spill] sm:$0xff] }
 0x74d   :  { %v15364_v21 = vpop.permute.xlu1 %7569  ;;  %3292 = vrot.lane.b32.xlu0 %v18942_v3, %s7939_s28  ;;  %6696 = vmatprep.subr.mxu1 %v18939_v38 }
 0x74e   :  { %6697 = vmatpush1.msra.mxu1 %v7882_v48 }
 0x74f   :  { %7604 = vrot.lane.b32.xlu1 %v7603_v60, %s7944_s18  ;;  %v15381_v62 = vpop.permute.xlu0 %3264  ;;  %6509 = vmatmul.mubr.f32.gmra.mxu1 %v5960_v10  ;;  %v7883_v10 = vld [vmem:[%s17141_s5 + $0x60] sm:$0xff] }
 0x750   :  { %18944 = vst [vmem:[#allocation155_spill] sm:$0xff] %v15381_v62  ;;  %6513 = vmatprep.mubr.f32.mxu1 %v5963_v46  ;;  %6698 = vmatprep.subr.mxu1 %v18939_v38  ;;  %v18945_v46 = vld [vmem:[#allocation148_spill] sm:$0xff] }
 0x751   :  { %v15390_v48 = vpop.permute.xlu1 %4674  ;;  %3617 = vrot.lane.b32.xlu0 %v18942_v3, %s7940_s7  ;;  %6699 = vmatpush1.msra.mxu1 %v7883_v10  ;;  %v3011_v40 = vmax.f32 %v18945_v46, %v2899_v31  ;;  %v7884_v10 = vld [vmem:[%s17141_s5 + $0x58] sm:$0xff] }
 0x752   :  { %6700 = vmatprep.subr.mxu1 %v18939_v38 }
 0x753   :  { %3294 = vrot.lane.b32.xlu1 %v18946_v52, %s7939_s28  ;;  %v15404_v22 = vpop.permute.xlu0 %3603  ;;  %6514 = vmatmul.mubr.f32.gmra.mxu1 %v5962_v7  ;;  %v3845_v3 = vmax.f32 %v3011_v40, %v3733_v36  ;;  %v5967_v7 = vld [vmem:[%s17142_s3 + $0x58] sm:$0xff]  ;;  %v7885_v36 = vld [vmem:[%s17141_s5 + $0x50] sm:$0xff] }
 0x754   :  { %18947 = vst [vmem:[#allocation154_spill] sm:$0xff] %v15404_v22  ;;  %6518 = vmatprep.mubr.f32.mxu1 %v5965_v26  ;;  %6701 = vmatpush1.msra.mxu1 %v7884_v10  ;;  %v5966_v10 = vld [vmem:[%s17142_s3 + $0x50] sm:$0xff]  ;;  %v18964_v22 = vld [vmem:[#allocation153_spill] sm:$0xff] }
 0x755   :  { %v15412_v31 = vpop.permute.xlu1 %3266  ;;  %5522 = vrot.lane.b32.xlu0 %v15329_v55, %s7942_s17  ;;  %6702 = vmatprep.subr.mxu1 %v18939_v38  ;;  %v15429_v46 = vsel %vm3890_vm10, %v3011_v40, %v3845_v3  ;;  %v7886_v3 = vld [vmem:[%s17141_s5 + $0x48] sm:$0xff]  ;;  %v18956_v55 = vld [vmem:[#allocation221_spill] sm:$0xff] }
 0x756   :  { %18948 = vst [vmem:[#allocation105_spill] sm:$0xff] %v15412_v31  ;;  %6703 = vmatpush1.msra.mxu1 %v7885_v36  ;;  %18949 = vst [vmem:[#allocation59_spill] sm:$0xff] %v15429_v46  ;;  %v7887_v36 = vld [vmem:[%s17141_s5 + $0x40] sm:$0xff]  ;;  %v19000_v31 = vld [vmem:[#allocation165_spill] sm:$0xff] }
 0x757   :  { %5167 = vrot.lane.b32.xlu1 %v15351_v39, %s7945_s21  ;;  %v15425_v26 = vpop.permute.xlu0 %5508  ;;  %6519 = vmatmul.mubr.f32.gmra.mxu1 %v5964_v15  ;;  %v5969_v15 = vld [vmem:[%s17142_s3 + $0x68] sm:$0xff]  ;;  %v18957_v39 = vld [vmem:[#allocation220_spill] sm:$0xff] }
 0x758   :  { %6523 = vmatprep.mubr.f32.mxu1 %v5967_v7  ;;  %6704 = vmatprep.subr.mxu1 %v18939_v38  ;;  %v5968_v7 = vld [vmem:[%s17142_s3 + $0x60] sm:$0xff] }
 0x759   :  { %v15435_v52 = vpop.permute.xlu1 %5139  ;;  %4337 = vrot.lane.b32.xlu0 %v15429_v46, %s7944_s18  ;;  %6705 = vmatpush1.msra.mxu1 %v7886_v3  ;;  %v18952_v3 = vld [vmem:[#allocation199_spill] sm:$0xff] }
 0x75a   :  { %6706 = vmatprep.subr.mxu1 %v18939_v38 }
 0x75b   :  { %7609 = vrot.lane.b32.xlu1 %v7603_v60, %s7945_s21  ;;  %v15447_v40 = vpop.permute.xlu0 %4676  ;;  %6524 = vmatmul.mubr.f32.gmra.mxu1 %v5966_v10  ;;  %v5971_v60 = vld [vmem:[%s17142_s3 + $0x78] sm:$0xff] }
 0x75c   :  { %18950 = vst [vmem:[#allocation93_spill] sm:$0xff] %v15447_v40  ;;  %6528 = vmatprep.mubr.f32.mxu1 %v5969_v15  ;;  %6707 = vmatpush1.msra.mxu1 %v7887_v36  ;;  %v7888_v10 = vld [vmem:[%s17141_s5 + $0x38] sm:$0xff]  ;;  %v18953_v15 = vld [vmem:[#allocation219_spill] sm:$0xff] }
 0x75d   :  { %v15455_v44 = vpop.permute.xlu1 %4309  ;;  %3296 = vrot.lane.b32.xlu0 %v18952_v3, %s7939_s28  ;;  %6708 = vmatprep.subr.mxu1 %v18939_v38  ;;  %v2515_v36 = vsel %vm2466_vm4, %v18954_v25, %v18953_v15  ;;  %v2900_v25 = vsel %vm2851_vm8, %v18953_v15, %v18958_v30  ;;  %v18961_v15 = vld [vmem:[#allocation6_spill] sm:$0xff]  ;;  %v19032_v40 = vld [vmem:[#allocation151_spill] sm:$0xff] }
 0x75e   :  { %18951 = vst [vmem:[#allocation80_spill] sm:$0xff] %v15455_v44  ;;  %6709 = vmatpush1.msra.mxu1 %v7888_v10  ;;  %v2516_v10 = vsel %vm2466_vm4, %v18957_v39, %v18956_v55  ;;  %v7889_v39 = vld [vmem:[%s17141_s5 + $0x30] sm:$0xff]  ;;  %v3012_v30 = vmax.f32 %v18960_v8, %v2515_v36  ;;  %v3013_v8 = vmax.f32 %v18965_v2, %v2900_v25  ;;  %v5975_v2 = vld [vmem:[%s17142_s3 + $0x98] sm:$0xff] }
 0x75f   :  { %4690 = vrot.lane.b32.xlu1 %v15347_v12, %s7941_s6  ;;  %v15471_v45 = vpop.permute.xlu0 %3268  ;;  %6529 = vmatmul.mubr.f32.gmra.mxu1 %v5968_v7 }
 0x760   :  { %18955 = vst [vmem:[#allocation10_spill] sm:$0xff] %v15471_v45  ;;  %6533 = vmatprep.mubr.f32.mxu1 %v5971_v60  ;;  %6710 = vmatprep.subr.mxu1 %v18939_v38  ;;  %v3349_v45 = vsel %vm3300_vm5, %v18959_v61, %v14952_v20  ;;  %v5973_v60 = vld [vmem:[%s17142_s3 + $0x88] sm:$0xff]  ;;  %v3734_v61 = vsel %vm3685_vm9, %v14952_v20, %v18961_v15  ;;  %v5972_v20 = vld [vmem:[%s17142_s3 + $0x80] sm:$0xff] }
 0x761   :  { %v15486_v7 = vpop.permute.xlu1 %7574  ;;  %3619 = vrot.lane.b32.xlu0 %v18952_v3, %s7940_s7  ;;  %6711 = vmatpush1.msra.mxu1 %v7889_v39  ;;  %v3350_v3 = vsel %vm3300_vm5, %v14992_v63, %v15006_v0  ;;  %v3014_v39 = vmax.f32 %v18964_v22, %v2516_v10  ;;  %v3846_v36 = vmax.f32 %v3012_v30, %v3349_v45  ;;  %v7890_v63 = vld [vmem:[%s17141_s5 + $0x28] sm:$0xff]  ;;  %v7891_v22 = vld [vmem:[%s17141_s5 + $0x20] sm:$0xff] }
 0x762   :  { %6712 = vmatprep.subr.mxu1 %v18939_v38 }
 0x763   :  { %3298 = vrot.lane.b32.xlu1 %v18962_v14, %s7939_s28  ;;  %v15506_v53 = vpop.permute.xlu0 %3605  ;;  %6534 = vmatmul.mubr.f32.gmra.mxu1 %v5970_v19  ;;  %v3847_v19 = vmax.f32 %v3013_v8, %v3734_v61  ;;  %v3848_v45 = vmax.f32 %v3014_v39, %v3350_v3  ;;  %v15533_v25 = vsel %vm3889_vm6, %v3012_v30, %v3846_v36  ;;  %v5974_v3 = vld [vmem:[%s17142_s3 + $0x90] sm:$0xff]  ;;  %v5977_v61 = vld [vmem:[%s17142_s3 + $0xa8] sm:$0xff]  ;;  %v7892_v30 = vld [vmem:[%s17141_s5 + $0x18] sm:$0xff] }
 0x764   :  { %18963 = vst [vmem:[#allocation101_spill] sm:$0xff] %v15506_v53  ;;  %6538 = vmatprep.mubr.f32.mxu1 %v5973_v60  ;;  %6713 = vmatpush1.msra.mxu1 %v7890_v63  ;;  %18968 = vst [vmem:[#allocation256_spill] sm:$0xff] %v15533_v25  ;;  %v5978_v14 = vld [vmem:[%s17142_s3 + $0xb0] sm:$0xff] }
 0x765   :  { %v15516_v15 = vpop.permute.xlu1 %3270  ;;  %5524 = vrot.lane.b32.xlu0 %v15347_v12, %s7942_s17  ;;  %6714 = vmatprep.subr.mxu1 %v18939_v38  ;;  %v15551_v36 = vsel %vm3889_vm6, %v3014_v39, %v3848_v45  ;;  %v7893_v39 = vld [vmem:[%s17141_s5 + $0x10] sm:$0xff] }
 0x766   :  { %18966 = vst [vmem:[#allocation45_spill] sm:$0xff] %v15516_v15  ;;  %6715 = vmatpush1.msra.mxu1 %v7891_v22  ;;  %18970 = vst [vmem:[#allocation39_spill] sm:$0xff] %v15551_v36  ;;  %v7613_v22 = vpack.i.bf16 %v15551_v36, %v15533_v25  ;;  %v18983_v12 = vld [vmem:[#allocation284_spill] sm:$0xff]  ;;  %v18992_v15 = vld [vmem:[#allocation71_spill] sm:$0xff] }
 0x767   :  { %5171 = vrot.lane.b32.xlu1 %v15429_v46, %s7945_s21  ;;  %v15529_v10 = vpop.permute.xlu0 %5510  ;;  %6539 = vmatmul.mubr.f32.gmra.mxu1 %v5972_v20  ;;  %v15555_v20 = vsel %vm3890_vm10, %v3013_v8, %v3847_v19  ;;  %v18973_v8 = vld [vmem:[#allocation283_spill] sm:$0xff]  ;;  %v18982_v46 = vld [vmem:[#allocation224_spill] sm:$0xff] }
 0x768   :  { %18967 = vst [vmem:[#allocation35_spill] sm:$0xff] %v15529_v10  ;;  %6543 = vmatprep.mubr.f32.mxu1 %v5975_v2  ;;  %6716 = vmatprep.subr.mxu1 %v18939_v38  ;;  %18971 = vst [vmem:[#allocation167_spill] sm:$0xff] %v15555_v20  ;;  %v5976_v2 = vld [vmem:[%s17142_s3 + $0xa0] sm:$0xff]  ;;  %v2901_v19 = vsel %vm2851_vm8, %v18956_v55, %v18973_v8  ;;  %v3735_v55 = vsel %vm3685_vm9, %v15006_v0, %v15004_v37  ;;  %v5981_v0 = vld [vmem:[%s17142_s3 + $0xc8] sm:$0xff] }
 0x769   :  { %v15539_v60 = vpop.permute.xlu1 %5143  ;;  %4692 = vrot.lane.b32.xlu0 %v15533_v25, %s7941_s6  ;;  %6717 = vmatpush1.msra.mxu1 %v7892_v30  ;;  %v7895_v37 = vld [vmem:[%s17141_s5] sm:$0xff] }
 0x76a   :  { %18969 = vst [vmem:[#allocation298_spill] sm:$0xff] %v15539_v60  ;;  %6718 = vmatprep.subr.mxu1 %v18939_v38 }
 0x76b   :  { %4341 = vrot.lane.b32.xlu1 %v15555_v20, %s7944_s18  ;;  %v15560_v63 = vpop.permute.xlu0 %4313  ;;  %6544 = vmatmul.mubr.f32.gmra.mxu1 %v5974_v3  ;;  %v5979_v3 = vld [vmem:[%s17142_s3 + $0xb8] sm:$0xff] }
 0x76c   :  { %18972 = vst [vmem:[#allocation166_spill] sm:$0xff] %v15560_v63  ;;  %6548 = vmatprep.mubr.f32.mxu1 %v5977_v61  ;;  %6719 = vmatpush1.msra.mxu1 %v7893_v39  ;;  %v7894_v61 = vld [vmem:[%s17141_s5 + $0x8] sm:$0xff]  ;;  %v18976_v39 = vld [vmem:[#allocation156_spill] sm:$0xff]  ;;  %v7536_v63 = vunpack.i.l.bf16 %v18992_v15 }
 0x76d   :  { %v15571_v45 = vpop.permute.xlu1 %7579  ;;  %5175 = vrot.lane.b32.xlu0 %v15555_v20, %s7945_s21  ;;  %6720 = vmatprep.subr.mxu1 %v18939_v38  ;;  %v3015_v8 = vmax.f32 %v18976_v39, %v2901_v19  ;;  %v18978_v19 = vld [vmem:[#allocation223_spill] sm:$0xff]  ;;  %v7896_v39 = vld [vmem:[%s17141_s5 + $0xc0] sm:$0xf] }
 0x76e   :  { %18974 = vst [vmem:[#allocation4_spill] sm:$0xff] %v15571_v45  ;;  %6721 = vmatpush1.msra.mxu1 %v7894_v61  ;;  %v19027_v45 = vld [vmem:[#allocation168_spill] sm:$0xff] }
 0x76f   :  { %7614 = vrot.lane.b32.xlu1 %v7613_v22, %s7944_s18  ;;  %v15588_v30 = vpop.permute.xlu0 %3272  ;;  %6549 = vmatmul.mubr.f32.gmra.mxu1 %v5976_v2  ;;  %v3849_v2 = vmax.f32 %v3015_v8, %v3735_v55  ;;  %v5980_v55 = vld [vmem:[%s17142_s3 + $0xc0] sm:$0xff] }
 0x770   :  { %18975 = vst [vmem:[#allocation163_spill] sm:$0xff] %v15588_v30  ;;  %6553 = vmatprep.mubr.f32.mxu1 %v5979_v3  ;;  %6722 = vmatprep.subr.mxu1 %v18939_v38  ;;  %v18979_v3 = vld [vmem:[#allocation222_spill] sm:$0xff]  ;;  %v3352_v30 = vsel %vm3300_vm5, %v15106_v24, %v15120_v27 }
 0x771   :  { %v15595_v20 = vpop.permute.xlu1 %4678  ;;  %7619 = vrot.lane.b32.xlu0 %v7613_v22, %s7945_s21  ;;  %6723 = vmatpush1.msra.mxu1 %v7895_v37  ;;  %v2517_v61 = vsel %vm2466_vm4, %v18979_v3, %v18978_v19  ;;  %v18981_v37 = vld [vmem:[#allocation225_spill] sm:$0xff]  ;;  %v18991_v24 = vld [vmem:[#allocation226_spill] sm:$0xff] }
 0x772   :  { %18977 = vst [vmem:[#allocation162_spill] sm:$0xff] %v15595_v20  ;;  %6738 = vmatprep.subr.mxu1 %v18939_v38  ;;  %v2518_v3 = vsel %vm2466_vm4, %v18982_v46, %v18981_v37  ;;  %v18985_v46 = vld [vmem:[#allocation157_spill] sm:$0xff]  ;;  %v18998_v20 = vld [vmem:[#allocation142_spill] sm:$0xff] }
 0x773   :  { %5526 = vrot.lane.b32.xlu1 %v15533_v25, %s7942_s17  ;;  %v15610_v22 = vpop.permute.xlu0 %3607  ;;  %6554 = vmatmul.mubr.f32.gmra.mxu1 %v5978_v14  ;;  %v2902_v25 = vsel %vm2851_vm8, %v18978_v19, %v18983_v12  ;;  %v3351_v14 = vsel %vm3300_vm5, %v15038_v43, %v15066_v34  ;;  %v15639_v12 = vsel %vm3890_vm10, %v3015_v8, %v3849_v2  ;;  %v7897_v43 = vld [vmem:[%s17141_s5 + $0xb8] sm:$0xff]  ;;  %v7541_v62 = vunpack.i.l.bf16 %v18998_v20 }
 0x774   :  { %18980 = vst [vmem:[#allocation67_spill] sm:$0xff] %v15610_v22  ;;  %6558 = vmatprep.mubr.f32.mxu1 %v5981_v0  ;;  %7120 = vmatpush2.msk.msra.mxu1 %vm6125_vm7, %v7896_v39  ;;  %v5983_v39 = vld [vmem:[%s17142_s3 + $0xd8] sm:$0xff]  ;;  %v3016_v22 = vmax.f32 %v18985_v46, %v2517_v61  ;;  %18986 = vst [vmem:[#allocation63_spill] sm:$0xff] %v15639_v12  ;;  %v3736_v19 = vsel %vm3685_vm9, %v15066_v34, %v15062_v41  ;;  %v18989_v46 = vld [vmem:[#allocation160_spill] sm:$0xff] }
 0x775   :  { %v15628_v0 = vpop.permute.xlu1 %3274  ;;  %4694 = vrot.lane.b32.xlu0 %v15551_v36, %s7941_s6  ;;  %6740 = vmatprep.subr.mxu1 %v18939_v38  ;;  %v18988_v8 = vld [vmem:[#allocation161_spill] sm:$0xff]  ;;  %v5982_v34 = vld [vmem:[%s17142_s3 + $0xd0] sm:$0xff]  ;;  %v18990_v41 = vld [vmem:[#allocation227_spill] sm:$0xff] }
 0x776   :  { %18984 = vst [vmem:[#allocation99_spill] sm:$0xff] %v15628_v0  ;;  %6741 = vmatpush2.msra.mxu1 %v7897_v43  ;;  %v3018_v2 = vmax.f32 %v18988_v8, %v2518_v3  ;;  %v3017_v0 = vmax.f32 %v18989_v46, %v2902_v25  ;;  %v3850_v53 = vmax.f32 %v3016_v22, %v3351_v14  ;;  %v7898_v25 = vld [vmem:[%s17141_s5 + $0xb0] sm:$0xff]  ;;  %v18994_v3 = vld [vmem:[#allocation229_spill] sm:$0xff] }
 0x777   :  { %4345 = vrot.lane.b32.xlu1 %v15639_v12, %s7944_s18  ;;  %v15652_v61 = vpop.permute.xlu0 %5512  ;;  %6559 = vmatmul.mubr.f32.gmra.mxu1 %v5980_v55  ;;  %v2519_v43 = vsel %vm2466_vm4, %v18991_v24, %v18990_v41  ;;  %v5985_v55 = vld [vmem:[%s17142_s3 + $0xe8] sm:$0xff]  ;;  %v18995_v14 = vld [vmem:[#allocation228_spill] sm:$0xff]  ;;  %v18996_v24 = vld [vmem:[#allocation130_spill] sm:$0xff] }
 0x778   :  { %18987 = vst [vmem:[#allocation83_spill] sm:$0xff] %v15652_v61  ;;  %6742 = vmatprep.subr.mxu1 %v18939_v38  ;;  %6563 = vmatprep.mubr.f32.mxu1 %v5983_v39  ;;  %v2520_v39 = vsel %vm2466_vm4, %v18995_v14, %v18994_v3  ;;  %v3851_v8 = vmax.f32 %v3017_v0, %v3736_v19  ;;  %v19001_v14 = vld [vmem:[#allocation285_spill] sm:$0xff]  ;;  %v7899_v19 = vld [vmem:[%s17141_s5 + $0xa8] sm:$0xff] }
 0x779   :  { %v15664_v61 = vpop.permute.xlu1 %5147  ;;  %5528 = vrot.lane.b32.xlu0 %v15551_v36, %s7942_s17  ;;  %6743 = vmatpush2.msra.mxu1 %v7898_v25  ;;  %v3852_v46 = vmax.f32 %v3018_v2, %v3352_v30  ;;  %v15687_v42 = vmax.f32 %v19000_v31, %v2519_v43  ;;  %v2903_v30 = vsel %vm2851_vm8, %v18981_v37, %v19001_v14  ;;  %v19003_v31 = vld [vmem:[#allocation169_spill] sm:$0xff]  ;;  %v19004_v14 = vld [vmem:[#allocation40_spill] sm:$0xff] }
 0x77a   :  { %18993 = vst [vmem:[#allocation14_spill] sm:$0xff] %v15664_v61  ;;  %6744 = vmatprep.subr.mxu1 %v18939_v38  ;;  %v18997_v61 = vld [vmem:[#allocation304_spill] sm:$0xff]  ;;  %v15703_v43 = vmax.f32 %v19003_v31, %v2520_v39  ;;  %v19009_v39 = vld [vmem:[#allocation143_spill] sm:$0xff]  ;;  %v7900_v31 = vld [vmem:[%s17141_s5 + $0xa0] sm:$0xff] }
 0x77b   :  { %v4821_v36 = vsel %vm4788_vm11, %v18997_v61, %v18996_v24  ;;  %5179 = vrot.lane.b32.xlu1 %v15639_v12, %s7945_s21  ;;  %v15684_v25 = vpop.permute.xlu0 %4680  ;;  %6564 = vmatmul.mubr.f32.gmra.mxu1 %v5982_v34  ;;  %v15697_v24 = vsel %vm3889_vm6, %v3016_v22, %v3850_v53  ;;  %v5984_v34 = vld [vmem:[%s17142_s3 + $0xe0] sm:$0xff]  ;;  %v7537_v12 = vunpack.i.h.bf16 %v18992_v15  ;;  %v4436_v37 = vsel %vm4403_vm13, %v7536_v63, %v18997_v61  ;;  %v5987_v53 = vld [vmem:[%s17142_s3 + $0xf8] sm:$0xff]  ;;  %v19007_v22 = vld [vmem:[#allocation127_spill] sm:$0xff] }
 0x77c   :  { %18999 = vst [vmem:[#allocation62_spill] sm:$0xff] %v15684_v25  ;;  %6745 = vmatpush2.msra.mxu1 %v7899_v19  ;;  %19002 = vst [vmem:[#allocation48_spill] sm:$0xff] %v15697_v24  ;;  %6568 = vmatprep.mubr.f32.mxu1 %v5985_v55  ;;  %v19005_v25 = vld [vmem:[#allocation12_spill] sm:$0xff]  ;;  %v4918_v15 = vmax.f32 %v19007_v22, %v4821_v36  ;;  %v19008_v55 = vld [vmem:[#allocation31_spill] sm:$0xff]  ;;  %v15725_v61 = vsel %vm3889_vm6, %v3018_v2, %v3852_v46  ;;  %v7542_v22 = vunpack.i.h.bf16 %v18998_v20 }
 0x77d   :  { %v5655_v19 = vsel %vm5622_vm12, %v19005_v25, %v19004_v14  ;;  %v15711_v60 = vpop.permute.xlu1 %4317  ;;  %4696 = vrot.lane.b32.xlu0 %v15697_v24, %s7941_s6  ;;  %6746 = vmatprep.subr.mxu1 %v18939_v38  ;;  %v4822_v63 = vsel %vm4788_vm11, %v19009_v39, %v19008_v55  ;;  %v15732_v14 = vsel %vm3890_vm10, %v3017_v0, %v3851_v8  ;;  %v19013_v55 = vld [vmem:[#allocation126_spill] sm:$0xff]  ;;  %v19016_v20 = vld [vmem:[#allocation123_spill] sm:$0xff] }
 0x77e   :  { %19006 = vst [vmem:[#allocation257_spill] sm:$0xff] %v15711_v60  ;;  %6747 = vmatpush2.msra.mxu1 %v7900_v31  ;;  %19010 = vst [vmem:[#allocation41_spill] sm:$0xff] %v15732_v14  ;;  %v19011_v60 = vld [vmem:[#allocation164_spill] sm:$0xff]  ;;  %v4437_v36 = vsel %vm4403_vm13, %v7537_v12, %v19009_v39  ;;  %v5270_v2 = vsel %vm5237_vm15, %v7541_v62, %v19005_v25  ;;  %v4917_v0 = vmax.f32 %v19013_v55, %v4436_v37  ;;  %v7901_v25 = vld [vmem:[%s17141_s5 + $0x98] sm:$0xff] }
 0x77f   :  { %v15735_v10 = vmax.f32 %v19011_v60, %v2903_v30  ;;  %4349 = vrot.lane.b32.xlu1 %v15732_v14, %s7944_s18  ;;  %v15744_v46 = vpop.permute.xlu0 %3276  ;;  %6569 = vmatmul.mubr.f32.gmra.mxu1 %v5984_v34  ;;  %v5752_v8 = vmax.f32 %v4918_v15, %v5655_v19  ;;  %v19014_v31 = vld [vmem:[#allocation60_spill] sm:$0xff]  ;;  %v19015_v60 = vld [vmem:[#allocation138_spill] sm:$0xff]  ;;  %v4920_v12 = vmax.f32 %v19016_v20, %v4822_v63  ;;  %v19019_v63 = vld [vmem:[#allocation81_spill] sm:$0xff] }
 0x780   :  { %19012 = vst [vmem:[#allocation174_spill] sm:$0xff] %v15744_v46  ;;  %v5656_v30 = vsel %vm5622_vm12, %v19015_v60, %v19014_v31  ;;  %6748 = vmatprep.subr.mxu1 %v18939_v38  ;;  %6573 = vmatprep.mubr.f32.mxu1 %v5987_v53  ;;  %v5271_v62 = vsel %vm5237_vm15, %v7542_v22, %v19015_v60  ;;  %v5986_v19 = vld [vmem:[%s17142_s3 + $0xf0] sm:$0xff]  ;;  %v19018_v53 = vld [vmem:[#allocation286_spill] sm:$0xff]  ;;  %v19020_v31 = vld [vmem:[#allocation75_spill] sm:$0xff] }
 0x781   :  { %6749 = vmatpush2.msra.mxu1 %v7901_v25  ;;  %v15757_v34 = vpop.permute.xlu1 %7584  ;;  %5183 = vrot.lane.b32.xlu0 %v15732_v14, %s7945_s21  ;;  %v7623_v37 = vpack.i.bf16 %v15725_v61, %v15697_v24  ;;  %v2904_v39 = vsel %vm2851_vm8, %v18990_v41, %v19018_v53  ;;  %v4919_v22 = vmax.f32 %v19019_v63, %v4437_v36  ;;  %v7546_v60 = vunpack.i.l.bf16 %v19020_v31  ;;  %v19021_v25 = vld [vmem:[#allocation307_spill] sm:$0xff]  ;;  %v19022_v14 = vld [vmem:[#allocation84_spill] sm:$0xff] }
 0x782   :  { %19017 = vst [vmem:[#allocation173_spill] sm:$0xff] %v15757_v34  ;;  %v5751_v55 = vmax.f32 %v4917_v0, %v5270_v2  ;;  %6750 = vmatprep.subr.mxu1 %v18939_v38  ;;  %v5754_v20 = vmax.f32 %v4920_v12, %v5656_v30  ;;  %v4823_v46 = vsel %vm4788_vm11, %v19022_v14, %v19021_v25  ;;  %v7902_v41 = vld [vmem:[%s17141_s5 + $0x90] sm:$0xff]  ;;  %v7551_v30 = vunpack.i.l.bf16 %v15096_v50  ;;  %v19025_v25 = vld [vmem:[#allocation231_spill] sm:$0xff] }
 0x783   :  { %v3737_v34 = vsel %vm3685_vm9, %v15120_v27, %v15118_v59  ;;  %6751 = vmatpush2.msra.mxu1 %v7902_v41  ;;  %7624 = vrot.lane.b32.xlu1 %v7623_v37, %s7944_s18  ;;  %v15782_v36 = vpop.permute.xlu0 %3609  ;;  %v5753_v2 = vmax.f32 %v4919_v22, %v5271_v62  ;;  %v5893_v63 = vsel %vm5827_vm14, %v4918_v15, %v5752_v8  ;;  %v19026_v27 = vld [vmem:[#allocation230_spill] sm:$0xff]  ;;  %v7903_v62 = vld [vmem:[%s17141_s5 + $0x88] sm:$0xff]  ;;  %v19030_v15 = vld [vmem:[#allocation300_spill] sm:$0xff] }
 0x784   :  { %19023 = vst [vmem:[#allocation258_spill] sm:$0xff] %v15782_v36  ;;  %6574 = vmatmul.mubr.f32.gmra.mxu1 %v5986_v19  ;;  %6752 = vmatprep.subr.mxu1 %v18939_v38  ;;  %v2521_v59 = vsel %vm2466_vm4, %v19026_v27, %v19025_v25  ;;  %v15792_v44 = vmax.f32 %v19027_v45, %v2904_v39  ;;  %v19028_v41 = vld [vmem:[#allocation94_spill] sm:$0xff]  ;;  %v7547_v27 = vunpack.i.h.bf16 %v19020_v31 }
 0x785   :  { %v5657_v36 = vsel %vm5622_vm12, %v19028_v41, %v15072_v32  ;;  %6753 = vmatpush2.msra.mxu1 %v7903_v62  ;;  %7121 = vmatprep.mubr.msk.f32.mxu1 %vm159_vm0, %v5893_v63  ;;  %v15801_v19 = vpop.permute.xlu1 %3278  ;;  %v4922_v8 = vmax.f32 %v19030_v15, %v4823_v46  ;;  %v3853_v45 = vmax.f32 %v15735_v10, %v3737_v34  ;;  %v19031_v39 = vld [vmem:[#allocation150_spill] sm:$0xff] }
 0x786   :  { %19029 = vst [vmem:[#allocation171_spill] sm:$0xff] %v15801_v19  ;;  %7629 = vrot.lane.b32.xlu0 %v7623_v37, %s7945_s21  ;;  %6754 = vmatprep.subr.mxu1 %v18939_v38  ;;  %v4438_v32 = vsel %vm4403_vm13, %v7546_v60, %v19022_v14  ;;  %v4824_v62 = vsel %vm4788_vm11, %v19032_v40, %v19031_v39  ;;  %v7904_v63 = vld [vmem:[%s17141_s5 + $0x80] sm:$0xff]  ;;  %v7552_v39 = vunpack.i.h.bf16 %v15096_v50 }
 0x787   :  { %6755 = vmatpush2.msra.mxu1 %v7904_v63  ;;  %5530 = vrot.lane.b32.xlu1 %v15697_v24, %s7942_s17  ;;  %v15818_v46 = vpop.permute.xlu0 %5514  ;;  %v5892_v38 = vsel %vm5826_vm1, %v4917_v0, %v5751_v55  ;;  %v5895_v14 = vsel %vm5827_vm14, %v4920_v12, %v5754_v20  ;;  %v5756_v37 = vmax.f32 %v4922_v8, %v5657_v36  ;;  %v19034_v63 = vld [vmem:[#allocation69_spill] sm:$0xff]  ;;  %v19035_v24 = vld [vmem:[#allocation146_spill] sm:$0xff]  ;;  %v19036_v55 = vld [vmem:[#allocation76_spill] sm:$0xff] }
 0x788   :  { %v4439_v31 = vsel %vm4403_vm13, %v7547_v27, %v19032_v40  ;;  %6757 = vmatmul.mubr.f32.vlgmr.msra.gmra.mxu1 %v5892_v38  ;;  %v5894_v60 = vsel %vm5826_vm1, %v4919_v22, %v5753_v2  ;;  %v5272_v15 = vsel %vm5237_vm15, %v7551_v30, %v19028_v41  ;;  %v5658_v0 = vsel %vm5622_vm12, %v19035_v24, %v19034_v63  ;;  %v19037_v40 = vld [vmem:[#allocation122_spill] sm:$0xff]  ;;  %v19041_v38 = vld [vmem:[#allocation37_spill] sm:$0xff] }
 0x789   :  { %v7556_v19 = vunpack.i.l.bf16 %v19036_v55  ;;  %7122 = vmatprep.mubr.msk.f32.mxu1 %vm159_vm0, %v5895_v14  ;;  %v15836_v12 = vpop.permute.xlu1 %5151  ;;  %v4921_v20 = vmax.f32 %v19037_v40, %v4438_v32  ;;  %v19038_v36 = vld [vmem:[#allocation306_spill] sm:$0xff]  ;;  %v3738_v50 = vsel %vm3685_vm9, %v15176_v16, %v15172_v49  ;;  %v15851_v30 = vsel %vm3890_vm10, %v15735_v10, %v3853_v45 }
 0x78a   :  { %v4924_v27 = vmax.f32 %v19038_v36, %v4824_v62  ;;  %v19039_v22 = vld [vmem:[#allocation66_spill] sm:$0xff]  ;;  %4698 = vrot.lane.b32.xlu0 %v15725_v61, %s7941_s6  ;;  %v3354_v63 = vsel %vm3300_vm5, %v15219_v13, %v15239_v5  ;;  %v5273_v10 = vsel %vm5237_vm15, %v7552_v39, %v19035_v24  ;;  %v5897_v40 = vsel %vm5827_vm14, %v4922_v8, %v5756_v37  ;;  %v19043_v39 = vld [vmem:[#allocation5_spill] sm:$0xff]  ;;  %v19045_v8 = vld [vmem:[#allocation232_spill] sm:$0xff] }
 0x78b   :  { %v3353_v2 = vsel %vm3300_vm5, %v19039_v22, %v15176_v16  ;;  %v19040_v41 = vld [vmem:[#allocation42_spill] sm:$0xff]  ;;  %4353 = vrot.lane.b32.xlu1 %v15851_v30, %s7944_s18  ;;  %v15862_v16 = vpop.permute.xlu0 %4321  ;;  %v5755_v49 = vmax.f32 %v4921_v20, %v5272_v15  ;;  %v3855_v13 = vmax.f32 %v15792_v44, %v3738_v50  ;;  %v5659_v22 = vsel %vm5622_vm12, %v15189_v9, %v15182_v6 }
 0x78c   :  { %v4923_v32 = vmax.f32 %v19040_v41, %v4439_v31  ;;  %v19042_v62 = vld [vmem:[#allocation90_spill] sm:$0xff]  ;;  %v5758_v45 = vmax.f32 %v4924_v27, %v5658_v0  ;;  %v7561_v31 = vunpack.i.l.bf16 %v15207_v57  ;;  %6762 = vmatmul.mubr.f32.gmra.mxu1 %v5894_v60  ;;  %v3854_v36 = vmax.f32 %v15687_v42, %v3353_v2  ;;  %v19044_v0 = vld [vmem:[#allocation233_spill] sm:$0xff] }
 0x78d   :  { %v4825_v14 = vsel %vm4788_vm11, %v19042_v62, %v19041_v38  ;;  %7123 = vmatprep.mubr.msk.f32.mxu1 %vm159_vm0, %v5897_v40  ;;  %v15875_v15 = vpop.permute.xlu1 %7589  ;;  %v4440_v24 = vsel %vm4403_vm13, %v7556_v19, %v19042_v62  ;;  %v15880_v60 = vmax.f32 %v19043_v39, %v2521_v59  ;;  %v2522_v37 = vsel %vm2466_vm4, %v19045_v8, %v19044_v0  ;;  %v19046_v2 = vld [vmem:[#allocation54_spill] sm:$0xff] }
 0x78e   :  { %v4926_v50 = vmax.f32 %v19046_v2, %v4825_v14  ;;  %v3856_v41 = vmax.f32 %v15703_v43, %v3354_v63  ;;  %5532 = vrot.lane.b32.xlu0 %v15725_v61, %s7942_s17  ;;  %v5757_v6 = vmax.f32 %v4923_v32, %v5273_v10  ;;  %v7557_v38 = vunpack.i.h.bf16 %v19036_v55  ;;  %v19047_v10 = vld [vmem:[#allocation299_spill] sm:$0xff] }
 0x78f   :  { %v4826_v19 = vsel %vm4788_vm11, %v15204_v33, %v15226_v29  ;;  %5187 = vrot.lane.b32.xlu1 %v15851_v30, %s7945_s21  ;;  %v15895_v59 = vpop.permute.xlu0 %3280  ;;  %v5896_v62 = vsel %vm5826_vm1, %v4921_v20, %v5755_v49  ;;  %v5899_v63 = vsel %vm5827_vm14, %v4924_v27, %v5758_v45  ;;  %v4925_v40 = vmax.f32 %v19047_v10, %v4440_v24  ;;  %v19048_v49 = vld [vmem:[#allocation252_spill] sm:$0xff] }
 0x790   :  { %v5760_v14 = vmax.f32 %v4926_v50, %v5659_v22  ;;  %6767 = vmatmul.mubr.f32.gmra.mxu1 %v5896_v62  ;;  %v5274_v55 = vsel %vm5237_vm15, %v7561_v31, %v15189_v9  ;;  %v4441_v29 = vsel %vm4403_vm13, %v7557_v38, %v15204_v33  ;;  %v5660_v39 = vsel %vm5622_vm12, %v15255_v56, %v15247_v54 }
 0x791   :  { %7124 = vmatprep.mubr.msk.f32.mxu1 %vm159_vm0, %v5899_v63  ;;  %v15910_v20 = vpop.permute.xlu1 %4682  ;;  %v15915_v27 = vsel %vm3889_vm6, %v15687_v42, %v3854_v36  ;;  %v15920_v9 = vsel %vm3890_vm10, %v15792_v44, %v3855_v13  ;;  %v7562_v33 = vunpack.i.h.bf16 %v15207_v57  ;;  %v4928_v45 = vmax.f32 %v19048_v49, %v4826_v19  ;;  %v19049_v42 = vld [vmem:[#allocation287_spill] sm:$0xff]  ;;  %v19052_v19 = vld [vmem:[#allocation172_spill] sm:$0xff] }
 0x792   :  { %v15927_v54 = vsel %vm3889_vm6, %v15703_v43, %v3856_v41  ;;  %v7566_v31 = vunpack.i.l.bf16 %v15290_v11  ;;  %4700 = vrot.lane.b32.xlu0 %v15915_v27, %s7941_s6  ;;  %v2905_v36 = vsel %vm2851_vm8, %v18994_v3, %v19049_v42  ;;  %v4827_v57 = vsel %vm4788_vm11, %v15266_v1, %v15262_v4  ;;  %v19050_v4 = vld [vmem:[#allocation22_spill] sm:$0xff]  ;;  %v19051_v41 = vld [vmem:[#allocation95_spill] sm:$0xff] }
 0x793   :  { %4357 = vrot.lane.b32.xlu1 %v15920_v9, %s7944_s18  ;;  %v15940_v44 = vpop.permute.xlu0 %3611  ;;  %v5898_v43 = vsel %vm5826_vm1, %v4923_v32, %v5757_v6  ;;  %v5759_v13 = vmax.f32 %v4925_v40, %v5274_v55  ;;  %v5275_v22 = vsel %vm5237_vm15, %v7562_v33, %v15255_v56  ;;  %v5762_v24 = vmax.f32 %v4928_v45, %v5660_v39  ;;  %v19054_v33 = vld [vmem:[#allocation288_spill] sm:$0xff] }
 0x794   :  { %v7571_v8 = vunpack.i.l.bf16 %v15364_v21  ;;  %6772 = vmatmul.mubr.f32.gmra.mxu1 %v5898_v43  ;;  %v5901_v3 = vsel %vm5827_vm14, %v4926_v50, %v5760_v14  ;;  %v15950_v2 = vmax.f32 %v19050_v4, %v2522_v37  ;;  %v4927_v38 = vmax.f32 %v19051_v41, %v4441_v29  ;;  %v19053_v50 = vld [vmem:[#allocation68_spill] sm:$0xff]  ;;  %v19057_v43 = vld [vmem:[#allocation93_spill] sm:$0xff] }
 0x795   :  { %v5661_v32 = vsel %vm5622_vm12, %v15335_v17, %v15325_v28  ;;  %7125 = vmatprep.mubr.msk.f32.mxu1 %vm159_vm0, %v5901_v3  ;;  %v15957_v6 = vpop.permute.xlu1 %3282  ;;  %v7633_v56 = vpack.i.bf16 %v15927_v54, %v15915_v27  ;;  %v3023_v62 = vmax.f32 %v19052_v19, %v2905_v36  ;;  %v3739_v37 = vsel %vm3685_vm9, %v15239_v5, %v15235_v51  ;;  %v19056_v36 = vld [vmem:[#allocation131_spill] sm:$0xff]  ;;  %v19059_v4 = vld [vmem:[#allocation4_spill] sm:$0xff]  ;;  %v19061_v19 = vld [vmem:[#allocation134_spill] sm:$0xff] }
 0x796   :  { %v4930_v14 = vmax.f32 %v19053_v50, %v4827_v57  ;;  %5191 = vrot.lane.b32.xlu0 %v15920_v9, %s7945_s21  ;;  %v4442_v28 = vsel %vm4403_vm13, %v7566_v31, %v15266_v1  ;;  %v5761_v63 = vmax.f32 %v4927_v38, %v5275_v22  ;;  %v4828_v10 = vsel %vm4788_vm11, %v15356_v47, %v15390_v48  ;;  %v19062_v50 = vld [vmem:[#allocation35_spill] sm:$0xff] }
 0x797   :  { %7634 = vrot.lane.b32.xlu1 %v7633_v56, %s7944_s18  ;;  %v15974_v55 = vpop.permute.xlu0 %5516  ;;  %v5900_v51 = vsel %vm5826_vm1, %v4925_v40, %v5759_v13  ;;  %v7567_v5 = vunpack.i.h.bf16 %v15290_v11  ;;  %v5903_v39 = vsel %vm5827_vm14, %v4928_v45, %v5762_v24  ;;  %v5276_v1 = vsel %vm5237_vm15, %v7571_v8, %v15335_v17  ;;  %v19055_v40 = vld [vmem:[#allocation135_spill] sm:$0xff]  ;;  %v19058_v13 = vld [vmem:[#allocation80_spill] sm:$0xff] }
 0x798   :  { %v5764_v29 = vmax.f32 %v4930_v14, %v5661_v32  ;;  %6777 = vmatmul.mubr.f32.gmra.mxu1 %v5900_v51  ;;  %v2906_v48 = vsel %vm2851_vm8, %v19025_v25, %v19054_v33  ;;  %v3857_v49 = vmax.f32 %v3023_v62, %v3739_v37  ;;  %v5662_v31 = vsel %vm5622_vm12, %v15435_v52, %v15425_v26  ;;  %v19060_v32 = vld [vmem:[#allocation175_spill] sm:$0xff]  ;;  %v19065_v51 = vld [vmem:[#allocation105_spill] sm:$0xff] }
 0x799   :  { %7126 = vmatprep.mubr.msk.f32.mxu1 %vm159_vm0, %v5903_v39  ;;  %v15990_v11 = vpop.permute.xlu1 %5155  ;;  %v4929_v42 = vmax.f32 %v19055_v40, %v4442_v28  ;;  %v4443_v45 = vsel %vm4403_vm13, %v7567_v5, %v15356_v47  ;;  %v7572_v17 = vunpack.i.h.bf16 %v15364_v21  ;;  %v4932_v57 = vmax.f32 %v19056_v36, %v4828_v10  ;;  %v19063_v28 = vld [vmem:[#allocation298_spill] sm:$0xff]  ;;  %v19066_v5 = vld [vmem:[#allocation155_spill] sm:$0xff]  ;;  %v19067_v39 = vld [vmem:[#allocation253_spill] sm:$0xff] }
 0x79a   :  { %v7576_v25 = vunpack.i.l.bf16 %v15486_v7  ;;  %7639 = vrot.lane.b32.xlu0 %v7633_v56, %s7945_s21  ;;  %v3355_v26 = vsel %vm3300_vm5, %v15277_v23, %v15314_v18  ;;  %v4829_v22 = vsel %vm4788_vm11, %v19058_v13, %v19057_v43  ;;  %v5902_v21 = vsel %vm5826_vm1, %v4927_v38, %v5761_v63  ;;  %v19064_v63 = vld [vmem:[#allocation17_spill] sm:$0xff] }
 0x79b   :  { %5534 = vrot.lane.b32.xlu1 %v15915_v27, %s7942_s17  ;;  %v16007_v47 = vpop.permute.xlu0 %4684  ;;  %v5763_v24 = vmax.f32 %v4929_v42, %v5276_v1  ;;  %v5277_v8 = vsel %vm5237_vm15, %v7572_v17, %v15435_v52  ;;  %v5766_v3 = vmax.f32 %v4932_v57, %v5662_v31  ;;  %v7581_v41 = vunpack.i.l.bf16 %v19059_v4  ;;  %v19069_v31 = vld [vmem:[#allocation166_spill] sm:$0xff] }
 0x79c   :  { %6782 = vmatmul.mubr.f32.gmra.mxu1 %v5902_v21  ;;  %v5905_v23 = vsel %vm5827_vm14, %v4930_v14, %v5764_v29  ;;  %v3025_v56 = vmax.f32 %v19060_v32, %v2906_v48  ;;  %v4931_v37 = vmax.f32 %v19061_v19, %v4443_v45  ;;  %v5663_v10 = vsel %vm5622_vm12, %v19063_v28, %v19062_v50  ;;  %v19071_v21 = vld [vmem:[#allocation14_spill] sm:$0xff]  ;;  %v19074_v32 = vld [vmem:[#allocation173_spill] sm:$0xff] }
 0x79d   :  { %7127 = vmatprep.mubr.msk.f32.mxu1 %vm159_vm0, %v5905_v23  ;;  %v16022_v38 = vpop.permute.xlu1 %4325  ;;  %v16026_v52 = vsel %vm3890_vm10, %v3023_v62, %v3857_v49  ;;  %v3740_v14 = vsel %vm3685_vm9, %v15314_v18, %v19064_v63  ;;  %v3356_v29 = vsel %vm3300_vm5, %v19066_v5, %v19065_v51  ;;  %v4934_v1 = vmax.f32 %v19067_v39, %v4829_v22  ;;  %v19068_v49 = vld [vmem:[#allocation162_spill] sm:$0xff]  ;;  %v19070_v22 = vld [vmem:[#allocation83_spill] sm:$0xff] }
 0x79e   :  { %4702 = vrot.lane.b32.xlu0 %v15927_v54, %s7941_s6  ;;  %v4444_v33 = vsel %vm4403_vm13, %v7576_v25, %v19058_v13  ;;  %v3858_v48 = vmax.f32 %v15880_v60, %v3355_v26  ;;  %v5765_v62 = vmax.f32 %v4931_v37, %v5277_v8  ;;  %v4830_v40 = vsel %vm4788_vm11, %v19069_v31, %v19068_v49  ;;  %v19075_v50 = vld [vmem:[#allocation62_spill] sm:$0xff]  ;;  %v19077_v49 = vld [vmem:[#allocation289_spill] sm:$0xff] }
 0x79f   :  { %4361 = vrot.lane.b32.xlu1 %v16026_v52, %s7944_s18  ;;  %v16045_v18 = vpop.permute.xlu0 %3284  ;;  %v5904_v45 = vsel %vm5826_vm1, %v4929_v42, %v5763_v24  ;;  %v7577_v17 = vunpack.i.h.bf16 %v15486_v7  ;;  %v5768_v36 = vmax.f32 %v4934_v1, %v5663_v10  ;;  %v5907_v25 = vsel %vm5827_vm14, %v4932_v57, %v5766_v3  ;;  %v19072_v7 = vld [vmem:[#allocation302_spill] sm:$0xff]  ;;  %v19073_v3 = vld [vmem:[#allocation139_spill] sm:$0xff] }
 0x7a0   :  { %6787 = vmatmul.mubr.f32.gmra.mxu1 %v5904_v45  ;;  %v5278_v26 = vsel %vm5237_vm15, %v7581_v41, %v19063_v28  ;;  %v3859_v43 = vmax.f32 %v3025_v56, %v3740_v14  ;;  %v3860_v13 = vmax.f32 %v15950_v2, %v3356_v29  ;;  %v5664_v8 = vsel %vm5622_vm12, %v19071_v21, %v19070_v22  ;;  %v19076_v28 = vld [vmem:[#allocation257_spill] sm:$0xff] }
 0x7a1   :  { %7128 = vmatprep.mubr.msk.f32.mxu1 %vm159_vm0, %v5907_v25  ;;  %v16059_v42 = vpop.permute.xlu1 %7594  ;;  %v4933_v24 = vmax.f32 %v19072_v7, %v4444_v33  ;;  %v4445_v23 = vsel %vm4403_vm13, %v7577_v17, %v19069_v31  ;;  %v7582_v57 = vunpack.i.h.bf16 %v19059_v4  ;;  %v4936_v41 = vmax.f32 %v19073_v3, %v4830_v40  ;;  %v19078_v40 = vld [vmem:[#allocation51_spill] sm:$0xff] }
 0x7a2   :  { %v7586_v19 = vunpack.i.l.bf16 %v19074_v32  ;;  %5536 = vrot.lane.b32.xlu0 %v15927_v54, %s7942_s17  ;;  %v4831_v10 = vsel %vm4788_vm11, %v19076_v28, %v19075_v50  ;;  %v5906_v14 = vsel %vm5826_vm1, %v4931_v37, %v5765_v62  ;;  %v7591_v39 = vunpack.i.l.bf16 %v15875_v15 }
 0x7a3   :  { %5195 = vrot.lane.b32.xlu1 %v16026_v52, %s7945_s21  ;;  %v16074_v63 = vpop.permute.xlu0 %3613  ;;  %v5767_v4 = vmax.f32 %v4933_v24, %v5278_v26  ;;  %v5279_v5 = vsel %vm5237_vm15, %v7582_v57, %v19071_v21  ;;  %v5770_v29 = vmax.f32 %v4936_v41, %v5664_v8  ;;  %v5909_v33 = vsel %vm5827_vm14, %v4934_v1, %v5768_v36  ;;  %v19080_v21 = vld [vmem:[#allocation178_spill] sm:$0xff] }
 0x7a4   :  { %6792 = vmatmul.mubr.f32.gmra.mxu1 %v5906_v14  ;;  %v2907_v31 = vsel %vm2851_vm8, %v19044_v0, %v19077_v49  ;;  %v4935_v45 = vmax.f32 %v19078_v40, %v4445_v23  ;;  %v5665_v37 = vsel %vm5622_vm12, %v15836_v12, %v15818_v46  ;;  %v16096_v17 = vsel %vm3889_vm6, %v15880_v60, %v3858_v48  ;;  %v19079_v0 = vld [vmem:[#allocation87_spill] sm:$0xff]  ;;  %v19081_v23 = vld [vmem:[#allocation305_spill] sm:$0xff]  ;;  %v19085_v49 = vld [vmem:[#allocation88_spill] sm:$0xff] }
 0x7a5   :  { %7129 = vmatprep.mubr.msk.f32.mxu1 %vm159_vm0, %v5909_v33  ;;  %v16091_v62 = vpop.permute.xlu1 %3286  ;;  %v16101_v1 = vsel %vm3889_vm6, %v15950_v2, %v3860_v13  ;;  %v4938_v36 = vmax.f32 %v19079_v0, %v4831_v10  ;;  %v16108_v46 = vsel %vm3890_vm10, %v3025_v56, %v3859_v43  ;;  %v4446_v25 = vsel %vm4403_vm13, %v7586_v19, %v19076_v28 }
 0x7a6   :  { %4704 = vrot.lane.b32.xlu0 %v16096_v17, %s7941_s6  ;;  %v5769_v26 = vmax.f32 %v4935_v45, %v5279_v5  ;;  %v4832_v60 = vsel %vm4788_vm11, %v15862_v16, %v15910_v20  ;;  %v5908_v48 = vsel %vm5826_vm1, %v4933_v24, %v5767_v4  ;;  %v7587_v13 = vunpack.i.h.bf16 %v19074_v32 }
 0x7a7   :  { %4365 = vrot.lane.b32.xlu1 %v16108_v46, %s7944_s18  ;;  %v5519_v2 = vpop.permute.xlu0 %5518  ;;  %v5772_v22 = vmax.f32 %v4938_v36, %v5665_v37  ;;  %v5911_v56 = vsel %vm5827_vm14, %v4936_v41, %v5770_v29  ;;  %v5280_v43 = vsel %vm5237_vm15, %v7591_v39, %v15836_v12  ;;  %v3027_v8 = vmax.f32 %v19080_v21, %v2907_v31  ;;  %v19082_v12 = vld [vmem:[#allocation147_spill] sm:$0xff]  ;;  %v19087_v37 = vld [vmem:[#allocation234_spill] sm:$0xff] }
 0x7a8   :  { %6797 = vmatmul.mubr.f32.gmra.mxu1 %v5908_v48  ;;  %v5666_v20 = vsel %vm5622_vm12, %v15990_v11, %v15974_v55  ;;  %v7643_v24 = vpack.i.bf16 %v16101_v1, %v16096_v17  ;;  %v4937_v57 = vmax.f32 %v19081_v23, %v4446_v25  ;;  %v4447_v3 = vsel %vm4403_vm13, %v7587_v13, %v15862_v16  ;;  %v19083_v55 = vld [vmem:[#allocation154_spill] sm:$0xff]  ;;  %v19088_v48 = vld [vmem:[#allocation237_spill] sm:$0xff]  ;;  %v19089_v13 = vld [vmem:[#allocation236_spill] sm:$0xff] }
 0x7a9   :  { %7130 = vmatprep.mubr.msk.f32.mxu1 %vm159_vm0, %v5911_v56  ;;  %v5160_v7 = vpop.permute.xlu1 %5159  ;;  %v7592_v41 = vunpack.i.h.bf16 %v15875_v15  ;;  %v4940_v32 = vmax.f32 %v19082_v12, %v4832_v60  ;;  %v7596_v19 = vunpack.i.l.bf16 %v16059_v42  ;;  %v3741_v50 = vsel %vm3685_vm9, %v19065_v51, %v19083_v55  ;;  %v19084_v51 = vld [vmem:[#allocation254_spill] sm:$0xff]  ;;  %v19092_v23 = vld [vmem:[#allocation24_spill] sm:$0xff]  ;;  %v19096_v55 = vld [vmem:[#allocation99_spill] sm:$0xff] }
 0x7aa   :  { %5199 = vrot.lane.b32.xlu0 %v16108_v46, %s7945_s21  ;;  %v4833_v28 = vsel %vm4788_vm11, %v16022_v38, %v16007_v47  ;;  %v5910_v15 = vsel %vm5826_vm1, %v4935_v45, %v5769_v26  ;;  %v5771_v10 = vmax.f32 %v4937_v57, %v5280_v43  ;;  %v5913_v5 = vsel %vm5827_vm14, %v4938_v36, %v5772_v22  ;;  %v19086_v45 = vld [vmem:[#allocation235_spill] sm:$0xff]  ;;  %v19090_v56 = vld [vmem:[#allocation290_spill] sm:$0xff] }
 0x7ab   :  { %7644 = vrot.lane.b32.xlu1 %v7643_v24, %s7944_s18  ;;  %v4330_v16 = vpop.permute.xlu0 %4329  ;;  %v5281_v14 = vsel %vm5237_vm15, %v7592_v41, %v15990_v11  ;;  %v5774_v4 = vmax.f32 %v4940_v32, %v5666_v20  ;;  %v4939_v29 = vmax.f32 %v19084_v51, %v4447_v3  ;;  %v5667_v39 = vsel %vm5622_vm12, %v5160_v7, %v5519_v2  ;;  %v19091_v20 = vld [vmem:[#allocation64_spill] sm:$0xff]  ;;  %v19093_v3 = vld [vmem:[#allocation45_spill] sm:$0xff]  ;;  %v19094_v41 = vld [vmem:[#allocation10_spill] sm:$0xff] }
 0x7ac   :  { %6802 = vmatmul.mubr.f32.gmra.mxu1 %v5910_v15  ;;  %v3861_v33 = vmax.f32 %v3027_v8, %v3741_v50  ;;  %v4942_v31 = vmax.f32 %v19085_v49, %v4833_v28  ;;  %v4448_v11 = vsel %vm4403_vm13, %v7596_v19, %v16022_v38  ;;  %v2523_v0 = vsel %vm2466_vm4, %v19087_v37, %v19086_v45  ;;  %v19097_v50 = vld [vmem:[#allocation163_spill] sm:$0xff] }
 0x7ad   :  { %7131 = vmatprep.mubr.msk.f32.mxu1 %vm159_vm0, %v5913_v5  ;;  %v7600_v47 = vpop.permute.xlu1 %7599  ;;  %v5773_v36 = vmax.f32 %v4939_v29, %v5281_v14  ;;  %v5912_v26 = vsel %vm5826_vm1, %v4937_v57, %v5771_v10  ;;  %v5915_v2 = vsel %vm5827_vm14, %v4940_v32, %v5774_v4  ;;  %v2524_v22 = vsel %vm2466_vm4, %v19089_v13, %v19088_v48  ;;  %v19095_v32 = vld [vmem:[#allocation101_spill] sm:$0xff]  ;;  %v19098_v4 = vld [vmem:[#allocation19_spill] sm:$0xff] }
 0x7ae   :  { %v7601_v40 = vunpack.i.l.bf16 %v7600_v47  ;;  %7649 = vrot.lane.b32.xlu0 %v7643_v24, %s7945_s21  ;;  %v5776_v60 = vmax.f32 %v4942_v31, %v5667_v39  ;;  %v2908_v43 = vsel %vm2851_vm8, %v19086_v45, %v19090_v56  ;;  %v4941_v24 = vmax.f32 %v19091_v20, %v4448_v11  ;;  %v19099_v5 = vld [vmem:[#allocation181_spill] sm:$0xff] }
 0x7af   :  { %5538 = vrot.lane.b32.xlu1 %v16096_v17, %s7942_s17  ;;  %v16164_v25 = vpop.permute.xlu0 %3288  ;;  %v3028_v57 = vmax.f32 %v19092_v23, %v2523_v0  ;;  %v3357_v12 = vsel %vm3300_vm5, %v19094_v41, %v19093_v3  ;;  %v3742_v19 = vsel %vm3685_vm9, %v19093_v3, %v19095_v32  ;;  %v3358_v28 = vsel %vm3300_vm5, %v19097_v50, %v19096_v55  ;;  %v19103_v32 = vld [vmem:[#allocation67_spill] sm:$0xff] }
 0x7b0   :  { %6807 = vmatmul.mubr.f32.gmra.mxu1 %v5912_v26  ;;  %v5282_v38 = vsel %vm5237_vm15, %v7601_v40, %v5160_v7  ;;  %v16187_v7 = vsel %vm3890_vm10, %v3027_v8, %v3861_v33  ;;  %v5914_v10 = vsel %vm5826_vm1, %v4939_v29, %v5773_v36  ;;  %v3030_v8 = vmax.f32 %v19098_v4, %v2524_v22  ;;  %v19100_v36 = vld [vmem:[#allocation255_spill] sm:$0xff] }
 0x7b1   :  { %7132 = vmatprep.mubr.msk.f32.mxu1 %vm159_vm0, %v5915_v2  ;;  %v4687_v21 = vpop.permute.xlu1 %4686  ;;  %v5775_v14 = vmax.f32 %v4941_v24, %v5282_v38  ;;  %v3029_v51 = vmax.f32 %v19099_v5, %v2908_v43  ;;  %v7597_v39 = vunpack.i.h.bf16 %v16059_v42  ;;  %v5917_v33 = vsel %vm5827_vm14, %v4942_v31, %v5776_v60  ;;  %v19101_v60 = vld [vmem:[#allocation20_spill] sm:$0xff]  ;;  %v19104_v50 = vld [vmem:[#allocation183_spill] sm:$0xff]  ;;  %v19106_v5 = vld [vmem:[#allocation238_spill] sm:$0xff] }
 0x7b2   :  { %4706 = vrot.lane.b32.xlu0 %v16101_v1, %s7941_s6  ;;  %v3862_v49 = vmax.f32 %v3028_v57, %v3357_v12  ;;  %v3864_v45 = vmax.f32 %v3030_v8, %v3358_v28  ;;  %v4834_v37 = vsel %vm4788_vm11, %v4330_v16, %v4687_v21  ;;  %v7602_v0 = vunpack.i.h.bf16 %v7600_v47 }
 0x7b3   :  { %4369 = vrot.lane.b32.xlu1 %v16187_v7, %s7944_s18  ;;  %v16197_v15 = vpop.permute.xlu0 %3615  ;;  %v3863_v11 = vmax.f32 %v3029_v51, %v3742_v19  ;;  %v4449_v29 = vsel %vm4403_vm13, %v7597_v39, %v4330_v16  ;;  %v5916_v31 = vsel %vm5826_vm1, %v4941_v24, %v5775_v14  ;;  %v4944_v2 = vmax.f32 %v19101_v60, %v4834_v37  ;;  %v19102_v24 = vld [vmem:[#allocation291_spill] sm:$0xff]  ;;  %v19108_v39 = vld [vmem:[#allocation240_spill] sm:$0xff]  ;;  %v19111_v37 = vld [vmem:[#allocation174_spill] sm:$0xff] }
 0x7b4   :  { %6812 = vmatmul.mubr.f32.gmra.mxu1 %v5914_v10  ;;  %v4943_v26 = vmax.f32 %v19100_v36, %v4449_v29  ;;  %v16221_v16 = vsel %vm3889_vm6, %v3028_v57, %v3862_v49  ;;  %v16225_v13 = vsel %vm3889_vm6, %v3030_v8, %v3864_v45  ;;  %v2909_v23 = vsel %vm2851_vm8, %v19088_v48, %v19102_v24  ;;  %v19105_v8 = vld [vmem:[#allocation239_spill] sm:$0xff]  ;;  %v19109_v49 = vld [vmem:[#allocation292_spill] sm:$0xff]  ;;  %v19112_v36 = vld [vmem:[#allocation25_spill] sm:$0xff] }
 0x7b5   :  { %7133 = vmatprep.mubr.msk.f32.mxu1 %vm159_vm0, %v5917_v33  ;;  %v16207_v40 = vpop.permute.xlu1 %3290  ;;  %v16233_v47 = vsel %vm3890_vm10, %v3029_v51, %v3863_v11  ;;  %v7653_v41 = vpack.i.bf16 %v16225_v13, %v16221_v16  ;;  %v3743_v19 = vsel %vm3685_vm9, %v19096_v55, %v19103_v32  ;;  %v3031_v28 = vmax.f32 %v19104_v50, %v2909_v23  ;;  %v19107_v51 = vld [vmem:[#allocation241_spill] sm:$0xff]  ;;  %v19110_v29 = vld [vmem:[#allocation171_spill] sm:$0xff]  ;;  %v19113_v60 = vld [vmem:[#allocation258_spill] sm:$0xff] }
 0x7b6   :  { %5540 = vrot.lane.b32.xlu0 %v16101_v1, %s7942_s17  ;;  %v2525_v55 = vsel %vm2466_vm4, %v19106_v5, %v19105_v8  ;;  %v2526_v33 = vsel %vm2466_vm4, %v19108_v39, %v19107_v51  ;;  %v2910_v11 = vsel %vm2851_vm8, %v19105_v8, %v19109_v49 }
 0x7b7   :  { %5203 = vrot.lane.b32.xlu1 %v16187_v7, %s7945_s21  ;;  %v5521_v42 = vpop.permute.xlu0 %5520  ;;  %v3865_v14 = vmax.f32 %v3031_v28, %v3743_v19 }
 0x7b8   :  { %6817 = vmatmul.mubr.f32.gmra.mxu1 %v5916_v31 }
 0x7b9   :  { %v5164_v38 = vpop.permute.xlu1 %5163 }
 0x7ba   :  { %v5283_v22 = vsel %vm5237_vm15, %v7602_v0, %v5164_v38  ;;  %v5668_v56 = vsel %vm5622_vm12, %v5164_v38, %v5521_v42  ;;  %4708 = vrot.lane.b32.xlu0 %v16221_v16, %s7941_s6  ;;  %v3359_v42 = vsel %vm3300_vm5, %v19111_v37, %v19110_v29  ;;  %v16280_v0 = vsel %vm3890_vm10, %v3031_v28, %v3865_v14 }
 0x7bb   :  { %v5777_v43 = vmax.f32 %v4943_v26, %v5283_v22  ;;  %v5778_v21 = vmax.f32 %v4944_v2, %v5668_v56  ;;  %4373 = vrot.lane.b32.xlu1 %v16233_v47, %s7944_s18  ;;  %v4689_v20 = vpop.permute.xlu0 %4688  ;;  %v3360_v38 = vsel %vm3300_vm5, %v15895_v59, %v15957_v6  ;;  %v19114_v56 = vld [vmem:[#allocation23_spill] sm:$0xff] }
 0x7bd   :  { %v4334_v57 = vpop.permute.xlu1 %4333  ;;  %v5919_v3 = vsel %vm5827_vm14, %v4944_v2, %v5778_v21  ;;  %v5918_v12 = vsel %vm5826_vm1, %v4943_v26, %v5777_v43  ;;  %v3032_v26 = vmax.f32 %v19112_v36, %v2525_v55  ;;  %v3744_v2 = vsel %vm3685_vm9, %v19110_v29, %v19113_v60  ;;  %v19115_v21 = vld [vmem:[#allocation186_spill] sm:$0xff] }
 0x7be   :  { %5207 = vrot.lane.b32.xlu0 %v16233_v47, %s7945_s21  ;;  %7134 = vmatprep.mubr.msk.f32.mxu1 %vm159_vm0, %v5919_v3  ;;  %v4835_v31 = vsel %vm4788_vm11, %v4334_v57, %v4689_v20  ;;  %v3034_v43 = vmax.f32 %v19114_v56, %v2526_v33  ;;  %v3033_v20 = vmax.f32 %v19115_v21, %v2910_v11  ;;  %v19116_v3 = vld [vmem:[#allocation73_spill] sm:$0xff]  ;;  %v19117_v11 = vld [vmem:[#allocation159_spill] sm:$0xff] }
 0x7bf   :  { %7654 = vrot.lane.b32.xlu1 %v7653_v41, %s7944_s18  ;;  %v16253_v48 = vpop.permute.xlu0 %3292  ;;  %6822 = vmatmul.mubr.f32.gmra.mxu1 %v5918_v12  ;;  %v3866_v23 = vmax.f32 %v3032_v26, %v3359_v42  ;;  %v19118_v42 = vld [vmem:[#allocation293_spill] sm:$0xff]  ;;  %v19120_v21 = vld [vmem:[#allocation243_spill] sm:$0xff] }
 0x7c0   :  { %v3867_v32 = vmax.f32 %v3033_v20, %v3744_v2  ;;  %v3868_v19 = vmax.f32 %v3034_v43, %v3360_v38  ;;  %v3745_v2 = vsel %vm3685_vm9, %v15957_v6, %v15940_v44 }
 0x7c1   :  { %v7605_v10 = vpop.permute.xlu1 %7604  ;;  %v16302_v5 = vsel %vm3889_vm6, %v3032_v26, %v3866_v23 }
 0x7c2   :  { %7659 = vrot.lane.b32.xlu0 %v7653_v41, %s7945_s21  ;;  %v7606_v24 = vunpack.i.l.bf16 %v7605_v10  ;;  %v4946_v41 = vmax.f32 %v19116_v3, %v4835_v31  ;;  %v16308_v39 = vsel %vm3889_vm6, %v3034_v43, %v3868_v19  ;;  %v2911_v31 = vsel %vm2851_vm8, %v19107_v51, %v19118_v42  ;;  %v19119_v51 = vld [vmem:[#allocation189_spill] sm:$0xff] }
 0x7c3   :  { %5542 = vrot.lane.b32.xlu1 %v16221_v16, %s7942_s17  ;;  %v16259_v4 = vpop.permute.xlu0 %3617  ;;  %v7663_v26 = vpack.i.bf16 %v16308_v39, %v16302_v5  ;;  %v3035_v56 = vmax.f32 %v19119_v51, %v2911_v31  ;;  %v7607_v43 = vunpack.i.h.bf16 %v7605_v10  ;;  %v19123_v19 = vld [vmem:[#allocation245_spill] sm:$0xff]  ;;  %v3361_v42 = vsel %vm3300_vm5, %v16045_v18, %v16091_v62  ;;  %v19128_v51 = vld [vmem:[#allocation26_spill] sm:$0xff] }
 0x7c4   :  { %v4450_v14 = vsel %vm4403_vm13, %v7606_v24, %v4334_v57  ;;  %v16315_v57 = vsel %vm3890_vm10, %v3033_v20, %v3867_v32  ;;  %v19121_v20 = vld [vmem:[#allocation242_spill] sm:$0xff] }
 0x7c5   :  { %v16270_v45 = vpop.permute.xlu1 %3294  ;;  %v4945_v29 = vmax.f32 %v19117_v11, %v4450_v14  ;;  %v2527_v24 = vsel %vm2466_vm4, %v19121_v20, %v19120_v21  ;;  %v3869_v3 = vmax.f32 %v3035_v56, %v3745_v2  ;;  %v19125_v14 = vld [vmem:[#allocation294_spill] sm:$0xff] }
 0x7c6   :  { %4710 = vrot.lane.b32.xlu0 %v16225_v13, %s7941_s6 }
 0x7c7   :  { %4377 = vrot.lane.b32.xlu1 %v16280_v0, %s7944_s18  ;;  %v5523_v22 = vpop.permute.xlu0 %5522 }
 0x7c9   :  { %v5168_v12 = vpop.permute.xlu1 %5167 }
 0x7ca   :  { %v5669_v50 = vsel %vm5622_vm12, %v5168_v12, %v5523_v22  ;;  %5544 = vrot.lane.b32.xlu0 %v16225_v13, %s7942_s17 }
 0x7cb   :  { %v5780_v59 = vmax.f32 %v4946_v41, %v5669_v50  ;;  %5211 = vrot.lane.b32.xlu1 %v16280_v0, %s7945_s21  ;;  %v4338_v28 = vpop.permute.xlu0 %4337  ;;  %v19124_v50 = vld [vmem:[#allocation244_spill] sm:$0xff] }
 0x7cc   :  { %v4451_v44 = vsel %vm4403_vm13, %v7607_v43, %v4338_v28 }
 0x7cd   :  { %v7610_v8 = vpop.permute.xlu1 %7609  ;;  %v5921_v55 = vsel %vm5827_vm14, %v4946_v41, %v5780_v59  ;;  %v2528_v59 = vsel %vm2466_vm4, %v19124_v50, %v19123_v19 }
 0x7ce   :  { %v7611_v33 = vunpack.i.l.bf16 %v7610_v8  ;;  %4712 = vrot.lane.b32.xlu0 %v16302_v5, %s7941_s6  ;;  %7135 = vmatprep.mubr.msk.f32.mxu1 %vm159_vm0, %v5921_v55  ;;  %v7612_v32 = vunpack.i.h.bf16 %v7610_v8  ;;  %v2912_v55 = vsel %vm2851_vm8, %v19120_v21, %v19125_v14  ;;  %v3038_v43 = vmax.f32 %v19128_v51, %v2528_v59  ;;  %v19129_v21 = vld [vmem:[#allocation191_spill] sm:$0xff]  ;;  %v19133_v51 = vld [vmem:[#allocation194_spill] sm:$0xff] }
 0x7cf   :  { %4381 = vrot.lane.b32.xlu1 %v16315_v57, %s7944_s18  ;;  %v16319_v49 = vpop.permute.xlu0 %3296  ;;  %v3037_v20 = vmax.f32 %v19129_v21, %v2912_v55 }
 0x7d0   :  { %v5284_v37 = vsel %vm5237_vm15, %v7611_v33, %v5168_v12  ;;  %v19122_v12 = vld [vmem:[#allocation27_spill] sm:$0xff]  ;;  %v19126_v33 = vld [vmem:[#allocation158_spill] sm:$0xff] }
 0x7d1   :  { %v4691_v36 = vpop.permute.xlu1 %4690  ;;  %v5779_v60 = vmax.f32 %v4945_v29, %v5284_v37  ;;  %v3036_v10 = vmax.f32 %v19122_v12, %v2527_v24  ;;  %v4947_v11 = vmax.f32 %v19126_v33, %v4451_v44  ;;  %v19130_v33 = vld [vmem:[#allocation295_spill] sm:$0xff] }
 0x7d2   :  { %5215 = vrot.lane.b32.xlu0 %v16315_v57, %s7945_s21  ;;  %v4836_v6 = vsel %vm4788_vm11, %v4338_v28, %v4691_v36  ;;  %v19127_v28 = vld [vmem:[#allocation59_spill] sm:$0xff]  ;;  %v16367_v36 = vsel %vm3890_vm10, %v3035_v56, %v3869_v3 }
 0x7d3   :  { %7664 = vrot.lane.b32.xlu1 %v7663_v26, %s7944_s18  ;;  %v16334_v38 = vpop.permute.xlu0 %3619  ;;  %v5920_v22 = vsel %vm5826_vm1, %v4945_v29, %v5779_v60  ;;  %v4948_v29 = vmax.f32 %v19127_v28, %v4836_v6  ;;  %v3362_v60 = vsel %vm3300_vm5, %v16164_v25, %v16207_v40  ;;  %v3870_v56 = vmax.f32 %v3036_v10, %v3361_v42  ;;  %v19131_v28 = vld [vmem:[#allocation167_spill] sm:$0xff] }
 0x7d4   :  { %6827 = vmatmul.mubr.f32.gmra.mxu1 %v5920_v22  ;;  %v3872_v25 = vmax.f32 %v3038_v43, %v3362_v60 }
 0x7d5   :  { %v16342_v23 = vpop.permute.xlu1 %3298 }
 0x7d6   :  { %7669 = vrot.lane.b32.xlu0 %v7663_v26, %s7945_s21  ;;  %v3746_v26 = vsel %vm3685_vm9, %v16091_v62, %v16074_v63  ;;  %v16394_v12 = vsel %vm3889_vm6, %v3038_v43, %v3872_v25 }
 0x7d7   :  { %5546 = vrot.lane.b32.xlu1 %v16302_v5, %s7942_s17  ;;  %v5525_v41 = vpop.permute.xlu0 %5524  ;;  %v3871_v62 = vmax.f32 %v3037_v20, %v3746_v26 }
 0x7d9   :  { %v5172_v37 = vpop.permute.xlu1 %5171  ;;  %v16401_v59 = vsel %vm3890_vm10, %v3037_v20, %v3871_v62  ;;  %v19134_v20 = vld [vmem:[#allocation247_spill] sm:$0xff] }
 0x7da   :  { %v5285_v31 = vsel %vm5237_vm15, %v7612_v32, %v5172_v37  ;;  %v5670_v8 = vsel %vm5622_vm12, %v5172_v37, %v5525_v41  ;;  %4714 = vrot.lane.b32.xlu0 %v16308_v39, %s7941_s6  ;;  %v16390_v41 = vsel %vm3889_vm6, %v3036_v10, %v3870_v56  ;;  %v19135_v56 = vld [vmem:[#allocation246_spill] sm:$0xff] }
 0x7db   :  { %v5781_v18 = vmax.f32 %v4947_v11, %v5285_v31  ;;  %v5782_v2 = vmax.f32 %v4948_v29, %v5670_v8  ;;  %4385 = vrot.lane.b32.xlu1 %v16367_v36, %s7944_s18  ;;  %v4693_v22 = vpop.permute.xlu0 %4692  ;;  %v7673_v42 = vpack.i.bf16 %v16394_v12, %v16390_v41  ;;  %v19132_v31 = vld [vmem:[#allocation256_spill] sm:$0xff] }
 0x7dd   :  { %v4342_v24 = vpop.permute.xlu1 %4341  ;;  %v5923_v3 = vsel %vm5827_vm14, %v4948_v29, %v5782_v2  ;;  %v5922_v63 = vsel %vm5826_vm1, %v4947_v11, %v5781_v18  ;;  %v2913_v11 = vsel %vm2851_vm8, %v19123_v19, %v19130_v33  ;;  %v3747_v18 = vsel %vm3685_vm9, %v16207_v40, %v16197_v15 }
 0x7de   :  { %5548 = vrot.lane.b32.xlu0 %v16308_v39, %s7942_s17  ;;  %7136 = vmatprep.mubr.msk.f32.mxu1 %vm159_vm0, %v5923_v3  ;;  %v4837_v32 = vsel %vm4788_vm11, %v4342_v24, %v4693_v22  ;;  %v3039_v43 = vmax.f32 %v19133_v51, %v2913_v11  ;;  %v19139_v11 = vld [vmem:[#allocation296_spill] sm:$0xff] }
 0x7df   :  { %5219 = vrot.lane.b32.xlu1 %v16367_v36, %s7945_s21  ;;  %v5176_v44 = vpop.permute.xlu0 %5175  ;;  %6832 = vmatmul.mubr.f32.gmra.mxu1 %v5922_v63  ;;  %v4950_v29 = vmax.f32 %v19131_v28, %v4837_v32  ;;  %v2914_v28 = vsel %vm2851_vm8, %v19134_v20, %v19139_v11  ;;  %v19145_v11 = vld [vmem:[#allocation41_spill] sm:$0xff] }
 0x7e0   :  { %v3873_v15 = vmax.f32 %v3039_v43, %v3747_v18 }
 0x7e1   :  { %v7615_v6 = vpop.permute.xlu1 %7614 }
 0x7e2   :  { %v7616_v50 = vunpack.i.l.bf16 %v7615_v6  ;;  %4716 = vrot.lane.b32.xlu0 %v16390_v41, %s7941_s6  ;;  %v7617_v21 = vunpack.i.h.bf16 %v7615_v6  ;;  %v19136_v6 = vld [vmem:[#allocation195_spill] sm:$0xff]  ;;  %v16453_v18 = vsel %vm3890_vm10, %v3039_v43, %v3873_v15 }
 0x7e3   :  { %4389 = vrot.lane.b32.xlu1 %v16401_v59, %s7944_s18  ;;  %v7620_v14 = vpop.permute.xlu0 %7619 }
 0x7e4   :  { %v4452_v10 = vsel %vm4403_vm13, %v7616_v50, %v4342_v24  ;;  %v7621_v55 = vunpack.i.l.bf16 %v7620_v14  ;;  %v2529_v24 = vsel %vm2466_vm4, %v19135_v56, %v19134_v20  ;;  %v7622_v50 = vunpack.i.h.bf16 %v7620_v14  ;;  %v19143_v56 = vld [vmem:[#allocation198_spill] sm:$0xff] }
 0x7e5   :  { %v5527_v37 = vpop.permute.xlu1 %5526  ;;  %v4949_v8 = vmax.f32 %v19132_v31, %v4452_v10  ;;  %v3040_v32 = vmax.f32 %v19136_v6, %v2529_v24  ;;  %v19137_v10 = vld [vmem:[#allocation249_spill] sm:$0xff]  ;;  %v3041_v24 = vmax.f32 %v19143_v56, %v2914_v28 }
 0x7e6   :  { %v5286_v26 = vsel %vm5237_vm15, %v7621_v55, %v5176_v44  ;;  %v5671_v60 = vsel %vm5622_vm12, %v5176_v44, %v5527_v37  ;;  %5223 = vrot.lane.b32.xlu0 %v16401_v59, %s7945_s21  ;;  %v19138_v55 = vld [vmem:[#allocation248_spill] sm:$0xff] }
 0x7e7   :  { %v5784_v19 = vmax.f32 %v4950_v29, %v5671_v60  ;;  %7674 = vrot.lane.b32.xlu1 %v7673_v42, %s7944_s18  ;;  %v4695_v2 = vpop.permute.xlu0 %4694  ;;  %v5783_v22 = vmax.f32 %v4949_v8, %v5286_v26  ;;  %v2530_v33 = vsel %vm2466_vm4, %v19138_v55, %v19137_v10  ;;  %v3363_v26 = vsel %vm3300_vm5, %v16253_v48, %v16270_v45  ;;  %v19144_v55 = vld [vmem:[#allocation297_spill] sm:$0xff] }
 0x7e8   :  { %v3874_v43 = vmax.f32 %v3040_v32, %v3363_v26  ;;  %v3749_v26 = vsel %vm3685_vm9, %v16342_v23, %v16334_v38 }
 0x7e9   :  { %v4346_v3 = vpop.permute.xlu1 %4345  ;;  %v5925_v63 = vsel %vm5827_vm14, %v4950_v29, %v5784_v19  ;;  %v5924_v62 = vsel %vm5826_vm1, %v4949_v8, %v5783_v22  ;;  %v19140_v29 = vld [vmem:[#allocation39_spill] sm:$0xff]  ;;  %v3748_v19 = vsel %vm3685_vm9, %v16270_v45, %v16259_v4 }
 0x7ea   :  { %v4453_v40 = vsel %vm4403_vm13, %v7617_v21, %v4346_v3  ;;  %v4838_v25 = vsel %vm4788_vm11, %v4346_v3, %v4695_v2  ;;  %7679 = vrot.lane.b32.xlu0 %v7673_v42, %s7945_s21  ;;  %7137 = vmatprep.mubr.msk.f32.mxu1 %vm159_vm0, %v5925_v63  ;;  %v19141_v42 = vld [vmem:[#allocation63_spill] sm:$0xff]  ;;  %v3364_v2 = vsel %vm3300_vm5, %v16319_v49, %v16342_v23 }
 0x7eb   :  { %5550 = vrot.lane.b32.xlu1 %v16390_v41, %s7942_s17  ;;  %v5529_v44 = vpop.permute.xlu0 %5528  ;;  %6837 = vmatmul.mubr.f32.gmra.mxu1 %v5924_v62  ;;  %v4951_v37 = vmax.f32 %v19140_v29, %v4453_v40  ;;  %v4952_v31 = vmax.f32 %v19141_v42, %v4838_v25  ;;  %v19142_v21 = vld [vmem:[#allocation199_spill] sm:$0xff]  ;;  %v3875_v45 = vmax.f32 %v3041_v24, %v3748_v19 }
 0x7ec   :  { %v3042_v20 = vmax.f32 %v19142_v21, %v2530_v33  ;;  %v16476_v40 = vsel %vm3889_vm6, %v3040_v32, %v3874_v43  ;;  %v2915_v32 = vsel %vm2851_vm8, %v19137_v10, %v19144_v55  ;;  %v19147_v10 = vld [vmem:[#allocation202_spill] sm:$0xff] }
 0x7ed   :  { %v5180_v8 = vpop.permute.xlu1 %5179 }
 0x7ee   :  { %v5287_v60 = vsel %vm5237_vm15, %v7622_v50, %v5180_v8  ;;  %v5672_v14 = vsel %vm5622_vm12, %v5180_v8, %v5529_v44  ;;  %4718 = vrot.lane.b32.xlu0 %v16394_v12, %s7941_s6  ;;  %v3876_v49 = vmax.f32 %v3042_v20, %v3364_v2  ;;  %v16487_v50 = vsel %vm3890_vm10, %v3041_v24, %v3875_v45 }
 0x7ef   :  { %v5785_v48 = vmax.f32 %v4951_v37, %v5287_v60  ;;  %v5786_v22 = vmax.f32 %v4952_v31, %v5672_v14  ;;  %4393 = vrot.lane.b32.xlu1 %v16453_v18, %s7944_s18  ;;  %v4697_v51 = vpop.permute.xlu0 %4696  ;;  %v3043_v14 = vmax.f32 %v19147_v10, %v2915_v32  ;;  %v5989_v10 = vld [vmem:[%s17143_s4 + $0x8] sm:$0xff] }
 0x7f0   :  { %v16480_v25 = vsel %vm3889_vm6, %v3042_v20, %v3876_v49 }
 0x7f1   :  { %v4350_v3 = vpop.permute.xlu1 %4349  ;;  %v5927_v63 = vsel %vm5827_vm14, %v4952_v31, %v5786_v22  ;;  %v5926_v4 = vsel %vm5826_vm1, %v4951_v37, %v5785_v48  ;;  %v7683_v42 = vpack.i.bf16 %v16480_v25, %v16476_v40  ;;  %v19146_v31 = vld [vmem:[#allocation48_spill] sm:$0xff]  ;;  %v3877_v21 = vmax.f32 %v3043_v14, %v3749_v26 }
 0x7f2   :  { %5552 = vrot.lane.b32.xlu0 %v16394_v12, %s7942_s17  ;;  %7138 = vmatprep.mubr.msk.f32.mxu1 %vm159_vm0, %v5927_v63  ;;  %v4839_v44 = vsel %vm4788_vm11, %v4350_v3, %v4697_v51 }
 0x7f3   :  { %5227 = vrot.lane.b32.xlu1 %v16453_v18, %s7945_s21  ;;  %v5184_v62 = vpop.permute.xlu0 %5183  ;;  %6842 = vmatmul.mubr.f32.gmra.mxu1 %v5926_v4  ;;  %v4954_v28 = vmax.f32 %v19145_v11, %v4839_v44 }
 0x7f5   :  { %v7625_v15 = vpop.permute.xlu1 %7624 }
 0x7f6   :  { %v7626_v6 = vunpack.i.l.bf16 %v7625_v15  ;;  %4720 = vrot.lane.b32.xlu0 %v16476_v40, %s7941_s6  ;;  %v7627_v48 = vunpack.i.h.bf16 %v7625_v15  ;;  %v16527_v15 = vsel %vm3890_vm10, %v3043_v14, %v3877_v21 }
 0x7f7   :  { %4397 = vrot.lane.b32.xlu1 %v16487_v50, %s7944_s18 }
 0x7f8   :  { %v4454_v58 = vsel %vm4403_vm13, %v7626_v6, %v4350_v3  ;;  %v7630_v33 = vpop.permute.xlu0 %7629 }
 0x7f9   :  { %v7631_v29 = vunpack.i.l.bf16 %v7630_v33  ;;  %v5531_v37 = vpop.permute.xlu1 %5530  ;;  %v4953_v8 = vmax.f32 %v19146_v31, %v4454_v58  ;;  %v7632_v43 = vunpack.i.h.bf16 %v7630_v33  ;;  %v5988_v58 = vld [vmem:[%s17143_s4] sm:$0xff] }
 0x7fa   :  { %v5673_v60 = vsel %vm5622_vm12, %v5184_v62, %v5531_v37  ;;  %5231 = vrot.lane.b32.xlu0 %v16487_v50, %s7945_s21 }
 0x7fb   :  { %v5288_v19 = vsel %vm5237_vm15, %v7631_v29, %v5184_v62  ;;  %v5788_v2 = vmax.f32 %v4954_v28, %v5673_v60  ;;  %7684 = vrot.lane.b32.xlu1 %v7683_v42, %s7944_s18 }
 0x7fc   :  { %v4699_v22 = vpop.permute.xlu0 %4698  ;;  %v5787_v51 = vmax.f32 %v4953_v8, %v5288_v19 }
 0x7fd   :  { %v4354_v20 = vpop.permute.xlu1 %4353  ;;  %v5929_v38 = vsel %vm5827_vm14, %v4954_v28, %v5788_v2 }
 0x7fe   :  { %v4455_v23 = vsel %vm4403_vm13, %v7627_v48, %v4354_v20  ;;  %v4840_v56 = vsel %vm4788_vm11, %v4354_v20, %v4699_v22  ;;  %5229 = vrot.lane.b32.xlu0 %v16476_v40, %s7945_s21  ;;  %7139 = vmatprep.mubr.msk.f32.mxu1 %vm159_vm0, %v5929_v38  ;;  %v5928_v24 = vsel %vm5826_vm1, %v4953_v8, %v5787_v51  ;;  %v5990_v8 = vld [vmem:[%s17143_s4 + $0x10] sm:$0xff] }
 0x7ff   :  { %5554 = vrot.lane.b32.xlu1 %v16476_v40, %s7942_s17  ;;  %6847 = vmatmul.mubr.f32.gmra.mxu1 %v5928_v24  ;;  %v4955_v63 = vmax.f32 %v15725_v61, %v4455_v23  ;;  %v4956_v4 = vmax.f32 %v15851_v30, %v4840_v56  ;;  %v5992_v56 = vld [vmem:[%s17143_s4 + $0x20] sm:$0xff] }
 0x800   :  { %v5533_v3 = vpop.permute.xlu0 %5532 }
 0x801   :  { %v5188_v45 = vpop.permute.xlu1 %5187 }
 0x802   :  { %v5289_v49 = vsel %vm5237_vm15, %v7632_v43, %v5188_v45  ;;  %v5674_v62 = vsel %vm5622_vm12, %v5188_v45, %v5533_v3  ;;  %4722 = vrot.lane.b32.xlu0 %v16480_v25, %s7941_s6 }
 0x803   :  { %v5789_v44 = vmax.f32 %v4955_v63, %v5289_v49  ;;  %v5790_v6 = vmax.f32 %v4956_v4, %v5674_v62  ;;  %4401 = vrot.lane.b32.xlu1 %v16527_v15, %s7944_s18 }
 0x804   :  { %v4701_v61 = vpop.permute.xlu0 %4700 }
 0x805   :  { %v4358_v55 = vpop.permute.xlu1 %4357  ;;  %v5931_v30 = vsel %vm5827_vm14, %v4956_v4, %v5790_v6  ;;  %v5930_v32 = vsel %vm5826_vm1, %v4955_v63, %v5789_v44 }
 0x806   :  { %5556 = vrot.lane.b32.xlu0 %v16480_v25, %s7942_s17  ;;  %7140 = vmatprep.mubr.msk.f32.mxu1 %vm159_vm0, %v5931_v30  ;;  %v4841_v29 = vsel %vm4788_vm11, %v4358_v55, %v4701_v61  ;;  %v5994_v61 = vld [vmem:[%s17143_s4 + $0x30] sm:$0xff] }
 0x807   :  { %5235 = vrot.lane.b32.xlu1 %v16527_v15, %s7945_s21  ;;  %v7201_v35 = vpop.f32.mrf.mxu1  ;;  %6852 = vmatmul.mubr.f32.gmra.mxu1 %v5930_v32  ;;  %v4958_v14 = vmax.f32 %v15920_v9, %v4841_v29  ;;  %v5993_v32 = vld [vmem:[%s17143_s4 + $0x28] sm:$0xff] }
 0x808   :  { %v5192_v33 = vpop.permute.xlu0 %5191 }
 0x809   :  { %v7635_v11 = vpop.permute.xlu1 %7634  ;;  %v7202_v28 = vpop.f32.mrf.mxu1 }
 0x80a   :  { %v7636_v37 = vunpack.i.l.bf16 %v7635_v11  ;;  %6356 = vperm.xlu0 %7371, %v5988_v58   ;;  %v16544_v42 = vadd.f32 %v7202_v28, %v7201_v35  ;;  %v7637_v9 = vunpack.i.h.bf16 %v7635_v11 }
 0x80b   :  { %5233 = vrot.lane.b32.xlu1 %v16480_v25, %s7945_s21  ;;  %v7204_v31 = vpop.f32.mrf.mxu1 }
 0x80c   :  { %v4456_v26 = vsel %vm4403_vm13, %v7636_v37, %v4358_v55  ;;  %v7640_v60 = vpop.permute.xlu0 %7639 }
 0x80d   :  { %v7641_v19 = vunpack.i.l.bf16 %v7640_v60  ;;  %v5535_v2 = vpop.permute.xlu1 %5534  ;;  %v7205_v48 = vpop.f32.mrf.mxu1  ;;  %v4957_v22 = vmax.f32 %v15915_v27, %v4456_v26  ;;  %v5991_v27 = vld [vmem:[%s17143_s4 + $0x18] sm:$0xff]  ;;  %v7642_v55 = vunpack.i.h.bf16 %v7640_v60  ;;  %v5996_v60 = vld [vmem:[%s17143_s4 + $0x40] sm:$0xff] }
 0x80e   :  { %v5675_v51 = vsel %vm5622_vm12, %v5192_v33, %v5535_v2  ;;  %6366 = vperm.xlu0 %7371, %v5990_v8   ;;  %v16558_v21 = vadd.f32 %v7205_v48, %v7204_v31 }
 0x80f   :  { %v5290_v20 = vsel %vm5237_vm15, %v7641_v19, %v5192_v33  ;;  %v5792_v38 = vmax.f32 %v4958_v14, %v5675_v51  ;;  %6361 = vperm.xlu1 %7372, %v5989_v10   ;;  %v7207_v23 = vpop.f32.mrf.mxu1  ;;  %v5998_v51 = vld [vmem:[%s17143_s4 + $0x50] sm:$0xff] }
 0x810   :  { %v4703_v24 = vpop.permute.xlu0 %4702  ;;  %v5791_v43 = vmax.f32 %v4957_v22, %v5290_v20 }
 0x811   :  { %v4362_v3 = vpop.permute.xlu1 %4361  ;;  %v7208_v63 = vpop.f32.mrf.mxu1  ;;  %v5933_v4 = vsel %vm5827_vm14, %v4958_v14, %v5792_v38  ;;  %v5997_v38 = vld [vmem:[%s17143_s4 + $0x48] sm:$0xff] }
 0x812   :  { %v4457_v45 = vsel %vm4403_vm13, %v7637_v9, %v4362_v3  ;;  %v4842_v49 = vsel %vm4788_vm11, %v4362_v3, %v4703_v24  ;;  %6376 = vperm.xlu0 %7371, %v5992_v56   ;;  %v16571_v62 = vadd.f32 %v7208_v63, %v7207_v23  ;;  %7141 = vmatprep.mubr.msk.f32.mxu1 %vm159_vm0, %v5933_v4  ;;  %v6000_v3 = vld [vmem:[%s17143_s4 + $0x60] sm:$0xff] }
 0x813   :  { %6371 = vperm.xlu1 %7372, %v5991_v27   ;;  %v7210_v44 = vpop.f32.mrf.mxu1  ;;  %v5932_v6 = vsel %vm5826_vm1, %v4957_v22, %v5791_v43  ;;  %v4959_v35 = vmax.f32 %v15927_v54, %v4457_v45  ;;  %v4960_v58 = vmax.f32 %v16026_v52, %v4842_v49  ;;  %v5995_v52 = vld [vmem:[%s17143_s4 + $0x38] sm:$0xff] }
 0x814   :  { %v5537_v30 = vpop.permute.xlu0 %5536  ;;  %6857 = vmatmul.mubr.f32.gmra.mxu1 %v5932_v6  ;;  %v5999_v45 = vld [vmem:[%s17143_s4 + $0x58] sm:$0xff] }
 0x815   :  { %v5196_v33 = vpop.permute.xlu1 %5195  ;;  %v7211_v11 = vpop.f32.mrf.mxu1 }
 0x816   :  { %v5291_v28 = vsel %vm5237_vm15, %v7642_v55, %v5196_v33  ;;  %v5676_v29 = vsel %vm5622_vm12, %v5196_v33, %v5537_v30  ;;  %6386 = vperm.xlu0 %7371, %v5994_v61   ;;  %v16586_v37 = vadd.f32 %v7211_v11, %v7210_v44  ;;  %v6002_v11 = vld [vmem:[%s17143_s4 + $0x70] sm:$0xff] }
 0x817   :  { %v5793_v31 = vmax.f32 %v4959_v35, %v5291_v28  ;;  %v5794_v8 = vmax.f32 %v4960_v58, %v5676_v29  ;;  %6381 = vperm.xlu1 %7372, %v5993_v32   ;;  %v7213_v26 = vpop.f32.mrf.mxu1 }
 0x818   :  { %v4705_v54 = vpop.permute.xlu0 %4704 }
 0x819   :  { %v4366_v10 = vpop.permute.xlu1 %4365  ;;  %v7214_v14 = vpop.f32.mrf.mxu1  ;;  %v5935_v19 = vsel %vm5827_vm14, %v4960_v58, %v5794_v8  ;;  %v5934_v2 = vsel %vm5826_vm1, %v4959_v35, %v5793_v31 }
 0x81a   :  { %6396 = vperm.xlu0 %7371, %v5996_v60   ;;  %v16598_v48 = vadd.f32 %v7214_v14, %v7213_v26  ;;  %7142 = vmatprep.mubr.msk.f32.mxu1 %vm159_vm0, %v5935_v19  ;;  %v4843_v9 = vsel %vm4788_vm11, %v4366_v10, %v4705_v54 }
 0x81b   :  { %6391 = vperm.xlu1 %7372, %v5995_v52   ;;  %v7216_v22 = vpop.f32.mrf.mxu1  ;;  %6862 = vmatmul.mubr.f32.gmra.mxu1 %v5934_v2  ;;  %v4962_v49 = vmax.f32 %v16108_v46, %v4843_v9 }
 0x81c   :  { %v5200_v20 = vpop.permute.xlu0 %5199 }
 0x81d   :  { %v7645_v23 = vpop.permute.xlu1 %7644  ;;  %v7217_v56 = vpop.f32.mrf.mxu1 }
 0x81e   :  { %v7646_v24 = vunpack.i.l.bf16 %v7645_v23  ;;  %6406 = vperm.xlu0 %7371, %v5998_v51   ;;  %v16608_v27 = vadd.f32 %v7217_v56, %v7216_v22  ;;  %v7647_v46 = vunpack.i.h.bf16 %v7645_v23  ;;  %v6003_v22 = vld [vmem:[%s17143_s4 + $0x78] sm:$0xff] }
 0x81f   :  { %6401 = vperm.xlu1 %7372, %v5997_v38   ;;  %v7219_v43 = vpop.f32.mrf.mxu1 }
 0x820   :  { %v4458_v63 = vsel %vm4403_vm13, %v7646_v24, %v4366_v10  ;;  %v7650_v4 = vpop.permute.xlu0 %7649 }
 0x821   :  { %v7651_v44 = vunpack.i.l.bf16 %v7650_v4  ;;  %v5539_v6 = vpop.permute.xlu1 %5538  ;;  %v7220_v61 = vpop.f32.mrf.mxu1  ;;  %v4961_v55 = vmax.f32 %v16096_v17, %v4458_v63  ;;  %v6001_v17 = vld [vmem:[%s17143_s4 + $0x68] sm:$0xff]  ;;  %v7652_v19 = vunpack.i.h.bf16 %v7650_v4 }
 0x822   :  { %v5677_v30 = vsel %vm5622_vm12, %v5200_v20, %v5539_v6  ;;  %6416 = vperm.xlu0 %7371, %v6000_v3   ;;  %v16620_v32 = vadd.f32 %v7220_v61, %v7219_v43 }
 0x823   :  { %v5292_v35 = vsel %vm5237_vm15, %v7651_v44, %v5200_v20  ;;  %v5796_v58 = vmax.f32 %v4962_v49, %v5677_v30  ;;  %6411 = vperm.xlu1 %7372, %v5999_v45   ;;  %v7222_v33 = vpop.f32.mrf.mxu1 }
 0x824   :  { %v4707_v28 = vpop.permute.xlu0 %4706  ;;  %v5795_v29 = vmax.f32 %v4961_v55, %v5292_v35 }
 0x825   :  { %v4370_v31 = vpop.permute.xlu1 %4369  ;;  %v7223_v8 = vpop.f32.mrf.mxu1  ;;  %v5937_v26 = vsel %vm5827_vm14, %v4962_v49, %v5796_v58 }
 0x826   :  { %v4459_v60 = vsel %vm4403_vm13, %v7647_v46, %v4370_v31  ;;  %v4844_v54 = vsel %vm4788_vm11, %v4370_v31, %v4707_v28  ;;  %6426 = vperm.xlu0 %7371, %v6002_v11   ;;  %v16633_v52 = vadd.f32 %v7223_v8, %v7222_v33  ;;  %7143 = vmatprep.mubr.msk.f32.mxu1 %vm159_vm0, %v5937_v26 }
 0x827   :  { %6421 = vperm.xlu1 %7372, %v6001_v17   ;;  %v7225_v10 = vpop.f32.mrf.mxu1  ;;  %v5936_v14 = vsel %vm5826_vm1, %v4961_v55, %v5795_v29  ;;  %v4963_v51 = vmax.f32 %v16101_v1, %v4459_v60  ;;  %v4964_v20 = vmax.f32 %v16187_v7, %v4844_v54 }
 0x828   :  { %v5541_v2 = vpop.permute.xlu0 %5540  ;;  %6867 = vmatmul.mubr.f32.gmra.mxu1 %v5936_v14 }
 0x829   :  { %v5204_v38 = vpop.permute.xlu1 %5203  ;;  %v7226_v23 = vpop.f32.mrf.mxu1 }
 0x82a   :  { %v5293_v56 = vsel %vm5237_vm15, %v7652_v19, %v5204_v38  ;;  %v5678_v9 = vsel %vm5622_vm12, %v5204_v38, %v5541_v2  ;;  %v16645_v24 = vadd.f32 %v7226_v23, %v7225_v10 }
 0x82b   :  { %v5797_v43 = vmax.f32 %v4963_v51, %v5293_v56  ;;  %v5798_v3 = vmax.f32 %v4964_v20, %v5678_v9  ;;  %6431 = vperm.xlu1 %7372, %v6003_v22   ;;  %v7228_v63 = vpop.f32.mrf.mxu1 }
 0x82c   :  { %v4709_v4 = vpop.permute.xlu0 %4708 }
 0x82d   :  { %v4374_v45 = vpop.permute.xlu1 %4373  ;;  %v7229_v49 = vpop.f32.mrf.mxu1  ;;  %v5939_v1 = vsel %vm5827_vm14, %v4964_v20, %v5798_v3  ;;  %v5938_v7 = vsel %vm5826_vm1, %v4963_v51, %v5797_v43 }
 0x82e   :  { %v16651_v44 = vadd.f32 %v7229_v49, %v7228_v63  ;;  %7144 = vmatprep.mubr.msk.f32.mxu1 %vm159_vm0, %v5939_v1  ;;  %v4845_v35 = vsel %vm4788_vm11, %v4374_v45, %v4709_v4 }
 0x82f   :  { %v7231_v6 = vpop.f32.mrf.mxu1  ;;  %6872 = vmatmul.mubr.f32.gmra.mxu1 %v5938_v7  ;;  %v4966_v17 = vmax.f32 %v16233_v47, %v4845_v35 }
 0x830   :  { %v5208_v61 = vpop.permute.xlu0 %5207 }
 0x831   :  { %v7655_v55 = vpop.permute.xlu1 %7654  ;;  %v7232_v30 = vpop.f32.mrf.mxu1 }
 0x832   :  { %v7656_v58 = vunpack.i.l.bf16 %v7655_v55  ;;  %v16655_v33 = vadd.f32 %v7232_v30, %v7231_v6  ;;  %v7657_v2 = vunpack.i.h.bf16 %v7655_v55 }
 0x833   :  { %v7234_v11 = vpop.f32.mrf.mxu1 }
 0x834   :  { %v4460_v46 = vsel %vm4403_vm13, %v7656_v58, %v4374_v45  ;;  %v7660_v28 = vpop.permute.xlu0 %7659 }
 0x835   :  { %v7661_v29 = vunpack.i.l.bf16 %v7660_v28  ;;  %v5543_v31 = vpop.permute.xlu1 %5542  ;;  %v7235_v8 = vpop.f32.mrf.mxu1  ;;  %v4965_v26 = vmax.f32 %v16221_v16, %v4460_v46  ;;  %v7662_v3 = vunpack.i.h.bf16 %v7660_v28 }
 0x836   :  { %v5679_v60 = vsel %vm5622_vm12, %v5208_v61, %v5543_v31  ;;  %v16661_v54 = vadd.f32 %v7235_v8, %v7234_v11 }
 0x837   :  { %v5294_v10 = vsel %vm5237_vm15, %v7661_v29, %v5208_v61  ;;  %v5800_v14 = vmax.f32 %v4966_v17, %v5679_v60  ;;  %v7237_v19 = vpop.f32.mrf.mxu1 }
 0x838   :  { %v4711_v22 = vpop.permute.xlu0 %4710  ;;  %v5799_v51 = vmax.f32 %v4965_v26, %v5294_v10 }
 0x839   :  { %v4378_v20 = vpop.permute.xlu1 %4377  ;;  %v7238_v38 = vpop.f32.mrf.mxu1  ;;  %v5941_v47 = vsel %vm5827_vm14, %v4966_v17, %v5800_v14 }
 0x83a   :  { %v4461_v23 = vsel %vm4403_vm13, %v7657_v2, %v4378_v20  ;;  %v4846_v16 = vsel %vm4788_vm11, %v4378_v20, %v4711_v22  ;;  %v16668_v56 = vadd.f32 %v7238_v38, %v7237_v19  ;;  %7145 = vmatprep.mubr.msk.f32.mxu1 %vm159_vm0, %v5941_v47  ;;  %v5940_v9 = vsel %vm5826_vm1, %v4965_v26, %v5799_v51 }
 0x83b   :  { %v7240_v43 = vpop.f32.mrf.mxu1  ;;  %6877 = vmatmul.mubr.f32.gmra.mxu1 %v5940_v9  ;;  %v4967_v4 = vmax.f32 %v16225_v13, %v4461_v23  ;;  %v4968_v45 = vmax.f32 %v16280_v0, %v4846_v16 }
 0x83c   :  { %v5545_v63 = vpop.permute.xlu0 %5544 }
 0x83d   :  { %v5212_v49 = vpop.permute.xlu1 %5211  ;;  %v7241_v1 = vpop.f32.mrf.mxu1 }
 0x83e   :  { %v5295_v7 = vsel %vm5237_vm15, %v7662_v3, %v5212_v49  ;;  %v5680_v6 = vsel %vm5622_vm12, %v5212_v49, %v5545_v63  ;;  %v16677_v61 = vadd.f32 %v7241_v1, %v7240_v43 }
 0x83f   :  { %v5801_v55 = vmax.f32 %v4967_v4, %v5295_v7  ;;  %v5802_v30 = vmax.f32 %v4968_v45, %v5680_v6  ;;  %v7243_v35 = vpop.f32.mrf.mxu1 }
 0x840   :  { %v4713_v58 = vpop.permute.xlu0 %4712 }
 0x841   :  { %v4382_v11 = vpop.permute.xlu1 %4381  ;;  %v7244_v46 = vpop.f32.mrf.mxu1  ;;  %v5943_v28 = vsel %vm5827_vm14, %v4968_v45, %v5802_v30  ;;  %v5942_v13 = vsel %vm5826_vm1, %v4967_v4, %v5801_v55 }
 0x842   :  { %v16683_v0 = vadd.f32 %v7244_v46, %v7243_v35  ;;  %7146 = vmatprep.mubr.msk.f32.mxu1 %vm159_vm0, %v5943_v28  ;;  %v4847_v8 = vsel %vm4788_vm11, %v4382_v11, %v4713_v58 }
 0x843   :  { %6882 = vmatmul.mubr.f32.gmra.mxu1 %v5942_v13  ;;  %v4970_v22 = vmax.f32 %v16315_v57, %v4847_v8 }
 0x844   :  { %v5216_v17 = vpop.permute.xlu0 %5215  ;;  %v7246_v29 = vpop.f32.mrf.mxu1 }
 0x845   :  { %v7665_v31 = vpop.permute.xlu1 %7664 }
 0x846   :  { %v7666_v26 = vunpack.i.l.bf16 %v7665_v31  ;;  %v7247_v60 = vpop.f32.mrf.mxu1  ;;  %v7667_v43 = vunpack.i.h.bf16 %v7665_v31 }
 0x847   :  { %v16687_v10 = vadd.f32 %v7247_v60, %v7246_v29 }
 0x848   :  { %v4462_v14 = vsel %vm4403_vm13, %v7666_v26, %v4382_v11  ;;  %v7670_v19 = vpop.permute.xlu0 %7669  ;;  %v16690_v2 = vpop.f32.mrf.mxu1 }
 0x849   :  { %v7671_v51 = vunpack.i.l.bf16 %v7670_v19  ;;  %v5547_v20 = vpop.permute.xlu1 %5546  ;;  %v4969_v38 = vmax.f32 %v16302_v5, %v4462_v14  ;;  %v7672_v6 = vunpack.i.h.bf16 %v7670_v19 }
 0x84a   :  { %v5681_v47 = vsel %vm5622_vm12, %v5216_v17, %v5547_v20  ;;  %v6760_v23 = vpop.f32.mrf.mxu1 }
 0x84b   :  { %v5296_v16 = vsel %vm5237_vm15, %v7671_v51, %v5216_v17  ;;  %v5804_v9 = vmax.f32 %v4970_v22, %v5681_v47 }
 0x84c   :  { %v4715_v3 = vpop.permute.xlu0 %4714  ;;  %v16696_v63 = vpop.f32.mrf.mxu1  ;;  %v5803_v4 = vmax.f32 %v4969_v38, %v5296_v16 }
 0x84d   :  { %v4386_v45 = vpop.permute.xlu1 %4385  ;;  %v5945_v49 = vsel %vm5827_vm14, %v4970_v22, %v5804_v9 }
 0x84e   :  { %v4463_v57 = vsel %vm4403_vm13, %v7667_v43, %v4386_v45  ;;  %v4848_v1 = vsel %vm4788_vm11, %v4386_v45, %v4715_v3  ;;  %v6765_v5 = vpop.f32.mrf.mxu1  ;;  %7147 = vmatprep.mubr.msk.f32.mxu1 %vm159_vm0, %v5945_v49  ;;  %v5944_v7 = vsel %vm5826_vm1, %v4969_v38, %v5803_v4 }
 0x84f   :  { %6887 = vmatmul.mubr.f32.gmra.mxu1 %v5944_v7  ;;  %v4971_v35 = vmax.f32 %v16308_v39, %v4463_v57  ;;  %v4972_v58 = vmax.f32 %v16367_v36, %v4848_v1 }
 0x850   :  { %v5549_v55 = vpop.permute.xlu0 %5548  ;;  %v16705_v30 = vpop.f32.mrf.mxu1 }
 0x851   :  { %v5220_v11 = vpop.permute.xlu1 %5219 }
 0x852   :  { %v5297_v46 = vsel %vm5237_vm15, %v7672_v6, %v5220_v11  ;;  %v5682_v28 = vsel %vm5622_vm12, %v5220_v11, %v5549_v55  ;;  %v6770_v13 = vpop.f32.mrf.mxu1 }
 0x853   :  { %v5805_v17 = vmax.f32 %v4971_v35, %v5297_v46  ;;  %v5806_v29 = vmax.f32 %v4972_v58, %v5682_v28 }
 0x854   :  { %v4717_v31 = vpop.permute.xlu0 %4716  ;;  %v16711_v8 = vpop.f32.mrf.mxu1 }
 0x855   :  { %v4390_v26 = vpop.permute.xlu1 %4389  ;;  %v5947_v60 = vsel %vm5827_vm14, %v4972_v58, %v5806_v29  ;;  %v5946_v39 = vsel %vm5826_vm1, %v4971_v35, %v5805_v17 }
 0x856   :  { %v6775_v14 = vpop.f32.mrf.mxu1  ;;  %7148 = vmatprep.mubr.msk.f32.mxu1 %vm159_vm0, %v5947_v60  ;;  %v4849_v51 = vsel %vm4788_vm11, %v4390_v26, %v4717_v31 }
 0x857   :  { %6892 = vmatmul.mubr.f32.gmra.mxu1 %v5946_v39  ;;  %v4974_v9 = vmax.f32 %v16401_v59, %v4849_v51 }
 0x858   :  { %v5224_v36 = vpop.permute.xlu0 %5223  ;;  %v16718_v19 = vpop.f32.mrf.mxu1 }
 0x859   :  { %v7675_v22 = vpop.permute.xlu1 %7674 }
 0x85a   :  { %v7676_v20 = vunpack.i.l.bf16 %v7675_v22  ;;  %v6780_v38 = vpop.f32.mrf.mxu1  ;;  %v7677_v5 = vunpack.i.h.bf16 %v7675_v22 }
 0x85c   :  { %v4464_v47 = vsel %vm4403_vm13, %v7676_v20, %v4390_v26  ;;  %v7680_v23 = vpop.permute.xlu0 %7679  ;;  %v16722_v16 = vpop.f32.mrf.mxu1 }
 0x85d   :  { %v7681_v43 = vunpack.i.l.bf16 %v7680_v23  ;;  %v5551_v3 = vpop.permute.xlu1 %5550  ;;  %v4973_v4 = vmax.f32 %v16390_v41, %v4464_v47  ;;  %v7682_v28 = vunpack.i.h.bf16 %v7680_v23 }
 0x85e   :  { %v5683_v45 = vsel %vm5622_vm12, %v5224_v36, %v5551_v3  ;;  %v6785_v49 = vpop.f32.mrf.mxu1 }
 0x85f   :  { %v5298_v57 = vsel %vm5237_vm15, %v7681_v43, %v5224_v36  ;;  %v5808_v1 = vmax.f32 %v4974_v9, %v5683_v45 }
 0x860   :  { %v4719_v7 = vpop.permute.xlu0 %4718  ;;  %v16728_v6 = vpop.f32.mrf.mxu1  ;;  %v5807_v55 = vmax.f32 %v4973_v4, %v5298_v57 }
 0x861   :  { %v4394_v35 = vpop.permute.xlu1 %4393  ;;  %v5949_v58 = vsel %vm5827_vm14, %v4974_v9, %v5808_v1 }
 0x862   :  { %v4465_v59 = vsel %vm4403_vm13, %v7677_v5, %v4394_v35  ;;  %v4850_v11 = vsel %vm4788_vm11, %v4394_v35, %v4719_v7  ;;  %v6790_v41 = vpop.f32.mrf.mxu1  ;;  %7149 = vmatprep.mubr.msk.f32.mxu1 %vm159_vm0, %v5949_v58  ;;  %v5948_v46 = vsel %vm5826_vm1, %v4973_v4, %v5807_v55 }
 0x863   :  { %6897 = vmatmul.mubr.f32.gmra.mxu1 %v5948_v46  ;;  %v4975_v29 = vmax.f32 %v16394_v12, %v4465_v59  ;;  %v4976_v31 = vmax.f32 %v16453_v18, %v4850_v11 }
 0x864   :  { %v5553_v13 = vpop.permute.xlu0 %5552  ;;  %v16737_v17 = vpop.f32.mrf.mxu1 }
 0x865   :  { %v5228_v26 = vpop.permute.xlu1 %5227 }
 0x866   :  { %v5299_v60 = vsel %vm5237_vm15, %v7682_v28, %v5228_v26  ;;  %v5684_v39 = vsel %vm5622_vm12, %v5228_v26, %v5553_v13  ;;  %v6795_v14 = vpop.f32.mrf.mxu1 }
 0x867   :  { %v5809_v36 = vmax.f32 %v4975_v29, %v5299_v60  ;;  %v5810_v22 = vmax.f32 %v4976_v31, %v5684_v39 }
 0x868   :  { %v4721_v51 = vpop.permute.xlu0 %4720  ;;  %v16743_v20 = vpop.f32.mrf.mxu1 }
 0x869   :  { %v4398_v38 = vpop.permute.xlu1 %4397  ;;  %v5951_v47 = vsel %vm5827_vm14, %v4976_v31, %v5810_v22  ;;  %v5950_v12 = vsel %vm5826_vm1, %v4975_v29, %v5809_v36 }
 0x86a   :  { %v6800_v23 = vpop.f32.mrf.mxu1  ;;  %7150 = vmatprep.mubr.msk.f32.mxu1 %vm159_vm0, %v5951_v47  ;;  %v4851_v3 = vsel %vm4788_vm11, %v4398_v38, %v4721_v51 }
 0x86b   :  { %6902 = vmatmul.mubr.f32.gmra.mxu1 %v5950_v12  ;;  %v4978_v5 = vmax.f32 %v16487_v50, %v4851_v3 }
 0x86c   :  { %v5232_v18 = vpop.permute.xlu0 %5231  ;;  %v16750_v9 = vpop.f32.mrf.mxu1 }
 0x86d   :  { %v7685_v43 = vpop.permute.xlu1 %7684 }
 0x86e   :  { %v7686_v4 = vunpack.i.l.bf16 %v7685_v43  ;;  %v6805_v45 = vpop.f32.mrf.mxu1  ;;  %v7687_v26 = vunpack.i.h.bf16 %v7685_v43 }
 0x870   :  { %v4466_v49 = vsel %vm4403_vm13, %v7686_v4, %v4398_v38  ;;  %v5230_v57 = vpop.permute.xlu0 %5229  ;;  %v16754_v1 = vpop.f32.mrf.mxu1 }
 0x871   :  { %v4977_v7 = vmax.f32 %v16476_v40, %v4466_v49  ;;  %v5555_v55 = vpop.permute.xlu1 %5554  ;;  %v5300_v35 = vsel %vm5237_vm15, %v5230_v57, %v5232_v18 }
 0x872   :  { %v5685_v58 = vsel %vm5622_vm12, %v5232_v18, %v5555_v55  ;;  %v6810_v59 = vpop.f32.mrf.mxu1 }
 0x873   :  { %v5811_v11 = vmax.f32 %v4977_v7, %v5300_v35  ;;  %v5812_v41 = vmax.f32 %v4978_v5, %v5685_v58 }
 0x874   :  { %v4723_v46 = vpop.permute.xlu0 %4722  ;;  %v16760_v28 = vpop.f32.mrf.mxu1 }
 0x875   :  { %v4402_v13 = vpop.permute.xlu1 %4401  ;;  %v5953_v29 = vsel %vm5827_vm14, %v4978_v5, %v5812_v41  ;;  %v5952_v50 = vsel %vm5826_vm1, %v4977_v7, %v5811_v11 }
 0x876   :  { %v4852_v40 = vsel %vm4788_vm11, %v4402_v13, %v4723_v46  ;;  %v6815_v31 = vpop.f32.mrf.mxu1  ;;  %7151 = vmatprep.mubr.msk.f32.mxu1 %vm159_vm0, %v5953_v29  ;;  %v4467_v22 = vsel %vm4403_vm13, %v7687_v26, %v4402_v13 }
 0x877   :  { %6907 = vmatmul.mubr.f32.gmra.mxu1 %v5952_v50  ;;  %v4980_v39 = vmax.f32 %v16527_v15, %v4852_v40  ;;  %v4979_v12 = vmax.f32 %v16480_v25, %v4467_v22  ;;  %v7905_v25 = vld [vmem:[%s17142_s3 + $0xe8] sm:$0xff] }
 0x878   :  { %v16768_v60 = vpop.f32.mrf.mxu1  ;;  %v5557_v14 = vpop.permute.xlu0 %5556 }
 0x879   :  { %v5236_v36 = vpop.permute.xlu1 %5235 }
 0x87a   :  { %v5686_v51 = vsel %vm5622_vm12, %v5236_v36, %v5557_v14  ;;  %v6820_v38 = vpop.f32.mrf.mxu1 }
 0x87b   :  { %v5814_v47 = vmax.f32 %v4980_v39, %v5686_v51 }
 0x87d   :  { %v5234_v23 = vpop.permute.xlu1 %5233  ;;  %v5955_v18 = vsel %vm5827_vm14, %v4980_v39, %v5814_v47 }
 0x87e   :  { %v5301_v43 = vsel %vm5237_vm15, %v5234_v23, %v5236_v36  ;;  %7152 = vmatprep.mubr.msk.f32.mxu1 %vm159_vm0, %v5955_v18 }
 0x87f   :  { %v5813_v3 = vmax.f32 %v4979_v12, %v5301_v43  ;;  %v16778_v15 = vpop.f32.mrf.mxu1 }
 0x881   :  { %v6825_v4 = vpop.f32.mrf.mxu1  ;;  %v5954_v45 = vsel %vm5826_vm1, %v4979_v12, %v5813_v3 }
 0x882   :  { %6912 = vmatmul.mubr.f32.gmra.mxu1 %v5954_v45 }
 0x883   :  { %7051 = vmatprep.mubr.f32.mxu1 %v7905_v25 }
 0x885   :  { %v16785_v53 = vpop.permute.xlu0 %6356 }
 0x886   :  { %v6501_v49 = vadd.f32 %v16544_v42, %v16785_v53 }
 0x888   :  { %6580 = vst.msk [vmem:[%s17144_s8] sm:$0xff] %vm6579_vm2, %v6501_v49 }
 0x889   :  { %v16793_v57 = vpop.permute.xlu0 %6366 }
 0x88a   :  { %v6511_v34 = vadd.f32 %v16571_v62, %v16793_v57  ;;  %v16797_v5 = vpop.permute.xlu1 %6361 }
 0x88b   :  { %v6506_v7 = vadd.f32 %v16558_v21, %v16797_v5 }
 0x88c   :  { %6582 = vst.msk [vmem:[%s17144_s8 + $0x10] sm:$0xff] %vm6579_vm2, %v6511_v34 }
 0x88d   :  { %6581 = vst.msk [vmem:[%s17144_s8 + $0x8] sm:$0xff] %vm6579_vm2, %v6506_v7  ;;  %v16809_v42 = vpop.permute.xlu0 %6376 }
 0x88e   :  { %v6521_v62 = vadd.f32 %v16598_v48, %v16809_v42  ;;  %v16813_v55 = vpop.permute.xlu1 %6371 }
 0x88f   :  { %v6516_v21 = vadd.f32 %v16586_v37, %v16813_v55 }
 0x890   :  { %6584 = vst.msk [vmem:[%s17144_s8 + $0x20] sm:$0xff] %vm6579_vm2, %v6521_v62 }
 0x891   :  { %6583 = vst.msk [vmem:[%s17144_s8 + $0x18] sm:$0xff] %vm6579_vm2, %v6516_v21  ;;  %v16825_v35 = vpop.permute.xlu0 %6386 }
 0x892   :  { %v6531_v48 = vadd.f32 %v16620_v32, %v16825_v35  ;;  %v16829_v58 = vpop.permute.xlu1 %6381 }
 0x893   :  { %v6526_v37 = vadd.f32 %v16608_v27, %v16829_v58 }
 0x894   :  { %6586 = vst.msk [vmem:[%s17144_s8 + $0x30] sm:$0xff] %vm6579_vm2, %v6531_v48  ;;  %v16837_v59 = vpop.f32.mrf.mxu1 }
 0x895   :  { %6585 = vst.msk [vmem:[%s17144_s8 + $0x28] sm:$0xff] %vm6579_vm2, %v6526_v37  ;;  %v16843_v11 = vpop.permute.xlu0 %6396 }
 0x896   :  { %v6541_v32 = vadd.f32 %v16645_v24, %v16843_v11  ;;  %v16847_v41 = vpop.permute.xlu1 %6391  ;;  %v6830_v27 = vpop.f32.mrf.mxu1 }
 0x897   :  { %v6536_v46 = vadd.f32 %v16633_v52, %v16847_v41 }
 0x898   :  { %6588 = vst.msk [vmem:[%s17144_s8 + $0x40] sm:$0xff] %vm6579_vm2, %v6541_v32 }
 0x899   :  { %6587 = vst.msk [vmem:[%s17144_s8 + $0x38] sm:$0xff] %vm6579_vm2, %v6536_v46  ;;  %v16859_v13 = vpop.permute.xlu0 %6406 }
 0x89a   :  { %v6551_v24 = vadd.f32 %v16655_v33, %v16859_v13  ;;  %v16863_v29 = vpop.permute.xlu1 %6401 }
 0x89b   :  { %v6546_v52 = vadd.f32 %v16651_v44, %v16863_v29 }
 0x89c   :  { %6590 = vst.msk [vmem:[%s17144_s8 + $0x50] sm:$0xff] %vm6579_vm2, %v6551_v24 }
 0x89d   :  { %6589 = vst.msk [vmem:[%s17144_s8 + $0x48] sm:$0xff] %vm6579_vm2, %v6546_v52  ;;  %v16875_v50 = vpop.permute.xlu0 %6416 }
 0x89e   :  { %v6561_v33 = vadd.f32 %v16668_v56, %v16875_v50  ;;  %v16879_v40 = vpop.permute.xlu1 %6411 }
 0x89f   :  { %v6556_v44 = vadd.f32 %v16661_v54, %v16879_v40  ;;  %v6833_v31 = vpop.f32.mrf.mxu1 }
 0x8a0   :  { %6592 = vst.msk [vmem:[%s17144_s8 + $0x60] sm:$0xff] %vm6579_vm2, %v6561_v33 }
 0x8a1   :  { %6591 = vst.msk [vmem:[%s17144_s8 + $0x58] sm:$0xff] %vm6579_vm2, %v6556_v44  ;;  %v16891_v26 = vpop.permute.xlu0 %6426  ;;  %v6835_v39 = vpop.f32.mrf.mxu1 }
 0x8a2   :  { %v6571_v56 = vadd.f32 %v16683_v0, %v16891_v26  ;;  %v16895_v14 = vpop.permute.xlu1 %6421 }
 0x8a3   :  { %v6566_v54 = vadd.f32 %v16677_v61, %v16895_v14 }
 0x8a4   :  { %6594 = vst.msk [vmem:[%s17144_s8 + $0x70] sm:$0xff] %vm6579_vm2, %v6571_v56 }
 0x8a5   :  { %6593 = vst.msk [vmem:[%s17144_s8 + $0x68] sm:$0xff] %vm6579_vm2, %v6566_v54 }
 0x8a6   :  { %v16907_v36 = vpop.permute.xlu1 %6431 }
 0x8a7   :  { %v6576_v0 = vadd.f32 %v16687_v10, %v16907_v36 }
 0x8a9   :  { %6595 = vst.msk [vmem:[%s17144_s8 + $0x78] sm:$0xff] %vm6579_vm2, %v6576_v0 }
 0x8ab   :  { %v16915_v61 = vpop.f32.mrf.mxu1 }
 0x8ad   :  { %v6840_v22 = vpop.f32.mrf.mxu1 }
 0x8ae   :  { %v7923_v22 = vld [vmem:[%s17142_s3 + $0x70] sm:$0xff] }
 0x8b3   :  { %v16917_v51 = vpop.f32.mrf.mxu1 }
 0x8b5   :  { %v6845_v38 = vpop.f32.mrf.mxu1 }
 0x8b6   :  { %v7925_v38 = vld [vmem:[%s17142_s3 + $0x80] sm:$0xff] }
 0x8bf   :  { %v16919_v47 = vpop.f32.mrf.mxu1 }
 0x8c1   :  { %v6850_v12 = vpop.f32.mrf.mxu1 }
 0x8c2   :  { %v7927_v12 = vld [vmem:[%s17142_s3 + $0x90] sm:$0xff] }
 0x8c7   :  { %v16921_v23 = vpop.f32.mrf.mxu1 }
 0x8c9   :  { %v6855_v18 = vpop.f32.mrf.mxu1 }
 0x8ca   :  { %v7929_v18 = vld [vmem:[%s17142_s3 + $0xa0] sm:$0xff] }
 0x8d4   :  { %v16923_v43 = vpop.f32.mrf.mxu1 }
 0x8d6   :  { %v6860_v10 = vpop.f32.mrf.mxu1 }
 0x8d7   :  { %v7931_v10 = vld [vmem:[%s17142_s3 + $0xb0] sm:$0xff] }
 0x8db   :  { %v6863_v3 = vpop.f32.mrf.mxu1 }
 0x8dd   :  { %v6865_v4 = vpop.f32.mrf.mxu1 }
 0x8de   :  { %v7933_v4 = vld [vmem:[%s17142_s3 + $0xc0] sm:$0xff] }
 0x8e8   :  { %v6868_v45 = vpop.f32.mrf.mxu1 }
 0x8ea   :  { %v6870_v25 = vpop.f32.mrf.mxu1 }
 0x8eb   :  { %v7935_v25 = vld [vmem:[%s17142_s3 + $0xd0] sm:$0xff] }
 0x8ef   :  { %v6873_v49 = vpop.f32.mrf.mxu1 }
 0x8f1   :  { %v6875_v34 = vpop.f32.mrf.mxu1 }
 0x8fb   :  { %v6878_v7 = vpop.f32.mrf.mxu1 }
 0x8fd   :  { %v6880_v62 = vpop.f32.mrf.mxu1 }
 0x903   :  { %v6883_v21 = vpop.f32.mrf.mxu1 }
 0x905   :  { %v6885_v48 = vpop.f32.mrf.mxu1 }
 0x90f   :  { %v6888_v37 = vpop.f32.mrf.mxu1 }
 0x911   :  { %v6890_v32 = vpop.f32.mrf.mxu1 }
 0x917   :  { %v6893_v27 = vpop.f32.mrf.mxu1 }
 0x919   :  { %v6895_v46 = vpop.f32.mrf.mxu1 }
 0x923   :  { %v6898_v24 = vpop.f32.mrf.mxu1 }
 0x925   :  { %v6900_v52 = vpop.f32.mrf.mxu1 }
 0x92b   :  { %v6903_v33 = vpop.f32.mrf.mxu1 }
 0x92d   :  { %v6905_v44 = vpop.f32.mrf.mxu1 }
 0x937   :  { %v6908_v39 = vpop.f32.mrf.mxu1 }
 0x939   :  { %v6910_v56 = vpop.f32.mrf.mxu1 }
 0x942   :  { %v6913_v54 = vpop.f32.mrf.mxu1 }
 0x943   :  { %7249 = vmatprep.subr.mxu0 %v6913_v54  ;;  %7329 = vmatprep.subr.mxu1 %v6913_v54 }
 0x944   :  { %v6915_v0 = vpop.f32.mrf.mxu1  ;;  %7250 = vmatpush3.msra.mxu0 %v6833_v31  ;;  %7345 = vmatpush3.msra.mxu1 %v6833_v31  ;;  %v7921_v31 = vld [vmem:[%s17142_s3 + $0x60] sm:$0xff] }
 0x945   :  { %7251 = vmatprep.subr.mxu0 %v6908_v39  ;;  %7330 = vmatprep.subr.mxu1 %v6908_v39 }
 0x946   :  { %7252 = vmatpush3.msra.mxu0 %v16837_v59  ;;  %7346 = vmatpush3.msra.mxu1 %v16837_v59  ;;  %v7920_v59 = vld [vmem:[%s17142_s3 + $0x68] sm:$0xff] }
 0x947   :  { %7253 = vmatprep.subr.mxu0 %v6903_v33  ;;  %7331 = vmatprep.subr.mxu1 %v6903_v33 }
 0x948   :  { %7254 = vmatpush3.msra.mxu0 %v16778_v15  ;;  %7347 = vmatpush3.msra.mxu1 %v16778_v15  ;;  %v7919_v15 = vld [vmem:[%s17142_s3 + $0x50] sm:$0xff] }
 0x949   :  { %7255 = vmatprep.subr.mxu0 %v6898_v24  ;;  %7332 = vmatprep.subr.mxu1 %v6898_v24 }
 0x94a   :  { %7256 = vmatpush3.msra.mxu0 %v16768_v60  ;;  %7348 = vmatpush3.msra.mxu1 %v16768_v60  ;;  %v7918_v60 = vld [vmem:[%s17142_s3 + $0x58] sm:$0xff] }
 0x94b   :  { %7257 = vmatprep.subr.mxu0 %v6893_v27  ;;  %7333 = vmatprep.subr.mxu1 %v6893_v27 }
 0x94c   :  { %7258 = vmatpush3.msra.mxu0 %v16760_v28  ;;  %7349 = vmatpush3.msra.mxu1 %v16760_v28  ;;  %v7917_v28 = vld [vmem:[%s17142_s3 + $0x40] sm:$0xff] }
 0x94d   :  { %7259 = vmatprep.subr.mxu0 %v6888_v37  ;;  %7334 = vmatprep.subr.mxu1 %v6888_v37 }
 0x94e   :  { %7260 = vmatpush3.msra.mxu0 %v16754_v1  ;;  %7350 = vmatpush3.msra.mxu1 %v16754_v1  ;;  %v7916_v1 = vld [vmem:[%s17142_s3 + $0x48] sm:$0xff] }
 0x94f   :  { %7261 = vmatprep.subr.mxu0 %v6883_v21  ;;  %7335 = vmatprep.subr.mxu1 %v6883_v21 }
 0x950   :  { %7262 = vmatpush3.msra.mxu0 %v16750_v9  ;;  %7351 = vmatpush3.msra.mxu1 %v16750_v9  ;;  %v7915_v9 = vld [vmem:[%s17142_s3 + $0x30] sm:$0xff] }
 0x951   :  { %7263 = vmatprep.subr.mxu0 %v6878_v7  ;;  %7336 = vmatprep.subr.mxu1 %v6878_v7 }
 0x952   :  { %7264 = vmatpush3.msra.mxu0 %v16743_v20  ;;  %7352 = vmatpush3.msra.mxu1 %v16743_v20  ;;  %v7914_v20 = vld [vmem:[%s17142_s3 + $0x38] sm:$0xff] }
 0x953   :  { %7265 = vmatprep.subr.mxu0 %v6873_v49  ;;  %7337 = vmatprep.subr.mxu1 %v6873_v49 }
 0x954   :  { %7266 = vmatpush3.msra.mxu0 %v16737_v17  ;;  %7353 = vmatpush3.msra.mxu1 %v16737_v17  ;;  %v7913_v17 = vld [vmem:[%s17142_s3 + $0x20] sm:$0xff] }
 0x955   :  { %7267 = vmatprep.subr.mxu0 %v6868_v45  ;;  %7338 = vmatprep.subr.mxu1 %v6868_v45  ;;  %v7934_v45 = vld [vmem:[%s17142_s3 + $0xd8] sm:$0xff] }
 0x956   :  { %7268 = vmatpush3.msra.mxu0 %v16728_v6  ;;  %7354 = vmatpush3.msra.mxu1 %v16728_v6  ;;  %v7912_v6 = vld [vmem:[%s17142_s3 + $0x28] sm:$0xff] }
 0x957   :  { %7269 = vmatprep.subr.mxu0 %v6863_v3  ;;  %7339 = vmatprep.subr.mxu1 %v6863_v3  ;;  %v7932_v3 = vld [vmem:[%s17142_s3 + $0xc8] sm:$0xff] }
 0x958   :  { %7270 = vmatpush3.msra.mxu0 %v16722_v16  ;;  %7355 = vmatpush3.msra.mxu1 %v16722_v16  ;;  %v7911_v16 = vld [vmem:[%s17142_s3 + $0xf0] sm:$0xff] }
 0x959   :  { %7271 = vmatprep.subr.mxu0 %v16923_v43  ;;  %7340 = vmatprep.subr.mxu1 %v16923_v43  ;;  %v7930_v43 = vld [vmem:[%s17142_s3 + $0xb8] sm:$0xff] }
 0x95a   :  { %7272 = vmatpush3.msra.mxu0 %v16718_v19  ;;  %7356 = vmatpush3.msra.mxu1 %v16718_v19  ;;  %v7909_v19 = vld [vmem:[%s17142_s3 + $0xf8] sm:$0xff] }
 0x95b   :  { %7273 = vmatprep.subr.mxu0 %v16921_v23  ;;  %7341 = vmatprep.subr.mxu1 %v16921_v23  ;;  %v7928_v23 = vld [vmem:[%s17142_s3 + $0xa8] sm:$0xff] }
 0x95c   :  { %7274 = vmatpush3.msra.mxu0 %v16711_v8  ;;  %7357 = vmatpush3.msra.mxu1 %v16711_v8  ;;  %v7907_v8 = vld [vmem:[%s17142_s3 + $0xe0] sm:$0xff] }
 0x95d   :  { %7275 = vmatprep.subr.mxu0 %v16919_v47  ;;  %7342 = vmatprep.subr.mxu1 %v16919_v47  ;;  %v7926_v47 = vld [vmem:[%s17142_s3 + $0x98] sm:$0xff] }
 0x95e   :  { %7276 = vmatpush3.msra.mxu0 %v16705_v30  ;;  %7358 = vmatpush3.msra.mxu1 %v16705_v30  ;;  %v7906_v30 = vld [vmem:[%s17142_s3] sm:$0xff] }
 0x95f   :  { %7277 = vmatprep.subr.mxu0 %v16917_v51  ;;  %7343 = vmatprep.subr.mxu1 %v16917_v51  ;;  %v7924_v51 = vld [vmem:[%s17142_s3 + $0x88] sm:$0xff] }
 0x960   :  { %7278 = vmatpush3.msra.mxu0 %v16696_v63  ;;  %7359 = vmatpush3.msra.mxu1 %v16696_v63  ;;  %v7908_v63 = vld [vmem:[%s17142_s3 + $0x18] sm:$0xff] }
 0x961   :  { %7279 = vmatprep.subr.mxu0 %v16915_v61  ;;  %7344 = vmatprep.subr.mxu1 %v16915_v61  ;;  %v7922_v61 = vld [vmem:[%s17142_s3 + $0x78] sm:$0xff] }
 0x962   :  { %7280 = vmatpush3.msra.mxu0 %v16690_v2  ;;  %7360 = vmatpush3.msra.mxu1 %v16690_v2  ;;  %v7910_v2 = vld [vmem:[%s17142_s3 + $0x10] sm:$0xff] }
 0x963   :  { %6982 = vmatmul.mubr.f32.vlgmr.msra.gmra.mxu0 %v7906_v30  ;;  %7052 = vmatmul.mubr.f32.vlgmr.msra.gmra.mxu1 %v7907_v8 }
 0x964   :  { %6986 = vmatprep.mubr.f32.mxu0 %v7908_v63  ;;  %7056 = vmatprep.mubr.f32.mxu1 %v7909_v19 }
 0x967   :  { %6987 = vmatmul.mubr.f32.gmra.mxu0 %v7910_v2  ;;  %7057 = vmatmul.mubr.f32.gmra.mxu1 %v7911_v16 }
 0x968   :  { %6991 = vmatprep.mubr.f32.mxu0 %v7912_v6 }
 0x96b   :  { %6992 = vmatmul.mubr.f32.gmra.mxu0 %v7913_v17 }
 0x96c   :  { %6996 = vmatprep.mubr.f32.mxu0 %v7914_v20 }
 0x96f   :  { %6997 = vmatmul.mubr.f32.gmra.mxu0 %v7915_v9 }
 0x970   :  { %7001 = vmatprep.mubr.f32.mxu0 %v7916_v1 }
 0x973   :  { %7002 = vmatmul.mubr.f32.gmra.mxu0 %v7917_v28 }
 0x974   :  { %7006 = vmatprep.mubr.f32.mxu0 %v7918_v60 }
 0x977   :  { %7007 = vmatmul.mubr.f32.gmra.mxu0 %v7919_v15 }
 0x978   :  { %7011 = vmatprep.mubr.f32.mxu0 %v7920_v59 }
 0x97b   :  { %7012 = vmatmul.mubr.f32.gmra.mxu0 %v7921_v31 }
 0x97c   :  { %7016 = vmatprep.mubr.f32.mxu0 %v7922_v61 }
 0x97f   :  { %7017 = vmatmul.mubr.f32.gmra.mxu0 %v7923_v22 }
 0x980   :  { %7021 = vmatprep.mubr.f32.mxu0 %v7924_v51 }
 0x983   :  { %7022 = vmatmul.mubr.f32.gmra.mxu0 %v7925_v38 }
 0x984   :  { %7026 = vmatprep.mubr.f32.mxu0 %v7926_v47 }
 0x987   :  { %7027 = vmatmul.mubr.f32.gmra.mxu0 %v7927_v12 }
 0x988   :  { %7031 = vmatprep.mubr.f32.mxu0 %v7928_v23 }
 0x98b   :  { %7032 = vmatmul.mubr.f32.gmra.mxu0 %v7929_v18 }
 0x98c   :  { %7036 = vmatprep.mubr.f32.mxu0 %v7930_v43 }
 0x98f   :  { %7037 = vmatmul.mubr.f32.gmra.mxu0 %v7931_v10 }
 0x990   :  { %7041 = vmatprep.mubr.f32.mxu0 %v7932_v3 }
 0x993   :  { %7042 = vmatmul.mubr.f32.gmra.mxu0 %v7933_v4 }
 0x994   :  { %7046 = vmatprep.mubr.f32.mxu0 %v7934_v45 }
 0x997   :  { %7047 = vmatmul.mubr.f32.gmra.mxu0 %v7935_v25 }
 0xa23   :  { %v7281_v49 = vpop.f32.mrf.mxu0  ;;  %v7323_v34 = vpop.f32.mrf.mxu1 }
 0xa25   :  { %v7282_v7 = vpop.f32.mrf.mxu0  ;;  %v7324_v62 = vpop.f32.mrf.mxu1 }
 0xa26   :  { %v7283_v21 = vadd.f32 %v7282_v7, %v7281_v49  ;;  %v7325_v48 = vadd.f32 %v7324_v62, %v7323_v34 }
 0xa27   :  { %v7284_v37 = vpop.f32.mrf.mxu0  ;;  %v7326_v32 = vpop.f32.mrf.mxu1 }
 0xa28   :  { %v6984_v27 = vadd.f32 %v7283_v21, %v16785_v53  ;;  %v7054_v46 = vadd.f32 %v7325_v48, %v16891_v26 }
 0xa29   :  { %v7285_v24 = vpop.f32.mrf.mxu0  ;;  %v7327_v52 = vpop.f32.mrf.mxu1 }
 0xa2a   :  { %7153 = vst.msk [vmem:[%s17144_s8 + $0x80] sm:$0xff] %vm6579_vm2, %v6984_v27  ;;  %7167 = vst.msk [vmem:[%s17144_s8 + $0xf0] sm:$0xff] %vm6579_vm2, %v7054_v46  ;;  %v7286_v33 = vadd.f32 %v7285_v24, %v7284_v37  ;;  %v7328_v44 = vadd.f32 %v7327_v52, %v7326_v32 }
 0xa2b   :  { %v7287_v39 = vpop.f32.mrf.mxu0 }
 0xa2c   :  { %v6989_v56 = vadd.f32 %v7286_v33, %v16797_v5  ;;  %v7059_v53 = vadd.f32 %v7328_v44, %v16907_v36 }
 0xa2d   :  { %v7288_v26 = vpop.f32.mrf.mxu0 }
 0xa2e   :  { %7154 = vst.msk [vmem:[%s17144_s8 + $0x88] sm:$0xff] %vm6579_vm2, %v6989_v56  ;;  %7168 = vst.msk [vmem:[%s17144_s8 + $0xf8] sm:$0xff] %vm6579_vm2, %v7059_v53  ;;  %v7289_v54 = vadd.f32 %v7288_v26, %v7287_v39 }
 0xa2f   :  { %v7290_v0 = vpop.f32.mrf.mxu0 }
 0xa30   :  { %v6994_v30 = vadd.f32 %v7289_v54, %v16793_v57 }
 0xa31   :  { %v7291_v8 = vpop.f32.mrf.mxu0 }
 0xa32   :  { %7155 = vst.msk [vmem:[%s17144_s8 + $0x90] sm:$0xff] %vm6579_vm2, %v6994_v30  ;;  %v7292_v5 = vadd.f32 %v7291_v8, %v7290_v0 }
 0xa33   :  { %v7293_v36 = vpop.f32.mrf.mxu0 }
 0xa34   :  { %v6999_v63 = vadd.f32 %v7292_v5, %v16813_v55 }
 0xa35   :  { %v7294_v19 = vpop.f32.mrf.mxu0 }
 0xa36   :  { %7156 = vst.msk [vmem:[%s17144_s8 + $0x98] sm:$0xff] %vm6579_vm2, %v6999_v63  ;;  %v7295_v2 = vadd.f32 %v7294_v19, %v7293_v36 }
 0xa37   :  { %v7296_v16 = vpop.f32.mrf.mxu0 }
 0xa38   :  { %v7004_v57 = vadd.f32 %v7295_v2, %v16809_v42 }
 0xa39   :  { %v7297_v6 = vpop.f32.mrf.mxu0 }
 0xa3a   :  { %7157 = vst.msk [vmem:[%s17144_s8 + $0xa0] sm:$0xff] %vm6579_vm2, %v7004_v57  ;;  %v7298_v17 = vadd.f32 %v7297_v6, %v7296_v16 }
 0xa3b   :  { %v7299_v20 = vpop.f32.mrf.mxu0 }
 0xa3c   :  { %v7009_v55 = vadd.f32 %v7298_v17, %v16829_v58 }
 0xa3d   :  { %v7300_v9 = vpop.f32.mrf.mxu0 }
 0xa3e   :  { %7158 = vst.msk [vmem:[%s17144_s8 + $0xa8] sm:$0xff] %vm6579_vm2, %v7009_v55  ;;  %v7301_v1 = vadd.f32 %v7300_v9, %v7299_v20 }
 0xa3f   :  { %v7302_v28 = vpop.f32.mrf.mxu0 }
 0xa40   :  { %v7014_v42 = vadd.f32 %v7301_v1, %v16825_v35 }
 0xa41   :  { %v7303_v60 = vpop.f32.mrf.mxu0 }
 0xa42   :  { %7159 = vst.msk [vmem:[%s17144_s8 + $0xb0] sm:$0xff] %vm6579_vm2, %v7014_v42  ;;  %v7304_v15 = vadd.f32 %v7303_v60, %v7302_v28 }
 0xa43   :  { %v7305_v59 = vpop.f32.mrf.mxu0 }
 0xa44   :  { %v7019_v58 = vadd.f32 %v7304_v15, %v16847_v41 }
 0xa45   :  { %v7306_v31 = vpop.f32.mrf.mxu0 }
 0xa46   :  { %7160 = vst.msk [vmem:[%s17144_s8 + $0xb8] sm:$0xff] %vm6579_vm2, %v7019_v58  ;;  %v7307_v61 = vadd.f32 %v7306_v31, %v7305_v59 }
 0xa47   :  { %v7308_v22 = vpop.f32.mrf.mxu0 }
 0xa48   :  { %v7024_v35 = vadd.f32 %v7307_v61, %v16843_v11 }
 0xa49   :  { %v7309_v51 = vpop.f32.mrf.mxu0 }
 0xa4a   :  { %7161 = vst.msk [vmem:[%s17144_s8 + $0xc0] sm:$0xff] %vm6579_vm2, %v7024_v35  ;;  %v7310_v38 = vadd.f32 %v7309_v51, %v7308_v22 }
 0xa4b   :  { %v7311_v47 = vpop.f32.mrf.mxu0 }
 0xa4c   :  { %v7029_v41 = vadd.f32 %v7310_v38, %v16863_v29 }
 0xa4d   :  { %v7312_v12 = vpop.f32.mrf.mxu0 }
 0xa4e   :  { %7162 = vst.msk [vmem:[%s17144_s8 + $0xc8] sm:$0xff] %vm6579_vm2, %v7029_v41  ;;  %v7313_v23 = vadd.f32 %v7312_v12, %v7311_v47 }
 0xa4f   :  { %v7314_v18 = vpop.f32.mrf.mxu0 }
 0xa50   :  { %v7034_v11 = vadd.f32 %v7313_v23, %v16859_v13 }
 0xa51   :  { %v7315_v43 = vpop.f32.mrf.mxu0 }
 0xa52   :  { %7163 = vst.msk [vmem:[%s17144_s8 + $0xd0] sm:$0xff] %vm6579_vm2, %v7034_v11  ;;  %v7316_v10 = vadd.f32 %v7315_v43, %v7314_v18 }
 0xa53   :  { %v7317_v3 = vpop.f32.mrf.mxu0 }
 0xa54   :  { %v7039_v29 = vadd.f32 %v7316_v10, %v16879_v40 }
 0xa55   :  { %v7318_v4 = vpop.f32.mrf.mxu0 }
 0xa56   :  { %7164 = vst.msk [vmem:[%s17144_s8 + $0xd8] sm:$0xff] %vm6579_vm2, %v7039_v29  ;;  %v7319_v45 = vadd.f32 %v7318_v4, %v7317_v3 }
 0xa57   :  { %v7320_v25 = vpop.f32.mrf.mxu0 }
 0xa58   :  { %v7044_v13 = vadd.f32 %v7319_v45, %v16875_v50 }
 0xa59   :  { %v7321_v49 = vpop.f32.mrf.mxu0 }
 0xa5a   :  { %7165 = vst.msk [vmem:[%s17144_s8 + $0xe0] sm:$0xff] %vm6579_vm2, %v7044_v13  ;;  %v7322_v34 = vadd.f32 %v7321_v49, %v7320_v25 }
 0xa5c   :  { %v7049_v7 = vadd.f32 %v7322_v34, %v16895_v14 }
 0xa5e   :  { %7166 = vst.msk [vmem:[%s17144_s8 + $0xe8] sm:$0xff] %vm6579_vm2, %v7049_v7 }

</bundles_post_ra>
